<compile_context>
chip_gen: v7x
topology: tpu7x:2x2x1
jax: 0.10.0
libtpu: 0.0.40
codegen_flags: <defaults>
</compile_context>

<pallas_src>
import functools
import math

import jax
import jax.numpy as jnp
from jax import lax
from jax.experimental import pallas as pl
from jax.experimental.pallas import tpu as pltpu


# --------------------------------- kernel ---------------------------------
def _norm(x, alpha, bias, eps, approx):
    """PyTorch `Norm`: alpha*(x-mean)/(std+eps)+bias; unbiased std; two-pass var."""
    d = x.shape[-1]
    mean = jnp.sum(x, axis=-1, keepdims=True) * (1.0 / d)
    diff = x - mean
    var = jnp.sum(diff * diff, axis=-1, keepdims=True) * (1.0 / (d - 1))
    inv = pl.reciprocal(jnp.sqrt(var) + eps, approx=approx)
    return alpha * diff * inv + bias


def _encoder_layer_kernel(
    x_ref,
    a1_ref, b1_ref,
    wq_ref, bq_ref, wk_ref, bk_ref, wv_ref, bv_ref, wo_ref, bo_ref,
    a2_ref, b2_ref,
    w1_ref, c1_ref, w2_ref, c2_ref,
    o_ref,
    *, heads, eps, compute_dtype, approx_recip,
):
    f32 = jnp.float32
    cd = compute_dtype
    # Exact multi-pass f32 only matters for the validation mode; bf16 MXU inputs
    # are single-pass regardless.
    prec = (lax.Precision.HIGHEST
            if jnp.dtype(cd) == jnp.dtype(jnp.float32) else None)

    x = x_ref[0].astype(f32)                               # (S, D)
    S, D = x.shape
    d_k = D // heads
    scale = 1.0 / math.sqrt(d_k)

    # ------- sub-layer 1: pre-norm + multi-head self-attention + residual -------
    x2 = _norm(x, a1_ref[...].astype(f32), b1_ref[...].astype(f32), eps, approx_recip)
    x2h = jnp.broadcast_to(x2.astype(cd), (heads, S, D))   # heads as leading batch axis

    # Batched-over-heads projections (weights pre-split per head in the wrapper).
    qh = jnp.einsum("hsd,hdk->hsk", x2h, wq_ref[...],
                    preferred_element_type=f32, precision=prec) + bq_ref[...]
    kh = jnp.einsum("hsd,hdk->hsk", x2h, wk_ref[...],
                    preferred_element_type=f32, precision=prec) + bk_ref[...]
    vh = jnp.einsum("hsd,hdk->hsk", x2h, wv_ref[...],
                    preferred_element_type=f32, precision=prec) + bv_ref[...]

    # One batched matmul per stage — no per-head Python loop, no lane slicing.
    scores = jnp.einsum("hqd,hkd->hqk", qh.astype(cd), kh.astype(cd),
                        preferred_element_type=f32, precision=prec) * scale
    # TODO(synk): mask is assumed None (module default); masked_fill path omitted.
    scores = scores - jnp.max(scores, axis=-1, keepdims=True)
    p = jnp.exp(scores)
    p = p * pl.reciprocal(jnp.sum(p, axis=-1, keepdims=True), approx=approx_recip)
    # TODO(synk): attention-prob dropout runs as identity (eval/inference mode).
    ctx = jnp.einsum("hqk,hkd->hqd", p.astype(cd), vh.astype(cd),
                     preferred_element_type=f32, precision=prec)      # (H, S, d_k)

    # concat(heads) @ Wo == sum_h ctx_h @ Wo[h]: one batched matmul + leading-axis
    # reduce (avoids an in-kernel (H,S,d_k)->(S,D) relayout).
    attn = jnp.einsum("hsk,hkn->hsn", ctx.astype(cd), wo_ref[...],
                      preferred_element_type=f32, precision=prec)     # (H, S, D)
    attn = jnp.sum(attn, axis=0) + bo_ref[...].astype(f32)            # (S, D)

    x = x + attn                    # dropout_1 == identity (eval)

    # ------------- sub-layer 2: pre-norm + feed-forward + residual --------------
    x2 = _norm(x, a2_ref[...].astype(f32), b2_ref[...].astype(f32), eps, approx_recip)
    h1 = jnp.dot(x2.astype(cd), w1_ref[...],
                 preferred_element_type=f32, precision=prec) + c1_ref[...].astype(f32)
    h1 = jnp.maximum(h1, 0.0)       # ReLU; FF dropout == identity (eval)
    ff = jnp.dot(h1.astype(cd), w2_ref[...],
                 preferred_element_type=f32, precision=prec) + c2_ref[...].astype(f32)
    x = x + ff                      # dropout_2 == identity (eval)

    # TODO(synk): for d_model < 128 a wrapper-side (B, S*D) lane-packing of the
    # output would avoid masked vst.msk stores; production d_model >= 128 is
    # already lane-dense.
    o_ref[0] = x.astype(o_ref.dtype)


# --------------------------------- wrapper ---------------------------------
def _const_index_map(rank):
    return lambda b: (0,) * rank


def _prepare_params(params, heads, d_model, compute_dtype):
    """Head-split attention weights, pad d_ff to a lane-dense multiple of 128,
    cast matmul weights to the compute dtype (biases / norm params stay f32)."""
    D = d_model
    d_k = D // heads
    f32 = jnp.float32
    cd = compute_dtype

    def split_w(w):     # (D, D) -> (H, D, d_k)
        return jnp.transpose(w.reshape(D, heads, d_k), (1, 0, 2)).astype(cd)

    def split_b(b):     # (1, D) -> (H, 1, d_k)
        return jnp.transpose(b.reshape(1, heads, d_k), (1, 0, 2)).astype(f32)

    wo_h = params["wo"].reshape(heads, d_k, D).astype(cd)   # rows are concat features

    d_ff = params["w1"].shape[1]
    d_ff_pad = ((d_ff + 127) // 128) * 128                  # 400 -> 512 etc.
    pad = d_ff_pad - d_ff
    w1 = jnp.pad(params["w1"], ((0, 0), (0, pad))).astype(cd)
    c1 = jnp.pad(params["c1"], ((0, 0), (0, pad))).astype(f32)
    w2 = jnp.pad(params["w2"], ((0, pad), (0, 0))).astype(cd)

    return (
        params["a1"].astype(f32), params["b1"].astype(f32),
        split_w(params["wq"]), split_b(params["bq"]),
        split_w(params["wk"]), split_b(params["bk"]),
        split_w(params["wv"]), split_b(params["bv"]),
        wo_h, params["bo"].astype(f32),
        params["a2"].astype(f32), params["b2"].astype(f32),
        w1, c1, w2, params["c2"].astype(f32),
    )


def _vmem_limit_bytes(ordered, S, D, heads, x_dtype, single_buffer_weights):
    MiB = 1024 * 1024
    d_ff_pad = ordered[12].shape[1]
    param_bytes = sum(int(p.size) * jnp.dtype(p.dtype).itemsize for p in ordered)
    weight_bufs = 1 if single_buffer_weights else 2
    io_bytes = 2 * 2 * S * D * jnp.dtype(x_dtype).itemsize          # x + out, double-buffered
    # rough bound on live f32 temporaries: residual/norm/attn slabs, q/k/v/ctx,
    # scores/probs, FFN hidden
    tmp_bytes = 4 * (8 * S * D + 2 * heads * S * S + 2 * S * d_ff_pad)
    est = weight_bufs * param_bytes + io_bytes + tmp_bytes

    try:
        phys = int(getattr(pltpu.get_tpu_info(), "vmem_capacity_bytes", 64 * MiB))
    except Exception:
        phys = 64 * MiB                     # conservative (v7x per-TC VMEM)
    cap = (phys * 3) // 4                   # leave headroom for pipeline buffers/scratch
    want = max((est * 5) // 4, 32 * MiB)    # never below any generation's default scoped limit
    return int(min(want, cap))


def _build_call(x_shape, x_dtype, ordered, heads, eps, compute_dtype,
                approx_recip, single_buffer_weights):
    B, S, D = x_shape
    kernel = functools.partial(
        _encoder_layer_kernel, heads=heads, eps=eps,
        compute_dtype=compute_dtype, approx_recip=approx_recip)

    def const_spec(p):
        idx = _const_index_map(p.ndim)
        if single_buffer_weights:
            # index_map never changes -> the default second pipeline buffer is dead VMEM
            return pl.BlockSpec(p.shape, idx, pipeline_mode=pl.Buffered(1))
        return pl.BlockSpec(p.shape, idx)

    in_specs = [pl.BlockSpec((1, S, D), lambda b: (b, 0, 0))]
    in_specs += [const_spec(p) for p in ordered]
    out_spec = pl.BlockSpec((1, S, D), lambda b: (b, 0, 0))

    vmem_limit = _vmem_limit_bytes(ordered, S, D, heads, x_dtype, single_buffer_weights)

    return pl.pallas_call(
        kernel,
        out_shape=jax.ShapeDtypeStruct((B, S, D), x_dtype),
        grid_spec=pltpu.PrefetchScalarGridSpec(
            num_scalar_prefetch=0,
            grid=(B,),
            in_specs=in_specs,
            out_specs=out_spec,
        ),
        compiler_params=pltpu.CompilerParams(
            dimension_semantics=("parallel",),
            vmem_limit_bytes=vmem_limit,
        ),
    )


def encoder_layer_forward(x, params, heads, eps=1e-6,
                          compute_dtype=jnp.bfloat16, approx_recip=True):
    """x: (B, S, D). params: dict of f32 JAX arrays (see __main__)."""
    B, S, D = x.shape
    ordered = _prepare_params(params, heads, D, compute_dtype)

    def run(single_buffer_weights):
        call = _build_call(x.shape, x.dtype, ordered, heads, eps, compute_dtype,
                           approx_recip, single_buffer_weights)
        return call(x, *ordered)

    try:
        return run(True)
    except Exception:
        # Fallback: if this JAX build rejects pl.Buffered(1) on the pallas_call
        # pipeline, default double-buffering is functionally identical.
        return run(False)


# ----------------------------- pure-JAX reference -----------------------------
def _ref_norm(x, a, b, eps):
    mean = x.mean(axis=-1, keepdims=True)
    var = ((x - mean) ** 2).sum(axis=-1, keepdims=True) / (x.shape[-1] - 1)
    return a * (x - mean) / (jnp.sqrt(var) + eps) + b


def _ref_encoder_layer(x, p, heads, eps=1e-6):
    B, S, D = x.shape
    d_k = D // heads
    x2 = _ref_norm(x, p["a1"], p["b1"], eps)
    q = x2 @ p["wq"] + p["bq"]
    k = x2 @ p["wk"] + p["bk"]
    v = x2 @ p["wv"] + p["bv"]
    split = lambda t: t.reshape(B, S, heads, d_k).transpose(0, 2, 1, 3)  # noqa: E731
    qh, kh, vh = split(q), split(k), split(v)
    scores = jnp.einsum("bhqd,bhkd->bhqk", qh, kh) / math.sqrt(d_k)
    probs = jax.nn.softmax(scores, axis=-1)
    o = jnp.einsum("bhqk,bhkd->bhqd", probs, vh)
    concat = o.transpose(0, 2, 1, 3).reshape(B, S, D)
    x = x + (concat @ p["wo"] + p["bo"])
    x2 = _ref_norm(x, p["a2"], p["b2"], eps)
    ff = jnp.maximum(x2 @ p["w1"] + p["c1"], 0.0) @ p["w2"] + p["c2"]
    return x + ff


if __name__ == "__main__":
    jax.config.update("jax_default_matmul_precision", "highest")

    batch, seq, d_model, heads, d_ff = 2, 8, 32, 4, 400   # module default d_ff=400
    key = jax.random.PRNGKey(0)
    ks = jax.random.split(key, 17)

    def nrm(k, shape, scale):
        return jax.random.normal(k, shape, dtype=jnp.float32) * scale

    params = {
        "a1": 1.0 + nrm(ks[0], (1, d_model), 0.1),
        "b1": nrm(ks[1], (1, d_model), 0.1),
        "wq": nrm(ks[2], (d_model, d_model), 1.0 / math.sqrt(d_model)),
        "bq": nrm(ks[3], (1, d_model), 0.02),
        "wk": nrm(ks[4], (d_model, d_model), 1.0 / math.sqrt(d_model)),
        "bk": nrm(ks[5], (1, d_model), 0.02),
        "wv": nrm(ks[6], (d_model, d_model), 1.0 / math.sqrt(d_model)),
        "bv": nrm(ks[7], (1, d_model), 0.02),
        "wo": nrm(ks[8], (d_model, d_model), 1.0 / math.sqrt(d_model)),
        "bo": nrm(ks[9], (1, d_model), 0.02),
        "a2": 1.0 + nrm(ks[10], (1, d_model), 0.1),
        "b2": nrm(ks[11], (1, d_model), 0.1),
        "w1": nrm(ks[12], (d_model, d_ff), 1.0 / math.sqrt(d_model)),
        "c1": nrm(ks[13], (1, d_ff), 0.02),
        "w2": nrm(ks[14], (d_ff, d_model), 1.0 / math.sqrt(d_ff)),
        "c2": nrm(ks[15], (1, d_model), 0.02),
    }
    x = jax.random.normal(ks[16], (batch, seq, d_model), dtype=jnp.float32)

    ref = _ref_encoder_layer(x, params, heads, eps=1e-6)

    # 1) strict correctness check: f32 matmul inputs, exact reciprocals.
    y32 = encoder_layer_forward(x, params, heads, eps=1e-6,
                                compute_dtype=jnp.float32, approx_recip=False)
    y32 = jax.block_until_ready(y32)
    assert y32.shape == ref.shape
    err32 = float(jnp.max(jnp.abs(y32 - ref)))
    assert jnp.allclose(y32, ref, atol=2e-3, rtol=2e-3), f"f32 mismatch: max err {err32}"

    # 2) performance configuration: bf16 MXU inputs + EUP approx reciprocals.
    ybf = encoder_layer_forward(x, params, heads, eps=1e-6,
                                compute_dtype=jnp.bfloat16, approx_recip=True)
    ybf = jax.block_until_ready(ybf)
    rel = float(jnp.linalg.norm((ybf - ref).astype(jnp.float32))
                / (jnp.linalg.norm(ref) + 1e-12))
    assert rel < 3e-2, f"bf16 relative L2 error too large: {rel}"

    print("KERNEL_OK")
</pallas_src>

<mosaic_0001>
module attributes {stable_mosaic.version = 11 : i64} {
  func.func @_encoder_layer_kernel(%arg0: i32, %arg1: memref<1x8x32xf32, #tpu.memory_space<vmem>>, %arg2: memref<1x32xf32, #tpu.memory_space<vmem>>, %arg3: memref<1x32xf32, #tpu.memory_space<vmem>>, %arg4: memref<4x32x8xf32, #tpu.memory_space<vmem>>, %arg5: memref<4x1x8xf32, #tpu.memory_space<vmem>>, %arg6: memref<4x32x8xf32, #tpu.memory_space<vmem>>, %arg7: memref<4x1x8xf32, #tpu.memory_space<vmem>>, %arg8: memref<4x32x8xf32, #tpu.memory_space<vmem>>, %arg9: memref<4x1x8xf32, #tpu.memory_space<vmem>>, %arg10: memref<4x8x32xf32, #tpu.memory_space<vmem>>, %arg11: memref<1x32xf32, #tpu.memory_space<vmem>>, %arg12: memref<1x32xf32, #tpu.memory_space<vmem>>, %arg13: memref<1x32xf32, #tpu.memory_space<vmem>>, %arg14: memref<32x512xf32, #tpu.memory_space<vmem>>, %arg15: memref<1x512xf32, #tpu.memory_space<vmem>>, %arg16: memref<512x32xf32, #tpu.memory_space<vmem>>, %arg17: memref<1x32xf32, #tpu.memory_space<vmem>>, %arg18: memref<1x8x32xf32, #tpu.memory_space<vmem>>) attributes {dimension_semantics = [#tpu.dimension_semantics<parallel>], iteration_bounds = array<i64: 2>, scalar_prefetch = 0 : i64, scratch_operands = 0 : i64, tpu.core_type = #tpu.core_type<tc>, window_params = [{transform_indices = @transform_0, window_bounds = array<i64: 1, 8, 32>}, {pipeline_mode = #tpu.pipeline_mode<synchronous>, transform_indices = @transform_1, window_bounds = array<i64: 1, 32>}, {pipeline_mode = #tpu.pipeline_mode<synchronous>, transform_indices = @transform_2, window_bounds = array<i64: 1, 32>}, {pipeline_mode = #tpu.pipeline_mode<synchronous>, transform_indices = @transform_3, window_bounds = array<i64: 4, 32, 8>}, {pipeline_mode = #tpu.pipeline_mode<synchronous>, transform_indices = @transform_4, window_bounds = array<i64: 4, 1, 8>}, {pipeline_mode = #tpu.pipeline_mode<synchronous>, transform_indices = @transform_5, window_bounds = array<i64: 4, 32, 8>}, {pipeline_mode = #tpu.pipeline_mode<synchronous>, transform_indices = @transform_6, window_bounds = array<i64: 4, 1, 8>}, {pipeline_mode = #tpu.pipeline_mode<synchronous>, transform_indices = @transform_7, window_bounds = array<i64: 4, 32, 8>}, {pipeline_mode = #tpu.pipeline_mode<synchronous>, transform_indices = @transform_8, window_bounds = array<i64: 4, 1, 8>}, {pipeline_mode = #tpu.pipeline_mode<synchronous>, transform_indices = @transform_9, window_bounds = array<i64: 4, 8, 32>}, {pipeline_mode = #tpu.pipeline_mode<synchronous>, transform_indices = @transform_10, window_bounds = array<i64: 1, 32>}, {pipeline_mode = #tpu.pipeline_mode<synchronous>, transform_indices = @transform_11, window_bounds = array<i64: 1, 32>}, {pipeline_mode = #tpu.pipeline_mode<synchronous>, transform_indices = @transform_12, window_bounds = array<i64: 1, 32>}, {pipeline_mode = #tpu.pipeline_mode<synchronous>, transform_indices = @transform_13, window_bounds = array<i64: 32, 512>}, {pipeline_mode = #tpu.pipeline_mode<synchronous>, transform_indices = @transform_14, window_bounds = array<i64: 1, 512>}, {pipeline_mode = #tpu.pipeline_mode<synchronous>, transform_indices = @transform_15, window_bounds = array<i64: 512, 32>}, {pipeline_mode = #tpu.pipeline_mode<synchronous>, transform_indices = @transform_16, window_bounds = array<i64: 1, 32>}, {transform_indices = @transform_17, window_bounds = array<i64: 1, 8, 32>}]} {
    %c0 = arith.constant 0 : index
    %c0_0 = arith.constant 0 : index
    %c0_1 = arith.constant 0 : index
    %0 = vector.load %arg1[%c0, %c0_0, %c0_1] : memref<1x8x32xf32, #tpu.memory_space<vmem>>, vector<1x8x32xf32>
    %1 = vector.shape_cast %0 : vector<1x8x32xf32> to vector<8x32xf32>
    %c0_2 = arith.constant 0 : index
    %c0_3 = arith.constant 0 : index
    %2 = vector.load %arg2[%c0_2, %c0_3] : memref<1x32xf32, #tpu.memory_space<vmem>>, vector<1x32xf32>
    %c0_4 = arith.constant 0 : index
    %c0_5 = arith.constant 0 : index
    %3 = vector.load %arg3[%c0_4, %c0_5] : memref<1x32xf32, #tpu.memory_space<vmem>>, vector<1x32xf32>
    %cst = arith.constant dense<0.000000e+00> : vector<8xf32>
    %4 = vector.multi_reduction <add>, %1, %cst [1] : vector<8x32xf32> to vector<8xf32>
    %5 = vector.shape_cast %4 : vector<8xf32> to vector<8x1xf32>
    %cst_6 = arith.constant 3.125000e-02 : f32
    %6 = vector.broadcast %cst_6 : f32 to vector<8x1xf32>
    %7 = arith.mulf %5, %6 : vector<8x1xf32>
    %8 = vector.broadcast %7 : vector<8x1xf32> to vector<8x32xf32>
    %9 = arith.subf %1, %8 : vector<8x32xf32>
    %10 = arith.mulf %9, %9 : vector<8x32xf32>
    %cst_7 = arith.constant dense<0.000000e+00> : vector<8xf32>
    %11 = vector.multi_reduction <add>, %10, %cst_7 [1] : vector<8x32xf32> to vector<8xf32>
    %12 = vector.shape_cast %11 : vector<8xf32> to vector<8x1xf32>
    %cst_8 = arith.constant 0.0322580636 : f32
    %13 = vector.broadcast %cst_8 : f32 to vector<8x1xf32>
    %14 = arith.mulf %12, %13 : vector<8x1xf32>
    %15 = math.sqrt %14 : vector<8x1xf32>
    %cst_9 = arith.constant 9.99999997E-7 : f32
    %16 = vector.broadcast %cst_9 : f32 to vector<8x1xf32>
    %17 = arith.addf %15, %16 : vector<8x1xf32>
    %18 = tpu.reciprocal %17 : vector<8x1xf32> -> vector<8x1xf32>
    %19 = vector.broadcast %2 : vector<1x32xf32> to vector<8x32xf32>
    %20 = arith.mulf %19, %9 : vector<8x32xf32>
    %21 = vector.broadcast %18 : vector<8x1xf32> to vector<8x32xf32>
    %22 = arith.mulf %20, %21 : vector<8x32xf32>
    %23 = vector.broadcast %3 : vector<1x32xf32> to vector<8x32xf32>
    %24 = arith.addf %22, %23 : vector<8x32xf32>
    %25 = vector.shape_cast %24 : vector<8x32xf32> to vector<1x8x32xf32>
    %26 = vector.broadcast %25 : vector<1x8x32xf32> to vector<4x8x32xf32>
    %c0_10 = arith.constant 0 : index
    %c0_11 = arith.constant 0 : index
    %c0_12 = arith.constant 0 : index
    %27 = vector.load %arg4[%c0_10, %c0_11, %c0_12] : memref<4x32x8xf32, #tpu.memory_space<vmem>>, vector<4x32x8xf32>
    "tpu.trace_start"() <{level = 10 : i32, message = "hsd,hdk->hsk"}> : () -> ()
    %cst_13 = arith.constant dense<0.000000e+00> : vector<4x8x8xf32>
    %28 = tpu.matmul %26, %27, %cst_13 {dimension_numbers = #tpu.dot_dimension_numbers<[2], [1], [1], [2], [0, 0, 0, 1, 1, 2], [0], [0]>, precision = #tpu.contract_precision<fp32>} : vector<4x8x32xf32>, vector<4x32x8xf32>, vector<4x8x8xf32> -> vector<4x8x8xf32>
    "tpu.trace_stop"() : () -> ()
    %c0_14 = arith.constant 0 : index
    %c0_15 = arith.constant 0 : index
    %c0_16 = arith.constant 0 : index
    %29 = vector.load %arg5[%c0_14, %c0_15, %c0_16] : memref<4x1x8xf32, #tpu.memory_space<vmem>>, vector<4x1x8xf32>
    %30 = vector.broadcast %29 : vector<4x1x8xf32> to vector<4x8x8xf32>
    %31 = arith.addf %28, %30 : vector<4x8x8xf32>
    %c0_17 = arith.constant 0 : index
    %c0_18 = arith.constant 0 : index
    %c0_19 = arith.constant 0 : index
    %32 = vector.load %arg6[%c0_17, %c0_18, %c0_19] : memref<4x32x8xf32, #tpu.memory_space<vmem>>, vector<4x32x8xf32>
    "tpu.trace_start"() <{level = 10 : i32, message = "hsd,hdk->hsk"}> : () -> ()
    %cst_20 = arith.constant dense<0.000000e+00> : vector<4x8x8xf32>
    %33 = tpu.matmul %26, %32, %cst_20 {dimension_numbers = #tpu.dot_dimension_numbers<[2], [1], [1], [2], [0, 0, 0, 1, 1, 2], [0], [0]>, precision = #tpu.contract_precision<fp32>} : vector<4x8x32xf32>, vector<4x32x8xf32>, vector<4x8x8xf32> -> vector<4x8x8xf32>
    "tpu.trace_stop"() : () -> ()
    %c0_21 = arith.constant 0 : index
    %c0_22 = arith.constant 0 : index
    %c0_23 = arith.constant 0 : index
    %34 = vector.load %arg7[%c0_21, %c0_22, %c0_23] : memref<4x1x8xf32, #tpu.memory_space<vmem>>, vector<4x1x8xf32>
    %35 = vector.broadcast %34 : vector<4x1x8xf32> to vector<4x8x8xf32>
    %36 = arith.addf %33, %35 : vector<4x8x8xf32>
    %c0_24 = arith.constant 0 : index
    %c0_25 = arith.constant 0 : index
    %c0_26 = arith.constant 0 : index
    %37 = vector.load %arg8[%c0_24, %c0_25, %c0_26] : memref<4x32x8xf32, #tpu.memory_space<vmem>>, vector<4x32x8xf32>
    "tpu.trace_start"() <{level = 10 : i32, message = "hsd,hdk->hsk"}> : () -> ()
    %cst_27 = arith.constant dense<0.000000e+00> : vector<4x8x8xf32>
    %38 = tpu.matmul %26, %37, %cst_27 {dimension_numbers = #tpu.dot_dimension_numbers<[2], [1], [1], [2], [0, 0, 0, 1, 1, 2], [0], [0]>, precision = #tpu.contract_precision<fp32>} : vector<4x8x32xf32>, vector<4x32x8xf32>, vector<4x8x8xf32> -> vector<4x8x8xf32>
    "tpu.trace_stop"() : () -> ()
    %c0_28 = arith.constant 0 : index
    %c0_29 = arith.constant 0 : index
    %c0_30 = arith.constant 0 : index
    %39 = vector.load %arg9[%c0_28, %c0_29, %c0_30] : memref<4x1x8xf32, #tpu.memory_space<vmem>>, vector<4x1x8xf32>
    %40 = vector.broadcast %39 : vector<4x1x8xf32> to vector<4x8x8xf32>
    %41 = arith.addf %38, %40 : vector<4x8x8xf32>
    "tpu.trace_start"() <{level = 10 : i32, message = "hqd,hkd->hqk"}> : () -> ()
    %cst_31 = arith.constant dense<0.000000e+00> : vector<4x8x8xf32>
    %42 = tpu.matmul %31, %36, %cst_31 {dimension_numbers = #tpu.dot_dimension_numbers<[2], [2], [1], [1], [0, 0, 0, 1, 1, 1], [0], [0]>, precision = #tpu.contract_precision<fp32>} : vector<4x8x8xf32>, vector<4x8x8xf32>, vector<4x8x8xf32> -> vector<4x8x8xf32>
    "tpu.trace_stop"() : () -> ()
    %cst_32 = arith.constant 0.353553385 : f32
    %43 = vector.broadcast %cst_32 : f32 to vector<4x8x8xf32>
    %44 = arith.mulf %42, %43 : vector<4x8x8xf32>
    %cst_33 = arith.constant dense<0xFF800000> : vector<4x8xf32>
    %45 = vector.multi_reduction <maximumf>, %44, %cst_33 [2] : vector<4x8x8xf32> to vector<4x8xf32>
    %46 = vector.shape_cast %45 : vector<4x8xf32> to vector<4x8x1xf32>
    %47 = vector.broadcast %46 : vector<4x8x1xf32> to vector<4x8x8xf32>
    %48 = arith.subf %44, %47 : vector<4x8x8xf32>
    %49 = math.exp %48 : vector<4x8x8xf32>
    %cst_34 = arith.constant dense<0.000000e+00> : vector<4x8xf32>
    %50 = vector.multi_reduction <add>, %49, %cst_34 [2] : vector<4x8x8xf32> to vector<4x8xf32>
    %51 = vector.shape_cast %50 : vector<4x8xf32> to vector<4x8x1xf32>
    %52 = tpu.reciprocal %51 : vector<4x8x1xf32> -> vector<4x8x1xf32>
    %53 = vector.broadcast %52 : vector<4x8x1xf32> to vector<4x8x8xf32>
    %54 = arith.mulf %49, %53 : vector<4x8x8xf32>
    "tpu.trace_start"() <{level = 10 : i32, message = "hqk,hkd->hqd"}> : () -> ()
    %cst_35 = arith.constant dense<0.000000e+00> : vector<4x8x8xf32>
    %55 = tpu.matmul %54, %41, %cst_35 {dimension_numbers = #tpu.dot_dimension_numbers<[2], [1], [1], [2], [0, 0, 0, 1, 1, 2], [0], [0]>, precision = #tpu.contract_precision<fp32>} : vector<4x8x8xf32>, vector<4x8x8xf32>, vector<4x8x8xf32> -> vector<4x8x8xf32>
    "tpu.trace_stop"() : () -> ()
    %c0_36 = arith.constant 0 : index
    %c0_37 = arith.constant 0 : index
    %c0_38 = arith.constant 0 : index
    %56 = vector.load %arg10[%c0_36, %c0_37, %c0_38] : memref<4x8x32xf32, #tpu.memory_space<vmem>>, vector<4x8x32xf32>
    "tpu.trace_start"() <{level = 10 : i32, message = "hsk,hkn->hsn"}> : () -> ()
    %cst_39 = arith.constant dense<0.000000e+00> : vector<4x8x32xf32>
    %57 = tpu.matmul %55, %56, %cst_39 {dimension_numbers = #tpu.dot_dimension_numbers<[2], [1], [1], [2], [0, 0, 0, 1, 1, 2], [0], [0]>, precision = #tpu.contract_precision<fp32>} : vector<4x8x8xf32>, vector<4x8x32xf32>, vector<4x8x32xf32> -> vector<4x8x32xf32>
    "tpu.trace_stop"() : () -> ()
    %cst_40 = arith.constant dense<0.000000e+00> : vector<8x32xf32>
    %58 = vector.multi_reduction <add>, %57, %cst_40 [0] : vector<4x8x32xf32> to vector<8x32xf32>
    %c0_41 = arith.constant 0 : index
    %c0_42 = arith.constant 0 : index
    %59 = vector.load %arg11[%c0_41, %c0_42] : memref<1x32xf32, #tpu.memory_space<vmem>>, vector<1x32xf32>
    %60 = vector.broadcast %59 : vector<1x32xf32> to vector<8x32xf32>
    %61 = arith.addf %58, %60 : vector<8x32xf32>
    %62 = arith.addf %1, %61 : vector<8x32xf32>
    %c0_43 = arith.constant 0 : index
    %c0_44 = arith.constant 0 : index
    %63 = vector.load %arg12[%c0_43, %c0_44] : memref<1x32xf32, #tpu.memory_space<vmem>>, vector<1x32xf32>
    %c0_45 = arith.constant 0 : index
    %c0_46 = arith.constant 0 : index
    %64 = vector.load %arg13[%c0_45, %c0_46] : memref<1x32xf32, #tpu.memory_space<vmem>>, vector<1x32xf32>
    %cst_47 = arith.constant dense<0.000000e+00> : vector<8xf32>
    %65 = vector.multi_reduction <add>, %62, %cst_47 [1] : vector<8x32xf32> to vector<8xf32>
    %66 = vector.shape_cast %65 : vector<8xf32> to vector<8x1xf32>
    %cst_48 = arith.constant 3.125000e-02 : f32
    %67 = vector.broadcast %cst_48 : f32 to vector<8x1xf32>
    %68 = arith.mulf %66, %67 : vector<8x1xf32>
    %69 = vector.broadcast %68 : vector<8x1xf32> to vector<8x32xf32>
    %70 = arith.subf %62, %69 : vector<8x32xf32>
    %71 = arith.mulf %70, %70 : vector<8x32xf32>
    %cst_49 = arith.constant dense<0.000000e+00> : vector<8xf32>
    %72 = vector.multi_reduction <add>, %71, %cst_49 [1] : vector<8x32xf32> to vector<8xf32>
    %73 = vector.shape_cast %72 : vector<8xf32> to vector<8x1xf32>
    %cst_50 = arith.constant 0.0322580636 : f32
    %74 = vector.broadcast %cst_50 : f32 to vector<8x1xf32>
    %75 = arith.mulf %73, %74 : vector<8x1xf32>
    %76 = math.sqrt %75 : vector<8x1xf32>
    %cst_51 = arith.constant 9.99999997E-7 : f32
    %77 = vector.broadcast %cst_51 : f32 to vector<8x1xf32>
    %78 = arith.addf %76, %77 : vector<8x1xf32>
    %79 = tpu.reciprocal %78 : vector<8x1xf32> -> vector<8x1xf32>
    %80 = vector.broadcast %63 : vector<1x32xf32> to vector<8x32xf32>
    %81 = arith.mulf %80, %70 : vector<8x32xf32>
    %82 = vector.broadcast %79 : vector<8x1xf32> to vector<8x32xf32>
    %83 = arith.mulf %81, %82 : vector<8x32xf32>
    %84 = vector.broadcast %64 : vector<1x32xf32> to vector<8x32xf32>
    %85 = arith.addf %83, %84 : vector<8x32xf32>
    %c0_52 = arith.constant 0 : index
    %c0_53 = arith.constant 0 : index
    %86 = vector.load %arg14[%c0_52, %c0_53] : memref<32x512xf32, #tpu.memory_space<vmem>>, vector<32x512xf32>
    %cst_54 = arith.constant dense<0.000000e+00> : vector<8x512xf32>
    %87 = tpu.matmul %85, %86, %cst_54 {dimension_numbers = #tpu.dot_dimension_numbers<[1], [0], [0], [1], [0, 0, 1, 1], [], []>, precision = #tpu.contract_precision<fp32>} : vector<8x32xf32>, vector<32x512xf32>, vector<8x512xf32> -> vector<8x512xf32>
    %c0_55 = arith.constant 0 : index
    %c0_56 = arith.constant 0 : index
    %88 = vector.load %arg15[%c0_55, %c0_56] : memref<1x512xf32, #tpu.memory_space<vmem>>, vector<1x512xf32>
    %89 = vector.broadcast %88 : vector<1x512xf32> to vector<8x512xf32>
    %90 = arith.addf %87, %89 : vector<8x512xf32>
    %cst_57 = arith.constant 0.000000e+00 : f32
    %91 = vector.broadcast %cst_57 : f32 to vector<8x512xf32>
    %92 = arith.maximumf %90, %91 : vector<8x512xf32>
    %c0_58 = arith.constant 0 : index
    %c0_59 = arith.constant 0 : index
    %93 = vector.load %arg16[%c0_58, %c0_59] : memref<512x32xf32, #tpu.memory_space<vmem>>, vector<512x32xf32>
    %cst_60 = arith.constant dense<0.000000e+00> : vector<8x32xf32>
    %94 = tpu.matmul %92, %93, %cst_60 {dimension_numbers = #tpu.dot_dimension_numbers<[1], [0], [0], [1], [0, 0, 1, 1], [], []>, precision = #tpu.contract_precision<fp32>} : vector<8x512xf32>, vector<512x32xf32>, vector<8x32xf32> -> vector<8x32xf32>
    %c0_61 = arith.constant 0 : index
    %c0_62 = arith.constant 0 : index
    %95 = vector.load %arg17[%c0_61, %c0_62] : memref<1x32xf32, #tpu.memory_space<vmem>>, vector<1x32xf32>
    %96 = vector.broadcast %95 : vector<1x32xf32> to vector<8x32xf32>
    %97 = arith.addf %94, %96 : vector<8x32xf32>
    %98 = arith.addf %62, %97 : vector<8x32xf32>
    %c0_63 = arith.constant 0 : index
    %c0_64 = arith.constant 0 : index
    %c0_65 = arith.constant 0 : index
    %99 = vector.load %arg18[%c0_63, %c0_64, %c0_65] : memref<1x8x32xf32, #tpu.memory_space<vmem>>, vector<1x8x32xf32>
    %100 = vector.shape_cast %99 : vector<1x8x32xf32> to vector<8x32xf32>
    %101 = vector.shape_cast %98 : vector<8x32xf32> to vector<1x8x32xf32>
    tpu.vector_store %arg18[%c0_63, %c0_64, %c0_65], %101 {strides = array<i32>} : memref<1x8x32xf32, #tpu.memory_space<vmem>>, vector<1x8x32xf32>,
    return
  }
  func.func @transform_0(%arg0: i32) -> (i32, i32, i32) {
    %c0_i32 = arith.constant 0 : i32
    %c0_i32_0 = arith.constant 0 : i32
    %c0_i32_1 = arith.constant 0 : i32
    return %arg0, %c0_i32, %c0_i32_0 : i32, i32, i32
  }
  func.func @transform_1(%arg0: i32) -> (i32, i32) {
    %c0_i32 = arith.constant 0 : i32
    %c0_i32_0 = arith.constant 0 : i32
    %c0_i32_1 = arith.constant 0 : i32
    return %c0_i32, %c0_i32_0 : i32, i32
  }
  func.func @transform_2(%arg0: i32) -> (i32, i32) {
    %c0_i32 = arith.constant 0 : i32
    %c0_i32_0 = arith.constant 0 : i32
    %c0_i32_1 = arith.constant 0 : i32
    return %c0_i32, %c0_i32_0 : i32, i32
  }
  func.func @transform_3(%arg0: i32) -> (i32, i32, i32) {
    %c0_i32 = arith.constant 0 : i32
    %c0_i32_0 = arith.constant 0 : i32
    %c0_i32_1 = arith.constant 0 : i32
    %c0_i32_2 = arith.constant 0 : i32
    return %c0_i32, %c0_i32_0, %c0_i32_1 : i32, i32, i32
  }
  func.func @transform_4(%arg0: i32) -> (i32, i32, i32) {
    %c0_i32 = arith.constant 0 : i32
    %c0_i32_0 = arith.constant 0 : i32
    %c0_i32_1 = arith.constant 0 : i32
    %c0_i32_2 = arith.constant 0 : i32
    return %c0_i32, %c0_i32_0, %c0_i32_1 : i32, i32, i32
  }
  func.func @transform_5(%arg0: i32) -> (i32, i32, i32) {
    %c0_i32 = arith.constant 0 : i32
    %c0_i32_0 = arith.constant 0 : i32
    %c0_i32_1 = arith.constant 0 : i32
    %c0_i32_2 = arith.constant 0 : i32
    return %c0_i32, %c0_i32_0, %c0_i32_1 : i32, i32, i32
  }
  func.func @transform_6(%arg0: i32) -> (i32, i32, i32) {
    %c0_i32 = arith.constant 0 : i32
    %c0_i32_0 = arith.constant 0 : i32
    %c0_i32_1 = arith.constant 0 : i32
    %c0_i32_2 = arith.constant 0 : i32
    return %c0_i32, %c0_i32_0, %c0_i32_1 : i32, i32, i32
  }
  func.func @transform_7(%arg0: i32) -> (i32, i32, i32) {
    %c0_i32 = arith.constant 0 : i32
    %c0_i32_0 = arith.constant 0 : i32
    %c0_i32_1 = arith.constant 0 : i32
    %c0_i32_2 = arith.constant 0 : i32
    return %c0_i32, %c0_i32_0, %c0_i32_1 : i32, i32, i32
  }
  func.func @transform_8(%arg0: i32) -> (i32, i32, i32) {
    %c0_i32 = arith.constant 0 : i32
    %c0_i32_0 = arith.constant 0 : i32
    %c0_i32_1 = arith.constant 0 : i32
    %c0_i32_2 = arith.constant 0 : i32
    return %c0_i32, %c0_i32_0, %c0_i32_1 : i32, i32, i32
  }
  func.func @transform_9(%arg0: i32) -> (i32, i32, i32) {
    %c0_i32 = arith.constant 0 : i32
    %c0_i32_0 = arith.constant 0 : i32
    %c0_i32_1 = arith.constant 0 : i32
    %c0_i32_2 = arith.constant 0 : i32
    return %c0_i32, %c0_i32_0, %c0_i32_1 : i32, i32, i32
  }
  func.func @transform_10(%arg0: i32) -> (i32, i32) {
    %c0_i32 = arith.constant 0 : i32
    %c0_i32_0 = arith.constant 0 : i32
    %c0_i32_1 = arith.constant 0 : i32
    return %c0_i32, %c0_i32_0 : i32, i32
  }
  func.func @transform_11(%arg0: i32) -> (i32, i32) {
    %c0_i32 = arith.constant 0 : i32
    %c0_i32_0 = arith.constant 0 : i32
    %c0_i32_1 = arith.constant 0 : i32
    return %c0_i32, %c0_i32_0 : i32, i32
  }
  func.func @transform_12(%arg0: i32) -> (i32, i32) {
    %c0_i32 = arith.constant 0 : i32
    %c0_i32_0 = arith.constant 0 : i32
    %c0_i32_1 = arith.constant 0 : i32
    return %c0_i32, %c0_i32_0 : i32, i32
  }
  func.func @transform_13(%arg0: i32) -> (i32, i32) {
    %c0_i32 = arith.constant 0 : i32
    %c0_i32_0 = arith.constant 0 : i32
    %c0_i32_1 = arith.constant 0 : i32
    return %c0_i32, %c0_i32_0 : i32, i32
  }
  func.func @transform_14(%arg0: i32) -> (i32, i32) {
    %c0_i32 = arith.constant 0 : i32
    %c0_i32_0 = arith.constant 0 : i32
    %c0_i32_1 = arith.constant 0 : i32
    return %c0_i32, %c0_i32_0 : i32, i32
  }
  func.func @transform_15(%arg0: i32) -> (i32, i32) {
    %c0_i32 = arith.constant 0 : i32
    %c0_i32_0 = arith.constant 0 : i32
    %c0_i32_1 = arith.constant 0 : i32
    return %c0_i32, %c0_i32_0 : i32, i32
  }
  func.func @transform_16(%arg0: i32) -> (i32, i32) {
    %c0_i32 = arith.constant 0 : i32
    %c0_i32_0 = arith.constant 0 : i32
    %c0_i32_1 = arith.constant 0 : i32
    return %c0_i32, %c0_i32_0 : i32, i32
  }
  func.func @transform_17(%arg0: i32) -> (i32, i32, i32) {
    %c0_i32 = arith.constant 0 : i32
    %c0_i32_0 = arith.constant 0 : i32
    %c0_i32_1 = arith.constant 0 : i32
    return %arg0, %c0_i32, %c0_i32_0 : i32, i32, i32
  }
}

module attributes {stable_mosaic.version = 11 : i64} {
  func.func @_encoder_layer_kernel(%arg0: i32, %arg1: memref<1x8x32xf32, #tpu.memory_space<vmem>>, %arg2: memref<1x32xf32, #tpu.memory_space<vmem>>, %arg3: memref<1x32xf32, #tpu.memory_space<vmem>>, %arg4: memref<4x32x8xf32, #tpu.memory_space<vmem>>, %arg5: memref<4x1x8xf32, #tpu.memory_space<vmem>>, %arg6: memref<4x32x8xf32, #tpu.memory_space<vmem>>, %arg7: memref<4x1x8xf32, #tpu.memory_space<vmem>>, %arg8: memref<4x32x8xf32, #tpu.memory_space<vmem>>, %arg9: memref<4x1x8xf32, #tpu.memory_space<vmem>>, %arg10: memref<4x8x32xf32, #tpu.memory_space<vmem>>, %arg11: memref<1x32xf32, #tpu.memory_space<vmem>>, %arg12: memref<1x32xf32, #tpu.memory_space<vmem>>, %arg13: memref<1x32xf32, #tpu.memory_space<vmem>>, %arg14: memref<32x512xf32, #tpu.memory_space<vmem>>, %arg15: memref<1x512xf32, #tpu.memory_space<vmem>>, %arg16: memref<512x32xf32, #tpu.memory_space<vmem>>, %arg17: memref<1x32xf32, #tpu.memory_space<vmem>>, %arg18: memref<1x8x32xf32, #tpu.memory_space<vmem>>) attributes {dimension_semantics = [#tpu.dimension_semantics<parallel>], iteration_bounds = array<i64: 2>, scalar_prefetch = 0 : i64, scratch_operands = 0 : i64, tpu.core_type = #tpu.core_type<tc>, window_params = [{transform_indices = @transform_0, window_bounds = array<i64: 1, 8, 32>}, {pipeline_mode = #tpu.pipeline_mode<synchronous>, transform_indices = @transform_1, window_bounds = array<i64: 1, 32>}, {pipeline_mode = #tpu.pipeline_mode<synchronous>, transform_indices = @transform_2, window_bounds = array<i64: 1, 32>}, {pipeline_mode = #tpu.pipeline_mode<synchronous>, transform_indices = @transform_3, window_bounds = array<i64: 4, 32, 8>}, {pipeline_mode = #tpu.pipeline_mode<synchronous>, transform_indices = @transform_4, window_bounds = array<i64: 4, 1, 8>}, {pipeline_mode = #tpu.pipeline_mode<synchronous>, transform_indices = @transform_5, window_bounds = array<i64: 4, 32, 8>}, {pipeline_mode = #tpu.pipeline_mode<synchronous>, transform_indices = @transform_6, window_bounds = array<i64: 4, 1, 8>}, {pipeline_mode = #tpu.pipeline_mode<synchronous>, transform_indices = @transform_7, window_bounds = array<i64: 4, 32, 8>}, {pipeline_mode = #tpu.pipeline_mode<synchronous>, transform_indices = @transform_8, window_bounds = array<i64: 4, 1, 8>}, {pipeline_mode = #tpu.pipeline_mode<synchronous>, transform_indices = @transform_9, window_bounds = array<i64: 4, 8, 32>}, {pipeline_mode = #tpu.pipeline_mode<synchronous>, transform_indices = @transform_10, window_bounds = array<i64: 1, 32>}, {pipeline_mode = #tpu.pipeline_mode<synchronous>, transform_indices = @transform_11, window_bounds = array<i64: 1, 32>}, {pipeline_mode = #tpu.pipeline_mode<synchronous>, transform_indices = @transform_12, window_bounds = array<i64: 1, 32>}, {pipeline_mode = #tpu.pipeline_mode<synchronous>, transform_indices = @transform_13, window_bounds = array<i64: 32, 512>}, {pipeline_mode = #tpu.pipeline_mode<synchronous>, transform_indices = @transform_14, window_bounds = array<i64: 1, 512>}, {pipeline_mode = #tpu.pipeline_mode<synchronous>, transform_indices = @transform_15, window_bounds = array<i64: 512, 32>}, {pipeline_mode = #tpu.pipeline_mode<synchronous>, transform_indices = @transform_16, window_bounds = array<i64: 1, 32>}, {transform_indices = @transform_17, window_bounds = array<i64: 1, 8, 32>}]} {
    %c0 = arith.constant 0 : index
    %c0_0 = arith.constant 0 : index
    %c0_1 = arith.constant 0 : index
    %0 = vector.load %arg1[%c0, %c0_0, %c0_1] : memref<1x8x32xf32, #tpu.memory_space<vmem>>, vector<1x8x32xf32>
    %1 = vector.shape_cast %0 : vector<1x8x32xf32> to vector<8x32xf32>
    %c0_2 = arith.constant 0 : index
    %c0_3 = arith.constant 0 : index
    %2 = vector.load %arg2[%c0_2, %c0_3] : memref<1x32xf32, #tpu.memory_space<vmem>>, vector<1x32xf32>
    %c0_4 = arith.constant 0 : index
    %c0_5 = arith.constant 0 : index
    %3 = vector.load %arg3[%c0_4, %c0_5] : memref<1x32xf32, #tpu.memory_space<vmem>>, vector<1x32xf32>
    %cst = arith.constant dense<0.000000e+00> : vector<8xf32>
    %4 = vector.multi_reduction <add>, %1, %cst [1] : vector<8x32xf32> to vector<8xf32>
    %5 = vector.shape_cast %4 : vector<8xf32> to vector<8x1xf32>
    %cst_6 = arith.constant 3.125000e-02 : f32
    %6 = vector.broadcast %cst_6 : f32 to vector<8x1xf32>
    %7 = arith.mulf %5, %6 : vector<8x1xf32>
    %8 = vector.broadcast %7 : vector<8x1xf32> to vector<8x32xf32>
    %9 = arith.subf %1, %8 : vector<8x32xf32>
    %10 = arith.mulf %9, %9 : vector<8x32xf32>
    %cst_7 = arith.constant dense<0.000000e+00> : vector<8xf32>
    %11 = vector.multi_reduction <add>, %10, %cst_7 [1] : vector<8x32xf32> to vector<8xf32>
    %12 = vector.shape_cast %11 : vector<8xf32> to vector<8x1xf32>
    %cst_8 = arith.constant 0.0322580636 : f32
    %13 = vector.broadcast %cst_8 : f32 to vector<8x1xf32>
    %14 = arith.mulf %12, %13 : vector<8x1xf32>
    %15 = math.sqrt %14 : vector<8x1xf32>
    %cst_9 = arith.constant 9.99999997E-7 : f32
    %16 = vector.broadcast %cst_9 : f32 to vector<8x1xf32>
    %17 = arith.addf %15, %16 : vector<8x1xf32>
    %18 = tpu.reciprocal %17 : vector<8x1xf32> -> vector<8x1xf32>
    %19 = vector.broadcast %2 : vector<1x32xf32> to vector<8x32xf32>
    %20 = arith.mulf %19, %9 : vector<8x32xf32>
    %21 = vector.broadcast %18 : vector<8x1xf32> to vector<8x32xf32>
    %22 = arith.mulf %20, %21 : vector<8x32xf32>
    %23 = vector.broadcast %3 : vector<1x32xf32> to vector<8x32xf32>
    %24 = arith.addf %22, %23 : vector<8x32xf32>
    %25 = vector.shape_cast %24 : vector<8x32xf32> to vector<1x8x32xf32>
    %26 = vector.broadcast %25 : vector<1x8x32xf32> to vector<4x8x32xf32>
    %c0_10 = arith.constant 0 : index
    %c0_11 = arith.constant 0 : index
    %c0_12 = arith.constant 0 : index
    %27 = vector.load %arg4[%c0_10, %c0_11, %c0_12] : memref<4x32x8xf32, #tpu.memory_space<vmem>>, vector<4x32x8xf32>
    "tpu.trace_start"() <{level = 10 : i32, message = "hsd,hdk->hsk"}> : () -> ()
    %cst_13 = arith.constant dense<0.000000e+00> : vector<4x8x8xf32>
    %28 = tpu.matmul %26, %27, %cst_13 {dimension_numbers = #tpu.dot_dimension_numbers<[2], [1], [1], [2], [0, 0, 0, 1, 1, 2], [0], [0]>, precision = #tpu.contract_precision<fp32>} : vector<4x8x32xf32>, vector<4x32x8xf32>, vector<4x8x8xf32> -> vector<4x8x8xf32>
    "tpu.trace_stop"() : () -> ()
    %c0_14 = arith.constant 0 : index
    %c0_15 = arith.constant 0 : index
    %c0_16 = arith.constant 0 : index
    %29 = vector.load %arg5[%c0_14, %c0_15, %c0_16] : memref<4x1x8xf32, #tpu.memory_space<vmem>>, vector<4x1x8xf32>
    %30 = vector.broadcast %29 : vector<4x1x8xf32> to vector<4x8x8xf32>
    %31 = arith.addf %28, %30 : vector<4x8x8xf32>
    %c0_17 = arith.constant 0 : index
    %c0_18 = arith.constant 0 : index
    %c0_19 = arith.constant 0 : index
    %32 = vector.load %arg6[%c0_17, %c0_18, %c0_19] : memref<4x32x8xf32, #tpu.memory_space<vmem>>, vector<4x32x8xf32>
    "tpu.trace_start"() <{level = 10 : i32, message = "hsd,hdk->hsk"}> : () -> ()
    %cst_20 = arith.constant dense<0.000000e+00> : vector<4x8x8xf32>
    %33 = tpu.matmul %26, %32, %cst_20 {dimension_numbers = #tpu.dot_dimension_numbers<[2], [1], [1], [2], [0, 0, 0, 1, 1, 2], [0], [0]>, precision = #tpu.contract_precision<fp32>} : vector<4x8x32xf32>, vector<4x32x8xf32>, vector<4x8x8xf32> -> vector<4x8x8xf32>
    "tpu.trace_stop"() : () -> ()
    %c0_21 = arith.constant 0 : index
    %c0_22 = arith.constant 0 : index
    %c0_23 = arith.constant 0 : index
    %34 = vector.load %arg7[%c0_21, %c0_22, %c0_23] : memref<4x1x8xf32, #tpu.memory_space<vmem>>, vector<4x1x8xf32>
    %35 = vector.broadcast %34 : vector<4x1x8xf32> to vector<4x8x8xf32>
    %36 = arith.addf %33, %35 : vector<4x8x8xf32>
    %c0_24 = arith.constant 0 : index
    %c0_25 = arith.constant 0 : index
    %c0_26 = arith.constant 0 : index
    %37 = vector.load %arg8[%c0_24, %c0_25, %c0_26] : memref<4x32x8xf32, #tpu.memory_space<vmem>>, vector<4x32x8xf32>
    "tpu.trace_start"() <{level = 10 : i32, message = "hsd,hdk->hsk"}> : () -> ()
    %cst_27 = arith.constant dense<0.000000e+00> : vector<4x8x8xf32>
    %38 = tpu.matmul %26, %37, %cst_27 {dimension_numbers = #tpu.dot_dimension_numbers<[2], [1], [1], [2], [0, 0, 0, 1, 1, 2], [0], [0]>, precision = #tpu.contract_precision<fp32>} : vector<4x8x32xf32>, vector<4x32x8xf32>, vector<4x8x8xf32> -> vector<4x8x8xf32>
    "tpu.trace_stop"() : () -> ()
    %c0_28 = arith.constant 0 : index
    %c0_29 = arith.constant 0 : index
    %c0_30 = arith.constant 0 : index
    %39 = vector.load %arg9[%c0_28, %c0_29, %c0_30] : memref<4x1x8xf32, #tpu.memory_space<vmem>>, vector<4x1x8xf32>
    %40 = vector.broadcast %39 : vector<4x1x8xf32> to vector<4x8x8xf32>
    %41 = arith.addf %38, %40 : vector<4x8x8xf32>
    "tpu.trace_start"() <{level = 10 : i32, message = "hqd,hkd->hqk"}> : () -> ()
    %cst_31 = arith.constant dense<0.000000e+00> : vector<4x8x8xf32>
    %42 = tpu.matmul %31, %36, %cst_31 {dimension_numbers = #tpu.dot_dimension_numbers<[2], [2], [1], [1], [0, 0, 0, 1, 1, 1], [0], [0]>, precision = #tpu.contract_precision<fp32>} : vector<4x8x8xf32>, vector<4x8x8xf32>, vector<4x8x8xf32> -> vector<4x8x8xf32>
    "tpu.trace_stop"() : () -> ()
    %cst_32 = arith.constant 0.353553385 : f32
    %43 = vector.broadcast %cst_32 : f32 to vector<4x8x8xf32>
    %44 = arith.mulf %42, %43 : vector<4x8x8xf32>
    %cst_33 = arith.constant dense<0xFF800000> : vector<4x8xf32>
    %45 = vector.multi_reduction <maximumf>, %44, %cst_33 [2] : vector<4x8x8xf32> to vector<4x8xf32>
    %46 = vector.shape_cast %45 : vector<4x8xf32> to vector<4x8x1xf32>
    %47 = vector.broadcast %46 : vector<4x8x1xf32> to vector<4x8x8xf32>
    %48 = arith.subf %44, %47 : vector<4x8x8xf32>
    %49 = math.exp %48 : vector<4x8x8xf32>
    %cst_34 = arith.constant dense<0.000000e+00> : vector<4x8xf32>
    %50 = vector.multi_reduction <add>, %49, %cst_34 [2] : vector<4x8x8xf32> to vector<4x8xf32>
    %51 = vector.shape_cast %50 : vector<4x8xf32> to vector<4x8x1xf32>
    %52 = tpu.reciprocal %51 : vector<4x8x1xf32> -> vector<4x8x1xf32>
    %53 = vector.broadcast %52 : vector<4x8x1xf32> to vector<4x8x8xf32>
    %54 = arith.mulf %49, %53 : vector<4x8x8xf32>
    "tpu.trace_start"() <{level = 10 : i32, message = "hqk,hkd->hqd"}> : () -> ()
    %cst_35 = arith.constant dense<0.000000e+00> : vector<4x8x8xf32>
    %55 = tpu.matmul %54, %41, %cst_35 {dimension_numbers = #tpu.dot_dimension_numbers<[2], [1], [1], [2], [0, 0, 0, 1, 1, 2], [0], [0]>, precision = #tpu.contract_precision<fp32>} : vector<4x8x8xf32>, vector<4x8x8xf32>, vector<4x8x8xf32> -> vector<4x8x8xf32>
    "tpu.trace_stop"() : () -> ()
    %c0_36 = arith.constant 0 : index
    %c0_37 = arith.constant 0 : index
    %c0_38 = arith.constant 0 : index
    %56 = vector.load %arg10[%c0_36, %c0_37, %c0_38] : memref<4x8x32xf32, #tpu.memory_space<vmem>>, vector<4x8x32xf32>
    "tpu.trace_start"() <{level = 10 : i32, message = "hsk,hkn->hsn"}> : () -> ()
    %cst_39 = arith.constant dense<0.000000e+00> : vector<4x8x32xf32>
    %57 = tpu.matmul %55, %56, %cst_39 {dimension_numbers = #tpu.dot_dimension_numbers<[2], [1], [1], [2], [0, 0, 0, 1, 1, 2], [0], [0]>, precision = #tpu.contract_precision<fp32>} : vector<4x8x8xf32>, vector<4x8x32xf32>, vector<4x8x32xf32> -> vector<4x8x32xf32>
    "tpu.trace_stop"() : () -> ()
    %cst_40 = arith.constant dense<0.000000e+00> : vector<8x32xf32>
    %58 = vector.multi_reduction <add>, %57, %cst_40 [0] : vector<4x8x32xf32> to vector<8x32xf32>
    %c0_41 = arith.constant 0 : index
    %c0_42 = arith.constant 0 : index
    %59 = vector.load %arg11[%c0_41, %c0_42] : memref<1x32xf32, #tpu.memory_space<vmem>>, vector<1x32xf32>
    %60 = vector.broadcast %59 : vector<1x32xf32> to vector<8x32xf32>
    %61 = arith.addf %58, %60 : vector<8x32xf32>
    %62 = arith.addf %1, %61 : vector<8x32xf32>
    %c0_43 = arith.constant 0 : index
    %c0_44 = arith.constant 0 : index
    %63 = vector.load %arg12[%c0_43, %c0_44] : memref<1x32xf32, #tpu.memory_space<vmem>>, vector<1x32xf32>
    %c0_45 = arith.constant 0 : index
    %c0_46 = arith.constant 0 : index
    %64 = vector.load %arg13[%c0_45, %c0_46] : memref<1x32xf32, #tpu.memory_space<vmem>>, vector<1x32xf32>
    %cst_47 = arith.constant dense<0.000000e+00> : vector<8xf32>
    %65 = vector.multi_reduction <add>, %62, %cst_47 [1] : vector<8x32xf32> to vector<8xf32>
    %66 = vector.shape_cast %65 : vector<8xf32> to vector<8x1xf32>
    %cst_48 = arith.constant 3.125000e-02 : f32
    %67 = vector.broadcast %cst_48 : f32 to vector<8x1xf32>
    %68 = arith.mulf %66, %67 : vector<8x1xf32>
    %69 = vector.broadcast %68 : vector<8x1xf32> to vector<8x32xf32>
    %70 = arith.subf %62, %69 : vector<8x32xf32>
    %71 = arith.mulf %70, %70 : vector<8x32xf32>
    %cst_49 = arith.constant dense<0.000000e+00> : vector<8xf32>
    %72 = vector.multi_reduction <add>, %71, %cst_49 [1] : vector<8x32xf32> to vector<8xf32>
    %73 = vector.shape_cast %72 : vector<8xf32> to vector<8x1xf32>
    %cst_50 = arith.constant 0.0322580636 : f32
    %74 = vector.broadcast %cst_50 : f32 to vector<8x1xf32>
    %75 = arith.mulf %73, %74 : vector<8x1xf32>
    %76 = math.sqrt %75 : vector<8x1xf32>
    %cst_51 = arith.constant 9.99999997E-7 : f32
    %77 = vector.broadcast %cst_51 : f32 to vector<8x1xf32>
    %78 = arith.addf %76, %77 : vector<8x1xf32>
    %79 = tpu.reciprocal %78 : vector<8x1xf32> -> vector<8x1xf32>
    %80 = vector.broadcast %63 : vector<1x32xf32> to vector<8x32xf32>
    %81 = arith.mulf %80, %70 : vector<8x32xf32>
    %82 = vector.broadcast %79 : vector<8x1xf32> to vector<8x32xf32>
    %83 = arith.mulf %81, %82 : vector<8x32xf32>
    %84 = vector.broadcast %64 : vector<1x32xf32> to vector<8x32xf32>
    %85 = arith.addf %83, %84 : vector<8x32xf32>
    %c0_52 = arith.constant 0 : index
    %c0_53 = arith.constant 0 : index
    %86 = vector.load %arg14[%c0_52, %c0_53] : memref<32x512xf32, #tpu.memory_space<vmem>>, vector<32x512xf32>
    %cst_54 = arith.constant dense<0.000000e+00> : vector<8x512xf32>
    %87 = tpu.matmul %85, %86, %cst_54 {dimension_numbers = #tpu.dot_dimension_numbers<[1], [0], [0], [1], [0, 0, 1, 1], [], []>, precision = #tpu.contract_precision<fp32>} : vector<8x32xf32>, vector<32x512xf32>, vector<8x512xf32> -> vector<8x512xf32>
    %c0_55 = arith.constant 0 : index
    %c0_56 = arith.constant 0 : index
    %88 = vector.load %arg15[%c0_55, %c0_56] : memref<1x512xf32, #tpu.memory_space<vmem>>, vector<1x512xf32>
    %89 = vector.broadcast %88 : vector<1x512xf32> to vector<8x512xf32>
    %90 = arith.addf %87, %89 : vector<8x512xf32>
    %cst_57 = arith.constant 0.000000e+00 : f32
    %91 = vector.broadcast %cst_57 : f32 to vector<8x512xf32>
    %92 = arith.maximumf %90, %91 : vector<8x512xf32>
    %c0_58 = arith.constant 0 : index
    %c0_59 = arith.constant 0 : index
    %93 = vector.load %arg16[%c0_58, %c0_59] : memref<512x32xf32, #tpu.memory_space<vmem>>, vector<512x32xf32>
    %cst_60 = arith.constant dense<0.000000e+00> : vector<8x32xf32>
    %94 = tpu.matmul %92, %93, %cst_60 {dimension_numbers = #tpu.dot_dimension_numbers<[1], [0], [0], [1], [0, 0, 1, 1], [], []>, precision = #tpu.contract_precision<fp32>} : vector<8x512xf32>, vector<512x32xf32>, vector<8x32xf32> -> vector<8x32xf32>
    %c0_61 = arith.constant 0 : index
    %c0_62 = arith.constant 0 : index
    %95 = vector.load %arg17[%c0_61, %c0_62] : memref<1x32xf32, #tpu.memory_space<vmem>>, vector<1x32xf32>
    %96 = vector.broadcast %95 : vector<1x32xf32> to vector<8x32xf32>
    %97 = arith.addf %94, %96 : vector<8x32xf32>
    %98 = arith.addf %62, %97 : vector<8x32xf32>
    %c0_63 = arith.constant 0 : index
    %c0_64 = arith.constant 0 : index
    %c0_65 = arith.constant 0 : index
    %99 = vector.load %arg18[%c0_63, %c0_64, %c0_65] : memref<1x8x32xf32, #tpu.memory_space<vmem>>, vector<1x8x32xf32>
    %100 = vector.shape_cast %99 : vector<1x8x32xf32> to vector<8x32xf32>
    %101 = vector.shape_cast %98 : vector<8x32xf32> to vector<1x8x32xf32>
    tpu.vector_store %arg18[%c0_63, %c0_64, %c0_65], %101 {strides = array<i32>} : memref<1x8x32xf32, #tpu.memory_space<vmem>>, vector<1x8x32xf32>,
    return
  }
  func.func @transform_0(%arg0: i32) -> (i32, i32, i32) {
    %c0_i32 = arith.constant 0 : i32
    %c0_i32_0 = arith.constant 0 : i32
    %c0_i32_1 = arith.constant 0 : i32
    return %arg0, %c0_i32, %c0_i32_0 : i32, i32, i32
  }
  func.func @transform_1(%arg0: i32) -> (i32, i32) {
    %c0_i32 = arith.constant 0 : i32
    %c0_i32_0 = arith.constant 0 : i32
    %c0_i32_1 = arith.constant 0 : i32
    return %c0_i32, %c0_i32_0 : i32, i32
  }
  func.func @transform_2(%arg0: i32) -> (i32, i32) {
    %c0_i32 = arith.constant 0 : i32
    %c0_i32_0 = arith.constant 0 : i32
    %c0_i32_1 = arith.constant 0 : i32
    return %c0_i32, %c0_i32_0 : i32, i32
  }
  func.func @transform_3(%arg0: i32) -> (i32, i32, i32) {
    %c0_i32 = arith.constant 0 : i32
    %c0_i32_0 = arith.constant 0 : i32
    %c0_i32_1 = arith.constant 0 : i32
    %c0_i32_2 = arith.constant 0 : i32
    return %c0_i32, %c0_i32_0, %c0_i32_1 : i32, i32, i32
  }
  func.func @transform_4(%arg0: i32) -> (i32, i32, i32) {
    %c0_i32 = arith.constant 0 : i32
    %c0_i32_0 = arith.constant 0 : i32
    %c0_i32_1 = arith.constant 0 : i32
    %c0_i32_2 = arith.constant 0 : i32
    return %c0_i32, %c0_i32_0, %c0_i32_1 : i32, i32, i32
  }
  func.func @transform_5(%arg0: i32) -> (i32, i32, i32) {
    %c0_i32 = arith.constant 0 : i32
    %c0_i32_0 = arith.constant 0 : i32
    %c0_i32_1 = arith.constant 0 : i32
    %c0_i32_2 = arith.constant 0 : i32
    return %c0_i32, %c0_i32_0, %c0_i32_1 : i32, i32, i32
  }
  func.func @transform_6(%arg0: i32) -> (i32, i32, i32) {
    %c0_i32 = arith.constant 0 : i32
    %c0_i32_0 = arith.constant 0 : i32
    %c0_i32_1 = arith.constant 0 : i32
    %c0_i32_2 = arith.constant 0 : i32
    return %c0_i32, %c0_i32_0, %c0_i32_1 : i32, i32, i32
  }
  func.func @transform_7(%arg0: i32) -> (i32, i32, i32) {
    %c0_i32 = arith.constant 0 : i32
    %c0_i32_0 = arith.constant 0 : i32
    %c0_i32_1 = arith.constant 0 : i32
    %c0_i32_2 = arith.constant 0 : i32
    return %c0_i32, %c0_i32_0, %c0_i32_1 : i32, i32, i32
  }
  func.func @transform_8(%arg0: i32) -> (i32, i32, i32) {
    %c0_i32 = arith.constant 0 : i32
    %c0_i32_0 = arith.constant 0 : i32
    %c0_i32_1 = arith.constant 0 : i32
    %c0_i32_2 = arith.constant 0 : i32
    return %c0_i32, %c0_i32_0, %c0_i32_1 : i32, i32, i32
  }
  func.func @transform_9(%arg0: i32) -> (i32, i32, i32) {
    %c0_i32 = arith.constant 0 : i32
    %c0_i32_0 = arith.constant 0 : i32
    %c0_i32_1 = arith.constant 0 : i32
    %c0_i32_2 = arith.constant 0 : i32
    return %c0_i32, %c0_i32_0, %c0_i32_1 : i32, i32, i32
  }
  func.func @transform_10(%arg0: i32) -> (i32, i32) {
    %c0_i32 = arith.constant 0 : i32
    %c0_i32_0 = arith.constant 0 : i32
    %c0_i32_1 = arith.constant 0 : i32
    return %c0_i32, %c0_i32_0 : i32, i32
  }
  func.func @transform_11(%arg0: i32) -> (i32, i32) {
    %c0_i32 = arith.constant 0 : i32
    %c0_i32_0 = arith.constant 0 : i32
    %c0_i32_1 = arith.constant 0 : i32
    return %c0_i32, %c0_i32_0 : i32, i32
  }
  func.func @transform_12(%arg0: i32) -> (i32, i32) {
    %c0_i32 = arith.constant 0 : i32
    %c0_i32_0 = arith.constant 0 : i32
    %c0_i32_1 = arith.constant 0 : i32
    return %c0_i32, %c0_i32_0 : i32, i32
  }
  func.func @transform_13(%arg0: i32) -> (i32, i32) {
    %c0_i32 = arith.constant 0 : i32
    %c0_i32_0 = arith.constant 0 : i32
    %c0_i32_1 = arith.constant 0 : i32
    return %c0_i32, %c0_i32_0 : i32, i32
  }
  func.func @transform_14(%arg0: i32) -> (i32, i32) {
    %c0_i32 = arith.constant 0 : i32
    %c0_i32_0 = arith.constant 0 : i32
    %c0_i32_1 = arith.constant 0 : i32
    return %c0_i32, %c0_i32_0 : i32, i32
  }
  func.func @transform_15(%arg0: i32) -> (i32, i32) {
    %c0_i32 = arith.constant 0 : i32
    %c0_i32_0 = arith.constant 0 : i32
    %c0_i32_1 = arith.constant 0 : i32
    return %c0_i32, %c0_i32_0 : i32, i32
  }
  func.func @transform_16(%arg0: i32) -> (i32, i32) {
    %c0_i32 = arith.constant 0 : i32
    %c0_i32_0 = arith.constant 0 : i32
    %c0_i32_1 = arith.constant 0 : i32
    return %c0_i32, %c0_i32_0 : i32, i32
  }
  func.func @transform_17(%arg0: i32) -> (i32, i32, i32) {
    %c0_i32 = arith.constant 0 : i32
    %c0_i32_0 = arith.constant 0 : i32
    %c0_i32_1 = arith.constant 0 : i32
    return %arg0, %c0_i32, %c0_i32_0 : i32, i32, i32
  }
}

</mosaic_0001>

<bundles_post_ra>
// kernel: tpu_custom_call.1
= control target key start
LH: loop header
LB: loop body
LE: loop exit
PB: predicated region body
PF: predicated region fallthrough
CT: control target
= control target key end

     0   :  { %s21983_s0 = inlined_call_operand.vmem [shape: f32[2,8,32], index: 0, kind: input, shape index: {}]   ;;  %s21984_s1 = inlined_call_operand.vmem [shape: f32[1,32], index: 1, kind: input, shape index: {}]   ;;  %s21985_s2 = inlined_call_operand.vmem [shape: f32[1,32], index: 2, kind: input, shape index: {}]   ;;  %s21986_s3 = inlined_call_operand.vmem [shape: f32[4,32,8], index: 3, kind: input, shape index: {}]   ;;  %s21987_s4 = inlined_call_operand.vmem [shape: f32[4,1,8], index: 4, kind: input, shape index: {}]   ;;  %s21988_s5 = inlined_call_operand.vmem [shape: f32[4,32,8], index: 5, kind: input, shape index: {}]   ;;  %s21989_s6 = inlined_call_operand.vmem [shape: f32[4,1,8], index: 6, kind: input, shape index: {}]   ;;  %s21990_s7 = inlined_call_operand.vmem [shape: f32[4,32,8], index: 7, kind: input, shape index: {}]   ;;  %s21991_s8 = inlined_call_operand.vmem [shape: f32[4,1,8], index: 8, kind: input, shape index: {}]   ;;  %s21992_s9 = inlined_call_operand.vmem [shape: f32[4,8,32], index: 9, kind: input, shape index: {}]   ;;  %s21993_s10 = inlined_call_operand.vmem [shape: f32[1,32], index: 10, kind: input, shape index: {}]   ;;  %s21994_s11 = inlined_call_operand.vmem [shape: f32[1,32], index: 11, kind: input, shape index: {}]   ;;  %s21995_s12 = inlined_call_operand.vmem [shape: f32[1,32], index: 12, kind: input, shape index: {}]   ;;  %s21996_s13 = inlined_call_operand.vmem [shape: f32[32,512], index: 13, kind: input, shape index: {}]   ;;  %s21997_s14 = inlined_call_operand.vmem [shape: f32[1,512], index: 14, kind: input, shape index: {}]   ;;  %s21998_s15 = inlined_call_operand.vmem [shape: f32[512,32], index: 15, kind: input, shape index: {}]   ;;  %s21999_s16 = inlined_call_operand.vmem [shape: f32[1,32], index: 16, kind: input, shape index: {}]   ;;  %s22000_s17 = inlined_call_operand.hbm [shape: f32[2,8,32], index: 17, kind: output, shape index: {}]  }
   0x1   :  { %22139 = sst [smem:[#allocation49_spill]] %s21983_s0 }
   0x2   :  { %22140 = sst [smem:[#allocation50_spill]] %s21984_s1 }
   0x3   :  { %22141 = sst [smem:[#allocation51_spill]] %s21985_s2 }
   0x4   :  { %22142 = sst [smem:[#allocation52_spill]] %s21986_s3 }
   0x5   :  { %22 = vsyncpa [#allocation3], 0 }
   0x6   :  { %24 = vsyncpa [#allocation3 + $0x1], 0  ;;  %s18560_s24 = smov 0   ;;  %s18562_s25 = smov 0  }
   0x7   :  { %s18564_s26 = smov 0   ;;  %s18566_s27 = smov 0  }
   0x8 LB: > { %22143 = sst [smem:[#allocation5_spill]] %s18460_s26  ;;  %s18581_s28 = sadd.s32 4294967295, %s18464_s27   ;;  %s18464_s27 = sphi %s18566_s27, %s22442_s27   ;;  %s18460_s26 = sphi %s18564_s26, %s22444_s26   ;;  %s18456_s25 = sphi %s18562_s25, %s22446_s25   ;;  %s18452_s24 = sphi %s18560_s24, %s22445_s24  }
   0x9   : > { %s15043_s29 = sadd.s32 4294967294, %s18464_s27   ;;  %s18585_s0 = sadd.s32 1, %s18464_s27  }
   0xa   : > { %22144 = sst [smem:[#allocation6_spill]] %s18585_s0  ;;  %s399_s30 = sadd.s32 1, %s18460_s26 }
   0xb   : > { %s396_s18 = ssub.s32 %s18464_s27, %s18585_s0  ;;  %p409_p0 = scmp.ne.s32.totalorder %s18460_s26, %s18456_s25 }
   0xc   : > { %p397_p1 = scmp.eq.s32.totalorder %s396_s18, 0  ;;  %p410_p2 = scmp.eq.s32.totalorder %s18581_s28, 1 }
   0xd   : > { %p415_p3 = scmp.ne.s32.totalorder %s18456_s25, %s18452_s24  ;;  %p416_p4 = scmp.eq.s32.totalorder %s15043_s29, 1 }
   0xe   : > { %s18596_s19 = scalar_select %p397_p1, %s18460_s26, %s399_s30  }
   0xf   : > { %p18598_p5 = por %p410_p2, %p409_p0  ;;  %p18602_p6 = por %p416_p4, %p415_p3 }
  0x10   : > { %22145 = sst [smem:[#allocation7_spill]] %s18596_s19  ;;  %p15046_p7 = scmp.ge.s32.totalorder %s18464_s27, 1 }
  0x11   : > { %p489_p8 = scmp.lt.s32.totalorder %s18464_s27, 3 }
  0x13   : > { %p490_p9 = pnand %p15046_p7, %p489_p8 }
  0x15   : > { %493 = sbr.rel (%p490_p9) target bundleno = 2890 (0xb4a), region = 88 }
  0x1c   : > { %p540_p10 = scmp.lt.s32.totalorder %s18581_s28, 1  ;;  %vm547_vm0 = vcmask 261120   ;;  %s22148_s30 = sld [smem:[#allocation49_spill]]  ;;  %v18466_v18 = vmov 0.0|0.0   ;;  %vm18467_vm1 = vmmov 0   ;;  %v22004_v40 = vmov 0.0  }
  0x1d   : > { %s22149_s3 = sld [smem:[#allocation52_spill]]  ;;  %17147 = vmatprep.subr.bf16.mxu0 %v18466_v18  ;;  %17183 = vmatprep.subr.bf16.mxu1 %v18466_v18  ;;  %s22150_s19 = sld [smem:[#allocation50_spill]]  ;;  %vm6537_vm4 = vcmask 64512  }
  0x1e   : > { %s541_s21 = scalar_select %p540_p10, %s18581_s28, 1  ;;  %16003 = vmatprep.mubr.msk.f32.mxu0 %vm18467_vm1, %v22004_v40  ;;  %16069 = vmatprep.mubr.msk.f32.mxu1 %vm18467_vm1, %v22004_v40 }
  0x1f   : > { %s22151_s2 = sld [smem:[#allocation51_spill]] }
  0x20   : > { %s15048_s22 = sshll.u32 %s541_s21, 3 }
  0x22   : > { %s18613_s18 = scalar_lea.vmem %s22148_s30, %s15048_s22  ;;  %s15068_s30 = sshll.u32 %s18581_s28, 7 }
  0x23   : > { %v544_v0 = vld [vmem:[%s18613_s18] sm:$0xff]  ;;  %v583_v8 = vld [vmem:[%s22149_s3 + $0x8] sm:$0xff]  ;;  %v584_v22 = vld [vmem:[%s22149_s3 + $0x10] sm:$0xff]  ;;  %s21940_s21 = scalar_lea.hbm %s22000_s17, %s15068_s30  ;;  %s18469_s28 = smov [#allocation2]  }
  0x24   : > { %v548_v1 = vsel %vm547_vm0, %v544_v0, 0.0  ;;  %v582_v7 = vld [vmem:[%s22149_s3] sm:$0xff]  ;;  %v633_v11 = vand.u32 4294901760, %v583_v8  ;;  %v587_v12 = vld [vmem:[%s22149_s3 + $0x28] sm:$0xff]  ;;  %v585_v23 = vld [vmem:[%s22149_s3 + $0x18] sm:$0xff]  ;;  %v636_v25 = vand.u32 4294901760, %v584_v22 }
  0x25   : > { %549 = vadd.xlane.f32.xlu0 %v548_v1  ;;  %v586_v9 = vld [vmem:[%s22149_s3 + $0x20] sm:$0xff]  ;;  %v630_v10 = vand.u32 4294901760, %v582_v7  ;;  %v1118_v14 = vand.u32 4294901760, %v587_v12  ;;  %v588_v24 = vld [vmem:[%s22149_s3 + $0x30] sm:$0xff]  ;;  %v639_v26 = vand.u32 4294901760, %v585_v23  ;;  %v589_v27 = vld [vmem:[%s22149_s3 + $0x38] sm:$0xff] }
  0x26   : > { %v1115_v13 = vand.u32 4294901760, %v586_v9  ;;  %v18638_v17 = vsub.f32 %v583_v8, %v633_v11  ;;  %v1121_v28 = vand.u32 4294901760, %v588_v24  ;;  %v1124_v30 = vand.u32 4294901760, %v589_v27 }
  0x27   : > { %v18634_v15 = vpack.c.bf16 %v633_v11, %v630_v10  ;;  %v18636_v16 = vsub.f32 %v582_v7, %v630_v10  ;;  %v18646_v21 = vsub.f32 %v587_v12, %v1118_v14  ;;  %v18668_v34 = vpack.c.bf16 %v639_v26, %v636_v25 }
  0x28   : > { %v18642_v19 = vpack.c.bf16 %v1118_v14, %v1115_v13  ;;  %v18644_v20 = vsub.f32 %v586_v9, %v1115_v13  ;;  %v718_v31 = vand.u32 4294901760, %v18638_v17  ;;  %v18670_v35 = vsub.f32 %v584_v22, %v636_v25 }
  0x29   : > { %17149 = vmatpush3.bf16.msra.mxu0 %v18634_v15  ;;  %v711_v29 = vand.u32 4294901760, %v18636_v16  ;;  %v1203_v33 = vand.u32 4294901760, %v18646_v21  ;;  %v18672_v36 = vsub.f32 %v585_v23, %v639_v26  ;;  %v18674_v37 = vsub.f32 %v588_v24, %v1121_v28  ;;  %v15050_v24 = vld [vmem:[%s22151_s2] ss:$0 sm:$0xff]  ;;  %s537_s2 = sand.u32 1, %s18456_s25  }
  0x2a   : > { %17185 = vmatpush3.bf16.msra.mxu1 %v18642_v19  ;;  %17150 = vmatprep.subr.bf16.mxu0 %v18466_v18  ;;  %v1196_v32 = vand.u32 4294901760, %v18644_v20  ;;  %v18676_v38 = vpack.c.bf16 %v1124_v30, %v1121_v28  ;;  %v18678_v39 = vsub.f32 %v589_v27, %v1124_v30  ;;  %v719_v42 = vsub.f32 %v18638_v17, %v718_v31  ;;  %s15047_s29 = sshll.u32 %s537_s2, 3  ;;  %s14971_s22 = scalar_lea.sflag [#allocation3], %s537_s2 }
  0x2b   : > { %17186 = vmatprep.subr.bf16.mxu1 %v18466_v18  ;;  %v712_v41 = vsub.f32 %v18636_v16, %v711_v29  ;;  %v1204_v44 = vsub.f32 %v18646_v21, %v1203_v33  ;;  %v725_v45 = vand.u32 4294901760, %v18670_v35  ;;  %v732_v46 = vand.u32 4294901760, %v18672_v36  ;;  %s539_s26 = scalar_lea.vmem [#allocation2], %s15047_s29  ;;  %s18406_s29 = sshll.u32 %s18469_s28, 4  ;;  %s18407_s29 = int_to_ptr.vmem [resolvable:$false] %s18406_s29 }
  0x2c   : > { %v1197_v43 = vsub.f32 %v18644_v20, %v1196_v32  ;;  %v1210_v47 = vand.u32 4294901760, %v18674_v37  ;;  %v720_v49 = vand.u32 4294901760, %v719_v42  ;;  %v1217_v51 = vand.u32 4294901760, %v18678_v39 }
  0x2d   : > { %17152 = vmatpush3.bf16.msra.mxu0 %v18668_v34  ;;  %v713_v48 = vand.u32 4294901760, %v712_v41  ;;  %v1205_v52 = vand.u32 4294901760, %v1204_v44  ;;  %v726_v53 = vsub.f32 %v18670_v35, %v725_v45  ;;  %v733_v54 = vsub.f32 %v18672_v36, %v732_v46  ;;  %v593_v44 = vld [vmem:[%s22149_s3 + $0x58] sm:$0xff] }
  0x2e   : > { %17188 = vmatpush3.bf16.msra.mxu1 %v18676_v38  ;;  %17153 = vmatprep.subr.bf16.mxu0 %v18466_v18  ;;  %v1198_v50 = vand.u32 4294901760, %v1197_v43  ;;  %v1211_v55 = vsub.f32 %v18674_v37, %v1210_v47  ;;  %v1218_v57 = vsub.f32 %v18678_v39, %v1217_v51  ;;  %v17160_v1 = vpack.c.bf16 %v18638_v17, %v18636_v16  ;;  %v592_v43 = vld [vmem:[%s22149_s3 + $0x50] sm:$0xff] }
  0x2f   : > { %17189 = vmatprep.subr.bf16.mxu1 %v18466_v18  ;;  %v17154_v56 = vpack.c.bf16 %v720_v49, %v713_v48  ;;  %v727_v59 = vand.u32 4294901760, %v726_v53  ;;  %v734_v60 = vand.u32 4294901760, %v733_v54  ;;  %v18710_v7 = vpack.c.bf16 %v1203_v33, %v1196_v32  ;;  %v590_v32 = vld [vmem:[%s22149_s3 + $0x40] sm:$0xff]  ;;  %v591_v33 = vld [vmem:[%s22149_s3 + $0x48] sm:$0xff] }
  0x30   : > { %v17190_v58 = vpack.c.bf16 %v1205_v52, %v1198_v50  ;;  %v1212_v61 = vand.u32 4294901760, %v1211_v55  ;;  %v1219_v62 = vand.u32 4294901760, %v1218_v57  ;;  %v18712_v8 = vpack.c.bf16 %v732_v46, %v725_v45  ;;  %v596_v45 = vld [vmem:[%s22149_s3 + $0x70] sm:$0xff]  ;;  %v597_v46 = vld [vmem:[%s22149_s3 + $0x78] sm:$0xff] }
  0x31   : > { %v17157_v63 = vpack.c.bf16 %v734_v60, %v727_v59  ;;  %v18714_v9 = vpack.c.bf16 %v1217_v51, %v1210_v47  ;;  %v1606_v51 = vand.u32 4294901760, %v592_v43  ;;  %v1609_v52 = vand.u32 4294901760, %v593_v44 }
  0x32   : > { %v2091_v53 = vand.u32 4294901760, %v596_v45  ;;  %v2094_v54 = vand.u32 4294901760, %v597_v46 }
  0x33   : > { %v18826_v60 = vsub.f32 %v593_v44, %v1609_v52 }
  0xb2   : > { %v550_v2 = vpop.xlane.xlu0 %549 }
  0xb3   : > { %v551_v3 = vmul.f32 0.03125, %v550_v2  ;;  %v17196_v2 = vpack.c.bf16 %v18646_v21, %v18644_v20  ;;  %v15049_v21 = vld [vmem:[%s22150_s19] ss:$0 sm:$0xff] }
  0xb5   : > { %v18617_v4 = vsub.f32 %v544_v0, %v551_v3  ;;  %v17193_v0 = vpack.c.bf16 %v1219_v62, %v1212_v61  ;;  %v17163_v3 = vpack.c.bf16 %v18672_v36, %v18670_v35  ;;  %v594_v35 = vld [vmem:[%s22149_s3 + $0x60] sm:$0xff]  ;;  %v595_v36 = vld [vmem:[%s22149_s3 + $0x68] sm:$0xff]  ;;  %v18828_v61 = vsub.f32 %v596_v45, %v2091_v53  ;;  %s18408_s3 = scalar_lea.vmem %s18407_s29, 256 }
  0xb6   : > { %v2085_v41 = vand.u32 4294901760, %v594_v35  ;;  %v2088_v42 = vand.u32 4294901760, %v595_v36  ;;  %v18830_v62 = vsub.f32 %v597_v46, %v2094_v54 }
  0xb7   : > { %v553_v5 = vmul.f32 %v18617_v4, %v18617_v4  ;;  %v573_v22 = vmul.f32 %v15049_v21, %v18617_v4 }
  0xb8   : > { %v18808_v49 = vsub.f32 %v594_v35, %v2085_v41  ;;  %v18810_v50 = vsub.f32 %v595_v36, %v2088_v42 }
  0xb9   : > { %v554_v6 = vsel %vm547_vm0, %v553_v5, 0.0  ;;  %v17199_v5 = vpack.c.bf16 %v18678_v39, %v18674_v37  ;;  %v1600_v37 = vand.u32 4294901760, %v590_v32  ;;  %v1603_v39 = vand.u32 4294901760, %v591_v33 }
  0xba   : > { %555 = vadd.xlane.f32.xlu0 %v554_v6  ;;  %v18708_v6 = vpack.c.bf16 %v718_v31, %v711_v29  ;;  %v2173_v59 = vand.u32 4294901760, %v18810_v50 }
  0xbb   : > { %v18804_v47 = vsub.f32 %v590_v32, %v1600_v37  ;;  %v18806_v48 = vsub.f32 %v591_v33, %v1603_v39  ;;  %v17271_v33 = vpack.c.bf16 %v18830_v62, %v18828_v61 }
  0xbd   : > { %v1681_v55 = vand.u32 4294901760, %v18804_v47  ;;  %v1688_v57 = vand.u32 4294901760, %v18806_v48 }
  0xbf   : > { %v17244_v35 = vpack.c.bf16 %v1688_v57, %v1681_v55 }
 0x147   : > { %v556_v10 = vpop.xlane.xlu0 %555 }
 0x148   : > { %v557_v11 = vmul.f32 0.032258064, %v556_v10 }
 0x14a   : > { %18377 = vrsqrt.f32 %v557_v11  ;;  %vm560_vm2 = vcmp.eq.f32.partialorder %v557_v11, inf  ;;  %v563_v14 = vand.u32 2147483648, %v557_v11  ;;  %vm562_vm3 = vcmp.eq.f32.partialorder %v557_v11, 0.0 }
 0x154   : > { %v18378_v12 = vpop.eup %18377 }
 0x155   : > { %v559_v13 = vmul.f32 %v18378_v12, %v557_v11 }
 0x157   : > { %v561_v16 = vsel %vm560_vm2, %v557_v11, %v559_v13 }
 0x158   : > { %v564_v17 = vsel %vm562_vm3, %v563_v14, %v561_v16 }
 0x159   : > { %v565_v20 = vadd.f32 1e-06, %v564_v17 }
 0x15b   : > { %18379 = vrcp.f32 %v565_v20 }
 0x165   : > { %v18380_v23 = vpop.eup %18379 }
 0x166   : > { %v574_v25 = vmul.f32 %v18380_v23, %v573_v22 }
 0x168   : > { %v581_v26 = vadd.f32 %v15050_v24, %v574_v25 }
 0x16a   : > { %v627_v27 = vsel %vm547_vm0, %v581_v26, 0 }
 0x16b   : > { %v18724_v28 = vand.u32 4294901760, %v627_v27 }
 0x16d   : > { %v18727_v29 = vsub.f32 %v627_v27, %v18724_v28  ;;  %v17232_v27 = vpack.c.bf16 %v18806_v48, %v18804_v47 }
 0x16f   : > { %v18730_v30 = vand.u32 4294901760, %v18727_v29 }
 0x171   : > { %v701_v4 = vsub.f32 %v18727_v29, %v18730_v30 }
 0x173   : > { %v18734_v31 = vand.u32 4294901760, %v701_v4  ;;  %v17268_v4 = vpack.c.bf16 %v18810_v50, %v18808_v49 }
 0x175   : > { %16004 = vmatmul.mubr.f32.vlgmr.msra.gmra.mrb[0].mxu0 %v18734_v31  ;;  %16070 = vmatmul.mubr.f32.vlgmr.msra.gmra.mrb[0].mxu1 %v18734_v31 }
 0x176   : > { %17155 = vmatpush3.bf16.msra.mxu0 %v17154_v56  ;;  %17191 = vmatpush3.bf16.msra.mxu1 %v17190_v58  ;;  %v18819_v56 = vsub.f32 %v592_v43, %v1606_v51  ;;  %v2166_v58 = vand.u32 4294901760, %v18808_v49 }
 0x177   : > { %17156 = vmatprep.subr.bf16.mxu0 %v18466_v18  ;;  %17192 = vmatprep.subr.bf16.mxu1 %v18466_v18 }
 0x178   : > { %16014 = vmatprep.mubr.msk.f32.mxu0 %vm18467_vm1, %v22004_v40  ;;  %16080 = vmatprep.mubr.msk.f32.mxu1 %vm18467_vm1, %v22004_v40  ;;  %v17235_v32 = vpack.c.bf16 %v18826_v60, %v18819_v56  ;;  %v17280_v36 = vpack.c.bf16 %v2173_v59, %v2166_v58 }
 0x17a   : > { %17158 = vmatpush3.bf16.msra.mxu0 %v17157_v63  ;;  %17194 = vmatpush3.bf16.msra.mxu1 %v17193_v0  ;;  %v18838_v63 = vpack.c.bf16 %v1603_v39, %v1600_v37  ;;  %v2167_v0 = vsub.f32 %v18808_v49, %v2166_v58  ;;  %v2569_v37 = vld [vmem:[%s21988_s5] sm:$0xff]  ;;  %v2570_v39 = vld [vmem:[%s21988_s5 + $0x8] sm:$0xff]  ;;  %v2571_v49 = vld [vmem:[%s21988_s5 + $0x10] sm:$0xff] }
 0x17b   : > { %17159 = vmatprep.subr.bf16.mxu0 %v18466_v18  ;;  %17195 = vmatprep.subr.bf16.mxu1 %v18466_v18  ;;  %v2614_v43 = vand.u32 4294901760, %v2569_v37  ;;  %v2617_v44 = vand.u32 4294901760, %v2570_v39 }
 0x17d   : > { %16015 = vmatmul.mubr.f32.vlgmr.msra.gmra.mrb[0].mxu0 %v18724_v28  ;;  %16081 = vmatmul.mubr.f32.vlgmr.msra.gmra.mrb[0].mxu1 %v18724_v28 }
 0x17e   : > { %17161 = vmatpush3.bf16.msra.mxu0 %v17160_v1  ;;  %17197 = vmatpush3.bf16.msra.mxu1 %v17196_v2  ;;  %v2174_v1 = vsub.f32 %v18810_v50, %v2173_v59  ;;  %v1695_v2 = vand.u32 4294901760, %v18819_v56  ;;  %v2572_v50 = vld [vmem:[%s21988_s5 + $0x18] sm:$0xff] }
 0x17f   : > { %17162 = vmatprep.subr.bf16.mxu0 %v18466_v18  ;;  %17198 = vmatprep.subr.bf16.mxu1 %v18466_v18  ;;  %v2623_v58 = vand.u32 4294901760, %v2572_v50 }
 0x180   : > { %16025 = vmatprep.mubr.msk.f32.mxu0 %vm18467_vm1, %v22004_v40  ;;  %16091 = vmatprep.mubr.msk.f32.mxu1 %vm18467_vm1, %v22004_v40  ;;  %v2175_v11 = vand.u32 4294901760, %v2174_v1  ;;  %v1696_v12 = vsub.f32 %v18819_v56, %v1695_v2  ;;  %v2620_v56 = vand.u32 4294901760, %v2571_v49 }
 0x182   : > { %17164 = vmatpush3.bf16.msra.mxu0 %v17163_v3  ;;  %17200 = vmatpush3.bf16.msra.mxu1 %v17199_v5  ;;  %v18855_v3 = vpack.c.bf16 %v2088_v42, %v2085_v41  ;;  %v1702_v5 = vand.u32 4294901760, %v18826_v60  ;;  %v1697_v21 = vand.u32 4294901760, %v1696_v12  ;;  %v2573_v41 = vld [vmem:[%s21988_s5 + $0x20] sm:$0xff]  ;;  %v2574_v42 = vld [vmem:[%s21988_s5 + $0x28] sm:$0xff] }
 0x183   : > { %17165 = vmatprep.subr.bf16.mxu0 %v18466_v18  ;;  %17201 = vmatprep.subr.bf16.mxu1 %v18466_v18  ;;  %v3099_v45 = vand.u32 4294901760, %v2573_v41 }
 0x184   : > { %v1703_v13 = vsub.f32 %v18826_v60, %v1702_v5  ;;  %v17247_v46 = vpack.c.bf16 %v1702_v5, %v1695_v2 }
 0x185   : > { %16026 = vmatmul.mubr.f32.vlgmr.msra.gmra.mrb[0].mxu0 %v18727_v29  ;;  %16092 = vmatmul.mubr.f32.vlgmr.msra.gmra.mrb[0].mxu1 %v18727_v29 }
 0x186   : > { %17167 = vmatpush3.bf16.msra.mxu0 %v18634_v15  ;;  %17203 = vmatpush3.bf16.msra.mxu1 %v18642_v19  ;;  %v1704_v22 = vand.u32 4294901760, %v1703_v13 }
 0x187   : > { %17168 = vmatprep.subr.bf16.mxu0 %v18466_v18  ;;  %17204 = vmatprep.subr.bf16.mxu1 %v18466_v18 }
 0x188   : > { %16036 = vmatprep.mubr.msk.f32.mxu0 %vm18467_vm1, %v22004_v40  ;;  %16102 = vmatprep.mubr.msk.f32.mxu1 %vm18467_vm1, %v22004_v40  ;;  %v17229_v25 = vpack.c.bf16 %v1704_v22, %v1697_v21 }
 0x18a   : > { %17170 = vmatpush3.bf16.msra.mxu0 %v18668_v34  ;;  %17206 = vmatpush3.bf16.msra.mxu1 %v18676_v38 }
 0x18b   : > { %17171 = vmatprep.subr.bf16.mxu0 %v18466_v18  ;;  %17207 = vmatprep.subr.bf16.mxu1 %v18466_v18 }
 0x18d   : > { %16037 = vmatmul.mubr.f32.vlgmr.msra.gmra.mrb[0].mxu0 %v18730_v30  ;;  %16103 = vmatmul.mubr.f32.vlgmr.msra.gmra.mrb[0].mxu1 %v18730_v30 }
 0x18e   : > { %17173 = vmatpush3.bf16.msra.mxu0 %v18708_v6  ;;  %17209 = vmatpush3.bf16.msra.mxu1 %v18710_v7  ;;  %v2180_v6 = vand.u32 4294901760, %v18828_v61  ;;  %v2187_v7 = vand.u32 4294901760, %v18830_v62 }
 0x18f   : > { %17174 = vmatprep.subr.bf16.mxu0 %v18466_v18  ;;  %17210 = vmatprep.subr.bf16.mxu1 %v18466_v18 }
 0x190   : > { %16047 = vmatprep.mubr.msk.f32.mxu0 %vm18467_vm1, %v22004_v40  ;;  %16113 = vmatprep.mubr.msk.f32.mxu1 %vm18467_vm1, %v22004_v40  ;;  %v2181_v14 = vsub.f32 %v18828_v61, %v2180_v6  ;;  %v2188_v16 = vsub.f32 %v18830_v62, %v2187_v7  ;;  %v18994_v61 = vsub.f32 %v2571_v49, %v2620_v56 }
 0x192   : > { %17176 = vmatpush3.bf16.msra.mxu0 %v18712_v8  ;;  %17212 = vmatpush3.bf16.msra.mxu1 %v18714_v9  ;;  %v18862_v8 = vpack.c.bf16 %v1609_v52, %v1606_v51  ;;  %v18864_v9 = vpack.c.bf16 %v2094_v54, %v2091_v53  ;;  %v2182_v23 = vand.u32 4294901760, %v2181_v14  ;;  %v2189_v24 = vand.u32 4294901760, %v2188_v16  ;;  %v2575_v51 = vld [vmem:[%s21988_s5 + $0x30] sm:$0xff]  ;;  %v2576_v52 = vld [vmem:[%s21988_s5 + $0x38] sm:$0xff] }
 0x193   : > { %17177 = vmatprep.subr.bf16.mxu0 %v18466_v18  ;;  %17213 = vmatprep.subr.bf16.mxu1 %v18466_v18  ;;  %v18982_v53 = vsub.f32 %v2569_v37, %v2614_v43  ;;  %v18984_v54 = vsub.f32 %v2570_v39, %v2617_v44  ;;  %v3105_v59 = vand.u32 4294901760, %v2575_v51  ;;  %v3108_v60 = vand.u32 4294901760, %v2576_v52 }
 0x194   : > { %v17265_v26 = vpack.c.bf16 %v2189_v24, %v2182_v23  ;;  %v19038_v14 = vpack.c.bf16 %v2623_v58, %v2620_v56  ;;  %v2580_v56 = vld [vmem:[%s21988_s5 + $0x58] sm:$0xff] }
 0x195   : > { %16048 = vmatmul.mubr.f32.vlgmr.msra.gmra.mrb[0].mxu0 %v18724_v28  ;;  %16114 = vmatmul.mubr.f32.vlgmr.msra.gmra.mrb[0].mxu1 %v18724_v28  ;;  %v2695_v62 = vand.u32 4294901760, %v18982_v53  ;;  %v19003_v1 = vsub.f32 %v2575_v51, %v3105_v59  ;;  %v19005_v2 = vsub.f32 %v2576_v52, %v3108_v60  ;;  %v19040_v16 = vpack.c.bf16 %v3108_v60, %v3105_v59 }
 0x196   : > { %17179 = vmatpush3.bf16.msra.mxu0 %v18634_v15  ;;  %17215 = vmatpush3.bf16.msra.mxu1 %v18642_v19  ;;  %v1682_v15 = vsub.f32 %v18804_v47, %v1681_v55  ;;  %v1689_v19 = vsub.f32 %v18806_v48, %v1688_v57  ;;  %v17283_v47 = vpack.c.bf16 %v2187_v7, %v2180_v6  ;;  %v3102_v48 = vand.u32 4294901760, %v2574_v42 }
 0x197   : > { %17180 = vmatprep.subr.bf16.mxu0 %v18466_v18  ;;  %17216 = vmatprep.subr.bf16.mxu1 %v18466_v18  ;;  %v18986_v55 = vsub.f32 %v2573_v41, %v3099_v45  ;;  %v2696_v6 = vsub.f32 %v18982_v53, %v2695_v62  ;;  %v3194_v12 = vand.u32 4294901760, %v19003_v1  ;;  %v3201_v13 = vand.u32 4294901760, %v19005_v2 }
 0x198   : > { %16058 = vmatprep.mubr.msk.f32.mxu0 %vm18467_vm1, %v22004_v40  ;;  %16124 = vmatprep.mubr.msk.f32.mxu1 %vm18467_vm1, %v22004_v40  ;;  %v1683_v10 = vand.u32 4294901760, %v1682_v15  ;;  %v18988_v57 = vsub.f32 %v2574_v42, %v3102_v48  ;;  %v2702_v15 = vand.u32 4294901760, %v18984_v54  ;;  %v17304_v37 = vpack.c.bf16 %v18984_v54, %v18982_v53 }
 0x199   : > { %v3195_v23 = vsub.f32 %v19003_v1, %v3194_v12  ;;  %v3202_v24 = vsub.f32 %v19005_v2, %v3201_v13  ;;  %v17343_v42 = vpack.c.bf16 %v19005_v2, %v19003_v1 }
 0x19a   : > { %17182 = vmatpush3.bf16.msra.mxu0 %v18668_v34  ;;  %17218 = vmatpush3.bf16.msra.mxu1 %v18676_v38  ;;  %v1690_v34 = vand.u32 4294901760, %v1689_v19  ;;  %v2168_v38 = vand.u32 4294901760, %v2167_v0  ;;  %v3180_v19 = vand.u32 4294901760, %v18986_v55  ;;  %v19001_v0 = vsub.f32 %v2572_v50, %v2623_v58  ;;  %v2584_v58 = vld [vmem:[%s21988_s5 + $0x78] sm:$0xff] }
 0x19b   : > { %17219 = vmatprep.subr.bf16.mxu0 %v18466_v18  ;;  %17255 = vmatprep.subr.bf16.mxu1 %v18466_v18  ;;  %v3187_v5 = vand.u32 4294901760, %v18988_v57  ;;  %v2703_v7 = vsub.f32 %v18984_v54, %v2702_v15  ;;  %v17340_v39 = vpack.c.bf16 %v18988_v57, %v18986_v55  ;;  %v17355_v54 = vpack.c.bf16 %v3201_v13, %v3194_v12 }
 0x19c   : > { %v17226_v17 = vpack.c.bf16 %v1690_v34, %v1683_v10  ;;  %v17262_v20 = vpack.c.bf16 %v2175_v11, %v2168_v38  ;;  %v3181_v10 = vsub.f32 %v18986_v55, %v3180_v19  ;;  %v2709_v34 = vand.u32 4294901760, %v18994_v61  ;;  %v2579_v55 = vld [vmem:[%s21988_s5 + $0x50] sm:$0xff] }
 0x19d   : > { %16059 = vmatmul.mubr.f32.vlgmr.msra.gmra.mrb[0].mxu0 %v18724_v28  ;;  %16125 = vmatmul.mubr.f32.vlgmr.msra.gmra.mrb[0].mxu1 %v18724_v28  ;;  %v3188_v38 = vsub.f32 %v18988_v57, %v3187_v5  ;;  %v2716_v11 = vand.u32 4294901760, %v19001_v0  ;;  %v17307_v41 = vpack.c.bf16 %v19001_v0, %v18994_v61  ;;  %v2583_v57 = vld [vmem:[%s21988_s5 + $0x70] sm:$0xff]  ;;  %v4078_v1 = vand.u32 4294901760, %v2584_v58 }
 0x19e   : > { %17221 = vmatpush3.bf16.msra.mxu0 %v18838_v63  ;;  %17257 = vmatpush3.bf16.msra.mxu1 %v18855_v3 }
 0x19f   : > { %17222 = vmatprep.subr.bf16.mxu0 %v18466_v18  ;;  %17258 = vmatprep.subr.bf16.mxu1 %v18466_v18  ;;  %v3189_v21 = vand.u32 4294901760, %v3188_v38  ;;  %v2717_v22 = vsub.f32 %v19001_v0, %v2716_v11  ;;  %v17319_v53 = vpack.c.bf16 %v2716_v11, %v2709_v34  ;;  %v4075_v0 = vand.u32 4294901760, %v2583_v57 }
 0x1a0   : > { %16135 = vmatprep.mubr.msk.f32.mxu0 %vm18467_vm1, %v22004_v40  ;;  %16201 = vmatprep.mubr.msk.f32.mxu1 %vm18467_vm1, %v22004_v40  ;;  %v19182_v11 = vsub.f32 %v2584_v58, %v4078_v1 }
 0x1a1   : > { %v19180_v38 = vsub.f32 %v2583_v57, %v4075_v0 }
 0x1a2   : > { %17224 = vmatpush3.bf16.msra.mxu0 %v18862_v8  ;;  %17260 = vmatpush3.bf16.msra.mxu1 %v18864_v9 }
 0x1a3   : > { %17225 = vmatprep.subr.bf16.mxu0 %v18466_v18  ;;  %17261 = vmatprep.subr.bf16.mxu1 %v18466_v18 }
 0x1a5   : > { %16136 = vmatmul.mubr.f32.vlgmr.msra.gmra.mrb[2].mxu0 %v18734_v31  ;;  %16202 = vmatmul.mubr.f32.vlgmr.msra.gmra.mrb[2].mxu1 %v18734_v31 }
 0x1a6   : > { %17227 = vmatpush3.bf16.msra.mxu0 %v17226_v17  ;;  %17263 = vmatpush3.bf16.msra.mxu1 %v17262_v20  ;;  %v3182_v17 = vand.u32 4294901760, %v3181_v10  ;;  %v2710_v20 = vsub.f32 %v18994_v61, %v2709_v34 }
 0x1a7   : > { %17228 = vmatprep.subr.bf16.mxu0 %v18466_v18  ;;  %17264 = vmatprep.subr.bf16.mxu1 %v18466_v18 }
 0x1a8   : > { %16146 = vmatprep.mubr.msk.f32.mxu0 %vm18467_vm1, %v22004_v40  ;;  %16212 = vmatprep.mubr.msk.f32.mxu1 %vm18467_vm1, %v22004_v40 }
 0x1aa   : > { %17230 = vmatpush3.bf16.msra.mxu0 %v17229_v25  ;;  %17266 = vmatpush3.bf16.msra.mxu1 %v17265_v26  ;;  %v2711_v26 = vand.u32 4294901760, %v2710_v20 }
 0x1ab   : > { %17231 = vmatprep.subr.bf16.mxu0 %v18466_v18  ;;  %17267 = vmatprep.subr.bf16.mxu1 %v18466_v18 }
 0x1ad   : > { %16147 = vmatmul.mubr.f32.vlgmr.msra.gmra.mrb[2].mxu0 %v18724_v28  ;;  %16213 = vmatmul.mubr.f32.vlgmr.msra.gmra.mrb[2].mxu1 %v18724_v28 }
 0x1ae   : > { %17233 = vmatpush3.bf16.msra.mxu0 %v17232_v27  ;;  %17269 = vmatpush3.bf16.msra.mxu1 %v17268_v4  ;;  %v17334_v27 = vpack.c.bf16 %v3189_v21, %v3182_v17  ;;  %v2718_v4 = vand.u32 4294901760, %v2717_v22  ;;  %v4164_v21 = vand.u32 4294901760, %v19180_v38  ;;  %v4171_v22 = vand.u32 4294901760, %v19182_v11 }
 0x1af   : > { %17234 = vmatprep.subr.bf16.mxu0 %v18466_v18  ;;  %17270 = vmatprep.subr.bf16.mxu1 %v18466_v18 }
 0x1b0   : > { %16157 = vmatprep.mubr.msk.f32.mxu0 %vm18467_vm1, %v22004_v40  ;;  %16223 = vmatprep.mubr.msk.f32.mxu1 %vm18467_vm1, %v22004_v40 }
 0x1b2   : > { %17236 = vmatpush3.bf16.msra.mxu0 %v17235_v32  ;;  %17272 = vmatpush3.bf16.msra.mxu1 %v17271_v33  ;;  %v3196_v32 = vand.u32 4294901760, %v3195_v23  ;;  %v3203_v33 = vand.u32 4294901760, %v3202_v24  ;;  %v19216_v24 = vpack.c.bf16 %v4078_v1, %v4075_v0 }
 0x1b3   : > { %17237 = vmatprep.subr.bf16.mxu0 %v18466_v18  ;;  %17273 = vmatprep.subr.bf16.mxu1 %v18466_v18 }
 0x1b5   : > { %16158 = vmatmul.mubr.f32.vlgmr.msra.gmra.mrb[2].mxu0 %v18727_v29  ;;  %16224 = vmatmul.mubr.f32.vlgmr.msra.gmra.mrb[2].mxu1 %v18727_v29 }
 0x1b6   : > { %17239 = vmatpush3.bf16.msra.mxu0 %v18838_v63  ;;  %17275 = vmatpush3.bf16.msra.mxu1 %v18855_v3 }
 0x1b7   : > { %17240 = vmatprep.subr.bf16.mxu0 %v18466_v18  ;;  %17276 = vmatprep.subr.bf16.mxu1 %v18466_v18 }
 0x1b8   : > { %16168 = vmatprep.mubr.msk.f32.mxu0 %vm18467_vm1, %v22004_v40  ;;  %16234 = vmatprep.mubr.msk.f32.mxu1 %vm18467_vm1, %v22004_v40 }
 0x1ba   : > { %17242 = vmatpush3.bf16.msra.mxu0 %v18862_v8  ;;  %17278 = vmatpush3.bf16.msra.mxu1 %v18864_v9 }
 0x1bb   : > { %17243 = vmatprep.subr.bf16.mxu0 %v18466_v18  ;;  %17279 = vmatprep.subr.bf16.mxu1 %v18466_v18 }
 0x1bd   : > { %16169 = vmatmul.mubr.f32.vlgmr.msra.gmra.mrb[2].mxu0 %v18730_v30  ;;  %16235 = vmatmul.mubr.f32.vlgmr.msra.gmra.mrb[2].mxu1 %v18730_v30 }
 0x1be   : > { %17245 = vmatpush3.bf16.msra.mxu0 %v17244_v35  ;;  %17281 = vmatpush3.bf16.msra.mxu1 %v17280_v36  ;;  %v17301_v35 = vpack.c.bf16 %v2718_v4, %v2711_v26  ;;  %v17337_v36 = vpack.c.bf16 %v3203_v33, %v3196_v32  ;;  %v4165_v32 = vsub.f32 %v19180_v38, %v4164_v21 }
 0x1bf   : > { %17246 = vmatprep.subr.bf16.mxu0 %v18466_v18  ;;  %17282 = vmatprep.subr.bf16.mxu1 %v18466_v18  ;;  %v4172_v33 = vsub.f32 %v19182_v11, %v4171_v22 }
 0x1c0   : > { %16179 = vmatprep.mubr.msk.f32.mxu0 %vm18467_vm1, %v22004_v40  ;;  %16245 = vmatprep.mubr.msk.f32.mxu1 %vm18467_vm1, %v22004_v40 }
 0x1c2   : > { %17248 = vmatpush3.bf16.msra.mxu0 %v17247_v46  ;;  %17284 = vmatpush3.bf16.msra.mxu1 %v17283_v47  ;;  %v2578_v46 = vld [vmem:[%s21988_s5 + $0x48] sm:$0xff]  ;;  %v2581_v47 = vld [vmem:[%s21988_s5 + $0x60] sm:$0xff] }
 0x1c3   : > { %17249 = vmatprep.subr.bf16.mxu0 %v18466_v18  ;;  %17285 = vmatprep.subr.bf16.mxu1 %v18466_v18  ;;  %v3587_v50 = vand.u32 4294901760, %v2578_v46  ;;  %v4069_v51 = vand.u32 4294901760, %v2581_v47 }
 0x1c5   : > { %16180 = vmatmul.mubr.f32.vlgmr.msra.gmra.mrb[2].mxu0 %v18724_v28  ;;  %16246 = vmatmul.mubr.f32.vlgmr.msra.gmra.mrb[2].mxu1 %v18724_v28  ;;  %v19160_v60 = vsub.f32 %v2578_v46, %v3587_v50  ;;  %v19162_v61 = vsub.f32 %v2581_v47, %v4069_v51 }
 0x1c6   : > { %17251 = vmatpush3.bf16.msra.mxu0 %v18838_v63  ;;  %17287 = vmatpush3.bf16.msra.mxu1 %v18855_v3  ;;  %v19014_v63 = vpack.c.bf16 %v2617_v44, %v2614_v43  ;;  %v19016_v3 = vpack.c.bf16 %v3102_v48, %v3099_v45  ;;  %v2577_v43 = vld [vmem:[%s21988_s5 + $0x40] sm:$0xff]  ;;  %v17316_v44 = vpack.c.bf16 %v2702_v15, %v2695_v62  ;;  %v2582_v48 = vld [vmem:[%s21988_s5 + $0x68] sm:$0xff]  ;;  %v3590_v15 = vand.u32 4294901760, %v2579_v55 }
 0x1c7   : > { %17252 = vmatprep.subr.bf16.mxu0 %v18466_v18  ;;  %17288 = vmatprep.subr.bf16.mxu1 %v18466_v18  ;;  %v17352_v45 = vpack.c.bf16 %v3187_v5, %v3180_v19  ;;  %v3584_v49 = vand.u32 4294901760, %v2577_v43  ;;  %v4072_v52 = vand.u32 4294901760, %v2582_v48  ;;  %v3593_v19 = vand.u32 4294901760, %v2580_v56 }
 0x1c8   : > { %16190 = vmatprep.mubr.msk.f32.mxu0 %vm18467_vm1, %v22004_v40  ;;  %16256 = vmatprep.mubr.msk.f32.mxu1 %vm18467_vm1, %v22004_v40  ;;  %v19171_v5 = vsub.f32 %v2579_v55, %v3590_v15 }
 0x1c9   : > { %v19158_v59 = vsub.f32 %v2577_v43, %v3584_v49  ;;  %v19164_v62 = vsub.f32 %v2582_v48, %v4072_v52  ;;  %v19178_v34 = vsub.f32 %v2580_v56, %v3593_v19  ;;  %v19190_v12 = vpack.c.bf16 %v3587_v50, %v3584_v49  ;;  %v4553_v49 = vld [vmem:[%s21990_s7] sm:$0xff] }
 0x1ca   : > { %17254 = vmatpush3.bf16.msra.mxu0 %v18862_v8  ;;  %17290 = vmatpush3.bf16.msra.mxu1 %v18864_v9  ;;  %v2697_v8 = vand.u32 4294901760, %v2696_v6  ;;  %v2704_v9 = vand.u32 4294901760, %v2703_v7  ;;  %v3672_v6 = vand.u32 4294901760, %v19160_v60  ;;  %v4150_v7 = vand.u32 4294901760, %v19162_v61 }
 0x1cb   : > { %17291 = vmatprep.subr.bf16.mxu0 %v18466_v18  ;;  %17327 = vmatprep.subr.bf16.mxu1 %v18466_v18  ;;  %v3665_v2 = vand.u32 4294901760, %v19158_v59  ;;  %v4157_v10 = vand.u32 4294901760, %v19164_v62  ;;  %v19207_v17 = vpack.c.bf16 %v4072_v52, %v4069_v51  ;;  %v3686_v20 = vand.u32 4294901760, %v19178_v34  ;;  %v4554_v52 = vld [vmem:[%s21990_s7 + $0x8] sm:$0xff] }
 0x1cc   : > { %v17298_v25 = vpack.c.bf16 %v2704_v9, %v2697_v8  ;;  %v4151_v13 = vsub.f32 %v19162_v61, %v4150_v7  ;;  %v3679_v9 = vand.u32 4294901760, %v19171_v5  ;;  %v19214_v23 = vpack.c.bf16 %v3593_v19, %v3590_v15  ;;  %v4559_v15 = vld [vmem:[%s21990_s7 + $0x30] sm:$0xff]  ;;  %v4560_v19 = vld [vmem:[%s21990_s7 + $0x38] sm:$0xff] }
 0x1cd   : > { %16191 = vmatmul.mubr.f32.vlgmr.msra.gmra.mrb[2].mxu0 %v18724_v28  ;;  %16257 = vmatmul.mubr.f32.vlgmr.msra.gmra.mrb[2].mxu1 %v18724_v28  ;;  %v4158_v8 = vsub.f32 %v19164_v62, %v4157_v10  ;;  %v3687_v4 = vsub.f32 %v19178_v34, %v3686_v20  ;;  %v17412_v46 = vpack.c.bf16 %v19164_v62, %v19162_v61  ;;  %v4598_v55 = vand.u32 4294901760, %v4553_v49  ;;  %v4555_v61 = vld [vmem:[%s21990_s7 + $0x10] sm:$0xff]  ;;  %v4556_v62 = vld [vmem:[%s21990_s7 + $0x18] sm:$0xff] }
 0x1ce   : > { %17293 = vmatpush3.bf16.msra.mxu0 %v19014_v63  ;;  %17329 = vmatpush3.bf16.msra.mxu1 %v19016_v3  ;;  %v17379_v47 = vpack.c.bf16 %v19178_v34, %v19171_v5  ;;  %v17415_v48 = vpack.c.bf16 %v19182_v11, %v19180_v38  ;;  %v17388_v50 = vpack.c.bf16 %v3672_v6, %v3665_v2  ;;  %v4601_v56 = vand.u32 4294901760, %v4554_v52 }
 0x1cf   : > { %17294 = vmatprep.subr.bf16.mxu0 %v18466_v18  ;;  %17330 = vmatprep.subr.bf16.mxu1 %v18466_v18  ;;  %v4159_v26 = vand.u32 4294901760, %v4158_v8  ;;  %v17424_v51 = vpack.c.bf16 %v4157_v10, %v4150_v7  ;;  %v19334_v0 = vsub.f32 %v4553_v49, %v4598_v55  ;;  %v4607_v7 = vand.u32 4294901760, %v4556_v62 }
 0x1d0   : > { %16267 = vmatprep.mubr.msk.f32.mxu0 %vm18467_vm1, %v22004_v40  ;;  %16333 = vmatprep.mubr.msk.f32.mxu1 %vm18467_vm1, %v22004_v40  ;;  %v19336_v1 = vsub.f32 %v4554_v52, %v4601_v56  ;;  %v5089_v10 = vand.u32 4294901760, %v4559_v15  ;;  %v5092_v34 = vand.u32 4294901760, %v4560_v19 }
 0x1d1   : > { %v4679_v38 = vand.u32 4294901760, %v19334_v0  ;;  %v19354_v8 = vsub.f32 %v4556_v62, %v4607_v7 }
 0x1d2   : > { %17296 = vmatpush3.bf16.msra.mxu0 %v19038_v14  ;;  %17332 = vmatpush3.bf16.msra.mxu1 %v19040_v16 }
 0x1d3   : > { %17297 = vmatprep.subr.bf16.mxu0 %v18466_v18  ;;  %17333 = vmatprep.subr.bf16.mxu1 %v18466_v18 }
 0x1d5   : > { %16268 = vmatmul.mubr.f32.vlgmr.msra.gmra.mrb[4].mxu0 %v18734_v31  ;;  %16334 = vmatmul.mubr.f32.vlgmr.msra.gmra.mrb[4].mxu1 %v18734_v31 }
 0x1d6   : > { %17299 = vmatpush3.bf16.msra.mxu0 %v17298_v25  ;;  %17335 = vmatpush3.bf16.msra.mxu1 %v17334_v27  ;;  %v3680_v27 = vsub.f32 %v19171_v5, %v3679_v9 }
 0x1d7   : > { %17300 = vmatprep.subr.bf16.mxu0 %v18466_v18  ;;  %17336 = vmatprep.subr.bf16.mxu1 %v18466_v18 }
 0x1d8   : > { %16278 = vmatprep.mubr.msk.f32.mxu0 %vm18467_vm1, %v22004_v40  ;;  %16344 = vmatprep.mubr.msk.f32.mxu1 %vm18467_vm1, %v22004_v40 }
 0x1da   : > { %17302 = vmatpush3.bf16.msra.mxu0 %v17301_v35  ;;  %17338 = vmatpush3.bf16.msra.mxu1 %v17337_v36 }
 0x1db   : > { %17303 = vmatprep.subr.bf16.mxu0 %v18466_v18  ;;  %17339 = vmatprep.subr.bf16.mxu1 %v18466_v18 }
 0x1dd   : > { %16279 = vmatmul.mubr.f32.vlgmr.msra.gmra.mrb[4].mxu0 %v18724_v28  ;;  %16345 = vmatmul.mubr.f32.vlgmr.msra.gmra.mrb[4].mxu1 %v18724_v28 }
 0x1de   : > { %17305 = vmatpush3.bf16.msra.mxu0 %v17304_v37  ;;  %17341 = vmatpush3.bf16.msra.mxu1 %v17340_v39  ;;  %v3681_v37 = vand.u32 4294901760, %v3680_v27  ;;  %v3688_v39 = vand.u32 4294901760, %v3687_v4 }
 0x1df   : > { %17306 = vmatprep.subr.bf16.mxu0 %v18466_v18  ;;  %17342 = vmatprep.subr.bf16.mxu1 %v18466_v18 }
 0x1e0   : > { %16289 = vmatprep.mubr.msk.f32.mxu0 %vm18467_vm1, %v22004_v40  ;;  %16355 = vmatprep.mubr.msk.f32.mxu1 %vm18467_vm1, %v22004_v40  ;;  %v17373_v43 = vpack.c.bf16 %v3688_v39, %v3681_v37 }
 0x1e2   : > { %17308 = vmatpush3.bf16.msra.mxu0 %v17307_v41  ;;  %17344 = vmatpush3.bf16.msra.mxu1 %v17343_v42  ;;  %v4166_v41 = vand.u32 4294901760, %v4165_v32  ;;  %v4173_v42 = vand.u32 4294901760, %v4172_v33  ;;  %v19392_v33 = vpack.c.bf16 %v5092_v34, %v5089_v10 }
 0x1e3   : > { %17309 = vmatprep.subr.bf16.mxu0 %v18466_v18  ;;  %17345 = vmatprep.subr.bf16.mxu1 %v18466_v18 }
 0x1e5   : > { %16290 = vmatmul.mubr.f32.vlgmr.msra.gmra.mrb[4].mxu0 %v18727_v29  ;;  %16356 = vmatmul.mubr.f32.vlgmr.msra.gmra.mrb[4].mxu1 %v18727_v29 }
 0x1e6   : > { %17311 = vmatpush3.bf16.msra.mxu0 %v19014_v63  ;;  %17347 = vmatpush3.bf16.msra.mxu1 %v19016_v3 }
 0x1e7   : > { %17312 = vmatprep.subr.bf16.mxu0 %v18466_v18  ;;  %17348 = vmatprep.subr.bf16.mxu1 %v18466_v18 }
 0x1e8   : > { %16300 = vmatprep.mubr.msk.f32.mxu0 %vm18467_vm1, %v22004_v40  ;;  %16366 = vmatprep.mubr.msk.f32.mxu1 %vm18467_vm1, %v22004_v40 }
 0x1ea   : > { %17314 = vmatpush3.bf16.msra.mxu0 %v19038_v14  ;;  %17350 = vmatpush3.bf16.msra.mxu1 %v19040_v16 }
 0x1eb   : > { %17315 = vmatprep.subr.bf16.mxu0 %v18466_v18  ;;  %17351 = vmatprep.subr.bf16.mxu1 %v18466_v18 }
 0x1ed   : > { %16301 = vmatmul.mubr.f32.vlgmr.msra.gmra.mrb[4].mxu0 %v18730_v30  ;;  %16367 = vmatmul.mubr.f32.vlgmr.msra.gmra.mrb[4].mxu1 %v18730_v30 }
 0x1ee   : > { %17317 = vmatpush3.bf16.msra.mxu0 %v17316_v44  ;;  %17353 = vmatpush3.bf16.msra.mxu1 %v17352_v45  ;;  %v17409_v44 = vpack.c.bf16 %v4173_v42, %v4166_v41  ;;  %v17376_v45 = vpack.c.bf16 %v19160_v60, %v19158_v59 }
 0x1ef   : > { %17318 = vmatprep.subr.bf16.mxu0 %v18466_v18  ;;  %17354 = vmatprep.subr.bf16.mxu1 %v18466_v18 }
 0x1f0   : > { %16311 = vmatprep.mubr.msk.f32.mxu0 %vm18467_vm1, %v22004_v40  ;;  %16377 = vmatprep.mubr.msk.f32.mxu1 %vm18467_vm1, %v22004_v40 }
 0x1f2   : > { %17320 = vmatpush3.bf16.msra.mxu0 %v17319_v53  ;;  %17356 = vmatpush3.bf16.msra.mxu1 %v17355_v54  ;;  %v4557_v53 = vld [vmem:[%s21990_s7 + $0x20] sm:$0xff]  ;;  %v4558_v54 = vld [vmem:[%s21990_s7 + $0x28] sm:$0xff] }
 0x1f3   : > { %17321 = vmatprep.subr.bf16.mxu0 %v18466_v18  ;;  %17357 = vmatprep.subr.bf16.mxu1 %v18466_v18  ;;  %v5083_v57 = vand.u32 4294901760, %v4557_v53  ;;  %v5086_v58 = vand.u32 4294901760, %v4558_v54 }
 0x1f5   : > { %16312 = vmatmul.mubr.f32.vlgmr.msra.gmra.mrb[4].mxu0 %v18724_v28  ;;  %16378 = vmatmul.mubr.f32.vlgmr.msra.gmra.mrb[4].mxu1 %v18724_v28  ;;  %v19340_v5 = vsub.f32 %v4558_v54, %v5086_v58 }
 0x1f6   : > { %17323 = vmatpush3.bf16.msra.mxu0 %v19014_v63  ;;  %17359 = vmatpush3.bf16.msra.mxu1 %v19016_v3  ;;  %v3666_v63 = vsub.f32 %v19158_v59, %v3665_v2  ;;  %v3673_v3 = vsub.f32 %v19160_v60, %v3672_v6  ;;  %v17391_v59 = vpack.c.bf16 %v3686_v20, %v3679_v9  ;;  %v4604_v6 = vand.u32 4294901760, %v4555_v61 }
 0x1f7   : > { %17324 = vmatprep.subr.bf16.mxu0 %v18466_v18  ;;  %17360 = vmatprep.subr.bf16.mxu1 %v18466_v18  ;;  %v17427_v60 = vpack.c.bf16 %v4171_v22, %v4164_v21  ;;  %v19338_v2 = vsub.f32 %v4557_v53, %v5083_v57  ;;  %v19356_v9 = vsub.f32 %v4559_v15, %v5089_v10 }
 0x1f8   : > { %16322 = vmatprep.mubr.msk.f32.mxu0 %vm18467_vm1, %v22004_v40  ;;  %16388 = vmatprep.mubr.msk.f32.mxu1 %vm18467_vm1, %v22004_v40  ;;  %v3667_v25 = vand.u32 4294901760, %v3666_v63  ;;  %v19347_v11 = vsub.f32 %v4555_v61, %v4604_v6  ;;  %v4686_v63 = vand.u32 4294901760, %v19336_v1  ;;  %v19358_v20 = vsub.f32 %v4560_v19, %v5092_v34 }
 0x1f9   : > { %v19366_v21 = vpack.c.bf16 %v4601_v56, %v4598_v55  ;;  %v5178_v27 = vand.u32 4294901760, %v19356_v9  ;;  %v19390_v32 = vpack.c.bf16 %v4607_v7, %v4604_v6  ;;  %v17484_v52 = vpack.c.bf16 %v19340_v5, %v19338_v2  ;;  %v4561_v55 = vld [vmem:[%s21990_s7 + $0x40] sm:$0xff]  ;;  %v4567_v6 = vld [vmem:[%s21990_s7 + $0x70] sm:$0xff]  ;;  %v4568_v7 = vld [vmem:[%s21990_s7 + $0x78] sm:$0xff] }
 0x1fa   : > { %17326 = vmatpush3.bf16.msra.mxu0 %v19038_v14  ;;  %17362 = vmatpush3.bf16.msra.mxu1 %v19040_v16  ;;  %v3674_v14 = vand.u32 4294901760, %v3673_v3  ;;  %v4152_v16 = vand.u32 4294901760, %v4151_v13  ;;  %v5164_v3 = vand.u32 4294901760, %v19338_v2  ;;  %v5171_v13 = vand.u32 4294901760, %v19340_v5 }
 0x1fb   : > { %17363 = vmatprep.subr.bf16.mxu0 %v18466_v18  ;;  %17399 = vmatprep.subr.bf16.mxu1 %v18466_v18  ;;  %v5185_v4 = vand.u32 4294901760, %v19358_v20  ;;  %v5179_v41 = vsub.f32 %v19356_v9, %v5178_v27  ;;  %v17451_v53 = vpack.c.bf16 %v19354_v8, %v19347_v11  ;;  %v17487_v54 = vpack.c.bf16 %v19358_v20, %v19356_v9 }
 0x1fc   : > { %v17370_v35 = vpack.c.bf16 %v3674_v14, %v3667_v25  ;;  %v17406_v36 = vpack.c.bf16 %v4159_v26, %v4152_v16  ;;  %v5165_v22 = vsub.f32 %v19338_v2, %v5164_v3  ;;  %v5172_v25 = vsub.f32 %v19340_v5, %v5171_v13  ;;  %v4563_v2 = vld [vmem:[%s21990_s7 + $0x50] sm:$0xff]  ;;  %v4564_v5 = vld [vmem:[%s21990_s7 + $0x58] sm:$0xff] }
 0x1fd   : > { %16323 = vmatmul.mubr.f32.vlgmr.msra.gmra.mrb[4].mxu0 %v18724_v28  ;;  %16389 = vmatmul.mubr.f32.vlgmr.msra.gmra.mrb[4].mxu1 %v18724_v28  ;;  %v4693_v14 = vand.u32 4294901760, %v19347_v11  ;;  %v19383_v16 = vpack.c.bf16 %v5086_v58, %v5083_v57  ;;  %v4700_v26 = vand.u32 4294901760, %v19354_v8  ;;  %v5186_v42 = vsub.f32 %v19358_v20, %v5185_v4  ;;  %v4562_v58 = vld [vmem:[%s21990_s7 + $0x48] sm:$0xff] }
 0x1fe   : > { %17365 = vmatpush3.bf16.msra.mxu0 %v19190_v12  ;;  %17401 = vmatpush3.bf16.msra.mxu1 %v19207_v17  ;;  %v17460_v56 = vpack.c.bf16 %v4686_v63, %v4679_v38  ;;  %v17496_v57 = vpack.c.bf16 %v5171_v13, %v5164_v3  ;;  %v5568_v61 = vand.u32 4294901760, %v4561_v55  ;;  %v5571_v62 = vand.u32 4294901760, %v4562_v58 }
 0x1ff   : > { %17366 = vmatprep.subr.bf16.mxu0 %v18466_v18  ;;  %17402 = vmatprep.subr.bf16.mxu1 %v18466_v18  ;;  %v4694_v37 = vsub.f32 %v19347_v11, %v4693_v14  ;;  %v4701_v39 = vsub.f32 %v19354_v8, %v4700_v26  ;;  %v5577_v3 = vand.u32 4294901760, %v4564_v5  ;;  %v6059_v13 = vand.u32 4294901760, %v4567_v6 }
 0x200   : > { %16399 = vmatprep.mubr.msk.f32.mxu0 %vm18467_vm1, %v22004_v40  ;;  %16465 = vmatprep.mubr.msk.f32.mxu1 %vm18467_vm1, %v22004_v40  ;;  %v19510_v10 = vsub.f32 %v4561_v55, %v5568_v61  ;;  %v19512_v34 = vsub.f32 %v4562_v58, %v5571_v62  ;;  %v6062_v8 = vand.u32 4294901760, %v4568_v7 }
 0x202   : > { %17368 = vmatpush3.bf16.msra.mxu0 %v19214_v23  ;;  %17404 = vmatpush3.bf16.msra.mxu1 %v19216_v24  ;;  %v5649_v9 = vand.u32 4294901760, %v19510_v10 }
 0x203   : > { %17369 = vmatprep.subr.bf16.mxu0 %v18466_v18  ;;  %17405 = vmatprep.subr.bf16.mxu1 %v18466_v18 }
 0x205   : > { %16400 = vmatmul.mubr.f32.vlgmr.msra.gmra.mrb[6].mxu0 %v18734_v31  ;;  %16466 = vmatmul.mubr.f32.vlgmr.msra.gmra.mrb[6].mxu1 %v18734_v31 }
 0x206   : > { %17371 = vmatpush3.bf16.msra.mxu0 %v17370_v35  ;;  %17407 = vmatpush3.bf16.msra.mxu1 %v17406_v36  ;;  %v5173_v36 = vand.u32 4294901760, %v5172_v25  ;;  %v19530_v25 = vsub.f32 %v4564_v5, %v5577_v3 }
 0x207   : > { %17372 = vmatprep.subr.bf16.mxu0 %v18466_v18  ;;  %17408 = vmatprep.subr.bf16.mxu1 %v18466_v18 }
 0x208   : > { %16410 = vmatprep.mubr.msk.f32.mxu0 %vm18467_vm1, %v22004_v40  ;;  %16476 = vmatprep.mubr.msk.f32.mxu1 %vm18467_vm1, %v22004_v40 }
 0x20a   : > { %17374 = vmatpush3.bf16.msra.mxu0 %v17373_v43  ;;  %17410 = vmatpush3.bf16.msra.mxu1 %v17409_v44 }
 0x20b   : > { %17375 = vmatprep.subr.bf16.mxu0 %v18466_v18  ;;  %17411 = vmatprep.subr.bf16.mxu1 %v18466_v18 }
 0x20d   : > { %16411 = vmatmul.mubr.f32.vlgmr.msra.gmra.mrb[6].mxu0 %v18724_v28  ;;  %16477 = vmatmul.mubr.f32.vlgmr.msra.gmra.mrb[6].mxu1 %v18724_v28 }
 0x20e   : > { %17377 = vmatpush3.bf16.msra.mxu0 %v17376_v45  ;;  %17413 = vmatpush3.bf16.msra.mxu1 %v17412_v46  ;;  %v4695_v45 = vand.u32 4294901760, %v4694_v37  ;;  %v4702_v46 = vand.u32 4294901760, %v4701_v39 }
 0x20f   : > { %17378 = vmatprep.subr.bf16.mxu0 %v18466_v18  ;;  %17414 = vmatprep.subr.bf16.mxu1 %v18466_v18 }
 0x210   : > { %16421 = vmatprep.mubr.msk.f32.mxu0 %vm18467_vm1, %v22004_v40  ;;  %16487 = vmatprep.mubr.msk.f32.mxu1 %vm18467_vm1, %v22004_v40  ;;  %v17445_v49 = vpack.c.bf16 %v4702_v46, %v4695_v45 }
 0x212   : > { %17380 = vmatpush3.bf16.msra.mxu0 %v17379_v47  ;;  %17416 = vmatpush3.bf16.msra.mxu1 %v17415_v48  ;;  %v5180_v47 = vand.u32 4294901760, %v5179_v41  ;;  %v5187_v48 = vand.u32 4294901760, %v5186_v42  ;;  %v19568_v42 = vpack.c.bf16 %v6062_v8, %v6059_v13 }
 0x213   : > { %17381 = vmatprep.subr.bf16.mxu0 %v18466_v18  ;;  %17417 = vmatprep.subr.bf16.mxu1 %v18466_v18 }
 0x215   : > { %16422 = vmatmul.mubr.f32.vlgmr.msra.gmra.mrb[6].mxu0 %v18727_v29  ;;  %16488 = vmatmul.mubr.f32.vlgmr.msra.gmra.mrb[6].mxu1 %v18727_v29 }
 0x216   : > { %17383 = vmatpush3.bf16.msra.mxu0 %v19190_v12  ;;  %17419 = vmatpush3.bf16.msra.mxu1 %v19207_v17 }
 0x217   : > { %17384 = vmatprep.subr.bf16.mxu0 %v18466_v18  ;;  %17420 = vmatprep.subr.bf16.mxu1 %v18466_v18 }
 0x218   : > { %16432 = vmatprep.mubr.msk.f32.mxu0 %vm18467_vm1, %v22004_v40  ;;  %16498 = vmatprep.mubr.msk.f32.mxu1 %vm18467_vm1, %v22004_v40 }
 0x21a   : > { %17386 = vmatpush3.bf16.msra.mxu0 %v19214_v23  ;;  %17422 = vmatpush3.bf16.msra.mxu1 %v19216_v24 }
 0x21b   : > { %17387 = vmatprep.subr.bf16.mxu0 %v18466_v18  ;;  %17423 = vmatprep.subr.bf16.mxu1 %v18466_v18 }
 0x21d   : > { %16433 = vmatmul.mubr.f32.vlgmr.msra.gmra.mrb[6].mxu0 %v18730_v30  ;;  %16499 = vmatmul.mubr.f32.vlgmr.msra.gmra.mrb[6].mxu1 %v18730_v30 }
 0x21e   : > { %17389 = vmatpush3.bf16.msra.mxu0 %v17388_v50  ;;  %17425 = vmatpush3.bf16.msra.mxu1 %v17424_v51  ;;  %v17481_v50 = vpack.c.bf16 %v5187_v48, %v5180_v47  ;;  %v17448_v51 = vpack.c.bf16 %v19336_v1, %v19334_v0 }
 0x21f   : > { %17390 = vmatprep.subr.bf16.mxu0 %v18466_v18  ;;  %17426 = vmatprep.subr.bf16.mxu1 %v18466_v18 }
 0x220   : > { %16443 = vmatprep.mubr.msk.f32.mxu0 %vm18467_vm1, %v22004_v40  ;;  %16509 = vmatprep.mubr.msk.f32.mxu1 %vm18467_vm1, %v22004_v40 }
 0x222   : > { %17392 = vmatpush3.bf16.msra.mxu0 %v17391_v59  ;;  %17428 = vmatpush3.bf16.msra.mxu1 %v17427_v60  ;;  %v4565_v59 = vld [vmem:[%s21990_s7 + $0x60] sm:$0xff]  ;;  %v4566_v60 = vld [vmem:[%s21990_s7 + $0x68] sm:$0xff] }
 0x223   : > { %17393 = vmatprep.subr.bf16.mxu0 %v18466_v18  ;;  %17429 = vmatprep.subr.bf16.mxu1 %v18466_v18  ;;  %v6053_v15 = vand.u32 4294901760, %v4565_v59  ;;  %v6056_v19 = vand.u32 4294901760, %v4566_v60 }
 0x225   : > { %16444 = vmatmul.mubr.f32.vlgmr.msra.gmra.mrb[6].mxu0 %v18724_v28  ;;  %16510 = vmatmul.mubr.f32.vlgmr.msra.gmra.mrb[6].mxu1 %v18724_v28  ;;  %v19516_v11 = vsub.f32 %v4566_v60, %v6056_v19 }
 0x226   : > { %17395 = vmatpush3.bf16.msra.mxu0 %v19190_v12  ;;  %17431 = vmatpush3.bf16.msra.mxu1 %v19207_v17  ;;  %v4680_v12 = vsub.f32 %v19334_v0, %v4679_v38  ;;  %v4687_v17 = vsub.f32 %v19336_v1, %v4686_v63  ;;  %v17463_v0 = vpack.c.bf16 %v4700_v26, %v4693_v14  ;;  %v5574_v63 = vand.u32 4294901760, %v4563_v2 }
 0x227   : > { %17396 = vmatprep.subr.bf16.mxu0 %v18466_v18  ;;  %17432 = vmatprep.subr.bf16.mxu1 %v18466_v18  ;;  %v17499_v1 = vpack.c.bf16 %v5185_v4, %v5178_v27  ;;  %v19514_v38 = vsub.f32 %v4565_v59, %v6053_v15  ;;  %v19532_v14 = vsub.f32 %v4567_v6, %v6059_v13  ;;  %v15051_v6 = vld [vmem:[%s21987_s4] ss:$0 sm:$0xff] }
 0x228   : > { %16454 = vmatprep.mubr.msk.f32.mxu0 %vm18467_vm1, %v22004_v40  ;;  %16520 = vmatprep.mubr.msk.f32.mxu1 %vm18467_vm1, %v22004_v40  ;;  %v4681_v35 = vand.u32 4294901760, %v4680_v12  ;;  %v19523_v20 = vsub.f32 %v4563_v2, %v5574_v63  ;;  %v5656_v12 = vand.u32 4294901760, %v19512_v34  ;;  %v19534_v26 = vsub.f32 %v4568_v7, %v6062_v8  ;;  %v15055_v8 = vld [vmem:[%s21989_s6] ss:$0 sm:$0xff] }
 0x229   : > { %v19542_v27 = vpack.c.bf16 %v5571_v62, %v5568_v61  ;;  %v6148_v37 = vand.u32 4294901760, %v19532_v14  ;;  %v19566_v41 = vpack.c.bf16 %v5577_v3, %v5574_v63 }
 0x22a   : > { %17398 = vmatpush3.bf16.msra.mxu0 %v19214_v23  ;;  %17434 = vmatpush3.bf16.msra.mxu1 %v19216_v24  ;;  %v4688_v23 = vand.u32 4294901760, %v4687_v17  ;;  %v5166_v24 = vand.u32 4294901760, %v5165_v22  ;;  %v6134_v17 = vand.u32 4294901760, %v19514_v38  ;;  %v6141_v22 = vand.u32 4294901760, %v19516_v11 }
 0x22b   : > { %17435 = vmatprep.subr.bf16.mxu0 %v18466_v18  ;;  %17471 = vmatprep.subr.bf16.mxu1 %v18466_v18  ;;  %v6155_v39 = vand.u32 4294901760, %v19534_v26  ;;  %v6149_v47 = vsub.f32 %v19532_v14, %v6148_v37  ;;  %v17523_v58 = vpack.c.bf16 %v19530_v25, %v19523_v20  ;;  %v17559_v59 = vpack.c.bf16 %v19534_v26, %v19532_v14 }
 0x22c   : > { %v17442_v43 = vpack.c.bf16 %v4688_v23, %v4681_v35  ;;  %v17478_v44 = vpack.c.bf16 %v5173_v36, %v5166_v24  ;;  %v6135_v4 = vsub.f32 %v19514_v38, %v6134_v17  ;;  %v6142_v35 = vsub.f32 %v19516_v11, %v6141_v22 }
 0x22d   : > { %16455 = vmatmul.mubr.f32.vlgmr.msra.gmra.mrb[6].mxu0 %v18724_v28  ;;  %16521 = vmatmul.mubr.f32.vlgmr.msra.gmra.mrb[6].mxu1 %v18724_v28  ;;  %v5663_v23 = vand.u32 4294901760, %v19523_v20  ;;  %v19559_v24 = vpack.c.bf16 %v6056_v19, %v6053_v15  ;;  %v5670_v36 = vand.u32 4294901760, %v19530_v25  ;;  %v6156_v48 = vsub.f32 %v19534_v26, %v6155_v39 }
 0x22e   : > { %17437 = vmatpush3.bf16.msra.mxu0 %v19366_v21  ;;  %17473 = vmatpush3.bf16.msra.mxu1 %v19383_v16  ;;  %v17568_v19 = vpack.c.bf16 %v6141_v22, %v6134_v17 }
 0x22f   : > { %17438 = vmatprep.subr.bf16.mxu0 %v18466_v18  ;;  %17474 = vmatprep.subr.bf16.mxu1 %v18466_v18  ;;  %v5664_v45 = vsub.f32 %v19523_v20, %v5663_v23  ;;  %v5671_v46 = vsub.f32 %v19530_v25, %v5670_v36 }
 0x230   : > { %16531 = vmatprep.mubr.msk.f32.mxu0 %vm18467_vm1, %v22004_v40  ;;  %16597 = vmatprep.mubr.msk.f32.mxu1 %vm18467_vm1, %v22004_v40 }
 0x232   : > { %17440 = vmatpush3.bf16.msra.mxu0 %v19390_v32  ;;  %17476 = vmatpush3.bf16.msra.mxu1 %v19392_v33 }
 0x233   : > { %17441 = vmatprep.subr.bf16.mxu0 %v18466_v18  ;;  %17477 = vmatprep.subr.bf16.mxu1 %v18466_v18 }
 0x235   : > { %16532 = vmatmul.mubr.f32.vlgmr.msra.gmra.mrb[8].mxu0 %v18734_v31  ;;  %16598 = vmatmul.mubr.f32.vlgmr.msra.gmra.mrb[8].mxu1 %v18734_v31 }
 0x236   : > { %17443 = vmatpush3.bf16.msra.mxu0 %v17442_v43  ;;  %17479 = vmatpush3.bf16.msra.mxu1 %v17478_v44  ;;  %v6143_v44 = vand.u32 4294901760, %v6142_v35 }
 0x237   : > { %17444 = vmatprep.subr.bf16.mxu0 %v18466_v18  ;;  %17480 = vmatprep.subr.bf16.mxu1 %v18466_v18 }
 0x238   : > { %16542 = vmatprep.mubr.msk.f32.mxu0 %vm18467_vm1, %v22004_v40  ;;  %16608 = vmatprep.mubr.msk.f32.mxu1 %vm18467_vm1, %v22004_v40 }
 0x23a   : > { %17446 = vmatpush3.bf16.msra.mxu0 %v17445_v49  ;;  %17482 = vmatpush3.bf16.msra.mxu1 %v17481_v50 }
 0x23b   : > { %17447 = vmatprep.subr.bf16.mxu0 %v18466_v18  ;;  %17483 = vmatprep.subr.bf16.mxu1 %v18466_v18 }
 0x23d   : > { %16543 = vmatmul.mubr.f32.vlgmr.msra.gmra.mrb[8].mxu0 %v18724_v28  ;;  %16609 = vmatmul.mubr.f32.vlgmr.msra.gmra.mrb[8].mxu1 %v18724_v28 }
 0x23e   : > { %17449 = vmatpush3.bf16.msra.mxu0 %v17448_v51  ;;  %17485 = vmatpush3.bf16.msra.mxu1 %v17484_v52  ;;  %v5665_v51 = vand.u32 4294901760, %v5664_v45  ;;  %v5672_v52 = vand.u32 4294901760, %v5671_v46  ;;  %v15053_v46 = vld [vmem:[%s21987_s4 + $0x2] ss:$0 sm:$0xff] }
 0x23f   : > { %17450 = vmatprep.subr.bf16.mxu0 %v18466_v18  ;;  %17486 = vmatprep.subr.bf16.mxu1 %v18466_v18 }
 0x240   : > { %16553 = vmatprep.mubr.msk.f32.mxu0 %vm18467_vm1, %v22004_v40  ;;  %16619 = vmatprep.mubr.msk.f32.mxu1 %vm18467_vm1, %v22004_v40  ;;  %v17517_v55 = vpack.c.bf16 %v5672_v52, %v5665_v51 }
 0x242   : > { %17452 = vmatpush3.bf16.msra.mxu0 %v17451_v53  ;;  %17488 = vmatpush3.bf16.msra.mxu1 %v17487_v54  ;;  %v6150_v53 = vand.u32 4294901760, %v6149_v47  ;;  %v6157_v54 = vand.u32 4294901760, %v6156_v48  ;;  %v15054_v47 = vld [vmem:[%s21987_s4 + $0x3] ss:$0 sm:$0xff] }
 0x243   : > { %17453 = vmatprep.subr.bf16.mxu0 %v18466_v18  ;;  %17489 = vmatprep.subr.bf16.mxu1 %v18466_v18 }
 0x245   : > { %16554 = vmatmul.mubr.f32.vlgmr.msra.gmra.mrb[8].mxu0 %v18727_v29  ;;  %16620 = vmatmul.mubr.f32.vlgmr.msra.gmra.mrb[8].mxu1 %v18727_v29 }
 0x246   : > { %17455 = vmatpush3.bf16.msra.mxu0 %v19366_v21  ;;  %17491 = vmatpush3.bf16.msra.mxu1 %v19383_v16 }
 0x247   : > { %17456 = vmatprep.subr.bf16.mxu0 %v18466_v18  ;;  %17492 = vmatprep.subr.bf16.mxu1 %v18466_v18 }
 0x248   : > { %16564 = vmatprep.mubr.msk.f32.mxu0 %vm18467_vm1, %v22004_v40  ;;  %16630 = vmatprep.mubr.msk.f32.mxu1 %vm18467_vm1, %v22004_v40 }
 0x24a   : > { %17458 = vmatpush3.bf16.msra.mxu0 %v19390_v32  ;;  %17494 = vmatpush3.bf16.msra.mxu1 %v19392_v33 }
 0x24b   : > { %17459 = vmatprep.subr.bf16.mxu0 %v18466_v18  ;;  %17495 = vmatprep.subr.bf16.mxu1 %v18466_v18 }
 0x24d   : > { %16565 = vmatmul.mubr.f32.vlgmr.msra.gmra.mrb[8].mxu0 %v18730_v30  ;;  %16631 = vmatmul.mubr.f32.vlgmr.msra.gmra.mrb[8].mxu1 %v18730_v30 }
 0x24e   : > { %17461 = vmatpush3.bf16.msra.mxu0 %v17460_v56  ;;  %17497 = vmatpush3.bf16.msra.mxu1 %v17496_v57  ;;  %v17553_v56 = vpack.c.bf16 %v6157_v54, %v6150_v53  ;;  %v17520_v57 = vpack.c.bf16 %v19512_v34, %v19510_v10 }
 0x24f   : > { %17462 = vmatprep.subr.bf16.mxu0 %v18466_v18  ;;  %17498 = vmatprep.subr.bf16.mxu1 %v18466_v18 }
 0x250   : > { %16575 = vmatprep.mubr.msk.f32.mxu0 %vm18467_vm1, %v22004_v40  ;;  %16641 = vmatprep.mubr.msk.f32.mxu1 %vm18467_vm1, %v22004_v40 }
 0x252   : > { %17464 = vmatpush3.bf16.msra.mxu0 %v17463_v0  ;;  %17500 = vmatpush3.bf16.msra.mxu1 %v17499_v1  ;;  %v17535_v0 = vpack.c.bf16 %v5670_v36, %v5663_v23  ;;  %v17571_v1 = vpack.c.bf16 %v6155_v39, %v6148_v37 }
 0x253   : > { %17465 = vmatprep.subr.bf16.mxu0 %v18466_v18  ;;  %17501 = vmatprep.subr.bf16.mxu1 %v18466_v18 }
 0x255   : > { %16576 = vmatmul.mubr.f32.vlgmr.msra.gmra.mrb[8].mxu0 %v18724_v28  ;;  %16642 = vmatmul.mubr.f32.vlgmr.msra.gmra.mrb[8].mxu1 %v18724_v28 }
 0x256   : > { %17467 = vmatpush3.bf16.msra.mxu0 %v19366_v21  ;;  %17503 = vmatpush3.bf16.msra.mxu1 %v19383_v16  ;;  %v5650_v21 = vsub.f32 %v19510_v10, %v5649_v9  ;;  %v5657_v16 = vsub.f32 %v19512_v34, %v5656_v12 }
 0x257   : > { %17468 = vmatprep.subr.bf16.mxu0 %v18466_v18  ;;  %17504 = vmatprep.subr.bf16.mxu1 %v18466_v18 }
 0x258   : > { %16586 = vmatprep.mubr.msk.f32.mxu0 %vm18467_vm1, %v22004_v40  ;;  %16652 = vmatprep.mubr.msk.f32.mxu1 %vm18467_vm1, %v22004_v40  ;;  %v5651_v43 = vand.u32 4294901760, %v5650_v21 }
 0x25a   : > { %17470 = vmatpush3.bf16.msra.mxu0 %v19390_v32  ;;  %17506 = vmatpush3.bf16.msra.mxu1 %v19392_v33  ;;  %v5658_v32 = vand.u32 4294901760, %v5657_v16  ;;  %v6136_v33 = vand.u32 4294901760, %v6135_v4 }
 0x25b   : > { %17507 = vmatprep.subr.bf16.mxu0 %v18466_v18  ;;  %17543 = vmatprep.subr.bf16.mxu1 %v18466_v18 }
 0x25c   : > { %v17514_v49 = vpack.c.bf16 %v5658_v32, %v5651_v43  ;;  %v17550_v50 = vpack.c.bf16 %v6143_v44, %v6136_v33 }
 0x25d   : > { %16587 = vmatmul.mubr.f32.vlgmr.msra.gmra.mrb[8].mxu0 %v18724_v28  ;;  %16653 = vmatmul.mubr.f32.vlgmr.msra.gmra.mrb[8].mxu1 %v18724_v28 }
 0x25e   : > { %17509 = vmatpush3.bf16.msra.mxu0 %v19542_v27  ;;  %17545 = vmatpush3.bf16.msra.mxu1 %v19559_v24 }
 0x25f   : > { %17510 = vmatprep.subr.bf16.mxu0 %v18466_v18  ;;  %17546 = vmatprep.subr.bf16.mxu1 %v18466_v18 }
 0x260   : > { %16663 = vmatprep.mubr.msk.f32.mxu0 %vm18467_vm1, %v22004_v40  ;;  %16729 = vmatprep.mubr.msk.f32.mxu1 %vm18467_vm1, %v22004_v40 }
 0x262   : > { %17512 = vmatpush3.bf16.msra.mxu0 %v19566_v41  ;;  %17548 = vmatpush3.bf16.msra.mxu1 %v19568_v42 }
 0x263   : > { %17513 = vmatprep.subr.bf16.mxu0 %v18466_v18  ;;  %17549 = vmatprep.subr.bf16.mxu1 %v18466_v18 }
 0x265   : > { %16664 = vmatmul.mubr.f32.vlgmr.msra.gmra.mrb[10].mxu0 %v18734_v31  ;;  %16730 = vmatmul.mubr.f32.vlgmr.msra.gmra.mrb[10].mxu1 %v18734_v31  ;;  %v17556_v31 = vpack.c.bf16 %v19516_v11, %v19514_v38 }
 0x266   : > { %17515 = vmatpush3.bf16.msra.mxu0 %v17514_v49  ;;  %17551 = vmatpush3.bf16.msra.mxu1 %v17550_v50 }
 0x267   : > { %17516 = vmatprep.subr.bf16.mxu0 %v18466_v18  ;;  %17552 = vmatprep.subr.bf16.mxu1 %v18466_v18 }
 0x268   : > { %16674 = vmatprep.mubr.msk.f32.mxu0 %vm18467_vm1, %v22004_v40  ;;  %16740 = vmatprep.mubr.msk.f32.mxu1 %vm18467_vm1, %v22004_v40 }
 0x26a   : > { %17518 = vmatpush3.bf16.msra.mxu0 %v17517_v55  ;;  %17554 = vmatpush3.bf16.msra.mxu1 %v17553_v56  ;;  %v15057_v56 = vld [vmem:[%s21989_s6 + $0x2] ss:$0 sm:$0xff] }
 0x26b   : > { %17519 = vmatprep.subr.bf16.mxu0 %v18466_v18  ;;  %17555 = vmatprep.subr.bf16.mxu1 %v18466_v18 }
 0x26d   : > { %16675 = vmatmul.mubr.f32.vlgmr.msra.gmra.mrb[10].mxu0 %v18724_v28  ;;  %16741 = vmatmul.mubr.f32.vlgmr.msra.gmra.mrb[10].mxu1 %v18724_v28 }
 0x26e   : > { %17521 = vmatpush3.bf16.msra.mxu0 %v17520_v57  ;;  %17557 = vmatpush3.bf16.msra.mxu1 %v17556_v31  ;;  %v15058_v57 = vld [vmem:[%s21989_s6 + $0x3] ss:$0 sm:$0xff] }
 0x26f   : > { %17522 = vmatprep.subr.bf16.mxu0 %v18466_v18  ;;  %17558 = vmatprep.subr.bf16.mxu1 %v18466_v18 }
 0x270   : > { %v1110_v60 = vpop.f32.mrb[0].mxu0  ;;  %v1595_v61 = vpop.f32.mrb[0].mxu1  ;;  %16685 = vmatprep.mubr.msk.f32.mxu0 %vm18467_vm1, %v22004_v40  ;;  %16751 = vmatprep.mubr.msk.f32.mxu1 %vm18467_vm1, %v22004_v40 }
 0x271   : > { %v16060_v62 = vpop.f32.mrb[1].mxu0  ;;  %v16126_v15 = vpop.f32.mrb[1].mxu1  ;;  %v18059_v7 = vadd.f32 %v15051_v6, %v1110_v60 }
 0x272   : > { %17524 = vmatpush3.bf16.msra.mxu0 %v17523_v58  ;;  %17560 = vmatpush3.bf16.msra.mxu1 %v17559_v59 }
 0x273   : > { %17525 = vmatprep.subr.bf16.mxu0 %v18466_v18  ;;  %17561 = vmatprep.subr.bf16.mxu1 %v18466_v18  ;;  %v6539_v34 = vsel %vm6537_vm4, %v18059_v7, 0 }
 0x274   : > { %v19696_v11 = vand.u32 4294901760, %v6539_v34 }
 0x275   : > { %16686 = vmatmul.mubr.f32.vlgmr.msra.gmra.mrb[10].mxu0 %v18727_v29  ;;  %16752 = vmatmul.mubr.f32.vlgmr.msra.gmra.mrb[10].mxu1 %v18727_v29  ;;  %v17532_v29 = vpack.c.bf16 %v5656_v12, %v5649_v9  ;;  %v15056_v9 = vld [vmem:[%s21989_s6 + $0x1] ss:$0 sm:$0xff] }
 0x276   : > { %17527 = vmatpush3.bf16.msra.mxu0 %v19542_v27  ;;  %17563 = vmatpush3.bf16.msra.mxu1 %v19559_v24  ;;  %v6611_v3 = vsub.f32 %v6539_v34, %v19696_v11 }
 0x277   : > { %17528 = vmatprep.subr.bf16.mxu0 %v18466_v18  ;;  %17564 = vmatprep.subr.bf16.mxu1 %v18466_v18 }
 0x278   : > { %16696 = vmatprep.mubr.msk.f32.mxu0 %vm18467_vm1, %v22004_v40  ;;  %16762 = vmatprep.mubr.msk.f32.mxu1 %vm18467_vm1, %v22004_v40  ;;  %v6612_v20 = vand.u32 4294901760, %v6611_v3 }
 0x27a   : > { %17530 = vmatpush3.bf16.msra.mxu0 %v19566_v41  ;;  %17566 = vmatpush3.bf16.msra.mxu1 %v19568_v42  ;;  %v6613_v4 = vsub.f32 %v6611_v3, %v6612_v20 }
 0x27b   : > { %17531 = vmatprep.subr.bf16.mxu0 %v18466_v18  ;;  %17567 = vmatprep.subr.bf16.mxu1 %v18466_v18 }
 0x27c   : > { %v6614_v39 = vand.u32 4294901760, %v6613_v4 }
 0x27d   : > { %16697 = vmatmul.mubr.f32.vlgmr.msra.gmra.mrb[10].mxu0 %v18730_v30  ;;  %16763 = vmatmul.mubr.f32.vlgmr.msra.gmra.mrb[10].mxu1 %v18730_v30 }
 0x27e   : > { %17533 = vmatpush3.bf16.msra.mxu0 %v17532_v29  ;;  %17569 = vmatpush3.bf16.msra.mxu1 %v17568_v19 }
 0x27f   : > { %17534 = vmatprep.subr.bf16.mxu0 %v18466_v18  ;;  %17570 = vmatprep.subr.bf16.mxu1 %v18466_v18 }
 0x280   : > { %16707 = vmatprep.mubr.msk.f32.mxu0 %vm18467_vm1, %v22004_v40  ;;  %16773 = vmatprep.mubr.msk.f32.mxu1 %vm18467_vm1, %v22004_v40 }
 0x282   : > { %17536 = vmatpush3.bf16.msra.mxu0 %v17535_v0  ;;  %17572 = vmatpush3.bf16.msra.mxu1 %v17571_v1 }
 0x283   : > { %17537 = vmatprep.subr.bf16.mxu0 %v18466_v18  ;;  %17573 = vmatprep.subr.bf16.mxu1 %v18466_v18 }
 0x285   : > { %16708 = vmatmul.mubr.f32.vlgmr.msra.gmra.mrb[10].mxu0 %v18724_v28  ;;  %16774 = vmatmul.mubr.f32.vlgmr.msra.gmra.mrb[10].mxu1 %v18724_v28 }
 0x286   : > { %17539 = vmatpush3.bf16.msra.mxu0 %v19542_v27  ;;  %17575 = vmatpush3.bf16.msra.mxu1 %v19559_v24 }
 0x287   : > { %17540 = vmatprep.subr.bf16.mxu0 %v18466_v18  ;;  %17576 = vmatprep.subr.bf16.mxu1 %v18466_v18 }
 0x288   : > { %16718 = vmatprep.mubr.msk.f32.mxu0 %vm18467_vm1, %v22004_v40  ;;  %16784 = vmatprep.mubr.msk.f32.mxu1 %vm18467_vm1, %v22004_v40 }
 0x28a   : > { %17542 = vmatpush3.bf16.msra.mxu0 %v19566_v41  ;;  %17578 = vmatpush3.bf16.msra.mxu1 %v19568_v42 }
 0x28b   : > { %16787 = vmatprep.subr.mxu0 %v22004_v40  ;;  %16817 = vmatprep.subr.mxu1 %v22004_v40 }
 0x28d   : > { %16719 = vmatmul.mubr.f32.vlgmr.msra.gmra.mrb[10].mxu0 %v18724_v28  ;;  %16785 = vmatmul.mubr.f32.vlgmr.msra.gmra.mrb[10].mxu1 %v18724_v28  ;;  %v15052_v28 = vld [vmem:[%s21987_s4 + $0x1] ss:$0 sm:$0xff] }
 0x28e   : > { %16789 = vmatprep.mubr.msk.f32.mxu0 %vm18467_vm1, %v22004_v40  ;;  %16819 = vmatprep.mubr.msk.f32.mxu1 %vm18467_vm1, %v22004_v40  ;;  %v18060_v10 = vadd.f32 %v15052_v28, %v1595_v61 }
 0x290   : > { %v6991_v38 = vsel %vm6537_vm4, %v18060_v10, 0 }
 0x291   : > { %v19698_v63 = vand.u32 4294901760, %v6991_v38 }
 0x293   : > { %v7063_v13 = vsub.f32 %v6991_v38, %v19698_v63 }
 0x295   : > { %v7064_v12 = vand.u32 4294901760, %v7063_v13 }
 0x297   : > { %v7065_v35 = vsub.f32 %v7063_v13, %v7064_v12 }
 0x299   : > { %v7066_v41 = vand.u32 4294901760, %v7065_v35 }
 0x2a0   : > { %v19684_v18 = vpop.f32.mrb[2].mxu0  ;;  %v19686_v30 = vpop.f32.mrb[2].mxu1 }
 0x2a1   : > { %v16192_v2 = vpop.f32.mrb[3].mxu0  ;;  %v16258_v5 = vpop.f32.mrb[3].mxu1  ;;  %v18061_v48 = vadd.f32 %v15053_v46, %v19684_v18  ;;  %v18062_v49 = vadd.f32 %v15054_v47, %v19686_v30 }
 0x2a3   : > { %v7443_v50 = vsel %vm6537_vm4, %v18061_v48, 0  ;;  %v7895_v51 = vsel %vm6537_vm4, %v18062_v49, 0 }
 0x2a4   : > { %v19748_v52 = vand.u32 4294901760, %v7443_v50  ;;  %v19750_v53 = vand.u32 4294901760, %v7895_v51 }
 0x2a6   : > { %v19755_v54 = vsub.f32 %v7443_v50, %v19748_v52  ;;  %v19758_v55 = vsub.f32 %v7895_v51, %v19750_v53 }
 0x2a8   : > { %v7516_v31 = vand.u32 4294901760, %v19755_v54  ;;  %v7968_v58 = vand.u32 4294901760, %v19758_v55 }
 0x2aa   : > { %v7517_v1 = vsub.f32 %v19755_v54, %v7516_v31  ;;  %v7969_v18 = vsub.f32 %v19758_v55, %v7968_v58 }
 0x2ac   : > { %v7518_v28 = vand.u32 4294901760, %v7517_v1  ;;  %v7970_v7 = vand.u32 4294901760, %v7969_v18 }
 0x2d0   : > { %v3094_v17 = vpop.f32.mrb[4].mxu0  ;;  %v3579_v22 = vpop.f32.mrb[4].mxu1 }
 0x2d1   : > { %v18063_v25 = vadd.f32 %v15055_v8, %v3094_v17  ;;  %v18064_v14 = vadd.f32 %v15056_v9, %v3579_v22  ;;  %v16324_v26 = vpop.f32.mrb[5].mxu0  ;;  %v16390_v27 = vpop.f32.mrb[5].mxu1  ;;  %v15060_v8 = vld [vmem:[%s21991_s8 + $0x1] ss:$0 sm:$0xff] }
 0x2d3   : > { %v6542_v21 = vsel %vm6537_vm4, %v18063_v25, 0  ;;  %v6994_v16 = vsel %vm6537_vm4, %v18064_v14, 0 }
 0x2d4   : > { %v6545_v23 = vand.u32 4294901760, %v6542_v21  ;;  %v6997_v24 = vand.u32 4294901760, %v6994_v16 }
 0x2d6   : > { %v6622_v36 = vsub.f32 %v6542_v21, %v6545_v23  ;;  %v7074_v37 = vsub.f32 %v6994_v16, %v6997_v24  ;;  %16788 = vmatpush3.xpose.msra.mxu0 %v6545_v23  ;;  %16818 = vmatpush3.xpose.msra.mxu1 %v6997_v24 }
 0x2d7   : > { %16792 = vmatprep.subr.mxu0 %v22004_v40  ;;  %16822 = vmatprep.subr.mxu1 %v22004_v40 }
 0x2d8   : > { %v6623_v42 = vand.u32 4294901760, %v6622_v36  ;;  %v7075_v43 = vand.u32 4294901760, %v7074_v37 }
 0x2d9   : > { %16790 = vmatmul.mubr.f32.vlgmr.msra.gmra.mrb[12].mxu0 %v6614_v39  ;;  %16820 = vmatmul.mubr.f32.vlgmr.msra.gmra.mrb[12].mxu1 %v7066_v41 }
 0x2da   : > { %v6624_v32 = vsub.f32 %v6622_v36, %v6623_v42  ;;  %v7076_v33 = vsub.f32 %v7074_v37, %v7075_v43  ;;  %16794 = vmatprep.mubr.msk.f32.mxu0 %vm18467_vm1, %v22004_v40  ;;  %16824 = vmatprep.mubr.msk.f32.mxu1 %vm18467_vm1, %v22004_v40 }
 0x2dc   : > { %v6625_v44 = vand.u32 4294901760, %v6624_v32  ;;  %v7077_v45 = vand.u32 4294901760, %v7076_v33 }
 0x2de   : > { %16793 = vmatpush3.xpose.msra.mxu0 %v6625_v44  ;;  %16823 = vmatpush3.xpose.msra.mxu1 %v7077_v45 }
 0x2df   : > { %16797 = vmatprep.subr.mxu0 %v22004_v40  ;;  %16827 = vmatprep.subr.mxu1 %v22004_v40 }
 0x2e1   : > { %16795 = vmatmul.mubr.f32.vlgmr.msra.gmra.mrb[12].mxu0 %v19696_v11  ;;  %16825 = vmatmul.mubr.f32.vlgmr.msra.gmra.mrb[12].mxu1 %v19698_v63 }
 0x2e2   : > { %16798 = vmatpush3.xpose.msra.mxu0 %v6622_v36  ;;  %16828 = vmatpush3.xpose.msra.mxu1 %v7074_v37 }
 0x2e3   : > { %16799 = vmatprep.mubr.msk.f32.mxu0 %vm18467_vm1, %v22004_v40  ;;  %16802 = vmatprep.subr.mxu0 %v22004_v40 }
 0x2e4   : > { %16829 = vmatprep.mubr.msk.f32.mxu1 %vm18467_vm1, %v22004_v40  ;;  %16832 = vmatprep.subr.mxu1 %v22004_v40 }
 0x2e9   : > { %16800 = vmatmul.mubr.f32.vlgmr.msra.gmra.mrb[12].mxu0 %v6611_v3  ;;  %16830 = vmatmul.mubr.f32.vlgmr.msra.gmra.mrb[12].mxu1 %v7063_v13  ;;  %v15059_v13 = vld [vmem:[%s21991_s8] ss:$0 sm:$0xff] }
 0x2ea   : > { %16803 = vmatpush3.xpose.msra.mxu0 %v6545_v23  ;;  %16833 = vmatpush3.xpose.msra.mxu1 %v6997_v24 }
 0x2eb   : > { %16804 = vmatprep.mubr.msk.f32.mxu0 %vm18467_vm1, %v22004_v40  ;;  %16807 = vmatprep.subr.mxu0 %v22004_v40 }
 0x2ec   : > { %16834 = vmatprep.mubr.msk.f32.mxu1 %vm18467_vm1, %v22004_v40  ;;  %16837 = vmatprep.subr.mxu1 %v22004_v40 }
 0x2f1   : > { %16805 = vmatmul.mubr.f32.vlgmr.msra.gmra.mrb[12].mxu0 %v6612_v20  ;;  %16835 = vmatmul.mubr.f32.vlgmr.msra.gmra.mrb[12].mxu1 %v7064_v12 }
 0x2f2   : > { %16808 = vmatpush3.xpose.msra.mxu0 %v6623_v42  ;;  %16838 = vmatpush3.xpose.msra.mxu1 %v7075_v43 }
 0x2f3   : > { %16809 = vmatprep.mubr.msk.f32.mxu0 %vm18467_vm1, %v22004_v40  ;;  %16812 = vmatprep.subr.mxu0 %v22004_v40 }
 0x2f4   : > { %16839 = vmatprep.mubr.msk.f32.mxu1 %vm18467_vm1, %v22004_v40  ;;  %16842 = vmatprep.subr.mxu1 %v22004_v40 }
 0x2f9   : > { %16810 = vmatmul.mubr.f32.vlgmr.msra.gmra.mrb[12].mxu0 %v19696_v11  ;;  %16840 = vmatmul.mubr.f32.vlgmr.msra.gmra.mrb[12].mxu1 %v19698_v63 }
 0x2fa   : > { %16813 = vmatpush3.xpose.msra.mxu0 %v6545_v23  ;;  %16843 = vmatpush3.xpose.msra.mxu1 %v6997_v24 }
 0x2fb   : > { %16814 = vmatprep.mubr.msk.f32.mxu0 %vm18467_vm1, %v22004_v40  ;;  %16844 = vmatprep.mubr.msk.f32.mxu1 %vm18467_vm1, %v22004_v40 }
 0x2fc   : > { %16847 = vmatprep.subr.mxu0 %v22004_v40  ;;  %16877 = vmatprep.subr.mxu1 %v22004_v40 }
 0x300   : > { %v4064_v59 = vpop.f32.mrb[6].mxu0  ;;  %v4549_v60 = vpop.f32.mrb[6].mxu1 }
 0x301   : > { %v18065_v61 = vadd.f32 %v15057_v56, %v4064_v59  ;;  %v18066_v62 = vadd.f32 %v15058_v57, %v4549_v60  ;;  %v16456_v15 = vpop.f32.mrb[7].mxu0  ;;  %v16522_v29 = vpop.f32.mrb[7].mxu1  ;;  %16815 = vmatmul.mubr.f32.vlgmr.msra.gmra.mrb[12].mxu0 %v19696_v11  ;;  %16845 = vmatmul.mubr.f32.vlgmr.msra.gmra.mrb[12].mxu1 %v19698_v63 }
 0x302   : > { %16849 = vmatprep.mubr.msk.f32.mxu0 %vm18467_vm1, %v22004_v40  ;;  %16879 = vmatprep.mubr.msk.f32.mxu1 %vm18467_vm1, %v22004_v40 }
 0x303   : > { %v7446_v19 = vsel %vm6537_vm4, %v18065_v61, 0  ;;  %v7898_v0 = vsel %vm6537_vm4, %v18066_v62, 0 }
 0x304   : > { %v7449_v30 = vand.u32 4294901760, %v7446_v19  ;;  %v7901_v2 = vand.u32 4294901760, %v7898_v0 }
 0x306   : > { %v7526_v5 = vsub.f32 %v7446_v19, %v7449_v30  ;;  %v7978_v6 = vsub.f32 %v7898_v0, %v7901_v2  ;;  %16848 = vmatpush3.xpose.msra.mxu0 %v7449_v30  ;;  %16878 = vmatpush3.xpose.msra.mxu1 %v7901_v2 }
 0x307   : > { %16852 = vmatprep.subr.mxu0 %v22004_v40  ;;  %16882 = vmatprep.subr.mxu1 %v22004_v40 }
 0x308   : > { %v7527_v10 = vand.u32 4294901760, %v7526_v5  ;;  %v7979_v34 = vand.u32 4294901760, %v7978_v6 }
 0x309   : > { %16850 = vmatmul.mubr.f32.vlgmr.msra.gmra.mrb[14].mxu0 %v7518_v28  ;;  %16880 = vmatmul.mubr.f32.vlgmr.msra.gmra.mrb[14].mxu1 %v7970_v7 }
 0x30a   : > { %v7528_v38 = vsub.f32 %v7526_v5, %v7527_v10  ;;  %v7980_v11 = vsub.f32 %v7978_v6, %v7979_v34  ;;  %16854 = vmatprep.mubr.msk.f32.mxu0 %vm18467_vm1, %v22004_v40  ;;  %16884 = vmatprep.mubr.msk.f32.mxu1 %vm18467_vm1, %v22004_v40 }
 0x30c   : > { %v7529_v63 = vand.u32 4294901760, %v7528_v38  ;;  %v7981_v3 = vand.u32 4294901760, %v7980_v11 }
 0x30e   : > { %16853 = vmatpush3.xpose.msra.mxu0 %v7529_v63  ;;  %16883 = vmatpush3.xpose.msra.mxu1 %v7981_v3 }
 0x30f   : > { %16857 = vmatprep.subr.mxu0 %v22004_v40  ;;  %16887 = vmatprep.subr.mxu1 %v22004_v40 }
 0x311   : > { %16855 = vmatmul.mubr.f32.vlgmr.msra.gmra.mrb[14].mxu0 %v19748_v52  ;;  %16885 = vmatmul.mubr.f32.vlgmr.msra.gmra.mrb[14].mxu1 %v19750_v53 }
 0x312   : > { %16858 = vmatpush3.xpose.msra.mxu0 %v7526_v5  ;;  %16888 = vmatpush3.xpose.msra.mxu1 %v7978_v6 }
 0x313   : > { %16859 = vmatprep.mubr.msk.f32.mxu0 %vm18467_vm1, %v22004_v40  ;;  %16862 = vmatprep.subr.mxu0 %v22004_v40 }
 0x314   : > { %16889 = vmatprep.mubr.msk.f32.mxu1 %vm18467_vm1, %v22004_v40  ;;  %16892 = vmatprep.subr.mxu1 %v22004_v40 }
 0x319   : > { %16860 = vmatmul.mubr.f32.vlgmr.msra.gmra.mrb[14].mxu0 %v19755_v54  ;;  %16890 = vmatmul.mubr.f32.vlgmr.msra.gmra.mrb[14].mxu1 %v19758_v55 }
 0x31a   : > { %16863 = vmatpush3.xpose.msra.mxu0 %v7449_v30  ;;  %16893 = vmatpush3.xpose.msra.mxu1 %v7901_v2 }
 0x31b   : > { %16864 = vmatprep.mubr.msk.f32.mxu0 %vm18467_vm1, %v22004_v40  ;;  %16867 = vmatprep.subr.mxu0 %v22004_v40 }
 0x31c   : > { %16894 = vmatprep.mubr.msk.f32.mxu1 %vm18467_vm1, %v22004_v40  ;;  %16897 = vmatprep.subr.mxu1 %v22004_v40 }
 0x321   : > { %16865 = vmatmul.mubr.f32.vlgmr.msra.gmra.mrb[14].mxu0 %v7516_v31  ;;  %16895 = vmatmul.mubr.f32.vlgmr.msra.gmra.mrb[14].mxu1 %v7968_v58 }
 0x322   : > { %16868 = vmatpush3.xpose.msra.mxu0 %v7527_v10  ;;  %16898 = vmatpush3.xpose.msra.mxu1 %v7979_v34 }
 0x323   : > { %16869 = vmatprep.mubr.msk.f32.mxu0 %vm18467_vm1, %v22004_v40  ;;  %16872 = vmatprep.subr.mxu0 %v22004_v40 }
 0x324   : > { %16899 = vmatprep.mubr.msk.f32.mxu1 %vm18467_vm1, %v22004_v40  ;;  %16902 = vmatprep.subr.mxu1 %v22004_v40 }
 0x329   : > { %16870 = vmatmul.mubr.f32.vlgmr.msra.gmra.mrb[14].mxu0 %v19748_v52  ;;  %16900 = vmatmul.mubr.f32.vlgmr.msra.gmra.mrb[14].mxu1 %v19750_v53 }
 0x32a   : > { %16873 = vmatpush3.xpose.msra.mxu0 %v7449_v30  ;;  %16903 = vmatpush3.xpose.msra.mxu1 %v7901_v2 }
 0x32b   : > { %16874 = vmatprep.mubr.msk.f32.mxu0 %vm18467_vm1, %v22004_v40  ;;  %16904 = vmatprep.mubr.msk.f32.mxu1 %vm18467_vm1, %v22004_v40 }
 0x32c   : > { %16907 = vmatprep.subr.mxu0 %v22004_v40  ;;  %16937 = vmatprep.subr.mxu1 %v22004_v40 }
 0x330   : > { %v5078_v9 = vpop.f32.mrb[8].mxu0  ;;  %v5563_v20 = vpop.f32.mrb[8].mxu1 }
 0x331   : > { %v19828_v12 = vadd.f32 %v15059_v13, %v5078_v9  ;;  %v19830_v17 = vadd.f32 %v15060_v8, %v5563_v20  ;;  %v16588_v22 = vpop.f32.mrb[9].mxu0  ;;  %v16654_v25 = vpop.f32.mrb[9].mxu1  ;;  %16875 = vmatmul.mubr.f32.vlgmr.msra.gmra.mrb[14].mxu0 %v19748_v52  ;;  %16905 = vmatmul.mubr.f32.vlgmr.msra.gmra.mrb[14].mxu1 %v19750_v53 }
 0x332   : > { %16909 = vmatprep.mubr.msk.f32.mxu0 %vm18467_vm1, %v22004_v40  ;;  %16939 = vmatprep.mubr.msk.f32.mxu1 %vm18467_vm1, %v22004_v40 }
 0x333   : > { %v19839_v14 = vand.u32 4294901760, %v19828_v12  ;;  %v19842_v26 = vand.u32 4294901760, %v19830_v17 }
 0x335   : > { %16908 = vmatpush3.msra.mxu0 %v19839_v14  ;;  %16938 = vmatpush3.msra.mxu1 %v19842_v26  ;;  %v8475_v5 = vsub.f32 %v19828_v12, %v19839_v14  ;;  %v8924_v38 = vsub.f32 %v19830_v17, %v19842_v26 }
 0x336   : > { %16912 = vmatprep.subr.mxu0 %v22004_v40  ;;  %16942 = vmatprep.subr.mxu1 %v22004_v40 }
 0x337   : > { %v8476_v34 = vand.u32 4294901760, %v8475_v5  ;;  %v8925_v20 = vand.u32 4294901760, %v8924_v38 }
 0x339   : > { %v8477_v9 = vsub.f32 %v8475_v5, %v8476_v34 }
 0x360   : > { %v19848_v27 = vpop.f32.mrb[10].mxu0  ;;  %v19850_v21 = vpop.f32.mrb[10].mxu1 }
 0x361   : > { %v16720_v16 = vpop.f32.mrb[11].mxu0  ;;  %v16786_v4 = vpop.f32.mrb[11].mxu1 }
 0x362   : > { %v8926_v4 = vsub.f32 %v8924_v38, %v8925_v20 }
 0x3d4   : > { %v6986_v35 = vpop.f32.mrb[12].mxu0  ;;  %v7438_v23 = vpop.f32.mrb[12].mxu1 }
 0x3d5   : > { %v8346_v24 = vmul.f32 0.35355338, %v6986_v35  ;;  %v16816_v36 = vpop.f32.mrb[13].mxu0  ;;  %v16846_v37 = vpop.f32.mrb[13].mxu1  ;;  %v8347_v39 = vmul.f32 0.35355338, %v7438_v23 }
 0x3d6   : > { %v8478_v35 = vand.u32 4294901760, %v8477_v9  ;;  %v15062_v37 = vld [vmem:[%s21991_s8 + $0x3] ss:$0 sm:$0xff] }
 0x3d7   : > { %v8350_v41 = vsel %vm6537_vm4, %v8346_v24, -inf  ;;  %v8353_v42 = vsel %vm6537_vm4, %v8347_v39, -inf }
 0x3d8   : > { %8351 = vmax.xlane.f32.xlu1 %v8350_v41  ;;  %v15061_v41 = vld [vmem:[%s21991_s8 + $0x2] ss:$0 sm:$0xff] }
 0x3dc   : > { %8354 = vmax.xlane.f32.xlu1 %v8353_v42  ;;  %v18070_v42 = vadd.f32 %v15062_v37, %v19850_v21 }
 0x404   : > { %v7890_v43 = vpop.f32.mrb[14].mxu0  ;;  %v8342_v32 = vpop.f32.mrb[14].mxu1 }
 0x405   : > { %v8348_v33 = vmul.f32 0.35355338, %v7890_v43  ;;  %v8349_v44 = vmul.f32 0.35355338, %v8342_v32  ;;  %v16876_v45 = vpop.f32.mrb[15].mxu0  ;;  %v16906_v46 = vpop.f32.mrb[15].mxu1  ;;  %v18069_v43 = vadd.f32 %v15061_v41, %v19848_v27 }
 0x406   : > { %v19914_v32 = vand.u32 4294901760, %v18070_v42 }
 0x407   : > { %v8359_v47 = vsel %vm6537_vm4, %v8349_v44, -inf  ;;  %v8356_v48 = vsel %vm6537_vm4, %v8348_v33, -inf }
 0x408   : > { %8360 = vmax.xlane.f32.xlu1 %v8359_v47  ;;  %8357 = vmax.xlane.f32.xlu0 %v8356_v48 }
 0x465   : > { %v8352_v49 = vpop.xlane.xlu1 %8351 }
 0x466   : > { %v8362_v50 = vsub.f32 %v8346_v24, %v8352_v49  ;;  %v8927_v24 = vand.u32 4294901760, %v8926_v4 }
 0x468   : > { %v8366_v51 = vmul.f32 1.442695, %v8362_v50 }
 0x469   : > { %v8355_v52 = vpop.xlane.xlu1 %8354 }
 0x46a   : > { %18381 = vpow2.f32 %v8366_v51  ;;  %v8363_v53 = vsub.f32 %v8347_v39, %v8355_v52 }
 0x46c   : > { %v8368_v54 = vmul.f32 1.442695, %v8363_v53 }
 0x46e   : > { %18383 = vpow2.f32 %v8368_v54 }
 0x474   : > { %v18382_v55 = vpop.eup %18381 }
 0x475   : > { %v8374_v56 = vsel %vm6537_vm4, %v18382_v55, 0.0 }
 0x476   : > { %8375 = vadd.xlane.f32.xlu0 %v8374_v56 }
 0x478   : > { %v18384_v57 = vpop.eup %18383 }
 0x479   : > { %v8377_v31 = vsel %vm6537_vm4, %v18384_v57, 0.0 }
 0x47a   : > { %8378 = vadd.xlane.f32.xlu1 %v8377_v31 }
 0x495   : > { %v8361_v58 = vpop.xlane.xlu1 %8360  ;;  %v8358_v59 = vpop.xlane.xlu0 %8357 }
 0x496   : > { %v8365_v60 = vsub.f32 %v8349_v44, %v8361_v58  ;;  %v8364_v61 = vsub.f32 %v8348_v33, %v8358_v59  ;;  %v19916_v33 = vand.u32 4294901760, %v18069_v43  ;;  %v9822_v44 = vsub.f32 %v18070_v42, %v19914_v32 }
 0x498   : > { %v8372_v62 = vmul.f32 1.442695, %v8365_v60  ;;  %v8370_v15 = vmul.f32 1.442695, %v8364_v61  ;;  %v9373_v46 = vsub.f32 %v18069_v43, %v19916_v33  ;;  %v9823_v50 = vand.u32 4294901760, %v9822_v44 }
 0x49a   : > { %18385 = vpow2.f32 %v8372_v62  ;;  %v9374_v52 = vand.u32 4294901760, %v9373_v46 }
 0x49b   : > { %18387 = vpow2.f32 %v8370_v15  ;;  %v10190_v15 = vld [vmem:[%s21992_s9] sm:$0xff] }
 0x4a4   : > { %v19858_v29 = vpop.eup %18385 }
 0x4a5   : > { %v19860_v19 = vpop.eup %18387  ;;  %v8383_v0 = vsel %vm6537_vm4, %v19858_v29, 0.0 }
 0x4a6   : > { %8384 = vadd.xlane.f32.xlu1 %v8383_v0  ;;  %v8380_v1 = vsel %vm6537_vm4, %v19860_v19, 0.0 }
 0x4a7   : > { %8381 = vadd.xlane.f32.xlu0 %v8380_v1 }
 0x503   : > { %v8376_v18 = vpop.xlane.xlu0 %8375 }
 0x504   : > { %18389 = vrcp.f32 %v8376_v18 }
 0x507   : > { %v8379_v30 = vpop.xlane.xlu1 %8378 }
 0x508   : > { %18391 = vrcp.f32 %v8379_v30 }
 0x50e   : > { %v18390_v2 = vpop.eup %18389 }
 0x50f   : > { %v8390_v6 = vmul.f32 %v18390_v2, %v18382_v55  ;;  %v9824_v55 = vsub.f32 %v9822_v44, %v9823_v50 }
 0x511   : > { %v8395_v28 = vsel %vm6537_vm4, %v8390_v6, 0  ;;  %v9825_v61 = vand.u32 4294901760, %v9824_v55 }
 0x512   : > { %v18392_v7 = vpop.eup %18391  ;;  %v19869_v10 = vand.u32 4294901760, %v8395_v28 }
 0x513   : > { %v8391_v11 = vmul.f32 %v18392_v7, %v18384_v57  ;;  %v9375_v57 = vsub.f32 %v9373_v46, %v9374_v52 }
 0x514   : > { %v8464_v63 = vsub.f32 %v8395_v28, %v19869_v10 }
 0x515   : > { %v8844_v3 = vsel %vm6537_vm4, %v8391_v11, 0  ;;  %v9376_v62 = vand.u32 4294901760, %v9375_v57 }
 0x516   : > { %v8465_v13 = vand.u32 4294901760, %v8464_v63  ;;  %v19875_v8 = vand.u32 4294901760, %v8844_v3 }
 0x518   : > { %v8466_v12 = vsub.f32 %v8464_v63, %v8465_v13  ;;  %v8913_v22 = vsub.f32 %v8844_v3, %v19875_v8 }
 0x51a   : > { %v8467_v25 = vand.u32 4294901760, %v8466_v12  ;;  %v8914_v16 = vand.u32 4294901760, %v8913_v22 }
 0x51c   : > { %16910 = vmatmul.mubr.f32.vlgmr.msra.gmra.mrb[16].mxu0 %v8467_v25  ;;  %v8915_v23 = vsub.f32 %v8913_v22, %v8914_v16 }
 0x51d   : > { %16913 = vmatpush3.msra.mxu0 %v8478_v35  ;;  %16914 = vmatprep.mubr.msk.f32.mxu0 %vm18467_vm1, %v22004_v40 }
 0x51e   : > { %v8916_v17 = vand.u32 4294901760, %v8915_v23  ;;  %16917 = vmatprep.subr.mxu0 %v22004_v40  ;;  %v10193_v23 = vld [vmem:[%s21992_s9 + $0x18] sm:$0xff] }
 0x520   : > { %16940 = vmatmul.mubr.f32.vlgmr.msra.gmra.mrb[16].mxu1 %v8916_v17  ;;  %v10192_v17 = vld [vmem:[%s21992_s9 + $0x10] sm:$0xff] }
 0x521   : > { %16943 = vmatpush3.msra.mxu1 %v8927_v24  ;;  %16944 = vmatprep.mubr.msk.f32.mxu1 %vm18467_vm1, %v22004_v40  ;;  %v20045_v24 = vand.u32 4294901760, %v10193_v23 }
 0x522   : > { %16947 = vmatprep.subr.mxu1 %v22004_v40 }
 0x523   : > { %v20055_v37 = vsub.f32 %v10193_v23, %v20045_v24 }
 0x524   : > { %16915 = vmatmul.mubr.f32.vlgmr.msra.gmra.mrb[16].mxu0 %v19869_v10 }
 0x525   : > { %16918 = vmatpush3.msra.mxu0 %v8475_v5  ;;  %16919 = vmatprep.mubr.msk.f32.mxu0 %vm18467_vm1, %v22004_v40 }
 0x526   : > { %16922 = vmatprep.subr.mxu0 %v22004_v40 }
 0x528   : > { %16945 = vmatmul.mubr.f32.vlgmr.msra.gmra.mrb[16].mxu1 %v19875_v8 }
 0x529   : > { %16948 = vmatpush3.msra.mxu1 %v8924_v38  ;;  %16949 = vmatprep.mubr.msk.f32.mxu1 %vm18467_vm1, %v22004_v40 }
 0x52a   : > { %16952 = vmatprep.subr.mxu1 %v22004_v40 }
 0x52c   : > { %16920 = vmatmul.mubr.f32.vlgmr.msra.gmra.mrb[16].mxu0 %v8464_v63 }
 0x52d   : > { %16923 = vmatpush3.msra.mxu0 %v19839_v14  ;;  %16924 = vmatprep.mubr.msk.f32.mxu0 %vm18467_vm1, %v22004_v40 }
 0x52e   : > { %16927 = vmatprep.subr.mxu0 %v22004_v40 }
 0x530   : > { %16950 = vmatmul.mubr.f32.vlgmr.msra.gmra.mrb[16].mxu1 %v8913_v22 }
 0x531   : > { %16953 = vmatpush3.msra.mxu1 %v19842_v26  ;;  %16954 = vmatprep.mubr.msk.f32.mxu1 %vm18467_vm1, %v22004_v40 }
 0x532   : > { %16957 = vmatprep.subr.mxu1 %v22004_v40 }
 0x533   : > { %v8385_v36 = vpop.xlane.xlu1 %8384 }
 0x534   : > { %18393 = vrcp.f32 %v8385_v36  ;;  %v8382_v39 = vpop.xlane.xlu0 %8381  ;;  %16925 = vmatmul.mubr.f32.vlgmr.msra.gmra.mrb[16].mxu0 %v8465_v13  ;;  %v20048_v36 = vand.u32 4294901760, %v10192_v17 }
 0x535   : > { %18395 = vrcp.f32 %v8382_v39  ;;  %16928 = vmatpush3.msra.mxu0 %v8476_v34  ;;  %16929 = vmatprep.mubr.msk.f32.mxu0 %vm18467_vm1, %v22004_v40 }
 0x536   : > { %16932 = vmatprep.subr.mxu0 %v22004_v40  ;;  %v11173_v39 = vsub.f32 %v10192_v17, %v20048_v36 }
 0x538   : > { %16955 = vmatmul.mubr.f32.vlgmr.msra.gmra.mrb[16].mxu1 %v8914_v16 }
 0x539   : > { %16958 = vmatpush3.msra.mxu1 %v8925_v20  ;;  %16959 = vmatprep.mubr.msk.f32.mxu1 %vm18467_vm1, %v22004_v40 }
 0x53a   : > { %16962 = vmatprep.subr.mxu1 %v22004_v40 }
 0x53c   : > { %16930 = vmatmul.mubr.f32.vlgmr.msra.gmra.mrb[16].mxu0 %v19869_v10 }
 0x53d   : > { %16933 = vmatpush3.msra.mxu0 %v19839_v14  ;;  %16934 = vmatprep.mubr.msk.f32.mxu0 %vm18467_vm1, %v22004_v40 }
 0x53e   : > { %v18394_v21 = vpop.eup %18393  ;;  %16967 = vmatprep.subr.mxu0 %v22004_v40 }
 0x53f   : > { %v18396_v27 = vpop.eup %18395  ;;  %v8393_v45 = vmul.f32 %v18394_v21, %v19858_v29  ;;  %v19991_v29 = vand.u32 4294901760, %v10190_v15 }
 0x540   : > { %v8392_v47 = vmul.f32 %v18396_v27, %v19860_v19  ;;  %16960 = vmatmul.mubr.f32.vlgmr.msra.gmra.mrb[16].mxu1 %v19875_v8  ;;  %v10191_v19 = vld [vmem:[%s21992_s9 + $0x8] sm:$0xff] }
 0x541   : > { %16963 = vmatpush3.msra.mxu1 %v19842_v26  ;;  %16964 = vmatprep.mubr.msk.f32.mxu1 %vm18467_vm1, %v22004_v40  ;;  %v9742_v14 = vsel %vm6537_vm4, %v8393_v45, 0  ;;  %v19998_v0 = vand.u32 4294901760, %v10191_v19  ;;  %v10275_v1 = vsub.f32 %v10190_v15, %v19991_v29  ;;  %v11174_v45 = vand.u32 4294901760, %v11173_v39 }
 0x542   : > { %16997 = vmatprep.subr.mxu1 %v22004_v40  ;;  %v9293_v48 = vsel %vm6537_vm4, %v8392_v47, 0  ;;  %v19934_v49 = vand.u32 4294901760, %v9742_v14 }
 0x543   : > { %v9361_v51 = vand.u32 4294901760, %v9293_v48  ;;  %v10724_v5 = vsub.f32 %v10191_v19, %v19998_v0  ;;  %v10276_v6 = vand.u32 4294901760, %v10275_v1 }
 0x544   : > { %16935 = vmatmul.mubr.f32.vlgmr.msra.gmra.mrb[16].mxu0 %v19869_v10  ;;  %v9811_v53 = vsub.f32 %v9742_v14, %v19934_v49 }
 0x545   : > { %16968 = vmatpush3.msra.mxu0 %v19916_v33  ;;  %16969 = vmatprep.mubr.msk.f32.mxu0 %vm18467_vm1, %v22004_v40  ;;  %v9362_v26 = vsub.f32 %v9293_v48, %v9361_v51  ;;  %v10277_v11 = vsub.f32 %v10275_v1, %v10276_v6  ;;  %v10725_v63 = vand.u32 4294901760, %v10724_v5 }
 0x546   : > { %16972 = vmatprep.subr.mxu0 %v22004_v40  ;;  %v9812_v54 = vand.u32 4294901760, %v9811_v53 }
 0x547   : > { %v9363_v56 = vand.u32 4294901760, %v9362_v26  ;;  %v10278_v20 = vand.u32 4294901760, %v10277_v11  ;;  %v10726_v12 = vsub.f32 %v10724_v5, %v10725_v63 }
 0x548   : > { %16965 = vmatmul.mubr.f32.vlgmr.msra.gmra.mrb[16].mxu1 %v19875_v8  ;;  %v9813_v31 = vsub.f32 %v9811_v53, %v9812_v54 }
 0x549   : > { %16998 = vmatpush3.msra.mxu1 %v19914_v32  ;;  %16999 = vmatprep.mubr.msk.f32.mxu1 %vm18467_vm1, %v22004_v40  ;;  %v9364_v58 = vsub.f32 %v9362_v26, %v9363_v56  ;;  %v10727_v4 = vand.u32 4294901760, %v10726_v12 }
 0x54a   : > { %17002 = vmatprep.subr.mxu1 %v22004_v40  ;;  %v9814_v59 = vand.u32 4294901760, %v9813_v31 }
 0x54b   : > { %v9365_v60 = vand.u32 4294901760, %v9364_v58 }
 0x54c   : > { %17000 = vmatmul.mubr.f32.vlgmr.msra.gmra.mrb[18].mxu1 %v9814_v59 }
 0x54d   : > { %16970 = vmatmul.mubr.f32.vlgmr.msra.gmra.mrb[18].mxu0 %v9365_v60  ;;  %17003 = vmatpush3.msra.mxu1 %v9825_v61 }
 0x54e   : > { %16973 = vmatpush3.msra.mxu0 %v9376_v62  ;;  %16974 = vmatprep.mubr.msk.f32.mxu0 %vm18467_vm1, %v22004_v40 }
 0x54f   : > { %16977 = vmatprep.subr.mxu0 %v22004_v40  ;;  %17004 = vmatprep.mubr.msk.f32.mxu1 %vm18467_vm1, %v22004_v40 }
 0x550   : > { %17007 = vmatprep.subr.mxu1 %v22004_v40 }
 0x554   : > { %17005 = vmatmul.mubr.f32.vlgmr.msra.gmra.mrb[18].mxu1 %v19934_v49 }
 0x555   : > { %16975 = vmatmul.mubr.f32.vlgmr.msra.gmra.mrb[18].mxu0 %v9361_v51  ;;  %17008 = vmatpush3.msra.mxu1 %v9822_v44 }
 0x556   : > { %16978 = vmatpush3.msra.mxu0 %v9373_v46  ;;  %16979 = vmatprep.mubr.msk.f32.mxu0 %vm18467_vm1, %v22004_v40 }
 0x557   : > { %16982 = vmatprep.subr.mxu0 %v22004_v40  ;;  %17009 = vmatprep.mubr.msk.f32.mxu1 %vm18467_vm1, %v22004_v40 }
 0x558   : > { %17012 = vmatprep.subr.mxu1 %v22004_v40 }
 0x55c   : > { %17010 = vmatmul.mubr.f32.vlgmr.msra.gmra.mrb[18].mxu1 %v9811_v53 }
 0x55d   : > { %16980 = vmatmul.mubr.f32.vlgmr.msra.gmra.mrb[18].mxu0 %v9362_v26  ;;  %17013 = vmatpush3.msra.mxu1 %v19914_v32 }
 0x55e   : > { %16983 = vmatpush3.msra.mxu0 %v19916_v33  ;;  %16984 = vmatprep.mubr.msk.f32.mxu0 %vm18467_vm1, %v22004_v40 }
 0x55f   : > { %16987 = vmatprep.subr.mxu0 %v22004_v40  ;;  %17014 = vmatprep.mubr.msk.f32.mxu1 %vm18467_vm1, %v22004_v40 }
 0x560   : > { %17017 = vmatprep.subr.mxu1 %v22004_v40 }
 0x564   : > { %17015 = vmatmul.mubr.f32.vlgmr.msra.gmra.mrb[18].mxu1 %v9812_v54 }
 0x565   : > { %16985 = vmatmul.mubr.f32.vlgmr.msra.gmra.mrb[18].mxu0 %v9363_v56  ;;  %17018 = vmatpush3.msra.mxu1 %v9823_v50  ;;  %v11175_v50 = vsub.f32 %v11173_v39, %v11174_v45 }
 0x566   : > { %16988 = vmatpush3.msra.mxu0 %v9374_v52  ;;  %16989 = vmatprep.mubr.msk.f32.mxu0 %vm18467_vm1, %v22004_v40 }
 0x567   : > { %16992 = vmatprep.subr.mxu0 %v22004_v40  ;;  %17019 = vmatprep.mubr.msk.f32.mxu1 %vm18467_vm1, %v22004_v40  ;;  %v11176_v55 = vand.u32 4294901760, %v11175_v50  ;;  %v12054_v50 = vld [vmem:[%s21996_s13 + $0x60] sm:$0xff] }
 0x568   : > { %17022 = vmatprep.subr.mxu1 %v22004_v40 }
 0x56c   : > { %17020 = vmatmul.mubr.f32.vlgmr.msra.gmra.mrb[18].mxu1 %v19934_v49 }
 0x56d   : > { %16990 = vmatmul.mubr.f32.vlgmr.msra.gmra.mrb[18].mxu0 %v9361_v51  ;;  %17023 = vmatpush3.msra.mxu1 %v19914_v32 }
 0x56e   : > { %16993 = vmatpush3.msra.mxu0 %v19916_v33  ;;  %16994 = vmatprep.mubr.msk.f32.mxu0 %vm18467_vm1, %v22004_v40  ;;  %v11623_v33 = vand.u32 4294901760, %v20055_v37 }
 0x56f   : > { %17024 = vmatprep.mubr.msk.f32.mxu1 %vm18467_vm1, %v22004_v40  ;;  %17027 = vmatprep.subr.mxu0 %v22004_v40 }
 0x570   : > { %17057 = vmatprep.subr.mxu1 %v22004_v40  ;;  %v11624_v48 = vsub.f32 %v20055_v37, %v11623_v33 }
 0x572   : > { %v11625_v26 = vand.u32 4294901760, %v11624_v48 }
 0x574   : > { %17025 = vmatmul.mubr.f32.vlgmr.msra.gmra.mrb[18].mxu1 %v19934_v49 }
 0x575   : > { %16995 = vmatmul.mubr.f32.vlgmr.msra.gmra.mrb[18].mxu0 %v9361_v51  ;;  %17059 = vmatprep.mubr.msk.f32.mxu1 %vm18467_vm1, %v22004_v40 }
 0x576   : > { %17029 = vmatprep.mubr.msk.f32.mxu0 %vm18467_vm1, %v22004_v40  ;;  %17028 = vmatpush3.msra.mxu0 %v19991_v29 }
 0x577   : > { %17032 = vmatprep.subr.mxu0 %v22004_v40  ;;  %17058 = vmatpush3.msra.mxu1 %v19998_v0 }
 0x578   : > { %17062 = vmatprep.subr.mxu1 %v22004_v40 }
 0x617   : > { %v8839_v18 = vpop.f32.mrb[16].mxu0 }
 0x618   : > { %v10195_v30 = vsel %vm6537_vm4, %v8839_v18, 0  ;;  %v16936_v2 = vpop.f32.mrb[17].mxu0 }
 0x619   : > { %v20005_v28 = vand.u32 4294901760, %v10195_v30  ;;  %v15063_v2 = vld [vmem:[%s21993_s10] ss:$0 sm:$0xff] }
 0x61b   : > { %v10264_v7 = vsub.f32 %v10195_v30, %v20005_v28  ;;  %v9288_v10 = vpop.f32.mrb[16].mxu1 }
 0x61c   : > { %v10644_v34 = vsel %vm6537_vm4, %v9288_v10, 0  ;;  %v16966_v38 = vpop.f32.mrb[17].mxu1 }
 0x61d   : > { %v10265_v3 = vand.u32 4294901760, %v10264_v7  ;;  %v20009_v13 = vand.u32 4294901760, %v10644_v34 }
 0x61f   : > { %v10266_v8 = vsub.f32 %v10264_v7, %v10265_v3  ;;  %v10713_v9 = vsub.f32 %v10644_v34, %v20009_v13 }
 0x621   : > { %v10267_v22 = vand.u32 4294901760, %v10266_v8  ;;  %v10714_v25 = vand.u32 4294901760, %v10713_v9  ;;  %v12047_v8 = vld [vmem:[%s21996_s13 + $0x28] sm:$0xff] }
 0x622   : > { %v12087_v12 = vand.u32 4294901760, %v12047_v8 }
 0x623   : > { %v10715_v16 = vsub.f32 %v10713_v9, %v10714_v25  ;;  %17030 = vmatmul.mubr.f32.vlgmr.msra.gmra.mrb[20].mxu0 %v10267_v22  ;;  %v12049_v22 = vld [vmem:[%s21996_s13 + $0x38] sm:$0xff] }
 0x624   : > { %17033 = vmatpush3.msra.mxu0 %v10278_v20  ;;  %17034 = vmatprep.mubr.msk.f32.mxu0 %vm18467_vm1, %v22004_v40 }
 0x625   : > { %v10716_v35 = vand.u32 4294901760, %v10715_v16  ;;  %17037 = vmatprep.subr.mxu0 %v22004_v40  ;;  %v12042_v16 = vld [vmem:[%s21996_s13] sm:$0xff] }
 0x626   : > { %v12085_v23 = vand.u32 4294901760, %v12042_v16 }
 0x627   : > { %17060 = vmatmul.mubr.f32.vlgmr.msra.gmra.mrb[20].mxu1 %v10716_v35  ;;  %v12630_v35 = vand.u32 4294901760, %v12049_v22 }
 0x628   : > { %17063 = vmatpush3.msra.mxu1 %v10727_v4  ;;  %17064 = vmatprep.mubr.msk.f32.mxu1 %vm18467_vm1, %v22004_v40  ;;  %v12046_v4 = vld [vmem:[%s21996_s13 + $0x20] sm:$0xff] }
 0x629   : > { %17067 = vmatprep.subr.mxu1 %v22004_v40  ;;  %v12089_v17 = vand.u32 4294901760, %v12046_v4 }
 0x62b   : > { %17035 = vmatmul.mubr.f32.vlgmr.msra.gmra.mrb[20].mxu0 %v20005_v28 }
 0x62c   : > { %17038 = vmatpush3.msra.mxu0 %v10275_v1  ;;  %17039 = vmatprep.mubr.msk.f32.mxu0 %vm18467_vm1, %v22004_v40 }
 0x62d   : > { %17042 = vmatprep.subr.mxu0 %v22004_v40 }
 0x62f   : > { %17065 = vmatmul.mubr.f32.vlgmr.msra.gmra.mrb[20].mxu1 %v20009_v13 }
 0x630   : > { %17068 = vmatpush3.msra.mxu1 %v10724_v5  ;;  %17069 = vmatprep.mubr.msk.f32.mxu1 %vm18467_vm1, %v22004_v40 }
 0x631   : > { %17072 = vmatprep.subr.mxu1 %v22004_v40 }
 0x633   : > { %17040 = vmatmul.mubr.f32.vlgmr.msra.gmra.mrb[20].mxu0 %v10264_v7 }
 0x634   : > { %17043 = vmatpush3.msra.mxu0 %v19991_v29  ;;  %17044 = vmatprep.mubr.msk.f32.mxu0 %vm18467_vm1, %v22004_v40 }
 0x635   : > { %17047 = vmatprep.subr.mxu0 %v22004_v40 }
 0x637   : > { %17070 = vmatmul.mubr.f32.vlgmr.msra.gmra.mrb[20].mxu1 %v10713_v9  ;;  %v12045_v9 = vld [vmem:[%s21996_s13 + $0x18] sm:$0xff] }
 0x638   : > { %17073 = vmatpush3.msra.mxu1 %v19998_v0  ;;  %17074 = vmatprep.mubr.msk.f32.mxu1 %vm18467_vm1, %v22004_v40 }
 0x639   : > { %17077 = vmatprep.subr.mxu1 %v22004_v40 }
 0x63b   : > { %17045 = vmatmul.mubr.f32.vlgmr.msra.gmra.mrb[20].mxu0 %v10265_v3 }
 0x63c   : > { %17048 = vmatpush3.msra.mxu0 %v10276_v6  ;;  %17049 = vmatprep.mubr.msk.f32.mxu0 %vm18467_vm1, %v22004_v40 }
 0x63d   : > { %17052 = vmatprep.subr.mxu0 %v22004_v40 }
 0x63f   : > { %17075 = vmatmul.mubr.f32.vlgmr.msra.gmra.mrb[20].mxu1 %v10714_v25  ;;  %v12626_v25 = vand.u32 4294901760, %v12045_v9 }
 0x640   : > { %17078 = vmatpush3.msra.mxu1 %v10725_v63  ;;  %17079 = vmatprep.mubr.msk.f32.mxu1 %vm18467_vm1, %v22004_v40 }
 0x641   : > { %17082 = vmatprep.subr.mxu1 %v22004_v40 }
 0x643   : > { %17050 = vmatmul.mubr.f32.vlgmr.msra.gmra.mrb[20].mxu0 %v20005_v28 }
 0x644   : > { %17053 = vmatpush3.msra.mxu0 %v19991_v29  ;;  %17054 = vmatprep.mubr.msk.f32.mxu0 %vm18467_vm1, %v22004_v40 }
 0x645   : > { %17087 = vmatprep.subr.mxu0 %v22004_v40 }
 0x647   : > { %v10186_v41 = vpop.f32.mrb[18].mxu1  ;;  %17080 = vmatmul.mubr.f32.vlgmr.msra.gmra.mrb[20].mxu1 %v20009_v13 }
 0x648   : > { %v9737_v42 = vpop.f32.mrb[18].mxu0  ;;  %v11542_v43 = vsel %vm6537_vm4, %v10186_v41, 0  ;;  %v17026_v32 = vpop.f32.mrb[19].mxu1  ;;  %17083 = vmatpush3.msra.mxu1 %v19998_v0  ;;  %17084 = vmatprep.mubr.msk.f32.mxu1 %vm18467_vm1, %v22004_v40  ;;  %v12055_v41 = vld [vmem:[%s21996_s13 + $0x68] sm:$0xff] }
 0x649   : > { %v11093_v21 = vsel %vm6537_vm4, %v9737_v42, 0  ;;  %v20066_v27 = vand.u32 4294901760, %v11542_v43  ;;  %v16996_v44 = vpop.f32.mrb[19].mxu0  ;;  %17117 = vmatprep.subr.mxu1 %v22004_v40  ;;  %v12053_v42 = vld [vmem:[%s21996_s13 + $0x58] sm:$0xff]  ;;  %v20175_v32 = vpack.c.bf16 %v12630_v35, %v12626_v25 }
 0x64a   : > { %v11161_v46 = vand.u32 4294901760, %v11093_v21  ;;  %v20185_v44 = vsub.f32 %v12046_v4, %v12089_v17  ;;  %v12634_v48 = vand.u32 4294901760, %v12053_v42 }
 0x64b   : > { %v11611_v47 = vsub.f32 %v11542_v43, %v20066_v27  ;;  %17055 = vmatmul.mubr.f32.vlgmr.msra.gmra.mrb[20].mxu0 %v20005_v28  ;;  %v18401_v28 = vld [vmem:[%s18613_s18] sm:$0xff]  ;;  %v12057_v43 = vld [vmem:[%s21996_s13 + $0x78] sm:$0xff]  ;;  %s14984_s18 = sshll.u32 %s539_s26, 4  ;;  %s21942_s18 = int_to_ptr.vmem [resolvable:$true] %s14984_s18 }
 0x64c   : > { %v11162_v14 = vsub.f32 %v11093_v21, %v11161_v46  ;;  %17088 = vmatpush3.msra.mxu0 %v20048_v36  ;;  %17089 = vmatprep.mubr.msk.f32.mxu0 %vm18467_vm1, %v22004_v40  ;;  %v20179_v21 = vsub.f32 %v12042_v16, %v12085_v23  ;;  %v12187_v16 = vand.u32 4294901760, %v20185_v44  ;;  %s18402_s23 = scalar_lea.vmem %s21942_s18, 128  ;;  %p18409_p0 = scmp.lt.s32.totalorder %s21942_s18, %s18407_s29 }
 0x64d   : > { %v11612_v49 = vand.u32 4294901760, %v11611_v47  ;;  %17092 = vmatprep.subr.mxu0 %v22004_v40  ;;  %p18403_p11 = scmp.ne.s32.totalorder %s21942_s18, %s18402_s23  ;;  %p18410_p1 = scmp.lt.s32.totalorder %s18408_s3, %s18402_s23 }
 0x64e   : > { %v11163_v51 = vand.u32 4294901760, %v11162_v14  ;;  %v12188_v4 = vsub.f32 %v20185_v44, %v12187_v16 }
 0x64f   : > { %v11613_v52 = vsub.f32 %v11611_v47, %v11612_v49  ;;  %17085 = vmatmul.mubr.f32.vlgmr.msra.gmra.mrb[20].mxu1 %v20009_v13  ;;  %v12043_v13 = vld [vmem:[%s21996_s13 + $0x8] sm:$0xff]  ;;  %p18404_p12 = pnand %p18403_p11, %p18598_p5  ;;  %p18411_p2 = por %p18410_p1, %p18409_p0 }
 0x650   : > { %v11164_v53 = vsub.f32 %v11162_v14, %v11163_v51  ;;  %17118 = vmatpush3.msra.mxu1 %v20045_v24  ;;  %17119 = vmatprep.mubr.msk.f32.mxu1 %vm18467_vm1, %v22004_v40  ;;  %v12083_v20 = vand.u32 4294901760, %v12043_v13 }
 0x651   : > { %v11614_v54 = vand.u32 4294901760, %v11613_v52  ;;  %17122 = vmatprep.subr.mxu1 %v22004_v40  ;;  %v12052_v52 = vld [vmem:[%s21996_s13 + $0x50] sm:$0xff]  ;;  %p18405_p13 = pneg %p18404_p12 }
 0x652   : > { %v11165_v56 = vand.u32 4294901760, %v11164_v53 }
 0x653   : > { %17120 = vmatmul.mubr.f32.vlgmr.msra.gmra.mrb[22].mxu1 %v11614_v54  ;;  %p18412_p3 = pnand %p18411_p2, %p18405_p13 }
 0x654   : > { %17090 = vmatmul.mubr.f32.vlgmr.msra.gmra.mrb[22].mxu0 %v11165_v56  ;;  %17123 = vmatpush3.msra.mxu1 %v11625_v26  ;;  %v12056_v56 = vld [vmem:[%s21996_s13 + $0x70] sm:$0xff] }
 0x655   : > { %17093 = vmatpush3.msra.mxu0 %v11176_v55  ;;  %17094 = vmatprep.mubr.msk.f32.mxu0 %vm18467_vm1, %v22004_v40 }
 0x656   : > { %17124 = vmatprep.mubr.msk.f32.mxu1 %vm18467_vm1, %v22004_v40  ;;  %17097 = vmatprep.subr.mxu0 %v22004_v40 }
 0x657   : > { %17127 = vmatprep.subr.mxu1 %v22004_v40 }
 0x65b   : > { %17125 = vmatmul.mubr.f32.vlgmr.msra.gmra.mrb[22].mxu1 %v20066_v27 }
 0x65c   : > { %17095 = vmatmul.mubr.f32.vlgmr.msra.gmra.mrb[22].mxu0 %v11161_v46  ;;  %17128 = vmatpush3.msra.mxu1 %v20055_v37  ;;  %v12051_v37 = vld [vmem:[%s21996_s13 + $0x48] sm:$0xff] }
 0x65d   : > { %17098 = vmatpush3.msra.mxu0 %v11173_v39  ;;  %17099 = vmatprep.mubr.msk.f32.mxu0 %vm18467_vm1, %v22004_v40  ;;  %v20164_v39 = vpack.c.bf16 %v12087_v12, %v12083_v20 }
 0x65e   : > { %17129 = vmatprep.mubr.msk.f32.mxu1 %vm18467_vm1, %v22004_v40  ;;  %17102 = vmatprep.subr.mxu0 %v22004_v40 }
 0x65f   : > { %17132 = vmatprep.subr.mxu1 %v22004_v40 }
 0x663   : > { %17130 = vmatmul.mubr.f32.vlgmr.msra.gmra.mrb[22].mxu1 %v11611_v47  ;;  %v12091_v47 = vand.u32 4294901760, %v12051_v37 }
 0x664   : > { %17100 = vmatmul.mubr.f32.vlgmr.msra.gmra.mrb[22].mxu0 %v11162_v14  ;;  %17133 = vmatpush3.msra.mxu1 %v20045_v24  ;;  %v12095_v14 = vand.u32 4294901760, %v12055_v41 }
 0x665   : > { %17103 = vmatpush3.msra.mxu0 %v20048_v36  ;;  %17104 = vmatprep.mubr.msk.f32.mxu0 %vm18467_vm1, %v22004_v40  ;;  %v20201_v55 = vsub.f32 %v12051_v37, %v12091_v47 }
 0x666   : > { %17134 = vmatprep.mubr.msk.f32.mxu1 %vm18467_vm1, %v22004_v40  ;;  %17107 = vmatprep.subr.mxu0 %v22004_v40 }
 0x667   : > { %17137 = vmatprep.subr.mxu1 %v22004_v40 }
 0x66b   : > { %17135 = vmatmul.mubr.f32.vlgmr.msra.gmra.mrb[22].mxu1 %v11612_v49  ;;  %v12638_v49 = vand.u32 4294901760, %v12057_v43 }
 0x66c   : > { %17105 = vmatmul.mubr.f32.vlgmr.msra.gmra.mrb[22].mxu0 %v11163_v51  ;;  %17138 = vmatpush3.msra.mxu1 %v11623_v33  ;;  %v20177_v33 = vpack.c.bf16 %v12089_v17, %v12085_v23 }
 0x66d   : > { %17108 = vmatpush3.msra.mxu0 %v11174_v45  ;;  %17109 = vmatprep.mubr.msk.f32.mxu0 %vm18467_vm1, %v22004_v40 }
 0x66e   : > { %17139 = vmatprep.mubr.msk.f32.mxu1 %vm18467_vm1, %v22004_v40  ;;  %17112 = vmatprep.subr.mxu0 %v22004_v40 }
 0x66f   : > { %17142 = vmatprep.subr.mxu1 %v22004_v40 }
 0x673   : > { %17140 = vmatmul.mubr.f32.vlgmr.msra.gmra.mrb[22].mxu1 %v20066_v27 }
 0x674   : > { %17110 = vmatmul.mubr.f32.vlgmr.msra.gmra.mrb[22].mxu0 %v11161_v46  ;;  %17143 = vmatpush3.msra.mxu1 %v20045_v24  ;;  %v12044_v24 = vld [vmem:[%s21996_s13 + $0x10] sm:$0xff] }
 0x675   : > { %17113 = vmatpush3.msra.mxu0 %v20048_v36  ;;  %17114 = vmatprep.mubr.msk.f32.mxu0 %vm18467_vm1, %v22004_v40  ;;  %v12048_v36 = vld [vmem:[%s21996_s13 + $0x30] sm:$0xff]  ;;  %v12628_v45 = vand.u32 4294901760, %v12044_v24 }
 0x676   : > { %17144 = vmatprep.mubr.msk.f32.mxu1 %vm18467_vm1, %v22004_v40  ;;  %17580 = vmatprep.subr.bf16.mxu0 %v20164_v39 }
 0x677   : > { %17628 = vmatprep.subr.bf16.mxu1 %v20175_v32  ;;  %v20197_v26 = vsub.f32 %v12044_v24, %v12628_v45 }
 0x67b   : > { %17145 = vmatmul.mubr.f32.vlgmr.msra.gmra.mrb[22].mxu1 %v20066_v27  ;;  %v12050_v27 = vld [vmem:[%s21996_s13 + $0x40] sm:$0xff] }
 0x67c   : > { %17115 = vmatmul.mubr.f32.vlgmr.msra.gmra.mrb[22].mxu0 %v11161_v46  ;;  %12698 = vmatprep.mubr.f32.mxu1 %v22004_v40  ;;  %v12632_v46 = vand.u32 4294901760, %v12048_v36  ;;  %v12093_v51 = vand.u32 4294901760, %v12050_v27 }
 0x67d   : > { %12155 = vmatprep.mubr.f32.mxu0 %v22004_v40  ;;  %17582 = vmatpush1.bf16.msra.mxu0 %v20177_v33 }
 0x67e   : > { %v20195_v53 = vpack.c.bf16 %v12632_v46, %v12628_v45  ;;  %v20199_v54 = vsub.f32 %v12048_v36, %v12632_v46 }
 0x680   : > { %17630 = vmatpush1.bf16.msra.mxu1 %v20195_v53 }
 0x71e   : > { %v10639_v57 = vpop.f32.mrb[20].mxu0 }
 0x71f   : > { %v17056_v31 = vpop.f32.mrb[21].mxu0  ;;  %v11990_v59 = vsel %vm547_vm0, %v10639_v57, 0.0  ;;  %v20206_v57 = vpack.c.bf16 %v12095_v14, %v12091_v47  ;;  %v12193_v47 = vand.u32 4294901760, %v20201_v55 }
 0x720   : > { %v20208_v31 = vsub.f32 %v12055_v41, %v12095_v14 }
 0x721   : > { %17584 = vmatprep.subr.bf16.mxu0 %v20206_v57 }
 0x722   : > { %v11088_v58 = vpop.f32.mrb[20].mxu1  ;;  %v12205_v14 = vand.u32 4294901760, %v20208_v31 }
 0x723   : > { %v11991_v60 = vsel %vm547_vm0, %v11088_v58, 0.0  ;;  %v17086_v61 = vpop.f32.mrb[21].mxu1  ;;  %v20210_v58 = vpack.c.bf16 %v12638_v49, %v12634_v48 }
 0x724   : > { %v11992_v62 = vadd.f32 %v11991_v60, %v11990_v59  ;;  %v20212_v59 = vsub.f32 %v12053_v42, %v12634_v48  ;;  %v20215_v60 = vsub.f32 %v12057_v43, %v12638_v49  ;;  %v12097_v61 = vand.u32 4294901760, %v12054_v50 }
 0x725   : > { %17632 = vmatprep.subr.bf16.mxu1 %v20210_v58  ;;  %v12189_v42 = vand.u32 4294901760, %v12188_v4 }
 0x74e   : > { %v11986_v15 = vpop.f32.mrb[22].mxu1 }
 0x74f   : > { %v11537_v29 = vpop.f32.mrb[22].mxu0  ;;  %v17146_v19 = vpop.f32.mrb[23].mxu1  ;;  %v11995_v30 = vsel %vm547_vm0, %v11986_v15, 0.0  ;;  %v12636_v15 = vand.u32 4294901760, %v12052_v52 }
 0x750   : > { %v11993_v0 = vsel %vm547_vm0, %v11537_v29, 0.0  ;;  %v17116_v1 = vpop.f32.mrb[23].mxu0  ;;  %v12640_v29 = vand.u32 4294901760, %v12056_v56  ;;  %v20221_v19 = vpack.c.bf16 %v12097_v61, %v12093_v51 }
 0x751   : > { %v11994_v18 = vadd.f32 %v11993_v0, %v11992_v62  ;;  %v20217_v62 = vsub.f32 %v12050_v27, %v12093_v51  ;;  %v20223_v0 = vsub.f32 %v12054_v50, %v12097_v61  ;;  %v20225_v1 = vsub.f32 %v12052_v52, %v12636_v15 }
 0x752   : > { %17586 = vmatpush1.bf16.msra.mxu0 %v20221_v19  ;;  %v12736_v50 = vand.u32 4294901760, %v20212_v59  ;;  %v12748_v51 = vand.u32 4294901760, %v20215_v60  ;;  %v12194_v52 = vsub.f32 %v20201_v55, %v12193_v47 }
 0x753   : > { %v11996_v5 = vadd.f32 %v11995_v30, %v11994_v18  ;;  %v20227_v18 = vpack.c.bf16 %v12640_v29, %v12636_v15  ;;  %v20229_v30 = vsub.f32 %v12056_v56, %v12640_v29  ;;  %v12206_v56 = vsub.f32 %v20208_v31, %v12205_v14 }
 0x754   : > { %v12199_v61 = vand.u32 4294901760, %v20217_v62  ;;  %v12211_v15 = vand.u32 4294901760, %v20223_v0  ;;  %v12737_v29 = vsub.f32 %v20212_v59, %v12736_v50 }
 0x755   : > { %v12004_v6 = vadd.f32 %v15063_v2, %v11996_v5  ;;  %17634 = vmatpush1.bf16.msra.mxu1 %v20227_v18  ;;  %v20233_v2 = vsub.f32 %v12043_v13, %v12083_v20  ;;  %v20235_v5 = vsub.f32 %v12047_v8, %v12087_v12  ;;  %v12718_v13 = vand.u32 4294901760, %v20197_v26 }
 0x756   : > { %v12730_v8 = vand.u32 4294901760, %v20199_v54  ;;  %v12200_v4 = vsub.f32 %v20217_v62, %v12199_v61 }
 0x757   : > { %v20127_v7 = vadd.f32 %v18401_v28, %v12004_v6  ;;  %v20237_v6 = vsub.f32 %v12045_v9, %v12626_v25  ;;  %v20239_v28 = vsub.f32 %v12049_v22, %v12630_v35  ;;  %v12719_v35 = vsub.f32 %v20197_v26, %v12718_v13 }
 0x758   : > { %v12731_v23 = vsub.f32 %v20199_v54, %v12730_v8 }
 0x759   : > { %22152 = vst [vmem:[#allocation8_spill] sm:$0xff] %v20127_v7  ;;  %v12008_v10 = vsel %vm547_vm0, %v20127_v7, 0.0  ;;  %v12720_v43 = vand.u32 4294901760, %v12719_v35  ;;  %v12212_v35 = vsub.f32 %v20223_v0, %v12211_v15 }
 0x75a   : > { %12009 = vadd.xlane.f32.xlu0 %v12008_v10  ;;  %v12169_v10 = vand.u32 4294901760, %v20233_v2  ;;  %v12732_v27 = vand.u32 4294901760, %v12731_v23  ;;  %v12738_v23 = vand.u32 4294901760, %v12737_v29  ;;  %v17597_v29 = vpack.c.bf16 %v20185_v44, %v20179_v21 }
 0x75c   : > { %v12170_v9 = vsub.f32 %v20233_v2, %v12169_v10  ;;  %v20275_v49 = vpack.c.bf16 %v12732_v27, %v12720_v43 }
 0x75e   : > { %v12171_v17 = vand.u32 4294901760, %v12170_v9  ;;  %v12749_v9 = vsub.f32 %v20215_v60, %v12748_v51 }
 0x7e7   : > { %v12010_v34 = vpop.xlane.xlu0 %12009 }
 0x7e8   : > { %v12011_v38 = vmul.f32 0.03125, %v12010_v34  ;;  %v12181_v34 = vand.u32 4294901760, %v20235_v5 }
 0x7ea   : > { %v20132_v11 = vsub.f32 %v20127_v7, %v12011_v38  ;;  %v12712_v38 = vand.u32 4294901760, %v20237_v6  ;;  %v12182_v20 = vsub.f32 %v20235_v5, %v12181_v34 }
 0x7ec   : > { %v12013_v63 = vmul.f32 %v20132_v11, %v20132_v11  ;;  %v12713_v12 = vsub.f32 %v20237_v6, %v12712_v38  ;;  %v12183_v24 = vand.u32 4294901760, %v12182_v20  ;;  %v12742_v20 = vand.u32 4294901760, %v20225_v1 }
 0x7ee   : > { %v12014_v3 = vsel %vm547_vm0, %v12013_v63, 0.0  ;;  %v12724_v63 = vand.u32 4294901760, %v20239_v28  ;;  %v12714_v36 = vand.u32 4294901760, %v12713_v12  ;;  %v17587_v45 = vpack.c.bf16 %v12183_v24, %v12171_v17 }
 0x7ef   : > { %12015 = vadd.xlane.f32.xlu1 %v12014_v3  ;;  %v12175_v3 = vand.u32 4294901760, %v20179_v21  ;;  %v12754_v12 = vand.u32 4294901760, %v20229_v30  ;;  %v12750_v17 = vand.u32 4294901760, %v12749_v9  ;;  %v12743_v24 = vsub.f32 %v20225_v1, %v12742_v20 }
 0x7f0   : > { %v12725_v22 = vsub.f32 %v20239_v28, %v12724_v63  ;;  %17588 = vmatprep.subr.bf16.mxu0 %v17587_v45  ;;  %v17645_v9 = vpack.c.bf16 %v20199_v54, %v20197_v26  ;;  %v20317_v54 = vpack.c.bf16 %v12724_v63, %v12712_v38 }
 0x7f1   : > { %v12176_v25 = vsub.f32 %v20179_v21, %v12175_v3  ;;  %v17639_v43 = vpack.c.bf16 %v12750_v17, %v12738_v23  ;;  %v12744_v27 = vand.u32 4294901760, %v12743_v24  ;;  %v20311_v23 = vpack.c.bf16 %v12181_v34, %v12169_v10 }
 0x7f2   : > { %v12726_v37 = vand.u32 4294901760, %v12725_v22  ;;  %v12195_v22 = vand.u32 4294901760, %v12194_v52  ;;  %v17595_v52 = vpack.c.bf16 %v20235_v5, %v20233_v2  ;;  %v20323_v17 = vpack.c.bf16 %v12187_v16, %v12175_v3  ;;  %v15064_v16 = vld [vmem:[%s21994_s11] ss:$0 sm:$0xff] }
 0x7f3   : > { %v12177_v41 = vand.u32 4294901760, %v12176_v25  ;;  %v12207_v25 = vand.u32 4294901760, %v12206_v56  ;;  %v17643_v56 = vpack.c.bf16 %v20239_v28, %v20237_v6  ;;  %v20327_v24 = vpack.c.bf16 %v12730_v8, %v12718_v13 }
 0x7f4   : > { %v17635_v46 = vpack.c.bf16 %v12726_v37, %v12714_v36  ;;  %v12755_v36 = vsub.f32 %v20229_v30, %v12754_v12  ;;  %v20329_v2 = vpack.c.bf16 %v12205_v14, %v12193_v47  ;;  %v20331_v5 = vpack.c.bf16 %v12748_v51, %v12736_v50  ;;  %v15065_v47 = vld [vmem:[%s21995_s12] ss:$0 sm:$0xff] }
 0x7f5   : > { %v20273_v48 = vpack.c.bf16 %v12189_v42, %v12177_v41  ;;  %v17591_v37 = vpack.c.bf16 %v12207_v25, %v12195_v22  ;;  %v12201_v41 = vand.u32 4294901760, %v12200_v4  ;;  %v12213_v42 = vand.u32 4294901760, %v12212_v35 }
 0x7f6   : > { %17636 = vmatprep.subr.bf16.mxu1 %v17635_v46  ;;  %v12756_v45 = vand.u32 4294901760, %v12755_v36  ;;  %v17599_v22 = vpack.c.bf16 %v20208_v31, %v20201_v55  ;;  %v17647_v25 = vpack.c.bf16 %v20215_v60, %v20212_v59  ;;  %v17601_v4 = vpack.c.bf16 %v20223_v0, %v20217_v62 }
 0x7f7   : > { %v17593_v46 = vpack.c.bf16 %v12213_v42, %v12201_v41  ;;  %v17649_v35 = vpack.c.bf16 %v20229_v30, %v20225_v1  ;;  %v20333_v10 = vpack.c.bf16 %v12211_v15, %v12199_v61  ;;  %v20335_v6 = vpack.c.bf16 %v12754_v12, %v12742_v20  ;;  %v20358_v41 = vld [vmem:[%s21998_s15 + $0x80] sm:$0xff]  ;;  %v20363_v42 = vld [vmem:[%s21998_s15 + $0x88] sm:$0xff] }
 0x7f8   : > { %v17641_v40 = vpack.c.bf16 %v12756_v45, %v12744_v27  ;;  %v12033_v13 = vmul.f32 %v15064_v16, %v20132_v11  ;;  %v22153_v11 = vmov 0.0   ;;  %v20385_v27 = vld [vmem:[%s21998_s15 + $0x98] sm:$0xff]  ;;  %v20390_v45 = vld [vmem:[%s21998_s15 + $0x10] sm:$0xff] }
 0x87c   : > { %v12016_v28 = vpop.xlane.xlu1 %12015 }
 0x87d   : > { %v12017_v34 = vmul.f32 0.032258064, %v12016_v28 }
 0x87f   : > { %18397 = vrsqrt.f32 %v12017_v34  ;;  %vm12020_vm5 = vcmp.eq.f32.partialorder %v12017_v34, inf  ;;  %v12023_v44 = vand.u32 2147483648, %v12017_v34  ;;  %vm12022_vm6 = vcmp.eq.f32.partialorder %v12017_v34, 0.0 }
 0x889   : > { %v18398_v21 = vpop.eup %18397 }
 0x88a   : > { %v12019_v38 = vmul.f32 %v18398_v21, %v12017_v34 }
 0x88c   : > { %v12021_v63 = vsel %vm12020_vm5, %v12017_v34, %v12019_v38  ;;  %v22017_v34 = vand.u32 4294901760, %v20385_v27 }
 0x88d   : > { %v12024_v26 = vsel %vm12022_vm6, %v12023_v44, %v12021_v63  ;;  %v20477_v63 = vld [vmem:[%s21998_s15 + $0xa8] sm:$0xff] }
 0x88e   : > { %v12025_v3 = vadd.f32 1e-06, %v12024_v26  ;;  %v20447_v60 = vsub.f32 %v20385_v27, %v22017_v34 }
 0x890   : > { %18399 = vrcp.f32 %v12025_v3  ;;  %v22010_v44 = vand.u32 4294901760, %v20447_v60 }
 0x89a   : > { %v18400_v8 = vpop.eup %18399 }
 0x89b   : > { %v12034_v14 = vmul.f32 %v18400_v8, %v12033_v13 }
 0x89d   : > { %v12041_v50 = vadd.f32 %v15065_v47, %v12034_v14  ;;  %v22018_v14 = vand.u32 4294901760, %v20477_v63 }
 0x89f   : > { %v12081_v51 = vsel %vm547_vm0, %v12041_v50, 0  ;;  %v20499_v50 = vld [vmem:[%s21998_s15 + $0x20] sm:$0xff] }
 0x8a0   : > { %v20345_v61 = vand.u32 4294901760, %v12081_v51 }
 0x8a2   : > { %v12157_v15 = vsub.f32 %v12081_v51, %v20345_v61  ;;  %v20504_v51 = vld [vmem:[%s21998_s15 + $0x28] sm:$0xff] }
 0x8a4   : > { %v20348_v20 = vand.u32 4294901760, %v12157_v15 }
 0x8a6   : > { %v12159_v12 = vsub.f32 %v12157_v15, %v20348_v20 }
 0x8a8   : > { %v12160_v36 = vand.u32 4294901760, %v12159_v12 }
 0x8aa   : > { %12161 = vmatmul.mubr.f32.vlgmr.msra.gmra.mrb[24].mxu0 %v12160_v36  ;;  %12704 = vmatmul.mubr.f32.vlgmr.msra.gmra.mrb[24].mxu1 %v12160_v36  ;;  %v13493_v36 = vsub.f32 %v20447_v60, %v22010_v44 }
 0x8ab   : > { %17590 = vmatpush1.bf16.msra.mxu0 %v20273_v48  ;;  %17638 = vmatpush1.bf16.msra.mxu1 %v20275_v49  ;;  %v20368_v48 = vld [vmem:[%s21998_s15] sm:$0xff]  ;;  %v13293_v49 = vand.u32 4294901760, %v20358_v41 }
 0x8ac   : > { %17592 = vmatprep.subr.bf16.mxu0 %v17591_v37  ;;  %17640 = vmatprep.subr.bf16.mxu1 %v17639_v43  ;;  %v13296_v37 = vand.u32 4294901760, %v20363_v42  ;;  %v20375_v43 = vld [vmem:[%s21998_s15 + $0x8] sm:$0xff]  ;;  %v13494_v34 = vand.u32 4294901760, %v13493_v36 }
 0x8ad   : > { %12271 = vmatprep.mubr.f32.mxu0 %v22153_v11  ;;  %12814 = vmatprep.mubr.f32.mxu1 %v22153_v11  ;;  %v20412_v21 = vsub.f32 %v20358_v41, %v13293_v49 }
 0x8af   : > { %17594 = vmatpush1.bf16.msra.mxu0 %v17593_v46  ;;  %17642 = vmatpush1.bf16.msra.mxu1 %v17641_v40  ;;  %v20380_v40 = vld [vmem:[%s21998_s15 + $0x90] sm:$0xff]  ;;  %v20395_v46 = vld [vmem:[%s21998_s15 + $0x18] sm:$0xff]  ;;  %v22011_v62 = vand.u32 4294901760, %v20412_v21 }
 0x8b0   : > { %17596 = vmatprep.subr.bf16.mxu0 %v17595_v52  ;;  %17644 = vmatprep.subr.bf16.mxu1 %v17643_v56  ;;  %v22021_v52 = vand.u32 4294901760, %v20368_v48  ;;  %v22020_v56 = vand.u32 4294901760, %v20375_v43  ;;  %v22019_v28 = vand.u32 4294901760, %v20380_v40  ;;  %v22012_v38 = vand.u32 4294901760, %v20395_v46 }
 0x8b1   : > { %v13472_v26 = vsub.f32 %v20412_v21, %v22011_v62 }
 0x8b2   : > { %12273 = vmatmul.mubr.f32.vlgmr.msra.gmra.mrb[24].mxu0 %v20345_v61  ;;  %12816 = vmatmul.mubr.f32.vlgmr.msra.gmra.mrb[24].mxu1 %v20345_v61  ;;  %v20426_v55 = vsub.f32 %v20368_v48, %v22021_v52  ;;  %v20437_v31 = vsub.f32 %v20375_v43, %v22020_v56  ;;  %v20442_v59 = vsub.f32 %v20380_v40, %v22019_v28 }
 0x8b3   : > { %17598 = vmatpush1.bf16.msra.mxu0 %v17597_v29  ;;  %17646 = vmatpush1.bf16.msra.mxu1 %v17645_v9  ;;  %v20417_v29 = vsub.f32 %v20363_v42, %v13296_v37  ;;  %v22013_v9 = vand.u32 4294901760, %v20390_v45  ;;  %v20461_v30 = vsub.f32 %v20395_v46, %v22012_v38  ;;  %v20630_v42 = vld [vmem:[%s21998_s15 + $0x40] sm:$0xff] }
 0x8b4   : > { %17600 = vmatprep.subr.bf16.mxu0 %v17599_v22  ;;  %17648 = vmatprep.subr.bf16.mxu1 %v17647_v25  ;;  %v22006_v22 = vand.u32 4294901760, %v20426_v55  ;;  %v20467_v25 = vld [vmem:[%s21998_s15 + $0xa0] sm:$0xff] }
 0x8b5   : > { %12359 = vmatprep.mubr.f32.mxu0 %v22153_v11  ;;  %12902 = vmatprep.mubr.f32.mxu1 %v22153_v11  ;;  %v22007_v0 = vand.u32 4294901760, %v20417_v29  ;;  %v20456_v1 = vsub.f32 %v20390_v45, %v22013_v9  ;;  %v22014_v13 = vand.u32 4294901760, %v20461_v30  ;;  %v22016_v8 = vand.u32 4294901760, %v20467_v25 }
 0x8b6   : > { %v13360_v47 = vsub.f32 %v20426_v55, %v22006_v22  ;;  %v20520_v22 = vld [vmem:[%s21998_s15 + $0xb0] sm:$0xff]  ;;  %v22028_v9 = vand.u32 4294901760, %v20499_v50 }
 0x8b7   : > { %17602 = vmatpush1.bf16.msra.mxu0 %v17601_v4  ;;  %17650 = vmatpush1.bf16.msra.mxu1 %v17649_v35  ;;  %v22008_v4 = vand.u32 4294901760, %v20437_v31  ;;  %v22009_v35 = vand.u32 4294901760, %v20442_v59  ;;  %v13479_v3 = vsub.f32 %v20417_v29, %v22007_v0  ;;  %v22015_v16 = vand.u32 4294901760, %v20456_v1  ;;  %v20525_v0 = vld [vmem:[%s21998_s15 + $0xb8] sm:$0xff] }
 0x8b8   : > { %17604 = vmatprep.subr.bf16.mxu0 %v20164_v39  ;;  %17652 = vmatprep.subr.bf16.mxu1 %v20175_v32  ;;  %v13381_v62 = vsub.f32 %v20461_v30, %v22014_v13  ;;  %v20538_v38 = vsub.f32 %v20467_v25, %v22016_v8  ;;  %v20554_v13 = vld [vmem:[%s21998_s15 + $0x30] sm:$0xff] }
 0x8b9   : > { %v13486_v12 = vsub.f32 %v20442_v59, %v22009_v35  ;;  %v13480_v35 = vand.u32 4294901760, %v13479_v3  ;;  %v13374_v44 = vsub.f32 %v20456_v1, %v22015_v16  ;;  %v22023_v3 = vand.u32 4294901760, %v20525_v0 }
 0x8ba   : > { %12362 = vmatmul.mubr.f32.vlgmr.msra.gmra.mrb[24].mxu0 %v12157_v15  ;;  %12905 = vmatmul.mubr.f32.vlgmr.msra.gmra.mrb[24].mxu1 %v12157_v15  ;;  %v13367_v15 = vsub.f32 %v20437_v31, %v22008_v4  ;;  %v13473_v4 = vand.u32 4294901760, %v13472_v26  ;;  %v22022_v26 = vand.u32 4294901760, %v20520_v22  ;;  %v13361_v16 = vand.u32 4294901760, %v13360_v47 }
 0x8bb   : > { %17606 = vmatpush1.bf16.msra.mxu0 %v20177_v33  ;;  %17654 = vmatpush1.bf16.msra.mxu1 %v20195_v53  ;;  %v13487_v8 = vand.u32 4294901760, %v13486_v12  ;;  %v13375_v56 = vand.u32 4294901760, %v13374_v44  ;;  %v13382_v52 = vand.u32 4294901760, %v13381_v62  ;;  %v20584_v62 = vld [vmem:[%s21998_s15 + $0xc0] sm:$0xff]  ;;  %v20600_v47 = vsub.f32 %v20525_v0, %v22023_v3 }
 0x8bc   : > { %17608 = vmatprep.subr.bf16.mxu0 %v20206_v57  ;;  %17656 = vmatprep.subr.bf16.mxu1 %v20210_v58  ;;  %v20565_v28 = vpack.c.bf16 %v13480_v35, %v13473_v4  ;;  %v20589_v4 = vld [vmem:[%s21998_s15 + $0xc8] sm:$0xff]  ;;  %v20595_v44 = vsub.f32 %v20520_v22, %v22022_v26  ;;  %v20613_v26 = vpack.c.bf16 %v13296_v37, %v13293_v49 }
 0x8bd   : > { %12440 = vmatprep.mubr.f32.mxu0 %v22153_v11  ;;  %12983 = vmatprep.mubr.f32.mxu1 %v22153_v11  ;;  %v20607_v36 = vpack.c.bf16 %v13494_v34, %v13487_v8  ;;  %v20617_v3 = vpack.c.bf16 %v13382_v52, %v13375_v56  ;;  %v22036_v34 = vand.u32 4294901760, %v20584_v62  ;;  %v22030_v41 = vand.u32 4294901760, %v20589_v4  ;;  %v20655_v52 = vld [vmem:[%s21998_s15 + $0xd8] sm:$0xff] }
 0x8be   : > { %v22032_v8 = vand.u32 4294901760, %v20595_v44 }
 0x8bf   : > { %17610 = vmatpush1.bf16.msra.mxu0 %v20221_v19  ;;  %17658 = vmatpush1.bf16.msra.mxu1 %v20227_v18 }
 0x8c0   : > { %17612 = vmatprep.subr.bf16.mxu0 %v20311_v23  ;;  %17660 = vmatprep.subr.bf16.mxu1 %v20317_v54  ;;  %v22027_v23 = vand.u32 4294901760, %v20504_v51  ;;  %v20547_v54 = vsub.f32 %v20477_v63, %v22018_v14  ;;  %v20561_v14 = vld [vmem:[%s21998_s15 + $0x38] sm:$0xff] }
 0x8c2   : > { %12444 = vmatmul.mubr.f32.vlgmr.msra.gmra.mrb[24].mxu0 %v20348_v20  ;;  %12987 = vmatmul.mubr.f32.vlgmr.msra.gmra.mrb[24].mxu1 %v20348_v20  ;;  %v13368_v20 = vand.u32 4294901760, %v13367_v15  ;;  %v22026_v35 = vand.u32 4294901760, %v20547_v54  ;;  %v22029_v15 = vand.u32 4294901760, %v20561_v14 }
 0x8c3   : > { %17614 = vmatpush1.bf16.msra.mxu0 %v20323_v17  ;;  %17662 = vmatpush1.bf16.msra.mxu1 %v20327_v24  ;;  %v22024_v17 = vand.u32 4294901760, %v20538_v38  ;;  %v20573_v24 = vsub.f32 %v20499_v50, %v22028_v9 }
 0x8c4   : > { %17616 = vmatprep.subr.bf16.mxu0 %v20329_v2  ;;  %17664 = vmatprep.subr.bf16.mxu1 %v20331_v5  ;;  %v20578_v2 = vsub.f32 %v20504_v51, %v22027_v23  ;;  %v22025_v5 = vand.u32 4294901760, %v20554_v13  ;;  %v20605_v12 = vpack.c.bf16 %v13368_v20, %v13361_v16  ;;  %v13507_v56 = vsub.f32 %v20547_v54, %v22026_v35 }
 0x8c5   : > { %12538 = vmatprep.mubr.f32.mxu0 %v22153_v11  ;;  %13081 = vmatprep.mubr.f32.mxu1 %v22153_v11  ;;  %v22159_v35 = vand.u32 4294901760, %v20390_v45  ;;  %v22160_v23 = vand.u32 4294901760, %v20395_v46  ;;  %v22035_v20 = vand.u32 4294901760, %v20630_v42 }
 0x8c6   : > { %v22031_v49 = vand.u32 4294901760, %v20578_v2  ;;  %v20645_v37 = vsub.f32 %v20554_v13, %v22025_v5 }
 0x8c7   : > { %17618 = vmatpush1.bf16.msra.mxu0 %v20333_v10  ;;  %17666 = vmatpush1.bf16.msra.mxu1 %v20335_v6  ;;  %v22154_v10 = vand.u32 4294901760, %v20368_v48  ;;  %v22155_v6 = vand.u32 4294901760, %v20375_v43  ;;  %v22033_v48 = vand.u32 4294901760, %v20573_v24  ;;  %v20650_v43 = vld [vmem:[%s21998_s15 + $0xd0] sm:$0xff]  ;;  %v20681_v9 = vpack.c.bf16 %v22160_v23, %v22159_v35 }
 0x8c8   : > { %17620 = vmatprep.subr.bf16.mxu0 %v20164_v39  ;;  %17668 = vmatprep.subr.bf16.mxu1 %v20175_v32  ;;  %v20635_v39 = vld [vmem:[%s21998_s15 + $0x48] sm:$0xff]  ;;  %v13500_v32 = vsub.f32 %v20538_v38, %v22024_v17  ;;  %v22158_v17 = vand.u32 4294901760, %v20385_v27  ;;  %v22038_v27 = vand.u32 4294901760, %v20655_v52  ;;  %v13395_v23 = vsub.f32 %v20578_v2, %v22031_v49 }
 0x8c9   : > { %v20623_v16 = vpack.c.bf16 %v22155_v6, %v22154_v10  ;;  %v20667_v10 = vsub.f32 %v20561_v14, %v22029_v15  ;;  %v22157_v6 = vand.u32 4294901760, %v20380_v40  ;;  %v22034_v15 = vand.u32 4294901760, %v20635_v39 }
 0x8ca   : > { %12540 = vmatmul.mubr.f32.vlgmr.msra.gmra.mrb[24].mxu0 %v20345_v61  ;;  %13083 = vmatmul.mubr.f32.vlgmr.msra.gmra.mrb[24].mxu1 %v20345_v61  ;;  %v22037_v40 = vand.u32 4294901760, %v20650_v43  ;;  %v13501_v45 = vand.u32 4294901760, %v13500_v32  ;;  %v13388_v46 = vsub.f32 %v20573_v24, %v22033_v48  ;;  %v13508_v35 = vand.u32 4294901760, %v13507_v56 }
 0x8cb   : > { %22156 = vst [vmem:[#allocation9_spill] sm:$0xff] %v20667_v10  ;;  %17622 = vmatpush1.bf16.msra.mxu0 %v20177_v33  ;;  %17670 = vmatpush1.bf16.msra.mxu1 %v20195_v53  ;;  %v20675_v5 = vpack.c.bf16 %v22158_v17, %v22157_v6  ;;  %v20690_v33 = vsub.f32 %v20584_v62, %v22036_v34  ;;  %v22040_v17 = vand.u32 4294901760, %v20645_v37  ;;  %v22039_v32 = vand.u32 4294901760, %v20667_v10 }
 0x8cc   : > { %17624 = vmatprep.subr.bf16.mxu0 %v20206_v57  ;;  %17672 = vmatprep.subr.bf16.mxu1 %v20210_v58  ;;  %v20695_v53 = vsub.f32 %v20589_v4, %v22030_v41  ;;  %v20702_v57 = vld [vmem:[%s21998_s15 + $0x50] sm:$0xff]  ;;  %v20707_v58 = vld [vmem:[%s21998_s15 + $0x58] sm:$0xff]  ;;  %v13514_v6 = vsub.f32 %v20595_v44, %v22032_v8  ;;  %v22163_v41 = vand.u32 4294901760, %v20600_v47  ;;  %v20730_v49 = vsub.f32 %v20630_v42, %v22035_v20 }
 0x8cd   : > { %22161 = vst [vmem:[#allocation10_spill] sm:$0xff] %v20690_v33  ;;  %12618 = vmatprep.mubr.f32.mxu0 %v22153_v11  ;;  %13161 = vmatprep.mubr.f32.mxu1 %v22153_v11  ;;  %v20735_v56 = vsub.f32 %v20635_v39, %v22034_v15  ;;  %v20746_v48 = vsub.f32 %v20650_v43, %v22037_v40  ;;  %v13389_v20 = vand.u32 4294901760, %v13388_v46  ;;  %v13396_v34 = vand.u32 4294901760, %v13395_v23 }
 0x8ce   : > { %22162 = vst [vmem:[#allocation11_spill] sm:$0xff] %v20695_v53  ;;  %v13521_v11 = vsub.f32 %v20600_v47, %v22163_v41  ;;  %22164 = vst [vmem:[#allocation12_spill] sm:$0xff] %v20730_v49  ;;  %v20751_v15 = vsub.f32 %v20655_v52, %v22038_v27  ;;  %v17715_v40 = vpack.c.bf16 %v13508_v35, %v13501_v45  ;;  %v13515_v8 = vand.u32 4294901760, %v13514_v6 }
 0x8cf   : > { %17626 = vmatpush1.bf16.msra.mxu0 %v20221_v19  ;;  %17674 = vmatpush1.bf16.msra.mxu1 %v20227_v18  ;;  %22165 = vst [vmem:[#allocation13_spill] sm:$0xff] %v20735_v56  ;;  %22166 = vst [vmem:[#allocation14_spill] sm:$0xff] %v20746_v48  ;;  %v22168_v19 = vand.u32 4294901760, %v20467_v25  ;;  %v22169_v18 = vand.u32 4294901760, %v20477_v63  ;;  %v13409_v46 = vsub.f32 %v20667_v10, %v22039_v32  ;;  %v22170_v23 = vand.u32 4294901760, %v20702_v57 }
 0x8d0   : > { %17708 = vmatprep.subr.bf16.mxu1 %v20565_v28  ;;  %17676 = vmatprep.subr.bf16.mxu0 %v20613_v26  ;;  %22167 = vst [vmem:[#allocation15_spill] sm:$0xff] %v20751_v15  ;;  %v13402_v28 = vsub.f32 %v20645_v37, %v22040_v17  ;;  %v13522_v27 = vand.u32 4294901760, %v13521_v11  ;;  %v22175_v6 = vand.u32 4294901760, %v20695_v53  ;;  %v17717_v32 = vpack.c.bf16 %v13396_v34, %v13389_v20 }
 0x8d1   : > { %v20760_v41 = vpack.c.bf16 %v22169_v18, %v22168_v19  ;;  %v20774_v19 = vsub.f32 %v20702_v57, %v22170_v23  ;;  %v22049_v18 = vand.u32 4294901760, %v20746_v48  ;;  %v22048_v23 = vand.u32 4294901760, %v20751_v15 }
 0x8d2   : > { %12620 = vmatmul.mubr.f32.vlgmr.msra.gmra.mrb[24].mxu0 %v20345_v61  ;;  %13163 = vmatmul.mubr.f32.vlgmr.msra.gmra.mrb[24].mxu1 %v20345_v61  ;;  %v22172_v61 = vand.u32 4294901760, %v20707_v58  ;;  %v13535_v11 = vsub.f32 %v20695_v53, %v22175_v6  ;;  %v13403_v17 = vand.u32 4294901760, %v13402_v28  ;;  %v13410_v63 = vand.u32 4294901760, %v13409_v46 }
 0x8d3   : > { %17710 = vmatpush3.bf16.msra.mxu1 %v20605_v12  ;;  %17678 = vmatpush3.bf16.msra.mxu0 %v20623_v16  ;;  %22171 = vst [vmem:[#allocation16_spill] sm:$0xff] %v20774_v19  ;;  %v22174_v12 = vand.u32 4294901760, %v20690_v33  ;;  %v22177_v25 = vand.u32 4294901760, %v20504_v51  ;;  %v22180_v34 = vand.u32 4294901760, %v20730_v49  ;;  %v22047_v20 = vand.u32 4294901760, %v20774_v19 }
 0x8d4   : > { %v20779_v45 = vsub.f32 %v20707_v58, %v22172_v61  ;;  %17712 = vmatprep.subr.bf16.mxu1 %v20607_v36  ;;  %17680 = vmatprep.subr.bf16.mxu0 %v20675_v5  ;;  %v17719_v61 = vpack.c.bf16 %v13522_v27, %v13515_v8  ;;  %v22176_v36 = vand.u32 4294901760, %v20499_v50  ;;  %v22181_v50 = vand.u32 4294901760, %v20735_v56 }
 0x8d5   : > { %v13528_v35 = vsub.f32 %v20690_v33, %v22174_v12  ;;  %v22178_v12 = vand.u32 4294901760, %v20520_v22  ;;  %v22179_v33 = vand.u32 4294901760, %v20525_v0  ;;  %v13416_v8 = vsub.f32 %v20730_v49, %v22180_v34 }
 0x8d6   : > { %22173 = vst [vmem:[#allocation17_spill] sm:$0xff] %v20779_v45  ;;  %v20795_v7 = vpack.c.bf16 %v22177_v25, %v22176_v36  ;;  %v13423_v51 = vsub.f32 %v20735_v56, %v22181_v50  ;;  %v22046_v22 = vand.u32 4294901760, %v20779_v45  ;;  %v13549_v27 = vsub.f32 %v20751_v15, %v22048_v23  ;;  %v20843_v50 = vld [vmem:[%s21998_s15 + $0xe8] sm:$0xff] }
 0x8d7   : > { %v20801_v10 = vpack.c.bf16 %v22179_v33, %v22178_v12  ;;  %17714 = vmatpush3.bf16.msra.mxu1 %v20617_v3  ;;  %17682 = vmatpush3.bf16.msra.mxu0 %v20681_v9  ;;  %v13529_v0 = vand.u32 4294901760, %v13528_v35  ;;  %v13536_v33 = vand.u32 4294901760, %v13535_v11  ;;  %v13542_v3 = vsub.f32 %v20746_v48, %v22049_v18 }
 0x8d8   : > { %17716 = vmatprep.subr.bf16.mxu1 %v17715_v40  ;;  %17684 = vmatprep.subr.bf16.mxu0 %v20760_v41  ;;  %v17721_v28 = vpack.c.bf16 %v13410_v63, %v13403_v17  ;;  %v22182_v46 = vand.u32 4294901760, %v20554_v13  ;;  %v22183_v25 = vand.u32 4294901760, %v20561_v14  ;;  %v13417_v40 = vand.u32 4294901760, %v13416_v8 }
 0x8d9   : > { %v13424_v35 = vand.u32 4294901760, %v13423_v51  ;;  %v13430_v11 = vsub.f32 %v20774_v19, %v22047_v20  ;;  %v13437_v36 = vsub.f32 %v20779_v45, %v22046_v22  ;;  %v17723_v17 = vpack.c.bf16 %v13536_v33, %v13529_v0  ;;  %v13185_v33 = vld [vmem:[%s21998_s15 + $0x60] sm:$0xff] }
 0x8da   : > { %v20824_v6 = vpack.c.bf16 %v22183_v25, %v22182_v46  ;;  %v13543_v13 = vand.u32 4294901760, %v13542_v3  ;;  %v13550_v14 = vand.u32 4294901760, %v13549_v27  ;;  %v13332_v0 = vand.u32 4294901760, %v20843_v50  ;;  %v13186_v3 = vld [vmem:[%s21998_s15 + $0x68] sm:$0xff] }
 0x8db   : > { %17718 = vmatpush3.bf16.msra.mxu1 %v17717_v32  ;;  %17686 = vmatpush3.bf16.msra.mxu0 %v20795_v7  ;;  %v17725_v32 = vpack.c.bf16 %v13424_v35, %v13417_v40  ;;  %v13431_v63 = vand.u32 4294901760, %v13430_v11  ;;  %v13438_v12 = vand.u32 4294901760, %v13437_v36  ;;  %v13281_v27 = vand.u32 4294901760, %v13185_v33  ;;  %v13203_v11 = vld [vmem:[%s21998_s15 + $0xf0] sm:$0xff]  ;;  %v13204_v36 = vld [vmem:[%s21998_s15 + $0xf8] sm:$0xff] }
 0x8dc   : > { %22184 = vst [vmem:[#allocation18_spill] sm:$0xff] %v20824_v6  ;;  %17720 = vmatprep.subr.bf16.mxu1 %v17719_v61  ;;  %17688 = vmatprep.subr.bf16.mxu0 %v20801_v10  ;;  %v17727_v34 = vpack.c.bf16 %v13550_v14, %v13543_v13  ;;  %v20838_v61 = vld [vmem:[%s21998_s15 + $0xe0] sm:$0xff]  ;;  %v20857_v25 = vsub.f32 %v20843_v50, %v13332_v0  ;;  %v13335_v14 = vand.u32 4294901760, %v13203_v11  ;;  %v22186_v49 = vand.u32 4294901760, %v20589_v4 }
 0x8dd   : > { %v17729_v8 = vpack.c.bf16 %v13438_v12, %v13431_v63  ;;  %v13329_v51 = vand.u32 4294901760, %v20838_v61  ;;  %v20859_v40 = vsub.f32 %v13185_v33, %v13281_v27  ;;  %v13187_v63 = vld [vmem:[%s21998_s15 + $0x70] sm:$0xff]  ;;  %v13188_v12 = vld [vmem:[%s21998_s15 + $0x78] sm:$0xff] }
 0x8de   : > { %v22057_v13 = vand.u32 4294901760, %v20857_v25  ;;  %v13290_v50 = vand.u32 4294901760, %v13188_v12  ;;  %v20885_v22 = vsub.f32 %v13203_v11, %v13335_v14 }
 0x8df   : > { %17722 = vmatpush3.bf16.msra.mxu1 %v17721_v28  ;;  %17690 = vmatpush3.bf16.msra.mxu0 %v20824_v6  ;;  %v13284_v28 = vand.u32 4294901760, %v13186_v3  ;;  %v20854_v46 = vsub.f32 %v20838_v61, %v13329_v51  ;;  %v13287_v61 = vand.u32 4294901760, %v13187_v63 }
 0x8e0   : > { %17724 = vmatprep.subr.bf16.mxu1 %v17723_v17  ;;  %v20897_v19 = vsub.f32 %v13188_v12, %v13290_v50  ;;  %v22188_v12 = vand.u32 4294901760, %v20630_v42 }
 0x8e1   : > { %v20861_v35 = vsub.f32 %v13186_v3, %v13284_v28  ;;  %v22054_v17 = vand.u32 4294901760, %v20854_v46  ;;  %v13563_v3 = vsub.f32 %v20857_v25, %v22057_v13  ;;  %v20895_v45 = vsub.f32 %v13187_v63, %v13287_v61 }
 0x8e2   : > { %v22071_v13 = vand.u32 4294901760, %v20885_v22  ;;  %v22068_v4 = vand.u32 4294901760, %v20897_v19 }
 0x8e3   : > { %17726 = vmatpush3.bf16.msra.mxu1 %v17725_v32  ;;  %v13338_v32 = vand.u32 4294901760, %v13204_v36  ;;  %v13556_v33 = vsub.f32 %v20854_v46, %v22054_v17  ;;  %v13564_v15 = vand.u32 4294901760, %v13563_v3  ;;  %v22069_v56 = vand.u32 4294901760, %v20895_v45 }
 0x8e4   : > { %17728 = vmatprep.subr.bf16.mxu1 %v17727_v34  ;;  %v22062_v34 = vand.u32 4294901760, %v20859_v40 }
 0x8e5   : > { %v20887_v20 = vsub.f32 %v13204_v36, %v13338_v32  ;;  %v13557_v17 = vand.u32 4294901760, %v13556_v33  ;;  %v22189_v33 = vand.u32 4294901760, %v20635_v39  ;;  %v13458_v42 = vsub.f32 %v20895_v45, %v22069_v56  ;;  %v22208_v56 = vld [vmem:[#allocation11_spill] sm:$0xff] }
 0x8e6   : > { %v13444_v23 = vsub.f32 %v20859_v40, %v22062_v34  ;;  %v22185_v34 = vand.u32 4294901760, %v20584_v62  ;;  %v22191_v39 = vand.u32 4294901760, %v20650_v43 }
 0x8e7   : > { %17730 = vmatpush3.bf16.msra.mxu1 %v17729_v8  ;;  %v22067_v8 = vand.u32 4294901760, %v20861_v35  ;;  %v22070_v11 = vand.u32 4294901760, %v20887_v20  ;;  %v17731_v63 = vpack.c.bf16 %v13564_v15, %v13557_v17  ;;  %v20912_v3 = vpack.c.bf16 %v22189_v33, %v22188_v12 }
 0x8e8   : > { %v13445_v36 = vand.u32 4294901760, %v13444_v23  ;;  %v20906_v53 = vpack.c.bf16 %v22186_v49, %v22185_v34  ;;  %v13465_v17 = vsub.f32 %v20897_v19, %v22068_v4  ;;  %v22194_v34 = vand.u32 4294901760, %v20702_v57  ;;  %v21038_v4 = vld [vmem:[%s21998_s15 + $0x1e8] sm:$0xff] }
 0x8e9   : > { %v13451_v18 = vsub.f32 %v20861_v35, %v22067_v8  ;;  %22190 = vst [vmem:[#allocation20_spill] sm:$0xff] %v20912_v3  ;;  %17732 = vmatprep.subr.bf16.mxu1 %v17731_v63  ;;  %v13577_v62 = vsub.f32 %v20887_v20, %v22070_v11  ;;  %v13459_v63 = vand.u32 4294901760, %v13458_v42  ;;  %v20943_v33 = vpack.c.bf16 %v13332_v0, %v13329_v51  ;;  %v22213_v0 = vld [vmem:[#allocation12_spill] sm:$0xff] }
 0x8ea   : > { %22187 = vst [vmem:[#allocation19_spill] sm:$0xff] %v20906_v53  ;;  %17692 = vmatprep.subr.bf16.mxu0 %v20906_v53  ;;  %v13466_v43 = vand.u32 4294901760, %v13465_v17  ;;  %v20950_v57 = vpack.c.bf16 %v13338_v32, %v13335_v14  ;;  %v17739_v51 = vpack.c.bf16 %v20417_v29, %v20412_v21  ;;  %v12060_v32 = vlaneseq  ;;  %22206 = vst [vmem:[#allocation30_spill] sm:$0xff] %v21038_v4  ;;  %v21051_v14 = vld [vmem:[%s21998_s15 + $0x168] sm:$0xff] }
 0x8eb   : > { %v13452_v48 = vand.u32 4294901760, %v13451_v18  ;;  %v13570_v18 = vsub.f32 %v20885_v22, %v22071_v13  ;;  %17694 = vmatpush3.bf16.msra.mxu0 %v20912_v3  ;;  %v13578_v23 = vand.u32 4294901760, %v13577_v62  ;;  %22197 = vst [vmem:[#allocation23_spill] sm:$0xff] %v20943_v33  ;;  %v20972_v62 = vld [vmem:[%s21997_s14] sm:$0xf]  ;;  %22210 = vst [vmem:[#allocation11_spill] sm:$0xff] %v21051_v14 }
 0x8ec   : > { %22198 = vst [vmem:[#allocation24_spill] sm:$0xff] %v20950_v57  ;;  %v21046_v13 = vld [vmem:[%s21998_s15 + $0x160] sm:$0xff] }
 0x8ed   : > { %v17733_v8 = vpack.c.bf16 %v13452_v48, %v13445_v36  ;;  %v13571_v15 = vand.u32 4294901760, %v13570_v18  ;;  %v22192_v48 = vand.u32 4294901760, %v20655_v52  ;;  %v17737_v52 = vpack.c.bf16 %v13466_v43, %v13459_v63 }
 0x8ee   : > { %v20945_v18 = vpack.c.bf16 %v13284_v28, %v13281_v27 }
 0x8ef   : > { %17734 = vmatpush3.bf16.msra.mxu1 %v17733_v8  ;;  %v20930_v49 = vpack.c.bf16 %v22192_v48, %v22191_v39  ;;  %v22195_v8 = vand.u32 4294901760, %v20707_v58  ;;  %v17735_v12 = vpack.c.bf16 %v13578_v23, %v13571_v15  ;;  %v20952_v58 = vpack.c.bf16 %v13290_v50, %v13287_v61 }
 0x8f0   : > { %v20966_v61 = vshrl.u32 %v12060_v32, 7 }
 0x8f1   : > { %22193 = vst [vmem:[#allocation21_spill] sm:$0xff] %v20930_v49  ;;  %v20939_v36 = vpack.c.bf16 %v22195_v8, %v22194_v34  ;;  %17696 = vmatprep.subr.bf16.mxu0 %v20930_v49  ;;  %17736 = vmatprep.subr.bf16.mxu1 %v17735_v12 }
 0x8f2   : > { %v12062_v50 = vsub.s32 0, %v20966_v61  ;;  %v12066_v15 = vsub.s32 1, %v20966_v61 }
 0x8f3   : > { %22196 = vst [vmem:[#allocation22_spill] sm:$0xff] %v20939_v36  ;;  %17698 = vmatpush3.bf16.msra.mxu0 %v20939_v36  ;;  %17738 = vmatpush3.bf16.msra.mxu1 %v17737_v52 }
 0x8f4   : > { %17700 = vmatprep.subr.bf16.mxu0 %v20943_v33  ;;  %17772 = vmatprep.subr.bf16.mxu1 %v20613_v26  ;;  %v12063_v42 = vrot.slane %v20972_v62, %v12062_v50  ;;  %v12067_v39 = vrot.slane %v20972_v62, %v12066_v15 }
 0x8f7   : > { %17702 = vmatpush3.bf16.msra.mxu0 %v20945_v18 }
 0x8f8   : > { %17704 = vmatprep.subr.bf16.mxu0 %v20950_v57 }
 0x8fb   : > { %17706 = vmatpush3.bf16.msra.mxu0 %v20952_v58 }
 0x8fc   : > { %17740 = vmatprep.subr.bf16.mxu0 %v17739_v51 }
 0x9a5   : > { %v12621_v48 = vpop.f32.mrb[24].mxu0  ;;  %v20977_v23 = vpop.f32.mrb[24].mxu1 }
 0x9a6   : > { %22199 = vst [vmem:[#allocation25_spill] sm:$0xff] %v20977_v23  ;;  %v18071_v17 = vadd.f32 %v12621_v48, %v12063_v42  ;;  %v12623_v34 = vpop.f32.mrb[25].mxu0  ;;  %v20979_v8 = vpop.f32.mrb[25].mxu1 }
 0x9a7   : > { %22200 = vst [vmem:[#allocation26_spill] sm:$0xff] %v20979_v8  ;;  %v18072_v63 = vadd.f32 %v12623_v34, %v12067_v39  ;;  %v17741_v34 = vpack.c.bf16 %v20437_v31, %v20426_v55 }
 0x9a8   : > { %v13169_v12 = vmax.f32 %v18071_v17, 0.0 }
 0x9a9   : > { %v13170_v43 = vmax.f32 %v18072_v63, 0.0 }
 0x9aa   : > { %v20981_v52 = vand.u32 4294901760, %v13169_v12 }
 0x9ab   : > { %v20983_v51 = vand.u32 4294901760, %v13170_v43 }
 0x9ac   : > { %22201 = vst [vmem:[#allocation27_spill] sm:$0xff] %v20981_v52  ;;  %v20986_v32 = vsub.f32 %v13169_v12, %v20981_v52  ;;  %v17743_v12 = vpack.c.bf16 %v20447_v60, %v20442_v59 }
 0x9ad   : > { %v13341_v50 = vsub.f32 %v13170_v43, %v20983_v51  ;;  %13581 = vmatprep.mubr.f32.mxu1 %v20983_v51  ;;  %v17745_v43 = vpack.c.bf16 %v20461_v30, %v20456_v1 }
 0x9ae   : > { %v22072_v15 = vand.u32 4294901760, %v20986_v32  ;;  %13583 = vmatmul.mubr.f32.vlgmr.msra.gmra.mrb[26].mxu1 %v20981_v52 }
 0x9af   : > { %17774 = vmatpush3.bf16.msra.mxu1 %v20623_v16  ;;  %v13342_v42 = vand.u32 4294901760, %v13341_v50 }
 0x9b0   : > { %v13349_v39 = vsub.f32 %v20986_v32, %v22072_v15  ;;  %17776 = vmatprep.subr.bf16.mxu1 %v20675_v5  ;;  %v21063_v15 = vld [vmem:[%s21998_s15 + $0x1f8] sm:$0xff] }
 0x9b1   : > { %13825 = vmatprep.mubr.f32.mxu1 %v13342_v42  ;;  %v13343_v48 = vsub.f32 %v13341_v50, %v13342_v42  ;;  %v17747_v42 = vpack.c.bf16 %v20547_v54, %v20538_v38  ;;  %22212 = vst [vmem:[#allocation32_spill] sm:$0xff] %v21063_v15 }
 0x9b2   : > { %v13350_v63 = vand.u32 4294901760, %v13349_v39  ;;  %v17749_v39 = vpack.c.bf16 %v20578_v2, %v20573_v24 }
 0x9b3   : > { %17778 = vmatpush3.bf16.msra.mxu1 %v20681_v9  ;;  %v13344_v17 = vand.u32 4294901760, %v13343_v48  ;;  %v17751_v48 = vpack.c.bf16 %v20600_v47, %v20595_v44 }
 0x9b4   : > { %17780 = vmatprep.subr.bf16.mxu1 %v20760_v41 }
 0x9b5   : > { %13345 = vmatprep.mubr.f32.mxu0 %v13344_v17  ;;  %v21023_v17 = vld [vmem:[%s21998_s15 + $0x158] sm:$0xff] }
 0x9b6   : > { %13351 = vmatmul.mubr.f32.vlgmr.msra.gmra.mrb[26].mxu0 %v13350_v63  ;;  %22203 = vst [vmem:[#allocation29_spill] sm:$0xff] %v21023_v17  ;;  %v22217_v23 = vand.u32 4294901760, %v21023_v17 }
 0x9b7   : > { %17742 = vmatpush3.bf16.msra.mxu0 %v17741_v34  ;;  %17782 = vmatpush3.bf16.msra.mxu1 %v20795_v7  ;;  %v22204_v34 = vld [vmem:[#allocation9_spill] sm:$0xff] }
 0x9b8   : > { %13718 = vmatprep.mubr.f32.mxu0 %v13341_v50  ;;  %17744 = vmatprep.subr.bf16.mxu0 %v17743_v12  ;;  %v21018_v50 = vld [vmem:[%s21998_s15 + $0x150] sm:$0xff]  ;;  %v17753_v63 = vpack.c.bf16 %v22204_v34, %v20645_v37  ;;  %v21076_v52 = vsub.f32 %v21023_v17, %v22217_v23  ;;  %v22226_v23 = vld [vmem:[#allocation17_spill] sm:$0xff] }
 0x9b9   : > { %17784 = vmatprep.subr.bf16.mxu1 %v20801_v10  ;;  %22202 = vst [vmem:[#allocation28_spill] sm:$0xff] %v21018_v50  ;;  %v22215_v28 = vand.u32 4294901760, %v21018_v50  ;;  %v22225_v17 = vld [vmem:[#allocation16_spill] sm:$0xff] }
 0x9bb   : > { %17746 = vmatpush3.bf16.msra.mxu0 %v17745_v43  ;;  %17786 = vmatpush3.bf16.msra.mxu1 %v20824_v6  ;;  %v22214_v43 = vld [vmem:[#allocation13_spill] sm:$0xff]  ;;  %v21071_v27 = vsub.f32 %v21018_v50, %v22215_v28  ;;  %v22221_v28 = vld [vmem:[#allocation14_spill] sm:$0xff]  ;;  %v22222_v50 = vld [vmem:[#allocation15_spill] sm:$0xff] }
 0x9bc   : > { %17748 = vmatprep.subr.bf16.mxu0 %v17747_v42  ;;  %17788 = vmatprep.subr.bf16.mxu1 %v20906_v53  ;;  %v21033_v42 = vld [vmem:[%s21998_s15 + $0x1e0] sm:$0xff]  ;;  %v17757_v12 = vpack.c.bf16 %v22214_v43, %v22213_v0  ;;  %22218 = vst [vmem:[#allocation13_spill] sm:$0xff] %v21076_v52  ;;  %v17761_v53 = vpack.c.bf16 %v22226_v23, %v22225_v17 }
 0x9bd   : > { %22205 = vst [vmem:[#allocation9_spill] sm:$0xff] %v21033_v42  ;;  %22216 = vst [vmem:[#allocation12_spill] sm:$0xff] %v21071_v27  ;;  %v22223_v8 = vand.u32 4294901760, %v21033_v42 }
 0x9bf   : > { %17750 = vmatpush3.bf16.msra.mxu0 %v17749_v39  ;;  %17790 = vmatpush3.bf16.msra.mxu1 %v20912_v3  ;;  %v22207_v39 = vld [vmem:[#allocation10_spill] sm:$0xff]  ;;  %v21098_v6 = vsub.f32 %v21033_v42, %v22223_v8  ;;  %v22227_v3 = vand.u32 4294901760, %v21046_v13  ;;  %v22231_v42 = vand.u32 4294901760, %v21063_v15 }
 0x9c0   : > { %17752 = vmatprep.subr.bf16.mxu0 %v17751_v48  ;;  %17792 = vmatprep.subr.bf16.mxu1 %v20930_v49  ;;  %v17755_v11 = vpack.c.bf16 %v22208_v56, %v22207_v39  ;;  %22209 = vst [vmem:[#allocation10_spill] sm:$0xff] %v21046_v13  ;;  %v21058_v48 = vld [vmem:[%s21998_s15 + $0x1f0] sm:$0xff] }
 0x9c1   : > { %22211 = vst [vmem:[#allocation31_spill] sm:$0xff] %v21058_v48  ;;  %v21081_v49 = vld [vmem:[%s21998_s15 + $0x170] sm:$0xff]  ;;  %v22229_v8 = vand.u32 4294901760, %v21058_v48 }
 0x9c2   : > { %22219 = vst [vmem:[#allocation33_spill] sm:$0xff] %v21081_v49 }
 0x9c3   : > { %17754 = vmatpush3.bf16.msra.mxu0 %v17753_v63  ;;  %17794 = vmatpush3.bf16.msra.mxu1 %v20939_v36  ;;  %v21086_v63 = vld [vmem:[%s21998_s15 + $0x178] sm:$0xff]  ;;  %v17759_v36 = vpack.c.bf16 %v22222_v50, %v22221_v28  ;;  %v22228_v50 = vand.u32 4294901760, %v21051_v14  ;;  %v21136_v28 = vsub.f32 %v21058_v48, %v22229_v8  ;;  %v21157_v8 = vld [vmem:[%s21998_s15 + $0x108] sm:$0xff]  ;;  %v22240_v48 = vpack.c.bf16 %v20857_v25, %v20854_v46 }
 0x9c4   : > { %22220 = vst [vmem:[#allocation34_spill] sm:$0xff] %v21086_v63  ;;  %17756 = vmatprep.subr.bf16.mxu0 %v17755_v11  ;;  %17796 = vmatprep.subr.bf16.mxu1 %v20943_v33  ;;  %v22224_v11 = vand.u32 4294901760, %v21038_v4 }
 0x9c5   : > { %22230 = vst [vmem:[#allocation16_spill] sm:$0xff] %v21136_v28 }
 0x9c6   : > { %v21103_v33 = vsub.f32 %v21038_v4, %v22224_v11  ;;  %v21116_v11 = vld [vmem:[%s21998_s15 + $0x180] sm:$0xff]  ;;  %v21126_v4 = vsub.f32 %v21051_v14, %v22228_v50  ;;  %v22234_v50 = vand.u32 4294901760, %v21076_v52 }
 0x9c7   : > { %17758 = vmatpush3.bf16.msra.mxu0 %v17757_v12  ;;  %17798 = vmatpush3.bf16.msra.mxu1 %v20945_v18  ;;  %v21121_v12 = vsub.f32 %v21046_v13, %v22227_v3  ;;  %v21141_v3 = vsub.f32 %v21063_v15, %v22231_v42  ;;  %v22233_v13 = vand.u32 4294901760, %v21071_v27  ;;  %v22236_v15 = vand.u32 4294901760, %v21081_v49 }
 0x9c8   : > { %17760 = vmatprep.subr.bf16.mxu0 %v17759_v36  ;;  %17800 = vmatprep.subr.bf16.mxu1 %v20950_v57  ;;  %v21131_v36 = vld [vmem:[%s21998_s15 + $0x188] sm:$0xff]  ;;  %v21152_v57 = vld [vmem:[%s21998_s15 + $0x100] sm:$0xff]  ;;  %v22244_v42 = vand.u32 4294901760, %v20986_v32  ;;  %v22246_v27 = vand.u32 4294901760, %v21126_v4 }
 0x9c9   : > { %22232 = vst [vmem:[#allocation17_spill] sm:$0xff] %v21141_v3  ;;  %v21147_v14 = vpack.c.bf16 %v22234_v50, %v22233_v13  ;;  %v21164_v52 = vsub.f32 %v21081_v49, %v22236_v15  ;;  %v22238_v13 = vand.u32 4294901760, %v21086_v63  ;;  %v21195_v49 = vld [vmem:[%s21998_s15 + $0x190] sm:$0xff]  ;;  %v22251_v15 = vand.u32 4294901760, %v21136_v28 }
 0x9cb   : > { %22235 = vst [vmem:[#allocation35_spill] sm:$0xff] %v21147_v14  ;;  %22237 = vst [vmem:[#allocation36_spill] sm:$0xff] %v21164_v52  ;;  %v21169_v50 = vsub.f32 %v21086_v63, %v22238_v13  ;;  %17762 = vmatpush3.bf16.msra.mxu0 %v17761_v53  ;;  %17802 = vmatpush3.bf16.msra.mxu1 %v20952_v58  ;;  %v22241_v13 = vand.u32 4294901760, %v21098_v6  ;;  %v22242_v53 = vand.u32 4294901760, %v21103_v33 }
 0x9cc   : > { %17764 = vmatprep.subr.bf16.mxu0 %v22240_v48  ;;  %17836 = vmatprep.subr.bf16.mxu1 %v20613_v26  ;;  %v22248_v26 = vpack.c.bf16 %v20861_v35, %v20859_v40  ;;  %v22250_v48 = vand.u32 4294901760, %v20417_v29 }
 0x9cd   : > { %22239 = vst [vmem:[#allocation37_spill] sm:$0xff] %v21169_v50  ;;  %v21184_v63 = vpack.c.bf16 %v22242_v53, %v22241_v13  ;;  %v22245_v53 = vand.u32 4294901760, %v21121_v12  ;;  %v21216_v13 = vld [vmem:[%s21998_s15 + $0x198] sm:$0xff] }
 0x9ce   : > { %13829 = vmatmul.mubr.f32.vlgmr.msra.gmra.mrb[28].mxu1 %v22244_v42  ;;  %v22249_v42 = vand.u32 4294901760, %v20412_v21  ;;  %v22255_v21 = vand.u32 4294901760, %v21116_v11 }
 0x9cf   : > { %22243 = vst [vmem:[#allocation38_spill] sm:$0xff] %v21184_v63  ;;  %v21203_v14 = vpack.c.bf16 %v22246_v27, %v22245_v53  ;;  %17766 = vmatpush3.bf16.msra.mxu0 %v22248_v26  ;;  %17838 = vmatpush3.bf16.msra.mxu1 %v20623_v16  ;;  %v22252_v27 = vand.u32 4294901760, %v21141_v3  ;;  %v22254_v16 = vpack.c.bf16 %v20887_v20, %v20885_v22 }
 0x9d0   : > { %v17803_v63 = vpack.c.bf16 %v22250_v48, %v22249_v42  ;;  %14099 = vmatprep.mubr.f32.mxu1 %v20983_v51  ;;  %v21231_v29 = vsub.f32 %v21116_v11, %v22255_v21  ;;  %v22257_v48 = vand.u32 4294901760, %v21131_v36  ;;  %v22259_v42 = vand.u32 4294901760, %v21164_v52  ;;  %17840 = vmatprep.subr.bf16.mxu1 %v20675_v5 }
 0x9d1   : > { %22247 = vst [vmem:[#allocation39_spill] sm:$0xff] %v21203_v14  ;;  %v21222_v53 = vpack.c.bf16 %v22252_v27, %v22251_v15  ;;  %17768 = vmatprep.subr.bf16.mxu0 %v22254_v16  ;;  %v22260_v15 = vand.u32 4294901760, %v21169_v50  ;;  %v22262_v16 = vand.u32 4294901760, %v21152_v57  ;;  %v22264_v21 = vand.u32 4294901760, %v21157_v8  ;;  %v21259_v50 = vld [vmem:[%s21998_s15 + $0x110] sm:$0xff] }
 0x9d2   : > { %22256 = vst [vmem:[#allocation41_spill] sm:$0xff] %v21231_v29  ;;  %v21236_v26 = vsub.f32 %v21131_v36, %v22257_v48  ;;  %v12074_v5 = vsub.s32 3, %v20966_v61  ;;  %v22106_v3 = vand.u32 4294901760, %v21231_v29 }
 0x9d3   : > { %22253 = vst [vmem:[#allocation40_spill] sm:$0xff] %v21222_v53  ;;  %v21242_v27 = vpack.c.bf16 %v22260_v15, %v22259_v42  ;;  %v21248_v53 = vsub.f32 %v21152_v57, %v22262_v16  ;;  %v21253_v14 = vsub.f32 %v21157_v8, %v22264_v21  ;;  %v22266_v15 = vpack.c.bf16 %v20897_v19, %v20895_v45 }
 0x9d4   : > { %22258 = vst [vmem:[#allocation42_spill] sm:$0xff] %v21236_v26  ;;  %17842 = vmatpush3.bf16.msra.mxu1 %v20681_v9  ;;  %v22267_v16 = vand.u32 4294901760, %v20426_v55  ;;  %v22268_v21 = vand.u32 4294901760, %v20437_v31  ;;  %v22270_v42 = vand.u32 4294901760, %v20447_v60  ;;  %v22104_v28 = vand.u32 4294901760, %v21236_v26 }
 0x9d5   : > { %22261 = vst [vmem:[#allocation43_spill] sm:$0xff] %v21242_v27  ;;  %22263 = vst [vmem:[#allocation44_spill] sm:$0xff] %v21248_v53  ;;  %17770 = vmatpush3.bf16.msra.mxu0 %v22266_v15  ;;  %17844 = vmatprep.subr.bf16.mxu1 %v20760_v41  ;;  %v22269_v27 = vand.u32 4294901760, %v20442_v59  ;;  %v22107_v15 = vand.u32 4294901760, %v21259_v50  ;;  %v22105_v9 = vand.u32 4294901760, %v21248_v53  ;;  %v22271_v31 = vand.u32 4294901760, %v21195_v49 }
 0x9d6   : > { %22265 = vst [vmem:[#allocation45_spill] sm:$0xff] %v21253_v14  ;;  %v17805_v48 = vpack.c.bf16 %v22268_v21, %v22267_v16  ;;  %17804 = vmatprep.subr.bf16.mxu0 %v17803_v63  ;;  %v21289_v59 = vld [vmem:[%s21998_s15 + $0x118] sm:$0xff]  ;;  %v22273_v60 = vand.u32 4294901760, %v21216_v13  ;;  %v22276_v16 = vand.u32 4294901760, %v20461_v30  ;;  %v22278_v55 = vand.u32 4294901760, %v20547_v54 }
 0x9d7   : > { %v17807_v52 = vpack.c.bf16 %v22270_v42, %v22269_v27  ;;  %v21284_v63 = vsub.f32 %v21195_v49, %v22271_v31  ;;  %v12075_v27 = vrot.slane %v20972_v62, %v12074_v5  ;;  %v22275_v42 = vand.u32 4294901760, %v20456_v1 }
 0x9d8   : > { %13721 = vmatmul.mubr.f32.vlgmr.msra.gmra.mrb[28].mxu0 %v20986_v32  ;;  %v21295_v41 = vsub.f32 %v21216_v13, %v22273_v60  ;;  %v22277_v31 = vand.u32 4294901760, %v20538_v38  ;;  %v21310_v60 = vld [vmem:[%s21998_s15 + $0x1a0] sm:$0xff]  ;;  %17846 = vmatpush3.bf16.msra.mxu1 %v20795_v7  ;;  %v14334_v38 = vsub.f32 %v21231_v29, %v22106_v3  ;;  %v14341_v1 = vsub.f32 %v21236_v26, %v22104_v28 }
 0x9d9   : > { %22272 = vst [vmem:[#allocation46_spill] sm:$0xff] %v21284_v63  ;;  %17806 = vmatpush3.bf16.msra.mxu0 %v17805_v48  ;;  %13995 = vmatprep.mubr.f32.mxu0 %v20983_v51  ;;  %v17809_v21 = vpack.c.bf16 %v22276_v16, %v22275_v42  ;;  %v21315_v48 = vld [vmem:[%s21998_s15 + $0x1a8] sm:$0xff]  ;;  %v22108_v30 = vand.u32 4294901760, %v21289_v59  ;;  %v21328_v54 = vsub.f32 %v21259_v50, %v22107_v15  ;;  %v22280_v7 = vand.u32 4294901760, %v20573_v24 }
 0x9da   : > { %22274 = vst [vmem:[#allocation47_spill] sm:$0xff] %v21295_v41  ;;  %v17811_v32 = vpack.c.bf16 %v22278_v55, %v22277_v31  ;;  %17808 = vmatprep.subr.bf16.mxu0 %v17807_v52  ;;  %17848 = vmatprep.subr.bf16.mxu1 %v20801_v10  ;;  %v22281_v52 = vand.u32 4294901760, %v20578_v2  ;;  %v14222_v5 = vsub.f32 %v21248_v53, %v22105_v9  ;;  %v22282_v55 = vand.u32 4294901760, %v21253_v14  ;;  %v22291_v2 = vld [vmem:[#allocation14_spill] sm:$0xff] }
 0x9db   : > { %22279 = vst [vmem:[#allocation48_spill] sm:$0xff] %v21328_v54  ;;  %v22283_v31 = vand.u32 4294901760, %v20595_v44  ;;  %v22284_v28 = vand.u32 4294901760, %v20600_v47  ;;  %v22286_v9 = vand.u32 4294901760, %v22204_v34  ;;  %v22288_v15 = vand.u32 4294901760, %v22208_v56  ;;  %v22295_v34 = vld [vmem:[#allocation18_spill] sm:$0xff] }
 0x9dc   : > { %v17813_v51 = vpack.c.bf16 %v22281_v52, %v22280_v7  ;;  %v14229_v42 = vsub.f32 %v21253_v14, %v22282_v55  ;;  %v22285_v52 = vand.u32 4294901760, %v20645_v37  ;;  %v22287_v55 = vand.u32 4294901760, %v22207_v39  ;;  %v22293_v7 = vld [vmem:[#allocation15_spill] sm:$0xff]  ;;  %v21372_v37 = vld [vmem:[%s21998_s15 + $0x120] sm:$0xff]  ;;  %17850 = vmatpush3.bf16.msra.mxu1 %v22295_v34 }
 0x9dd   : > { %v17815_v10 = vpack.c.bf16 %v22284_v28, %v22283_v31  ;;  %17810 = vmatpush3.bf16.msra.mxu0 %v17809_v21  ;;  %v22289_v47 = vand.u32 4294901760, %v22213_v0  ;;  %v22290_v28 = vand.u32 4294901760, %v22214_v43  ;;  %v22292_v24 = vand.u32 4294901760, %v22291_v2  ;;  %v22309_v43 = vld [vmem:[#allocation20_spill] sm:$0xff] }
 0x9de   : > { %v17817_v3 = vpack.c.bf16 %v22286_v9, %v22285_v52  ;;  %v17819_v44 = vpack.c.bf16 %v22288_v15, %v22287_v55  ;;  %v22294_v21 = vand.u32 4294901760, %v22293_v7  ;;  %17812 = vmatprep.subr.bf16.mxu0 %v17811_v32  ;;  %v14335_v56 = vand.u32 4294901760, %v14334_v38  ;;  %v21384_v15 = vld [vmem:[%s21998_s15 + $0x128] sm:$0xff]  ;;  %v21389_v9 = vld [vmem:[%s21998_s15 + $0x1b0] sm:$0xff]  ;;  %v22297_v32 = vld [vmem:[#allocation26_spill] sm:$0xff] }
 0x9df   : > { %v21361_v31 = vpack.c.bf16 %v22290_v28, %v22289_v47  ;;  %v14342_v0 = vand.u32 4294901760, %v14341_v1  ;;  %v21379_v39 = vsub.f32 %v21289_v59, %v22108_v30  ;;  %v21392_v38 = vadd.f32 %v22297_v32, %v12075_v27  ;;  %v22298_v1 = vld [vmem:[#allocation19_spill] sm:$0xff] }
 0x9e0   : > { %v21367_v16 = vpack.c.bf16 %v22294_v21, %v22292_v24  ;;  %17852 = vmatprep.subr.bf16.mxu1 %v22298_v1  ;;  %v14223_v24 = vand.u32 4294901760, %v14222_v5  ;;  %v14230_v2 = vand.u32 4294901760, %v14229_v42  ;;  %v22299_v7 = vand.u32 4294901760, %v21284_v63  ;;  %v21415_v42 = vld [vmem:[%s21998_s15 + $0x1b8] sm:$0xff] }
 0x9e1   : > { %22296 = vst [vmem:[#allocation14_spill] sm:$0xff] %v21379_v39  ;;  %v22300_v55 = vand.u32 4294901760, %v21295_v41  ;;  %v22301_v28 = vand.u32 4294901760, %v21310_v60  ;;  %v22303_v27 = vand.u32 4294901760, %v21315_v48  ;;  %17814 = vmatpush3.bf16.msra.mxu0 %v17813_v51  ;;  %v22305_v32 = vand.u32 4294901760, %v22225_v17  ;;  %17854 = vmatpush3.bf16.msra.mxu1 %v22309_v43 }
 0x9e2   : > { %v14348_v52 = vsub.f32 %v21284_v63, %v22299_v7  ;;  %v22306_v1 = vand.u32 4294901760, %v22226_v23  ;;  %v22111_v30 = vand.u32 4294901760, %v21384_v15  ;;  %v22110_v5 = vand.u32 4294901760, %v21389_v9  ;;  %17816 = vmatprep.subr.bf16.mxu0 %v17815_v10 }
 0x9e3   : > { %v14355_v47 = vsub.f32 %v21295_v41, %v22300_v55  ;;  %v21404_v21 = vsub.f32 %v21310_v60, %v22301_v28  ;;  %v21409_v34 = vsub.f32 %v21315_v48, %v22303_v27  ;;  %v22307_v55 = vand.u32 4294901760, %v20854_v46 }
 0x9e4   : > { %v21421_v7 = vpack.c.bf16 %v22306_v1, %v22305_v32  ;;  %v22308_v28 = vand.u32 4294901760, %v20857_v25  ;;  %v21432_v51 = vpack.c.bf16 %v14342_v0, %v14335_v56  ;;  %v22310_v17 = vand.u32 4294901760, %v20859_v40  ;;  %v21459_v0 = vld [vmem:[%s21998_s15 + $0x138] sm:$0xff] }
 0x9e5   : > { %22302 = vst [vmem:[#allocation15_spill] sm:$0xff] %v21404_v21  ;;  %22304 = vst [vmem:[#allocation18_spill] sm:$0xff] %v21409_v34  ;;  %v22311_v23 = vand.u32 4294901760, %v20861_v35  ;;  %v22312_v46 = vand.u32 4294901760, %v21328_v54  ;;  %v22109_v1 = vand.u32 4294901760, %v21379_v39  ;;  %v21448_v10 = vpack.c.bf16 %v14230_v2, %v14223_v24  ;;  %v21454_v35 = vld [vmem:[%s21998_s15 + $0x130] sm:$0xff]  ;;  %17818 = vmatpush3.bf16.msra.mxu0 %v17817_v3 }
 0x9e6   : > { %v21427_v27 = vpack.c.bf16 %v22308_v28, %v22307_v55  ;;  %v13172_v55 = vmax.f32 %v21392_v38, 0.0  ;;  %v22313_v28 = vld [vmem:[#allocation21_spill] sm:$0xff]  ;;  %v14349_v56 = vand.u32 4294901760, %v14348_v52  ;;  %v14356_v43 = vand.u32 4294901760, %v14355_v47  ;;  %v21471_v52 = vld [vmem:[%s21998_s15 + $0x1c0] sm:$0xff]  ;;  %17820 = vmatprep.subr.bf16.mxu0 %v17819_v44 }
 0x9e7   : > { %v21438_v32 = vpack.c.bf16 %v22311_v23, %v22310_v17  ;;  %v21443_v25 = vsub.f32 %v21328_v54, %v22312_v46  ;;  %17856 = vmatprep.subr.bf16.mxu1 %v22313_v28  ;;  %v22314_v24 = vand.u32 4294901760, %v21372_v37  ;;  %v21476_v23 = vld [vmem:[%s21998_s15 + $0x1c8] sm:$0xff]  ;;  %v22316_v47 = vand.u32 4294901760, %v20885_v22  ;;  %v22322_v22 = vld [vmem:[#allocation22_spill] sm:$0xff] }
 0x9e8   : > { %v22317_v46 = vand.u32 4294901760, %v20887_v20  ;;  %v22319_v17 = vand.u32 4294901760, %v20897_v19  ;;  %v21493_v40 = vsub.f32 %v21384_v15, %v22111_v30  ;;  %v21498_v3 = vsub.f32 %v21389_v9, %v22110_v5  ;;  %17858 = vmatpush3.bf16.msra.mxu1 %v22322_v22  ;;  %v21530_v30 = vld [vmem:[%s21998_s15 + $0x1d0] sm:$0xff] }
 0x9e9   : > { %v21466_v2 = vsub.f32 %v21372_v37, %v22314_v24  ;;  %v22318_v24 = vand.u32 4294901760, %v20895_v45  ;;  %v14237_v20 = vand.u32 4294901760, %v21443_v25  ;;  %v14243_v19 = vsub.f32 %v21379_v39, %v22109_v1  ;;  %v22323_v25 = vld [vmem:[#allocation23_spill] sm:$0xff]  ;;  %17822 = vmatpush3.bf16.msra.mxu0 %v21361_v31 }
 0x9ea   : > { %v21482_v28 = vpack.c.bf16 %v22317_v46, %v22316_v47  ;;  %22320 = vst [vmem:[#allocation19_spill] sm:$0xff] %v21493_v40  ;;  %22321 = vst [vmem:[#allocation20_spill] sm:$0xff] %v21498_v3  ;;  %v21510_v47 = vld [vmem:[%s21998_s15 + $0x140] sm:$0xff]  ;;  %v21515_v46 = vld [vmem:[%s21998_s15 + $0x148] sm:$0xff]  ;;  %v21517_v44 = vand.u32 4294901760, %v13172_v55  ;;  %17860 = vmatprep.subr.bf16.mxu1 %v22323_v25  ;;  %v17903_v25 = vpack.c.bf16 %v14356_v43, %v14349_v56  ;;  %v22325_v45 = vand.u32 4294901760, %v21404_v21 }
 0x9eb   : > { %22315 = vst [vmem:[#allocation26_spill] sm:$0xff] %v21466_v2  ;;  %v21488_v38 = vpack.c.bf16 %v22319_v17, %v22318_v24  ;;  %v22324_v24 = vand.u32 4294901760, %v21415_v42  ;;  %v21535_v17 = vld [vmem:[%s21998_s15 + $0x1d8] sm:$0xff]  ;;  %v22326_v39 = vand.u32 4294901760, %v21409_v34  ;;  %17824 = vmatprep.subr.bf16.mxu0 %v21367_v16  ;;  %v22327_v43 = vand.u32 4294901760, %v21454_v35 }
 0x9ec   : > { %17862 = vmatpush3.bf16.msra.mxu1 %v20945_v18  ;;  %v21564_v56 = vsub.f32 %v13172_v55, %v21517_v44  ;;  %v22329_v18 = vld [vmem:[#allocation24_spill] sm:$0xff]  ;;  %v22330_v54 = vand.u32 4294901760, %v21471_v52  ;;  %v22331_v5 = vand.u32 4294901760, %v21476_v23  ;;  %v14244_v41 = vand.u32 4294901760, %v14243_v19 }
 0x9ed   : > { %v21523_v22 = vsub.f32 %v21415_v42, %v22324_v24  ;;  %v14362_v24 = vsub.f32 %v21404_v21, %v22325_v45  ;;  %v14369_v1 = vsub.f32 %v21409_v34, %v22326_v39  ;;  %v21554_v39 = vsub.f32 %v21454_v35, %v22327_v43  ;;  %17864 = vmatprep.subr.bf16.mxu1 %v22329_v18 }
 0x9ee   : > { %v22328_v45 = vand.u32 4294901760, %v21459_v0  ;;  %v21571_v43 = vsub.f32 %v21471_v52, %v22330_v54  ;;  %v22332_v55 = vand.u32 4294901760, %v21466_v2  ;;  %17826 = vmatpush3.bf16.msra.mxu0 %v21421_v7  ;;  %v22333_v18 = vand.u32 4294901760, %v21493_v40 }
 0x9ef   : > { %v14363_v34 = vand.u32 4294901760, %v14362_v24  ;;  %v14370_v63 = vand.u32 4294901760, %v14369_v1  ;;  %v22334_v54 = vand.u32 4294901760, %v21498_v3  ;;  %v22336_v1 = vand.u32 4294901760, %v21515_v46  ;;  %17828 = vmatprep.subr.bf16.mxu0 %v21427_v27 }
 0x9f0   : > { %v21559_v31 = vsub.f32 %v21459_v0, %v22328_v45  ;;  %v21576_v45 = vsub.f32 %v21476_v23, %v22331_v5  ;;  %v14250_v21 = vsub.f32 %v21466_v2, %v22332_v55  ;;  %v14257_v16 = vsub.f32 %v21493_v40, %v22333_v18  ;;  %17866 = vmatpush3.bf16.msra.mxu1 %v20952_v58 }
 0x9f1   : > { %v14376_v14 = vsub.f32 %v21498_v3, %v22334_v54  ;;  %v22335_v5 = vand.u32 4294901760, %v21510_v47  ;;  %v21596_v24 = vsub.f32 %v21515_v46, %v22336_v1  ;;  %v22337_v18 = vand.u32 4294901760, %v21530_v30  ;;  %17900 = vmatprep.subr.bf16.mxu1 %v21432_v51  ;;  %v22342_v51 = vld [vmem:[#allocation27_spill] sm:$0xff] }
 0x9f2   : > { %v22339_v27 = vand.u32 4294901760, %v21523_v22  ;;  %v22138_v7 = vand.u32 4294901760, %v21576_v45  ;;  %v17905_v40 = vpack.c.bf16 %v14244_v41, %v14237_v20  ;;  %v22341_v2 = vand.u32 4294901760, %v21131_v36  ;;  %17830 = vmatpush3.bf16.msra.mxu0 %v21438_v32 }
 0x9f3   : > { %v21591_v19 = vsub.f32 %v21510_v47, %v22335_v5  ;;  %v21605_v54 = vsub.f32 %v21530_v30, %v22337_v18  ;;  %v22338_v5 = vand.u32 4294901760, %v21535_v17  ;;  %v22340_v18 = vand.u32 4294901760, %v21116_v11  ;;  %14101 = vmatmul.mubr.f32.vlgmr.msra.gmra.mrb[30].mxu1 %v22342_v51  ;;  %17832 = vmatprep.subr.bf16.mxu0 %v21482_v28 }
 0x9f4   : > { %v14383_v1 = vsub.f32 %v21523_v22, %v22339_v27  ;;  %v14251_v26 = vand.u32 4294901760, %v14250_v21  ;;  %v14258_v58 = vand.u32 4294901760, %v14257_v16  ;;  %v14377_v29 = vand.u32 4294901760, %v14376_v14  ;;  %17902 = vmatpush3.bf16.msra.mxu1 %v21448_v10  ;;  %14443 = vmatprep.mubr.f32.mxu1 %v21517_v44 }
 0x9f5   : > { %v21610_v3 = vsub.f32 %v21535_v17, %v22338_v5  ;;  %v21623_v53 = vpack.c.bf16 %v22341_v2, %v22340_v18  ;;  %v17907_v5 = vpack.c.bf16 %v14370_v63, %v14363_v34  ;;  %v14277_v27 = vand.u32 4294901760, %v21591_v19  ;;  %17904 = vmatprep.subr.bf16.mxu1 %v17903_v25 }
 0x9f6   : > { %v14284_v55 = vand.u32 4294901760, %v21596_v24  ;;  %v22343_v11 = vand.u32 4294901760, %v21554_v39  ;;  %v22344_v63 = vand.u32 4294901760, %v21559_v31  ;;  %v14403_v21 = vand.u32 4294901760, %v21605_v54  ;;  %17834 = vmatpush3.bf16.msra.mxu0 %v21488_v38 }
 0x9f7   : > { %v14410_v14 = vand.u32 4294901760, %v21610_v3  ;;  %v22345_v34 = vand.u32 4294901760, %v21564_v56  ;;  %v14384_v10 = vand.u32 4294901760, %v14383_v1  ;;  %v22346_v2 = vand.u32 4294901760, %v21571_v43  ;;  %17868 = vmatprep.subr.bf16.mxu0 %v21623_v53 }
 0x9f8   : > { %v14264_v36 = vsub.f32 %v21554_v39, %v22343_v11  ;;  %v14271_v41 = vsub.f32 %v21559_v31, %v22344_v63  ;;  %v14397_v16 = vsub.f32 %v21576_v45, %v22138_v7  ;;  %v12070_v18 = vsub.s32 2, %v20966_v61  ;;  %17906 = vmatpush3.bf16.msra.mxu1 %v17905_v40 }
 0x9f9   : > { %v14205_v32 = vsub.f32 %v21564_v56, %v22345_v34  ;;  %v14390_v20 = vsub.f32 %v21571_v43, %v22346_v2  ;;  %v22347_v11 = vand.u32 4294901760, %v21152_v57  ;;  %v22348_v28 = vand.u32 4294901760, %v21157_v8  ;;  %17908 = vmatprep.subr.bf16.mxu1 %v17907_v5  ;;  %13997 = vmatmul.mubr.f32.vlgmr.msra.gmra.mrb[30].mxu0 %v22342_v51  ;;  %v22353_v5 = vld [vmem:[#allocation12_spill] sm:$0xff] }
 0x9fa   : > { %v17909_v63 = vpack.c.bf16 %v14258_v58, %v14251_v26  ;;  %v22349_v1 = vand.u32 4294901760, %v21195_v49  ;;  %v22350_v34 = vand.u32 4294901760, %v21216_v13  ;;  %v14278_v7 = vsub.f32 %v21591_v19, %v14277_v27 }
 0x9fb   : > { %v21654_v25 = vpack.c.bf16 %v22348_v28, %v22347_v11  ;;  %v14285_v57 = vsub.f32 %v21596_v24, %v14284_v55  ;;  %v14265_v61 = vand.u32 4294901760, %v14264_v36  ;;  %v14272_v8 = vand.u32 4294901760, %v14271_v41 }
 0x9fc   : > { %v21661_v2 = vpack.c.bf16 %v22350_v34, %v22349_v1  ;;  %v14404_v49 = vsub.f32 %v21605_v54, %v14403_v21  ;;  %v14411_v13 = vsub.f32 %v21610_v3, %v14410_v14  ;;  %v14206_v26 = vand.u32 4294901760, %v14205_v32  ;;  %17910 = vmatpush3.bf16.msra.mxu1 %v17909_v63 }
 0x9fd   : > { %v17911_v38 = vpack.c.bf16 %v14384_v10, %v14377_v29  ;;  %v14391_v58 = vand.u32 4294901760, %v14390_v20  ;;  %v14398_v11 = vand.u32 4294901760, %v14397_v16  ;;  %v12071_v28 = vrot.slane %v20972_v62, %v12070_v18  ;;  %17870 = vmatpush3.bf16.msra.mxu0 %v21654_v25  ;;  %v22355_v10 = vld [vmem:[#allocation13_spill] sm:$0xff] }
 0x9fe   : > { %v22351_v40 = vand.u32 4294901760, %v21259_v50  ;;  %v22352_v36 = vand.u32 4294901760, %v21289_v59  ;;  %14207 = vmatprep.mubr.f32.mxu0 %v14206_v26  ;;  %v14279_v1 = vand.u32 4294901760, %v14278_v7  ;;  %v14286_v34 = vand.u32 4294901760, %v14285_v57  ;;  %17872 = vmatprep.subr.bf16.mxu0 %v21661_v2 }
 0x9ff   : > { %v22354_v32 = vand.u32 4294901760, %v22353_v5  ;;  %v22356_v20 = vand.u32 4294901760, %v22355_v10  ;;  %v17913_v50 = vpack.c.bf16 %v14272_v8, %v14265_v61  ;;  %v22357_v59 = vand.u32 4294901760, %v21310_v60  ;;  %17912 = vmatprep.subr.bf16.mxu1 %v17911_v38 }
 0xa00   : > { %v21682_v41 = vpack.c.bf16 %v22352_v36, %v22351_v40  ;;  %v22358_v51 = vand.u32 4294901760, %v21315_v48  ;;  %v14405_v7 = vand.u32 4294901760, %v14404_v49  ;;  %v14412_v18 = vand.u32 4294901760, %v14411_v13 }
 0xa01   : > { %v14292_v29 = vsub.f32 %v22353_v5, %v22354_v32  ;;  %v14299_v62 = vsub.f32 %v22355_v10, %v22356_v20  ;;  %v17915_v57 = vpack.c.bf16 %v14398_v11, %v14391_v58  ;;  %v22359_v26 = vand.u32 4294901760, %v21098_v6  ;;  %17914 = vmatpush3.bf16.msra.mxu1 %v17913_v50 }
 0xa02   : > { %v21696_v16 = vpack.c.bf16 %v22358_v51, %v22357_v59  ;;  %v22360_v36 = vand.u32 4294901760, %v21103_v33  ;;  %v22361_v61 = vand.u32 4294901760, %v21372_v37  ;;  %v22362_v60 = vand.u32 4294901760, %v21384_v15  ;;  %17874 = vmatpush3.bf16.msra.mxu0 %v21682_v41  ;;  %v22366_v37 = vld [vmem:[#allocation25_spill] sm:$0xff] }
 0xa03   : > { %v14418_v40 = vsub.f32 %v21098_v6, %v22359_v26  ;;  %v22363_v48 = vand.u32 4294901760, %v21389_v9  ;;  %v22364_v49 = vand.u32 4294901760, %v21415_v42  ;;  %v17917_v38 = vpack.c.bf16 %v14286_v34, %v14279_v1  ;;  %17916 = vmatprep.subr.bf16.mxu1 %v17915_v57  ;;  %v22368_v1 = vld [vmem:[#allocation16_spill] sm:$0xff] }
 0xa04   : > { %v14425_v63 = vsub.f32 %v21103_v33, %v22360_v36  ;;  %v21708_v8 = vpack.c.bf16 %v22362_v60, %v22361_v61  ;;  %v14293_v58 = vand.u32 4294901760, %v14292_v29  ;;  %v14300_v11 = vand.u32 4294901760, %v14299_v62  ;;  %17876 = vmatprep.subr.bf16.mxu0 %v21696_v16  ;;  %v22370_v62 = vld [vmem:[#allocation17_spill] sm:$0xff] }
 0xa05   : > { %v21714_v13 = vpack.c.bf16 %v22364_v49, %v22363_v48  ;;  %v22365_v32 = vand.u32 4294901760, %v21121_v12  ;;  %v18073_v59 = vadd.f32 %v22366_v37, %v12071_v28  ;;  %v17919_v15 = vpack.c.bf16 %v14412_v18, %v14405_v7  ;;  %17918 = vmatpush3.bf16.msra.mxu1 %v17917_v38 }
 0xa06   : > { %v22367_v9 = vand.u32 4294901760, %v21126_v4  ;;  %v14419_v51 = vand.u32 4294901760, %v14418_v40  ;;  %v14426_v26 = vand.u32 4294901760, %v14425_v63  ;;  %v22369_v34 = vand.u32 4294901760, %v22368_v1  ;;  %17878 = vmatpush3.bf16.msra.mxu0 %v21708_v8 }
 0xa07   : > { %v14306_v20 = vsub.f32 %v21121_v12, %v22365_v32  ;;  %v22371_v36 = vand.u32 4294901760, %v22370_v62  ;;  %v22372_v28 = vand.u32 4294901760, %v21454_v35  ;;  %v22373_v50 = vand.u32 4294901760, %v21459_v0  ;;  %17880 = vmatprep.subr.bf16.mxu0 %v21714_v13  ;;  %v22376_v32 = vld [vmem:[#allocation36_spill] sm:$0xff]  ;;  %v22378_v0 = vld [vmem:[#allocation37_spill] sm:$0xff]  ;;  %17920 = vmatprep.subr.bf16.mxu1 %v17919_v15 }
 0xa08   : > { %v14313_v42 = vsub.f32 %v21126_v4, %v22367_v9  ;;  %v14432_v29 = vsub.f32 %v22368_v1, %v22369_v34  ;;  %v17921_v18 = vpack.c.bf16 %v14300_v11, %v14293_v58  ;;  %v22374_v57 = vand.u32 4294901760, %v21471_v52 }
 0xa09   : > { %v14439_v61 = vsub.f32 %v22370_v62, %v22371_v36  ;;  %v21736_v7 = vpack.c.bf16 %v22373_v50, %v22372_v28  ;;  %v22375_v40 = vand.u32 4294901760, %v21476_v23  ;;  %v14307_v60 = vand.u32 4294901760, %v14306_v20 }
 0xa0a   : > { %v13171_v48 = vmax.f32 %v18073_v59, 0.0  ;;  %v14314_v49 = vand.u32 4294901760, %v14313_v42  ;;  %v22377_v37 = vand.u32 4294901760, %v22376_v32  ;;  %v22379_v9 = vand.u32 4294901760, %v22378_v0  ;;  %17922 = vmatpush3.bf16.msra.mxu1 %v17921_v18 }
 0xa0b   : > { %v21742_v63 = vpack.c.bf16 %v22375_v40, %v22374_v57  ;;  %v17923_v52 = vpack.c.bf16 %v14426_v26, %v14419_v51  ;;  %v14433_v11 = vand.u32 4294901760, %v14432_v29  ;;  %v14440_v23 = vand.u32 4294901760, %v14439_v61  ;;  %17882 = vmatpush3.bf16.msra.mxu0 %v21736_v7  ;;  %v22386_v61 = vld [vmem:[#allocation29_spill] sm:$0xff] }
 0xa0c   : > { %v14320_v35 = vsub.f32 %v22376_v32, %v22377_v37  ;;  %v14327_v58 = vsub.f32 %v22378_v0, %v22379_v9  ;;  %v22380_v20 = vand.u32 4294901760, %v21510_v47  ;;  %v22381_v38 = vand.u32 4294901760, %v21515_v46  ;;  %v22384_v46 = vld [vmem:[#allocation28_spill] sm:$0xff]  ;;  %v22388_v57 = vld [vmem:[#allocation9_spill] sm:$0xff] }
 0xa0d   : > { %v22382_v42 = vand.u32 4294901760, %v21530_v30  ;;  %v22383_v34 = vand.u32 4294901760, %v21535_v17  ;;  %v21764_v28 = vand.u32 4294901760, %v13171_v48  ;;  %17884 = vmatprep.subr.bf16.mxu0 %v21742_v63  ;;  %v17925_v15 = vpack.c.bf16 %v14314_v49, %v14307_v60  ;;  %17924 = vmatprep.subr.bf16.mxu1 %v17923_v52  ;;  %v22390_v60 = vld [vmem:[#allocation30_spill] sm:$0xff] }
 0xa0e   : > { %v21756_v59 = vpack.c.bf16 %v22381_v38, %v22380_v20  ;;  %v14321_v51 = vand.u32 4294901760, %v14320_v35  ;;  %v14328_v26 = vand.u32 4294901760, %v14327_v58  ;;  %v17927_v47 = vpack.c.bf16 %v14440_v23, %v14433_v11  ;;  %v22392_v35 = vld [vmem:[#allocation10_spill] sm:$0xff]  ;;  %v22394_v58 = vld [vmem:[#allocation11_spill] sm:$0xff]  ;;  %v22398_v38 = vld [vmem:[#allocation32_spill] sm:$0xff] }
 0xa0f   : > { %v21762_v36 = vpack.c.bf16 %v22383_v34, %v22382_v42  ;;  %v22385_v29 = vand.u32 4294901760, %v22384_v46  ;;  %v22387_v30 = vand.u32 4294901760, %v22386_v61  ;;  %v21775_v17 = vsub.f32 %v13171_v48, %v21764_v28  ;;  %17926 = vmatpush3.bf16.msra.mxu1 %v17925_v15  ;;  %v22396_v23 = vld [vmem:[#allocation31_spill] sm:$0xff]  ;;  %v22400_v15 = vld [vmem:[#allocation33_spill] sm:$0xff] }
 0xa10   : > { %17886 = vmatpush3.bf16.msra.mxu0 %v21756_v59  ;;  %v17929_v18 = vpack.c.bf16 %v14328_v26, %v14321_v51  ;;  %v22389_v40 = vand.u32 4294901760, %v22388_v57  ;;  %v22391_v49 = vand.u32 4294901760, %v22390_v60  ;;  %17928 = vmatprep.subr.bf16.mxu1 %v17927_v47  ;;  %v22393_v9 = vand.u32 4294901760, %v22392_v35  ;;  %v22402_v26 = vld [vmem:[#allocation34_spill] sm:$0xff]  ;;  %v22408_v60 = vld [vmem:[#allocation45_spill] sm:$0xff] }
 0xa11   : > { %v21772_v50 = vpack.c.bf16 %v22387_v30, %v22385_v29  ;;  %17888 = vmatprep.subr.bf16.mxu0 %v21762_v36  ;;  %v22395_v52 = vand.u32 4294901760, %v22394_v58  ;;  %v14210_v48 = vand.u32 4294901760, %v21775_v17  ;;  %v22397_v20 = vand.u32 4294901760, %v22396_v23  ;;  %v22405_v30 = vld [vmem:[#allocation41_spill] sm:$0xff]  ;;  %v22410_v58 = vld [vmem:[#allocation47_spill] sm:$0xff]  ;;  %v22411_v23 = vld [vmem:[#allocation48_spill] sm:$0xff] }
 0xa12   : > { %v21782_v37 = vpack.c.bf16 %v22391_v49, %v22389_v40  ;;  %v22399_v42 = vand.u32 4294901760, %v22398_v38  ;;  %v22401_v51 = vand.u32 4294901760, %v22400_v15  ;;  %v22403_v47 = vand.u32 4294901760, %v22402_v26  ;;  %v22407_v40 = vld [vmem:[#allocation44_spill] sm:$0xff]  ;;  %v22414_v15 = vld [vmem:[#allocation18_spill] sm:$0xff] }
 0xa13   : > { %v21789_v11 = vpack.c.bf16 %v22395_v52, %v22393_v9  ;;  %17930 = vmatpush3.bf16.msra.mxu1 %v17929_v18  ;;  %v14211_v29 = vsub.f32 %v21775_v17, %v14210_v48  ;;  %v22404_v61 = vand.u32 4294901760, %v21564_v56  ;;  %v22406_v18 = vld [vmem:[#allocation42_spill] sm:$0xff]  ;;  %v17933_v49 = vpack.c.bf16 %v22408_v60, %v22407_v40 }
 0xa14   : > { %17890 = vmatpush3.bf16.msra.mxu0 %v21772_v50  ;;  %17964 = vmatprep.subr.bf16.mxu1 %v21623_v53  ;;  %v21798_v34 = vpack.c.bf16 %v22399_v42, %v22397_v20  ;;  %v21806_v46 = vpack.c.bf16 %v22403_v47, %v22401_v51  ;;  %v17931_v57 = vpack.c.bf16 %v22406_v18, %v22405_v30  ;;  %v22409_v9 = vld [vmem:[#allocation46_spill] sm:$0xff]  ;;  %v22413_v42 = vld [vmem:[#allocation15_spill] sm:$0xff] }
 0xa15   : > { %17892 = vmatprep.subr.bf16.mxu0 %v21782_v37  ;;  %v14212_v35 = vand.u32 4294901760, %v14211_v29  ;;  %v17935_v52 = vpack.c.bf16 %v22410_v58, %v22409_v9  ;;  %v22412_v20 = vld [vmem:[#allocation14_spill] sm:$0xff]  ;;  %v17939_v51 = vpack.c.bf16 %v22414_v15, %v22413_v42  ;;  %v22416_v47 = vld [vmem:[#allocation19_spill] sm:$0xff] }
 0xa16   : > { %14445 = vmatmul.mubr.f32.vlgmr.msra.gmra.mrb[32].mxu1 %v21764_v28  ;;  %v17937_v38 = vpack.c.bf16 %v22412_v20, %v22411_v23  ;;  %v22415_v26 = vld [vmem:[#allocation26_spill] sm:$0xff] }
 0xa17   : > { %17966 = vmatpush3.bf16.msra.mxu1 %v21654_v25  ;;  %14687 = vmatprep.mubr.f32.mxu1 %v22404_v61  ;;  %v17941_v29 = vpack.c.bf16 %v22416_v47, %v22415_v26  ;;  %v22417_v61 = vld [vmem:[#allocation20_spill] sm:$0xff] }
 0xa18   : > { %17894 = vmatpush3.bf16.msra.mxu0 %v21789_v11  ;;  %17968 = vmatprep.subr.bf16.mxu1 %v21661_v2 }
 0xa19   : > { %17896 = vmatprep.subr.bf16.mxu0 %v21798_v34 }
 0xa1b   : > { %17970 = vmatpush3.bf16.msra.mxu1 %v21682_v41 }
 0xa1c   : > { %17898 = vmatpush3.bf16.msra.mxu0 %v21806_v46  ;;  %17972 = vmatprep.subr.bf16.mxu1 %v21696_v16 }
 0xa1d   : > { %17932 = vmatprep.subr.bf16.mxu0 %v17931_v57  ;;  %v17945_v57 = vpack.c.bf16 %v21559_v31, %v21554_v39 }
 0xa1f   : > { %14213 = vmatmul.mubr.f32.vlgmr.msra.gmra.mrb[32].mxu0 %v14212_v35  ;;  %17974 = vmatpush3.bf16.msra.mxu1 %v21708_v8  ;;  %v17949_v35 = vpack.c.bf16 %v21596_v24, %v21591_v19  ;;  %v22440_v19 = vld [vmem:[#allocation43_spill] sm:$0xff] }
 0xa20   : > { %17934 = vmatpush3.bf16.msra.mxu0 %v17933_v49  ;;  %14580 = vmatprep.mubr.f32.mxu0 %v21564_v56  ;;  %v17943_v56 = vpack.c.bf16 %v21523_v22, %v22417_v61  ;;  %v17947_v49 = vpack.c.bf16 %v21576_v45, %v21571_v43 }
 0xa21   : > { %17936 = vmatprep.subr.bf16.mxu0 %v17935_v52  ;;  %17976 = vmatprep.subr.bf16.mxu1 %v21714_v13  ;;  %v17951_v52 = vpack.c.bf16 %v21610_v3, %v21605_v54  ;;  %v22439_v3 = vld [vmem:[#allocation40_spill] sm:$0xff] }
 0xa23   : > { %17978 = vmatpush3.bf16.msra.mxu1 %v21736_v7 }
 0xa24   : > { %17938 = vmatpush3.bf16.msra.mxu0 %v17937_v38  ;;  %17980 = vmatprep.subr.bf16.mxu1 %v21742_v63  ;;  %v17953_v38 = vpack.c.bf16 %v22355_v10, %v22353_v5  ;;  %v17959_v5 = vpack.c.bf16 %v22370_v62, %v22368_v1  ;;  %v17961_v10 = vpack.c.bf16 %v22378_v0, %v22376_v32  ;;  %v22423_v62 = vand.u32 4294901760, %v22410_v58 }
 0xa25   : > { %17940 = vmatprep.subr.bf16.mxu0 %v17939_v51  ;;  %v17955_v51 = vpack.c.bf16 %v21103_v33, %v21098_v6  ;;  %v22418_v6 = vand.u32 4294901760, %v22405_v30  ;;  %v22425_v0 = vand.u32 4294901760, %v22412_v20  ;;  %v22427_v30 = vand.u32 4294901760, %v22414_v15 }
 0xa27   : > { %17982 = vmatpush3.bf16.msra.mxu1 %v21756_v59 }
 0xa28   : > { %17942 = vmatpush3.bf16.msra.mxu0 %v17941_v29  ;;  %17984 = vmatprep.subr.bf16.mxu1 %v21762_v36  ;;  %v17957_v29 = vpack.c.bf16 %v21126_v4, %v21121_v12  ;;  %v22419_v4 = vand.u32 4294901760, %v22406_v18  ;;  %v22420_v12 = vand.u32 4294901760, %v22407_v40  ;;  %v22430_v40 = vand.u32 4294901760, %v22417_v61 }
 0xa29   : > { %17944 = vmatprep.subr.bf16.mxu0 %v17943_v56 }
 0xa2a   : > { %v17995_v33 = vpack.c.bf16 %v22419_v4, %v22418_v6 }
 0xa2b   : > { %17986 = vmatpush3.bf16.msra.mxu1 %v21772_v50 }
 0xa2c   : > { %17946 = vmatpush3.bf16.msra.mxu0 %v17945_v57  ;;  %17988 = vmatprep.subr.bf16.mxu1 %v21782_v37 }
 0xa2d   : > { %17948 = vmatprep.subr.bf16.mxu0 %v17947_v49 }
 0xa2f   : > { %17990 = vmatpush3.bf16.msra.mxu1 %v21789_v11 }
 0xa30   : > { %17950 = vmatpush3.bf16.msra.mxu0 %v17949_v35  ;;  %17992 = vmatprep.subr.bf16.mxu1 %v21798_v34 }
 0xa31   : > { %17952 = vmatprep.subr.bf16.mxu0 %v17951_v52 }
 0xa33   : > { %17994 = vmatpush3.bf16.msra.mxu1 %v21806_v46 }
 0xa34   : > { %17954 = vmatpush3.bf16.msra.mxu0 %v17953_v38  ;;  %18028 = vmatprep.subr.bf16.mxu1 %v21623_v53  ;;  %v22421_v53 = vand.u32 4294901760, %v22408_v60 }
 0xa35   : > { %17956 = vmatprep.subr.bf16.mxu0 %v17955_v51 }
 0xa36   : > { %14691 = vmatmul.mubr.f32.vlgmr.msra.gmra.mrb[34].mxu1 %v14210_v48  ;;  %v17997_v1 = vpack.c.bf16 %v22421_v53, %v22420_v12 }
 0xa37   : > { %18030 = vmatpush3.bf16.msra.mxu1 %v21654_v25  ;;  %14961 = vmatprep.mubr.f32.mxu1 %v21517_v44  ;;  %v22422_v25 = vand.u32 4294901760, %v22409_v9  ;;  %v22432_v9 = vand.u32 4294901760, %v21554_v39  ;;  %v18015_v39 = vpack.c.bf16 %v14410_v14, %v14403_v21  ;;  %v15066_v21 = vld [vmem:[%s21999_s16] ss:$0 sm:$0xff] }
 0xa38   : > { %17958 = vmatpush3.bf16.msra.mxu0 %v17957_v29  ;;  %18032 = vmatprep.subr.bf16.mxu1 %v21661_v2  ;;  %v22424_v2 = vand.u32 4294901760, %v22411_v23  ;;  %v22434_v23 = vand.u32 4294901760, %v21571_v43  ;;  %v22437_v43 = vld [vmem:[#allocation38_spill] sm:$0xff] }
 0xa39   : > { %17960 = vmatprep.subr.bf16.mxu0 %v17959_v5  ;;  %v17999_v32 = vpack.c.bf16 %v22423_v62, %v22422_v25 }
 0xa3a   : > { %v18001_v48 = vpack.c.bf16 %v22425_v0, %v22424_v2 }
 0xa3b   : > { %18034 = vmatpush3.bf16.msra.mxu1 %v21682_v41  ;;  %v22426_v41 = vand.u32 4294901760, %v22413_v42 }
 0xa3c   : > { %17962 = vmatpush3.bf16.msra.mxu0 %v17961_v10  ;;  %18036 = vmatprep.subr.bf16.mxu1 %v21696_v16  ;;  %v22428_v16 = vand.u32 4294901760, %v22415_v26 }
 0xa3d   : > { %17996 = vmatprep.subr.bf16.mxu0 %v17995_v33  ;;  %v18003_v18 = vpack.c.bf16 %v22427_v30, %v22426_v41 }
 0xa3f   : > { %14583 = vmatmul.mubr.f32.vlgmr.msra.gmra.mrb[34].mxu0 %v21775_v17  ;;  %18038 = vmatpush3.bf16.msra.mxu1 %v21708_v8  ;;  %v22431_v8 = vand.u32 4294901760, %v21523_v22  ;;  %v18013_v22 = vpack.c.bf16 %v14284_v55, %v14277_v27 }
 0xa40   : > { %17998 = vmatpush3.bf16.msra.mxu0 %v17997_v1  ;;  %14857 = vmatprep.mubr.f32.mxu0 %v21517_v44  ;;  %v22429_v44 = vand.u32 4294901760, %v22416_v47 }
 0xa41   : > { %18000 = vmatprep.subr.bf16.mxu0 %v17999_v32  ;;  %18040 = vmatprep.subr.bf16.mxu1 %v21714_v13  ;;  %v18007_v60 = vpack.c.bf16 %v22431_v8, %v22430_v40  ;;  %v22433_v13 = vand.u32 4294901760, %v21559_v31  ;;  %v22436_v31 = vld [vmem:[#allocation35_spill] sm:$0xff]  ;;  %v22441_v8 = vld [vmem:[#allocation8_spill] sm:$0xff] }
 0xa42   : > { %v18005_v17 = vpack.c.bf16 %v22429_v44, %v22428_v16 }
 0xa43   : > { %18042 = vmatpush3.bf16.msra.mxu1 %v21736_v7  ;;  %v18009_v58 = vpack.c.bf16 %v22433_v13, %v22432_v9  ;;  %v22435_v7 = vand.u32 4294901760, %v21576_v45  ;;  %v22438_v45 = vld [vmem:[#allocation39_spill] sm:$0xff] }
 0xa44   : > { %18002 = vmatpush3.bf16.msra.mxu0 %v18001_v48  ;;  %18044 = vmatprep.subr.bf16.mxu1 %v21742_v63 }
 0xa45   : > { %18004 = vmatprep.subr.bf16.mxu0 %v18003_v18  ;;  %v18011_v20 = vpack.c.bf16 %v22435_v7, %v22434_v23 }
 0xa47   : > { %18046 = vmatpush3.bf16.msra.mxu1 %v21756_v59 }
 0xa48   : > { %18006 = vmatpush3.bf16.msra.mxu0 %v18005_v17  ;;  %18048 = vmatprep.subr.bf16.mxu1 %v21762_v36 }
 0xa49   : > { %18008 = vmatprep.subr.bf16.mxu0 %v18007_v60 }
 0xa4b   : > { %18050 = vmatpush3.bf16.msra.mxu1 %v21772_v50 }
 0xa4c   : > { %18010 = vmatpush3.bf16.msra.mxu0 %v18009_v58  ;;  %18052 = vmatprep.subr.bf16.mxu1 %v21782_v37 }
 0xa4d   : > { %18012 = vmatprep.subr.bf16.mxu0 %v18011_v20 }
 0xa4f   : > { %18054 = vmatpush3.bf16.msra.mxu1 %v21789_v11 }
 0xa50   : > { %18014 = vmatpush3.bf16.msra.mxu0 %v18013_v22  ;;  %18056 = vmatprep.subr.bf16.mxu1 %v21798_v34 }
 0xa51   : > { %18016 = vmatprep.subr.bf16.mxu0 %v18015_v39 }
 0xa53   : > { %18058 = vmatpush3.bf16.msra.mxu1 %v21806_v46 }
 0xa54   : > { %18018 = vmatpush3.bf16.msra.mxu0 %v22436_v31 }
 0xa55   : > { %18020 = vmatprep.subr.bf16.mxu0 %v22437_v43 }
 0xa56   : > { %14963 = vmatmul.mubr.f32.vlgmr.msra.gmra.mrb[36].mxu1 %v21764_v28 }
 0xa58   : > { %18022 = vmatpush3.bf16.msra.mxu0 %v22438_v45 }
 0xa59   : > { %18024 = vmatprep.subr.bf16.mxu0 %v22439_v3 }
 0xa5c   : > { %18026 = vmatpush3.bf16.msra.mxu0 %v22440_v19 }
 0xa5f   : > { %14859 = vmatmul.mubr.f32.vlgmr.msra.gmra.mrb[36].mxu0 %v21764_v28 }
 0xa81   : > { %v15642_v24 = vpop.f32.mrb[26].mxu1 }
 0xa82   : > { %v15643_v55 = vpop.f32.mrb[27].mxu1 }
 0xa83   : > { %v15644_v54 = vadd.f32 %v15643_v55, %v15642_v24 }
 0xa89   : > { %v15607_v27 = vpop.f32.mrb[26].mxu0 }
 0xa8a   : > { %v15608_v14 = vpop.f32.mrb[27].mxu0 }
 0xa8b   : > { %v15609_v63 = vadd.f32 %v15608_v14, %v15607_v27 }
 0xa8d   : > { %v13353_v59 = vadd.f32 %v15609_v63, %v15066_v21 }
 0xa8f   : > { %v13585_v36 = vadd.f32 %v15644_v54, %v13353_v59 }
 0xaa1   : > { %v15712_v50 = vpop.f32.mrb[28].mxu1 }
 0xaa2   : > { %v15713_v37 = vpop.f32.mrb[29].mxu1 }
 0xaa3   : > { %v15714_v11 = vadd.f32 %v15713_v37, %v15712_v50 }
 0xaab   : > { %v15677_v34 = vpop.f32.mrb[28].mxu0 }
 0xaac   : > { %v15678_v46 = vpop.f32.mrb[29].mxu0 }
 0xaad   : > { %v15679_v42 = vadd.f32 %v15678_v46, %v15677_v34 }
 0xaaf   : > { %v13723_v15 = vadd.f32 %v15679_v42, %v13585_v36 }
 0xab1   : > { %v13831_v28 = vadd.f32 %v15714_v11, %v13723_v15 }
 0xac6   : > { %v15782_v26 = vpop.f32.mrb[30].mxu1 }
 0xac7   : > { %v15783_v47 = vpop.f32.mrb[31].mxu1 }
 0xac8   : > { %v15784_v61 = vadd.f32 %v15783_v47, %v15782_v26 }
 0xacc   : > { %v15747_v56 = vpop.f32.mrb[30].mxu0 }
 0xacd   : > { %v15748_v57 = vpop.f32.mrb[31].mxu0 }
 0xace   : > { %v15749_v49 = vadd.f32 %v15748_v57, %v15747_v56 }
 0xad0   : > { %v13999_v35 = vadd.f32 %v15749_v49, %v13831_v28 }
 0xad2   : > { %v14103_v52 = vadd.f32 %v15784_v61, %v13999_v35 }
 0xae9   : > { %v15852_v38 = vpop.f32.mrb[32].mxu1 }
 0xaea   : > { %v15853_v51 = vpop.f32.mrb[33].mxu1 }
 0xaeb   : > { %v15854_v29 = vadd.f32 %v15853_v51, %v15852_v38 }
 0xaf2   : > { %v15817_v5 = vpop.f32.mrb[32].mxu0 }
 0xaf3   : > { %v15818_v10 = vpop.f32.mrb[33].mxu0 }
 0xaf4   : > { %v15819_v6 = vadd.f32 %v15818_v10, %v15817_v5 }
 0xaf6   : > { %v14215_v4 = vadd.f32 %v15819_v6, %v14103_v52 }
 0xaf8   : > { %v14447_v33 = vadd.f32 %v15854_v29, %v14215_v4 }
 0xb09   : > { %v15922_v12 = vpop.f32.mrb[34].mxu1 }
 0xb0a   : > { %v15923_v53 = vpop.f32.mrb[35].mxu1 }
 0xb0b   : > { %v15924_v1 = vadd.f32 %v15923_v53, %v15922_v12 }
 0xb12   : > { %v15887_v25 = vpop.f32.mrb[34].mxu0 }
 0xb13   : > { %v15888_v62 = vpop.f32.mrb[35].mxu0 }
 0xb14   : > { %v15889_v32 = vadd.f32 %v15888_v62, %v15887_v25 }
 0xb16   : > { %v14585_v2 = vadd.f32 %v15889_v32, %v14447_v33 }
 0xb18   : > { %v14693_v0 = vadd.f32 %v15924_v1, %v14585_v2 }
 0xb29   : > { %v15992_v48 = vpop.f32.mrb[36].mxu1 }
 0xb2a   : > { %v15993_v41 = vpop.f32.mrb[37].mxu1 }
 0xb2b   : > { %v15994_v30 = vadd.f32 %v15993_v41, %v15992_v48 }
 0xb32   : > { %v15957_v18 = vpop.f32.mrb[36].mxu0 }
 0xb33   : > { %v15958_v16 = vpop.f32.mrb[37].mxu0 }
 0xb34   : > { %v15959_v44 = vadd.f32 %v15958_v16, %v15957_v18 }
 0xb36   : > { %v14861_v17 = vadd.f32 %v15959_v44, %v14693_v0 }
 0xb38   : > { %v14965_v40 = vadd.f32 %v15994_v30, %v14861_v17 }
 0xb3a   : > { %v14968_v60 = vadd.f32 %v14965_v40, %v22441_v8 }
 0xb3c   : > { %14969 = vst.msk [vmem:[%s539_s26] sm:$0xff] %vm547_vm0, %v14968_v60 }
 0xb3d   : > { %18415 = shalt.err (!%p18412_p3)
}
 0xb3e   : > { %s18416_s2 = scalar_lea.hbm %s21940_s21, 128  ;;  %s18420_s0 = scalar_lea.hbm %s22000_s17, 256 }
 0xb3f   : > { %p18417_p4 = scmp.ne.s32.totalorder %s21940_s21, %s18416_s2  ;;  %p18421_p9 = scmp.lt.u32.totalorder %s21940_s21, %s22000_s17 }
 0xb40   : > { %p18422_p10 = scmp.lt.u32.totalorder %s18420_s0, %s18416_s2  ;;  %p18424_p12 = scmp.lt.u32.totalorder %s18416_s2, %s21940_s21 }
 0xb41   : > { %p18418_p7 = pnand %p18417_p4, %p18598_p5 }
 0xb42   : > { %p18423_p11 = por %p18422_p10, %p18421_p9 }
 0xb43   : > { %p18419_p8 = pneg %p18418_p7 }
 0xb44   : > { %p18425_p13 = por %p18424_p12, %p18423_p11 }
 0xb46   : > { %p18426_p0 = pnand %p18425_p13, %p18419_p8 }
 0xb48   : > { %18429 = shalt.err (!%p18426_p0)
}
 0xb49   : > { %18335 = dma.vmem_to_hbm [thread:$0]  (%p18598_p5), %s21942_s18, 128, %s21940_s21, %s14971_s22  }
 0xb4a PF: > { %p18341_p1 = scmp.ge.s32.totalorder %s18464_s27, 2  ;;  %s14996_s3 = sand.u32 1, %s18452_s24  }
 0xb4b   : > { %s14997_s23 = scalar_lea.sflag [#allocation3], %s14996_s3 }
 0xb4c   : > { %p18338_p2 = pnand %p18341_p1, %p18602_p6 }
 0xb4e   : > { %18447 = dma.done.wait (!%p18338_p2), %s14997_s23, 128  }
 0xb4f   : > { %18449 = vsyncadd (!%p18338_p2), %s14997_s23, 4294967168  ;;  %s22442_s27 = sld [smem:[#allocation6_spill]]  ;;  %s22443_s29 = sld [smem:[#allocation5_spill]] }
 0xb50   : > { %s22444_s26 = sld [smem:[#allocation7_spill]]  ;;  %s22445_s24 = smov %s18456_s25 }
 0xb55   : > { %p27_p3 = scmp.ge.s32.totalorder %s22442_s27, 4   ;;  %s22446_s25 = smov %s22443_s29 }
 0xb57   :  { %29 = sbr.rel (!%p27_p3) target bundleno = 8 (0x8), region = 123 }
 0xb5e   :  { %15002 = vsyncpa [#allocation3], 1 }
 0xb5f   :  { %15004 = vsyncpa [#allocation3 + $0x1], 1 }

// kernel: tpu_custom_call.1
= control target key start
LH: loop header
LB: loop body
LE: loop exit
PB: predicated region body
PF: predicated region fallthrough
CT: control target
= control target key end

     0   :  { %s21983_s0 = inlined_call_operand.vmem [shape: f32[2,8,32], index: 0, kind: input, shape index: {}]   ;;  %s21984_s1 = inlined_call_operand.vmem [shape: f32[1,32], index: 1, kind: input, shape index: {}]   ;;  %s21985_s2 = inlined_call_operand.vmem [shape: f32[1,32], index: 2, kind: input, shape index: {}]   ;;  %s21986_s3 = inlined_call_operand.vmem [shape: f32[4,32,8], index: 3, kind: input, shape index: {}]   ;;  %s21987_s4 = inlined_call_operand.vmem [shape: f32[4,1,8], index: 4, kind: input, shape index: {}]   ;;  %s21988_s5 = inlined_call_operand.vmem [shape: f32[4,32,8], index: 5, kind: input, shape index: {}]   ;;  %s21989_s6 = inlined_call_operand.vmem [shape: f32[4,1,8], index: 6, kind: input, shape index: {}]   ;;  %s21990_s7 = inlined_call_operand.vmem [shape: f32[4,32,8], index: 7, kind: input, shape index: {}]   ;;  %s21991_s8 = inlined_call_operand.vmem [shape: f32[4,1,8], index: 8, kind: input, shape index: {}]   ;;  %s21992_s9 = inlined_call_operand.vmem [shape: f32[4,8,32], index: 9, kind: input, shape index: {}]   ;;  %s21993_s10 = inlined_call_operand.vmem [shape: f32[1,32], index: 10, kind: input, shape index: {}]   ;;  %s21994_s11 = inlined_call_operand.vmem [shape: f32[1,32], index: 11, kind: input, shape index: {}]   ;;  %s21995_s12 = inlined_call_operand.vmem [shape: f32[1,32], index: 12, kind: input, shape index: {}]   ;;  %s21996_s13 = inlined_call_operand.vmem [shape: f32[32,512], index: 13, kind: input, shape index: {}]   ;;  %s21997_s14 = inlined_call_operand.vmem [shape: f32[1,512], index: 14, kind: input, shape index: {}]   ;;  %s21998_s15 = inlined_call_operand.vmem [shape: f32[512,32], index: 15, kind: input, shape index: {}]   ;;  %s21999_s16 = inlined_call_operand.vmem [shape: f32[1,32], index: 16, kind: input, shape index: {}]   ;;  %s22000_s17 = inlined_call_operand.hbm [shape: f32[2,8,32], index: 17, kind: output, shape index: {}]  }
   0x1   :  { %22139 = sst [smem:[#allocation49_spill]] %s21983_s0 }
   0x2   :  { %22140 = sst [smem:[#allocation50_spill]] %s21984_s1 }
   0x3   :  { %22141 = sst [smem:[#allocation51_spill]] %s21985_s2 }
   0x4   :  { %22142 = sst [smem:[#allocation52_spill]] %s21986_s3 }
   0x5   :  { %22 = vsyncpa [#allocation3], 0 }
   0x6   :  { %24 = vsyncpa [#allocation3 + $0x1], 0  ;;  %s18560_s24 = smov 0   ;;  %s18562_s25 = smov 0  }
   0x7   :  { %s18564_s26 = smov 0   ;;  %s18566_s27 = smov 0  }
   0x8 LB: > { %22143 = sst [smem:[#allocation5_spill]] %s18460_s26  ;;  %s18581_s28 = sadd.s32 4294967295, %s18464_s27   ;;  %s18464_s27 = sphi %s18566_s27, %s22442_s27   ;;  %s18460_s26 = sphi %s18564_s26, %s22444_s26   ;;  %s18456_s25 = sphi %s18562_s25, %s22446_s25   ;;  %s18452_s24 = sphi %s18560_s24, %s22445_s24  }
   0x9   : > { %s15043_s29 = sadd.s32 4294967294, %s18464_s27   ;;  %s18585_s0 = sadd.s32 1, %s18464_s27  }
   0xa   : > { %22144 = sst [smem:[#allocation6_spill]] %s18585_s0  ;;  %s399_s30 = sadd.s32 1, %s18460_s26 }
   0xb   : > { %s396_s18 = ssub.s32 %s18464_s27, %s18585_s0  ;;  %p409_p0 = scmp.ne.s32.totalorder %s18460_s26, %s18456_s25 }
   0xc   : > { %p397_p1 = scmp.eq.s32.totalorder %s396_s18, 0  ;;  %p410_p2 = scmp.eq.s32.totalorder %s18581_s28, 1 }
   0xd   : > { %p415_p3 = scmp.ne.s32.totalorder %s18456_s25, %s18452_s24  ;;  %p416_p4 = scmp.eq.s32.totalorder %s15043_s29, 1 }
   0xe   : > { %s18596_s19 = scalar_select %p397_p1, %s18460_s26, %s399_s30  }
   0xf   : > { %p18598_p5 = por %p410_p2, %p409_p0  ;;  %p18602_p6 = por %p416_p4, %p415_p3 }
  0x10   : > { %22145 = sst [smem:[#allocation7_spill]] %s18596_s19  ;;  %p15046_p7 = scmp.ge.s32.totalorder %s18464_s27, 1 }
  0x11   : > { %p489_p8 = scmp.lt.s32.totalorder %s18464_s27, 3 }
  0x13   : > { %p490_p9 = pnand %p15046_p7, %p489_p8 }
  0x15   : > { %493 = sbr.rel (%p490_p9) target bundleno = 2890 (0xb4a), region = 88 }
  0x1c   : > { %p540_p10 = scmp.lt.s32.totalorder %s18581_s28, 1  ;;  %vm547_vm0 = vcmask 261120   ;;  %s22148_s30 = sld [smem:[#allocation49_spill]]  ;;  %v18466_v18 = vmov 0.0|0.0   ;;  %vm18467_vm1 = vmmov 0   ;;  %v22004_v40 = vmov 0.0  }
  0x1d   : > { %s22149_s3 = sld [smem:[#allocation52_spill]]  ;;  %17147 = vmatprep.subr.bf16.mxu0 %v18466_v18  ;;  %17183 = vmatprep.subr.bf16.mxu1 %v18466_v18  ;;  %s22150_s19 = sld [smem:[#allocation50_spill]]  ;;  %vm6537_vm4 = vcmask 64512  }
  0x1e   : > { %s541_s21 = scalar_select %p540_p10, %s18581_s28, 1  ;;  %16003 = vmatprep.mubr.msk.f32.mxu0 %vm18467_vm1, %v22004_v40  ;;  %16069 = vmatprep.mubr.msk.f32.mxu1 %vm18467_vm1, %v22004_v40 }
  0x1f   : > { %s22151_s2 = sld [smem:[#allocation51_spill]] }
  0x20   : > { %s15048_s22 = sshll.u32 %s541_s21, 3 }
  0x22   : > { %s18613_s18 = scalar_lea.vmem %s22148_s30, %s15048_s22  ;;  %s15068_s30 = sshll.u32 %s18581_s28, 7 }
  0x23   : > { %v544_v0 = vld [vmem:[%s18613_s18] sm:$0xff]  ;;  %v583_v8 = vld [vmem:[%s22149_s3 + $0x8] sm:$0xff]  ;;  %v584_v22 = vld [vmem:[%s22149_s3 + $0x10] sm:$0xff]  ;;  %s21940_s21 = scalar_lea.hbm %s22000_s17, %s15068_s30  ;;  %s18469_s28 = smov [#allocation2]  }
  0x24   : > { %v548_v1 = vsel %vm547_vm0, %v544_v0, 0.0  ;;  %v582_v7 = vld [vmem:[%s22149_s3] sm:$0xff]  ;;  %v633_v11 = vand.u32 4294901760, %v583_v8  ;;  %v587_v12 = vld [vmem:[%s22149_s3 + $0x28] sm:$0xff]  ;;  %v585_v23 = vld [vmem:[%s22149_s3 + $0x18] sm:$0xff]  ;;  %v636_v25 = vand.u32 4294901760, %v584_v22 }
  0x25   : > { %549 = vadd.xlane.f32.xlu0 %v548_v1  ;;  %v586_v9 = vld [vmem:[%s22149_s3 + $0x20] sm:$0xff]  ;;  %v630_v10 = vand.u32 4294901760, %v582_v7  ;;  %v1118_v14 = vand.u32 4294901760, %v587_v12  ;;  %v588_v24 = vld [vmem:[%s22149_s3 + $0x30] sm:$0xff]  ;;  %v639_v26 = vand.u32 4294901760, %v585_v23  ;;  %v589_v27 = vld [vmem:[%s22149_s3 + $0x38] sm:$0xff] }
  0x26   : > { %v1115_v13 = vand.u32 4294901760, %v586_v9  ;;  %v18638_v17 = vsub.f32 %v583_v8, %v633_v11  ;;  %v1121_v28 = vand.u32 4294901760, %v588_v24  ;;  %v1124_v30 = vand.u32 4294901760, %v589_v27 }
  0x27   : > { %v18634_v15 = vpack.c.bf16 %v633_v11, %v630_v10  ;;  %v18636_v16 = vsub.f32 %v582_v7, %v630_v10  ;;  %v18646_v21 = vsub.f32 %v587_v12, %v1118_v14  ;;  %v18668_v34 = vpack.c.bf16 %v639_v26, %v636_v25 }
  0x28   : > { %v18642_v19 = vpack.c.bf16 %v1118_v14, %v1115_v13  ;;  %v18644_v20 = vsub.f32 %v586_v9, %v1115_v13  ;;  %v718_v31 = vand.u32 4294901760, %v18638_v17  ;;  %v18670_v35 = vsub.f32 %v584_v22, %v636_v25 }
  0x29   : > { %17149 = vmatpush3.bf16.msra.mxu0 %v18634_v15  ;;  %v711_v29 = vand.u32 4294901760, %v18636_v16  ;;  %v1203_v33 = vand.u32 4294901760, %v18646_v21  ;;  %v18672_v36 = vsub.f32 %v585_v23, %v639_v26  ;;  %v18674_v37 = vsub.f32 %v588_v24, %v1121_v28  ;;  %v15050_v24 = vld [vmem:[%s22151_s2] ss:$0 sm:$0xff]  ;;  %s537_s2 = sand.u32 1, %s18456_s25  }
  0x2a   : > { %17185 = vmatpush3.bf16.msra.mxu1 %v18642_v19  ;;  %17150 = vmatprep.subr.bf16.mxu0 %v18466_v18  ;;  %v1196_v32 = vand.u32 4294901760, %v18644_v20  ;;  %v18676_v38 = vpack.c.bf16 %v1124_v30, %v1121_v28  ;;  %v18678_v39 = vsub.f32 %v589_v27, %v1124_v30  ;;  %v719_v42 = vsub.f32 %v18638_v17, %v718_v31  ;;  %s15047_s29 = sshll.u32 %s537_s2, 3  ;;  %s14971_s22 = scalar_lea.sflag [#allocation3], %s537_s2 }
  0x2b   : > { %17186 = vmatprep.subr.bf16.mxu1 %v18466_v18  ;;  %v712_v41 = vsub.f32 %v18636_v16, %v711_v29  ;;  %v1204_v44 = vsub.f32 %v18646_v21, %v1203_v33  ;;  %v725_v45 = vand.u32 4294901760, %v18670_v35  ;;  %v732_v46 = vand.u32 4294901760, %v18672_v36  ;;  %s539_s26 = scalar_lea.vmem [#allocation2], %s15047_s29  ;;  %s18406_s29 = sshll.u32 %s18469_s28, 4  ;;  %s18407_s29 = int_to_ptr.vmem [resolvable:$false] %s18406_s29 }
  0x2c   : > { %v1197_v43 = vsub.f32 %v18644_v20, %v1196_v32  ;;  %v1210_v47 = vand.u32 4294901760, %v18674_v37  ;;  %v720_v49 = vand.u32 4294901760, %v719_v42  ;;  %v1217_v51 = vand.u32 4294901760, %v18678_v39 }
  0x2d   : > { %17152 = vmatpush3.bf16.msra.mxu0 %v18668_v34  ;;  %v713_v48 = vand.u32 4294901760, %v712_v41  ;;  %v1205_v52 = vand.u32 4294901760, %v1204_v44  ;;  %v726_v53 = vsub.f32 %v18670_v35, %v725_v45  ;;  %v733_v54 = vsub.f32 %v18672_v36, %v732_v46  ;;  %v593_v44 = vld [vmem:[%s22149_s3 + $0x58] sm:$0xff] }
  0x2e   : > { %17188 = vmatpush3.bf16.msra.mxu1 %v18676_v38  ;;  %17153 = vmatprep.subr.bf16.mxu0 %v18466_v18  ;;  %v1198_v50 = vand.u32 4294901760, %v1197_v43  ;;  %v1211_v55 = vsub.f32 %v18674_v37, %v1210_v47  ;;  %v1218_v57 = vsub.f32 %v18678_v39, %v1217_v51  ;;  %v17160_v1 = vpack.c.bf16 %v18638_v17, %v18636_v16  ;;  %v592_v43 = vld [vmem:[%s22149_s3 + $0x50] sm:$0xff] }
  0x2f   : > { %17189 = vmatprep.subr.bf16.mxu1 %v18466_v18  ;;  %v17154_v56 = vpack.c.bf16 %v720_v49, %v713_v48  ;;  %v727_v59 = vand.u32 4294901760, %v726_v53  ;;  %v734_v60 = vand.u32 4294901760, %v733_v54  ;;  %v18710_v7 = vpack.c.bf16 %v1203_v33, %v1196_v32  ;;  %v590_v32 = vld [vmem:[%s22149_s3 + $0x40] sm:$0xff]  ;;  %v591_v33 = vld [vmem:[%s22149_s3 + $0x48] sm:$0xff] }
  0x30   : > { %v17190_v58 = vpack.c.bf16 %v1205_v52, %v1198_v50  ;;  %v1212_v61 = vand.u32 4294901760, %v1211_v55  ;;  %v1219_v62 = vand.u32 4294901760, %v1218_v57  ;;  %v18712_v8 = vpack.c.bf16 %v732_v46, %v725_v45  ;;  %v596_v45 = vld [vmem:[%s22149_s3 + $0x70] sm:$0xff]  ;;  %v597_v46 = vld [vmem:[%s22149_s3 + $0x78] sm:$0xff] }
  0x31   : > { %v17157_v63 = vpack.c.bf16 %v734_v60, %v727_v59  ;;  %v18714_v9 = vpack.c.bf16 %v1217_v51, %v1210_v47  ;;  %v1606_v51 = vand.u32 4294901760, %v592_v43  ;;  %v1609_v52 = vand.u32 4294901760, %v593_v44 }
  0x32   : > { %v2091_v53 = vand.u32 4294901760, %v596_v45  ;;  %v2094_v54 = vand.u32 4294901760, %v597_v46 }
  0x33   : > { %v18826_v60 = vsub.f32 %v593_v44, %v1609_v52 }
  0xb2   : > { %v550_v2 = vpop.xlane.xlu0 %549 }
  0xb3   : > { %v551_v3 = vmul.f32 0.03125, %v550_v2  ;;  %v17196_v2 = vpack.c.bf16 %v18646_v21, %v18644_v20  ;;  %v15049_v21 = vld [vmem:[%s22150_s19] ss:$0 sm:$0xff] }
  0xb5   : > { %v18617_v4 = vsub.f32 %v544_v0, %v551_v3  ;;  %v17193_v0 = vpack.c.bf16 %v1219_v62, %v1212_v61  ;;  %v17163_v3 = vpack.c.bf16 %v18672_v36, %v18670_v35  ;;  %v594_v35 = vld [vmem:[%s22149_s3 + $0x60] sm:$0xff]  ;;  %v595_v36 = vld [vmem:[%s22149_s3 + $0x68] sm:$0xff]  ;;  %v18828_v61 = vsub.f32 %v596_v45, %v2091_v53  ;;  %s18408_s3 = scalar_lea.vmem %s18407_s29, 256 }
  0xb6   : > { %v2085_v41 = vand.u32 4294901760, %v594_v35  ;;  %v2088_v42 = vand.u32 4294901760, %v595_v36  ;;  %v18830_v62 = vsub.f32 %v597_v46, %v2094_v54 }
  0xb7   : > { %v553_v5 = vmul.f32 %v18617_v4, %v18617_v4  ;;  %v573_v22 = vmul.f32 %v15049_v21, %v18617_v4 }
  0xb8   : > { %v18808_v49 = vsub.f32 %v594_v35, %v2085_v41  ;;  %v18810_v50 = vsub.f32 %v595_v36, %v2088_v42 }
  0xb9   : > { %v554_v6 = vsel %vm547_vm0, %v553_v5, 0.0  ;;  %v17199_v5 = vpack.c.bf16 %v18678_v39, %v18674_v37  ;;  %v1600_v37 = vand.u32 4294901760, %v590_v32  ;;  %v1603_v39 = vand.u32 4294901760, %v591_v33 }
  0xba   : > { %555 = vadd.xlane.f32.xlu0 %v554_v6  ;;  %v18708_v6 = vpack.c.bf16 %v718_v31, %v711_v29  ;;  %v2173_v59 = vand.u32 4294901760, %v18810_v50 }
  0xbb   : > { %v18804_v47 = vsub.f32 %v590_v32, %v1600_v37  ;;  %v18806_v48 = vsub.f32 %v591_v33, %v1603_v39  ;;  %v17271_v33 = vpack.c.bf16 %v18830_v62, %v18828_v61 }
  0xbd   : > { %v1681_v55 = vand.u32 4294901760, %v18804_v47  ;;  %v1688_v57 = vand.u32 4294901760, %v18806_v48 }
  0xbf   : > { %v17244_v35 = vpack.c.bf16 %v1688_v57, %v1681_v55 }
 0x147   : > { %v556_v10 = vpop.xlane.xlu0 %555 }
 0x148   : > { %v557_v11 = vmul.f32 0.032258064, %v556_v10 }
 0x14a   : > { %18377 = vrsqrt.f32 %v557_v11  ;;  %vm560_vm2 = vcmp.eq.f32.partialorder %v557_v11, inf  ;;  %v563_v14 = vand.u32 2147483648, %v557_v11  ;;  %vm562_vm3 = vcmp.eq.f32.partialorder %v557_v11, 0.0 }
 0x154   : > { %v18378_v12 = vpop.eup %18377 }
 0x155   : > { %v559_v13 = vmul.f32 %v18378_v12, %v557_v11 }
 0x157   : > { %v561_v16 = vsel %vm560_vm2, %v557_v11, %v559_v13 }
 0x158   : > { %v564_v17 = vsel %vm562_vm3, %v563_v14, %v561_v16 }
 0x159   : > { %v565_v20 = vadd.f32 1e-06, %v564_v17 }
 0x15b   : > { %18379 = vrcp.f32 %v565_v20 }
 0x165   : > { %v18380_v23 = vpop.eup %18379 }
 0x166   : > { %v574_v25 = vmul.f32 %v18380_v23, %v573_v22 }
 0x168   : > { %v581_v26 = vadd.f32 %v15050_v24, %v574_v25 }
 0x16a   : > { %v627_v27 = vsel %vm547_vm0, %v581_v26, 0 }
 0x16b   : > { %v18724_v28 = vand.u32 4294901760, %v627_v27 }
 0x16d   : > { %v18727_v29 = vsub.f32 %v627_v27, %v18724_v28  ;;  %v17232_v27 = vpack.c.bf16 %v18806_v48, %v18804_v47 }
 0x16f   : > { %v18730_v30 = vand.u32 4294901760, %v18727_v29 }
 0x171   : > { %v701_v4 = vsub.f32 %v18727_v29, %v18730_v30 }
 0x173   : > { %v18734_v31 = vand.u32 4294901760, %v701_v4  ;;  %v17268_v4 = vpack.c.bf16 %v18810_v50, %v18808_v49 }
 0x175   : > { %16004 = vmatmul.mubr.f32.vlgmr.msra.gmra.mrb[0].mxu0 %v18734_v31  ;;  %16070 = vmatmul.mubr.f32.vlgmr.msra.gmra.mrb[0].mxu1 %v18734_v31 }
 0x176   : > { %17155 = vmatpush3.bf16.msra.mxu0 %v17154_v56  ;;  %17191 = vmatpush3.bf16.msra.mxu1 %v17190_v58  ;;  %v18819_v56 = vsub.f32 %v592_v43, %v1606_v51  ;;  %v2166_v58 = vand.u32 4294901760, %v18808_v49 }
 0x177   : > { %17156 = vmatprep.subr.bf16.mxu0 %v18466_v18  ;;  %17192 = vmatprep.subr.bf16.mxu1 %v18466_v18 }
 0x178   : > { %16014 = vmatprep.mubr.msk.f32.mxu0 %vm18467_vm1, %v22004_v40  ;;  %16080 = vmatprep.mubr.msk.f32.mxu1 %vm18467_vm1, %v22004_v40  ;;  %v17235_v32 = vpack.c.bf16 %v18826_v60, %v18819_v56  ;;  %v17280_v36 = vpack.c.bf16 %v2173_v59, %v2166_v58 }
 0x17a   : > { %17158 = vmatpush3.bf16.msra.mxu0 %v17157_v63  ;;  %17194 = vmatpush3.bf16.msra.mxu1 %v17193_v0  ;;  %v18838_v63 = vpack.c.bf16 %v1603_v39, %v1600_v37  ;;  %v2167_v0 = vsub.f32 %v18808_v49, %v2166_v58  ;;  %v2569_v37 = vld [vmem:[%s21988_s5] sm:$0xff]  ;;  %v2570_v39 = vld [vmem:[%s21988_s5 + $0x8] sm:$0xff]  ;;  %v2571_v49 = vld [vmem:[%s21988_s5 + $0x10] sm:$0xff] }
 0x17b   : > { %17159 = vmatprep.subr.bf16.mxu0 %v18466_v18  ;;  %17195 = vmatprep.subr.bf16.mxu1 %v18466_v18  ;;  %v2614_v43 = vand.u32 4294901760, %v2569_v37  ;;  %v2617_v44 = vand.u32 4294901760, %v2570_v39 }
 0x17d   : > { %16015 = vmatmul.mubr.f32.vlgmr.msra.gmra.mrb[0].mxu0 %v18724_v28  ;;  %16081 = vmatmul.mubr.f32.vlgmr.msra.gmra.mrb[0].mxu1 %v18724_v28 }
 0x17e   : > { %17161 = vmatpush3.bf16.msra.mxu0 %v17160_v1  ;;  %17197 = vmatpush3.bf16.msra.mxu1 %v17196_v2  ;;  %v2174_v1 = vsub.f32 %v18810_v50, %v2173_v59  ;;  %v1695_v2 = vand.u32 4294901760, %v18819_v56  ;;  %v2572_v50 = vld [vmem:[%s21988_s5 + $0x18] sm:$0xff] }
 0x17f   : > { %17162 = vmatprep.subr.bf16.mxu0 %v18466_v18  ;;  %17198 = vmatprep.subr.bf16.mxu1 %v18466_v18  ;;  %v2623_v58 = vand.u32 4294901760, %v2572_v50 }
 0x180   : > { %16025 = vmatprep.mubr.msk.f32.mxu0 %vm18467_vm1, %v22004_v40  ;;  %16091 = vmatprep.mubr.msk.f32.mxu1 %vm18467_vm1, %v22004_v40  ;;  %v2175_v11 = vand.u32 4294901760, %v2174_v1  ;;  %v1696_v12 = vsub.f32 %v18819_v56, %v1695_v2  ;;  %v2620_v56 = vand.u32 4294901760, %v2571_v49 }
 0x182   : > { %17164 = vmatpush3.bf16.msra.mxu0 %v17163_v3  ;;  %17200 = vmatpush3.bf16.msra.mxu1 %v17199_v5  ;;  %v18855_v3 = vpack.c.bf16 %v2088_v42, %v2085_v41  ;;  %v1702_v5 = vand.u32 4294901760, %v18826_v60  ;;  %v1697_v21 = vand.u32 4294901760, %v1696_v12  ;;  %v2573_v41 = vld [vmem:[%s21988_s5 + $0x20] sm:$0xff]  ;;  %v2574_v42 = vld [vmem:[%s21988_s5 + $0x28] sm:$0xff] }
 0x183   : > { %17165 = vmatprep.subr.bf16.mxu0 %v18466_v18  ;;  %17201 = vmatprep.subr.bf16.mxu1 %v18466_v18  ;;  %v3099_v45 = vand.u32 4294901760, %v2573_v41 }
 0x184   : > { %v1703_v13 = vsub.f32 %v18826_v60, %v1702_v5  ;;  %v17247_v46 = vpack.c.bf16 %v1702_v5, %v1695_v2 }
 0x185   : > { %16026 = vmatmul.mubr.f32.vlgmr.msra.gmra.mrb[0].mxu0 %v18727_v29  ;;  %16092 = vmatmul.mubr.f32.vlgmr.msra.gmra.mrb[0].mxu1 %v18727_v29 }
 0x186   : > { %17167 = vmatpush3.bf16.msra.mxu0 %v18634_v15  ;;  %17203 = vmatpush3.bf16.msra.mxu1 %v18642_v19  ;;  %v1704_v22 = vand.u32 4294901760, %v1703_v13 }
 0x187   : > { %17168 = vmatprep.subr.bf16.mxu0 %v18466_v18  ;;  %17204 = vmatprep.subr.bf16.mxu1 %v18466_v18 }
 0x188   : > { %16036 = vmatprep.mubr.msk.f32.mxu0 %vm18467_vm1, %v22004_v40  ;;  %16102 = vmatprep.mubr.msk.f32.mxu1 %vm18467_vm1, %v22004_v40  ;;  %v17229_v25 = vpack.c.bf16 %v1704_v22, %v1697_v21 }
 0x18a   : > { %17170 = vmatpush3.bf16.msra.mxu0 %v18668_v34  ;;  %17206 = vmatpush3.bf16.msra.mxu1 %v18676_v38 }
 0x18b   : > { %17171 = vmatprep.subr.bf16.mxu0 %v18466_v18  ;;  %17207 = vmatprep.subr.bf16.mxu1 %v18466_v18 }
 0x18d   : > { %16037 = vmatmul.mubr.f32.vlgmr.msra.gmra.mrb[0].mxu0 %v18730_v30  ;;  %16103 = vmatmul.mubr.f32.vlgmr.msra.gmra.mrb[0].mxu1 %v18730_v30 }
 0x18e   : > { %17173 = vmatpush3.bf16.msra.mxu0 %v18708_v6  ;;  %17209 = vmatpush3.bf16.msra.mxu1 %v18710_v7  ;;  %v2180_v6 = vand.u32 4294901760, %v18828_v61  ;;  %v2187_v7 = vand.u32 4294901760, %v18830_v62 }
 0x18f   : > { %17174 = vmatprep.subr.bf16.mxu0 %v18466_v18  ;;  %17210 = vmatprep.subr.bf16.mxu1 %v18466_v18 }
 0x190   : > { %16047 = vmatprep.mubr.msk.f32.mxu0 %vm18467_vm1, %v22004_v40  ;;  %16113 = vmatprep.mubr.msk.f32.mxu1 %vm18467_vm1, %v22004_v40  ;;  %v2181_v14 = vsub.f32 %v18828_v61, %v2180_v6  ;;  %v2188_v16 = vsub.f32 %v18830_v62, %v2187_v7  ;;  %v18994_v61 = vsub.f32 %v2571_v49, %v2620_v56 }
 0x192   : > { %17176 = vmatpush3.bf16.msra.mxu0 %v18712_v8  ;;  %17212 = vmatpush3.bf16.msra.mxu1 %v18714_v9  ;;  %v18862_v8 = vpack.c.bf16 %v1609_v52, %v1606_v51  ;;  %v18864_v9 = vpack.c.bf16 %v2094_v54, %v2091_v53  ;;  %v2182_v23 = vand.u32 4294901760, %v2181_v14  ;;  %v2189_v24 = vand.u32 4294901760, %v2188_v16  ;;  %v2575_v51 = vld [vmem:[%s21988_s5 + $0x30] sm:$0xff]  ;;  %v2576_v52 = vld [vmem:[%s21988_s5 + $0x38] sm:$0xff] }
 0x193   : > { %17177 = vmatprep.subr.bf16.mxu0 %v18466_v18  ;;  %17213 = vmatprep.subr.bf16.mxu1 %v18466_v18  ;;  %v18982_v53 = vsub.f32 %v2569_v37, %v2614_v43  ;;  %v18984_v54 = vsub.f32 %v2570_v39, %v2617_v44  ;;  %v3105_v59 = vand.u32 4294901760, %v2575_v51  ;;  %v3108_v60 = vand.u32 4294901760, %v2576_v52 }
 0x194   : > { %v17265_v26 = vpack.c.bf16 %v2189_v24, %v2182_v23  ;;  %v19038_v14 = vpack.c.bf16 %v2623_v58, %v2620_v56  ;;  %v2580_v56 = vld [vmem:[%s21988_s5 + $0x58] sm:$0xff] }
 0x195   : > { %16048 = vmatmul.mubr.f32.vlgmr.msra.gmra.mrb[0].mxu0 %v18724_v28  ;;  %16114 = vmatmul.mubr.f32.vlgmr.msra.gmra.mrb[0].mxu1 %v18724_v28  ;;  %v2695_v62 = vand.u32 4294901760, %v18982_v53  ;;  %v19003_v1 = vsub.f32 %v2575_v51, %v3105_v59  ;;  %v19005_v2 = vsub.f32 %v2576_v52, %v3108_v60  ;;  %v19040_v16 = vpack.c.bf16 %v3108_v60, %v3105_v59 }
 0x196   : > { %17179 = vmatpush3.bf16.msra.mxu0 %v18634_v15  ;;  %17215 = vmatpush3.bf16.msra.mxu1 %v18642_v19  ;;  %v1682_v15 = vsub.f32 %v18804_v47, %v1681_v55  ;;  %v1689_v19 = vsub.f32 %v18806_v48, %v1688_v57  ;;  %v17283_v47 = vpack.c.bf16 %v2187_v7, %v2180_v6  ;;  %v3102_v48 = vand.u32 4294901760, %v2574_v42 }
 0x197   : > { %17180 = vmatprep.subr.bf16.mxu0 %v18466_v18  ;;  %17216 = vmatprep.subr.bf16.mxu1 %v18466_v18  ;;  %v18986_v55 = vsub.f32 %v2573_v41, %v3099_v45  ;;  %v2696_v6 = vsub.f32 %v18982_v53, %v2695_v62  ;;  %v3194_v12 = vand.u32 4294901760, %v19003_v1  ;;  %v3201_v13 = vand.u32 4294901760, %v19005_v2 }
 0x198   : > { %16058 = vmatprep.mubr.msk.f32.mxu0 %vm18467_vm1, %v22004_v40  ;;  %16124 = vmatprep.mubr.msk.f32.mxu1 %vm18467_vm1, %v22004_v40  ;;  %v1683_v10 = vand.u32 4294901760, %v1682_v15  ;;  %v18988_v57 = vsub.f32 %v2574_v42, %v3102_v48  ;;  %v2702_v15 = vand.u32 4294901760, %v18984_v54  ;;  %v17304_v37 = vpack.c.bf16 %v18984_v54, %v18982_v53 }
 0x199   : > { %v3195_v23 = vsub.f32 %v19003_v1, %v3194_v12  ;;  %v3202_v24 = vsub.f32 %v19005_v2, %v3201_v13  ;;  %v17343_v42 = vpack.c.bf16 %v19005_v2, %v19003_v1 }
 0x19a   : > { %17182 = vmatpush3.bf16.msra.mxu0 %v18668_v34  ;;  %17218 = vmatpush3.bf16.msra.mxu1 %v18676_v38  ;;  %v1690_v34 = vand.u32 4294901760, %v1689_v19  ;;  %v2168_v38 = vand.u32 4294901760, %v2167_v0  ;;  %v3180_v19 = vand.u32 4294901760, %v18986_v55  ;;  %v19001_v0 = vsub.f32 %v2572_v50, %v2623_v58  ;;  %v2584_v58 = vld [vmem:[%s21988_s5 + $0x78] sm:$0xff] }
 0x19b   : > { %17219 = vmatprep.subr.bf16.mxu0 %v18466_v18  ;;  %17255 = vmatprep.subr.bf16.mxu1 %v18466_v18  ;;  %v3187_v5 = vand.u32 4294901760, %v18988_v57  ;;  %v2703_v7 = vsub.f32 %v18984_v54, %v2702_v15  ;;  %v17340_v39 = vpack.c.bf16 %v18988_v57, %v18986_v55  ;;  %v17355_v54 = vpack.c.bf16 %v3201_v13, %v3194_v12 }
 0x19c   : > { %v17226_v17 = vpack.c.bf16 %v1690_v34, %v1683_v10  ;;  %v17262_v20 = vpack.c.bf16 %v2175_v11, %v2168_v38  ;;  %v3181_v10 = vsub.f32 %v18986_v55, %v3180_v19  ;;  %v2709_v34 = vand.u32 4294901760, %v18994_v61  ;;  %v2579_v55 = vld [vmem:[%s21988_s5 + $0x50] sm:$0xff] }
 0x19d   : > { %16059 = vmatmul.mubr.f32.vlgmr.msra.gmra.mrb[0].mxu0 %v18724_v28  ;;  %16125 = vmatmul.mubr.f32.vlgmr.msra.gmra.mrb[0].mxu1 %v18724_v28  ;;  %v3188_v38 = vsub.f32 %v18988_v57, %v3187_v5  ;;  %v2716_v11 = vand.u32 4294901760, %v19001_v0  ;;  %v17307_v41 = vpack.c.bf16 %v19001_v0, %v18994_v61  ;;  %v2583_v57 = vld [vmem:[%s21988_s5 + $0x70] sm:$0xff]  ;;  %v4078_v1 = vand.u32 4294901760, %v2584_v58 }
 0x19e   : > { %17221 = vmatpush3.bf16.msra.mxu0 %v18838_v63  ;;  %17257 = vmatpush3.bf16.msra.mxu1 %v18855_v3 }
 0x19f   : > { %17222 = vmatprep.subr.bf16.mxu0 %v18466_v18  ;;  %17258 = vmatprep.subr.bf16.mxu1 %v18466_v18  ;;  %v3189_v21 = vand.u32 4294901760, %v3188_v38  ;;  %v2717_v22 = vsub.f32 %v19001_v0, %v2716_v11  ;;  %v17319_v53 = vpack.c.bf16 %v2716_v11, %v2709_v34  ;;  %v4075_v0 = vand.u32 4294901760, %v2583_v57 }
 0x1a0   : > { %16135 = vmatprep.mubr.msk.f32.mxu0 %vm18467_vm1, %v22004_v40  ;;  %16201 = vmatprep.mubr.msk.f32.mxu1 %vm18467_vm1, %v22004_v40  ;;  %v19182_v11 = vsub.f32 %v2584_v58, %v4078_v1 }
 0x1a1   : > { %v19180_v38 = vsub.f32 %v2583_v57, %v4075_v0 }
 0x1a2   : > { %17224 = vmatpush3.bf16.msra.mxu0 %v18862_v8  ;;  %17260 = vmatpush3.bf16.msra.mxu1 %v18864_v9 }
 0x1a3   : > { %17225 = vmatprep.subr.bf16.mxu0 %v18466_v18  ;;  %17261 = vmatprep.subr.bf16.mxu1 %v18466_v18 }
 0x1a5   : > { %16136 = vmatmul.mubr.f32.vlgmr.msra.gmra.mrb[2].mxu0 %v18734_v31  ;;  %16202 = vmatmul.mubr.f32.vlgmr.msra.gmra.mrb[2].mxu1 %v18734_v31 }
 0x1a6   : > { %17227 = vmatpush3.bf16.msra.mxu0 %v17226_v17  ;;  %17263 = vmatpush3.bf16.msra.mxu1 %v17262_v20  ;;  %v3182_v17 = vand.u32 4294901760, %v3181_v10  ;;  %v2710_v20 = vsub.f32 %v18994_v61, %v2709_v34 }
 0x1a7   : > { %17228 = vmatprep.subr.bf16.mxu0 %v18466_v18  ;;  %17264 = vmatprep.subr.bf16.mxu1 %v18466_v18 }
 0x1a8   : > { %16146 = vmatprep.mubr.msk.f32.mxu0 %vm18467_vm1, %v22004_v40  ;;  %16212 = vmatprep.mubr.msk.f32.mxu1 %vm18467_vm1, %v22004_v40 }
 0x1aa   : > { %17230 = vmatpush3.bf16.msra.mxu0 %v17229_v25  ;;  %17266 = vmatpush3.bf16.msra.mxu1 %v17265_v26  ;;  %v2711_v26 = vand.u32 4294901760, %v2710_v20 }
 0x1ab   : > { %17231 = vmatprep.subr.bf16.mxu0 %v18466_v18  ;;  %17267 = vmatprep.subr.bf16.mxu1 %v18466_v18 }
 0x1ad   : > { %16147 = vmatmul.mubr.f32.vlgmr.msra.gmra.mrb[2].mxu0 %v18724_v28  ;;  %16213 = vmatmul.mubr.f32.vlgmr.msra.gmra.mrb[2].mxu1 %v18724_v28 }
 0x1ae   : > { %17233 = vmatpush3.bf16.msra.mxu0 %v17232_v27  ;;  %17269 = vmatpush3.bf16.msra.mxu1 %v17268_v4  ;;  %v17334_v27 = vpack.c.bf16 %v3189_v21, %v3182_v17  ;;  %v2718_v4 = vand.u32 4294901760, %v2717_v22  ;;  %v4164_v21 = vand.u32 4294901760, %v19180_v38  ;;  %v4171_v22 = vand.u32 4294901760, %v19182_v11 }
 0x1af   : > { %17234 = vmatprep.subr.bf16.mxu0 %v18466_v18  ;;  %17270 = vmatprep.subr.bf16.mxu1 %v18466_v18 }
 0x1b0   : > { %16157 = vmatprep.mubr.msk.f32.mxu0 %vm18467_vm1, %v22004_v40  ;;  %16223 = vmatprep.mubr.msk.f32.mxu1 %vm18467_vm1, %v22004_v40 }
 0x1b2   : > { %17236 = vmatpush3.bf16.msra.mxu0 %v17235_v32  ;;  %17272 = vmatpush3.bf16.msra.mxu1 %v17271_v33  ;;  %v3196_v32 = vand.u32 4294901760, %v3195_v23  ;;  %v3203_v33 = vand.u32 4294901760, %v3202_v24  ;;  %v19216_v24 = vpack.c.bf16 %v4078_v1, %v4075_v0 }
 0x1b3   : > { %17237 = vmatprep.subr.bf16.mxu0 %v18466_v18  ;;  %17273 = vmatprep.subr.bf16.mxu1 %v18466_v18 }
 0x1b5   : > { %16158 = vmatmul.mubr.f32.vlgmr.msra.gmra.mrb[2].mxu0 %v18727_v29  ;;  %16224 = vmatmul.mubr.f32.vlgmr.msra.gmra.mrb[2].mxu1 %v18727_v29 }
 0x1b6   : > { %17239 = vmatpush3.bf16.msra.mxu0 %v18838_v63  ;;  %17275 = vmatpush3.bf16.msra.mxu1 %v18855_v3 }
 0x1b7   : > { %17240 = vmatprep.subr.bf16.mxu0 %v18466_v18  ;;  %17276 = vmatprep.subr.bf16.mxu1 %v18466_v18 }
 0x1b8   : > { %16168 = vmatprep.mubr.msk.f32.mxu0 %vm18467_vm1, %v22004_v40  ;;  %16234 = vmatprep.mubr.msk.f32.mxu1 %vm18467_vm1, %v22004_v40 }
 0x1ba   : > { %17242 = vmatpush3.bf16.msra.mxu0 %v18862_v8  ;;  %17278 = vmatpush3.bf16.msra.mxu1 %v18864_v9 }
 0x1bb   : > { %17243 = vmatprep.subr.bf16.mxu0 %v18466_v18  ;;  %17279 = vmatprep.subr.bf16.mxu1 %v18466_v18 }
 0x1bd   : > { %16169 = vmatmul.mubr.f32.vlgmr.msra.gmra.mrb[2].mxu0 %v18730_v30  ;;  %16235 = vmatmul.mubr.f32.vlgmr.msra.gmra.mrb[2].mxu1 %v18730_v30 }
 0x1be   : > { %17245 = vmatpush3.bf16.msra.mxu0 %v17244_v35  ;;  %17281 = vmatpush3.bf16.msra.mxu1 %v17280_v36  ;;  %v17301_v35 = vpack.c.bf16 %v2718_v4, %v2711_v26  ;;  %v17337_v36 = vpack.c.bf16 %v3203_v33, %v3196_v32  ;;  %v4165_v32 = vsub.f32 %v19180_v38, %v4164_v21 }
 0x1bf   : > { %17246 = vmatprep.subr.bf16.mxu0 %v18466_v18  ;;  %17282 = vmatprep.subr.bf16.mxu1 %v18466_v18  ;;  %v4172_v33 = vsub.f32 %v19182_v11, %v4171_v22 }
 0x1c0   : > { %16179 = vmatprep.mubr.msk.f32.mxu0 %vm18467_vm1, %v22004_v40  ;;  %16245 = vmatprep.mubr.msk.f32.mxu1 %vm18467_vm1, %v22004_v40 }
 0x1c2   : > { %17248 = vmatpush3.bf16.msra.mxu0 %v17247_v46  ;;  %17284 = vmatpush3.bf16.msra.mxu1 %v17283_v47  ;;  %v2578_v46 = vld [vmem:[%s21988_s5 + $0x48] sm:$0xff]  ;;  %v2581_v47 = vld [vmem:[%s21988_s5 + $0x60] sm:$0xff] }
 0x1c3   : > { %17249 = vmatprep.subr.bf16.mxu0 %v18466_v18  ;;  %17285 = vmatprep.subr.bf16.mxu1 %v18466_v18  ;;  %v3587_v50 = vand.u32 4294901760, %v2578_v46  ;;  %v4069_v51 = vand.u32 4294901760, %v2581_v47 }
 0x1c5   : > { %16180 = vmatmul.mubr.f32.vlgmr.msra.gmra.mrb[2].mxu0 %v18724_v28  ;;  %16246 = vmatmul.mubr.f32.vlgmr.msra.gmra.mrb[2].mxu1 %v18724_v28  ;;  %v19160_v60 = vsub.f32 %v2578_v46, %v3587_v50  ;;  %v19162_v61 = vsub.f32 %v2581_v47, %v4069_v51 }
 0x1c6   : > { %17251 = vmatpush3.bf16.msra.mxu0 %v18838_v63  ;;  %17287 = vmatpush3.bf16.msra.mxu1 %v18855_v3  ;;  %v19014_v63 = vpack.c.bf16 %v2617_v44, %v2614_v43  ;;  %v19016_v3 = vpack.c.bf16 %v3102_v48, %v3099_v45  ;;  %v2577_v43 = vld [vmem:[%s21988_s5 + $0x40] sm:$0xff]  ;;  %v17316_v44 = vpack.c.bf16 %v2702_v15, %v2695_v62  ;;  %v2582_v48 = vld [vmem:[%s21988_s5 + $0x68] sm:$0xff]  ;;  %v3590_v15 = vand.u32 4294901760, %v2579_v55 }
 0x1c7   : > { %17252 = vmatprep.subr.bf16.mxu0 %v18466_v18  ;;  %17288 = vmatprep.subr.bf16.mxu1 %v18466_v18  ;;  %v17352_v45 = vpack.c.bf16 %v3187_v5, %v3180_v19  ;;  %v3584_v49 = vand.u32 4294901760, %v2577_v43  ;;  %v4072_v52 = vand.u32 4294901760, %v2582_v48  ;;  %v3593_v19 = vand.u32 4294901760, %v2580_v56 }
 0x1c8   : > { %16190 = vmatprep.mubr.msk.f32.mxu0 %vm18467_vm1, %v22004_v40  ;;  %16256 = vmatprep.mubr.msk.f32.mxu1 %vm18467_vm1, %v22004_v40  ;;  %v19171_v5 = vsub.f32 %v2579_v55, %v3590_v15 }
 0x1c9   : > { %v19158_v59 = vsub.f32 %v2577_v43, %v3584_v49  ;;  %v19164_v62 = vsub.f32 %v2582_v48, %v4072_v52  ;;  %v19178_v34 = vsub.f32 %v2580_v56, %v3593_v19  ;;  %v19190_v12 = vpack.c.bf16 %v3587_v50, %v3584_v49  ;;  %v4553_v49 = vld [vmem:[%s21990_s7] sm:$0xff] }
 0x1ca   : > { %17254 = vmatpush3.bf16.msra.mxu0 %v18862_v8  ;;  %17290 = vmatpush3.bf16.msra.mxu1 %v18864_v9  ;;  %v2697_v8 = vand.u32 4294901760, %v2696_v6  ;;  %v2704_v9 = vand.u32 4294901760, %v2703_v7  ;;  %v3672_v6 = vand.u32 4294901760, %v19160_v60  ;;  %v4150_v7 = vand.u32 4294901760, %v19162_v61 }
 0x1cb   : > { %17291 = vmatprep.subr.bf16.mxu0 %v18466_v18  ;;  %17327 = vmatprep.subr.bf16.mxu1 %v18466_v18  ;;  %v3665_v2 = vand.u32 4294901760, %v19158_v59  ;;  %v4157_v10 = vand.u32 4294901760, %v19164_v62  ;;  %v19207_v17 = vpack.c.bf16 %v4072_v52, %v4069_v51  ;;  %v3686_v20 = vand.u32 4294901760, %v19178_v34  ;;  %v4554_v52 = vld [vmem:[%s21990_s7 + $0x8] sm:$0xff] }
 0x1cc   : > { %v17298_v25 = vpack.c.bf16 %v2704_v9, %v2697_v8  ;;  %v4151_v13 = vsub.f32 %v19162_v61, %v4150_v7  ;;  %v3679_v9 = vand.u32 4294901760, %v19171_v5  ;;  %v19214_v23 = vpack.c.bf16 %v3593_v19, %v3590_v15  ;;  %v4559_v15 = vld [vmem:[%s21990_s7 + $0x30] sm:$0xff]  ;;  %v4560_v19 = vld [vmem:[%s21990_s7 + $0x38] sm:$0xff] }
 0x1cd   : > { %16191 = vmatmul.mubr.f32.vlgmr.msra.gmra.mrb[2].mxu0 %v18724_v28  ;;  %16257 = vmatmul.mubr.f32.vlgmr.msra.gmra.mrb[2].mxu1 %v18724_v28  ;;  %v4158_v8 = vsub.f32 %v19164_v62, %v4157_v10  ;;  %v3687_v4 = vsub.f32 %v19178_v34, %v3686_v20  ;;  %v17412_v46 = vpack.c.bf16 %v19164_v62, %v19162_v61  ;;  %v4598_v55 = vand.u32 4294901760, %v4553_v49  ;;  %v4555_v61 = vld [vmem:[%s21990_s7 + $0x10] sm:$0xff]  ;;  %v4556_v62 = vld [vmem:[%s21990_s7 + $0x18] sm:$0xff] }
 0x1ce   : > { %17293 = vmatpush3.bf16.msra.mxu0 %v19014_v63  ;;  %17329 = vmatpush3.bf16.msra.mxu1 %v19016_v3  ;;  %v17379_v47 = vpack.c.bf16 %v19178_v34, %v19171_v5  ;;  %v17415_v48 = vpack.c.bf16 %v19182_v11, %v19180_v38  ;;  %v17388_v50 = vpack.c.bf16 %v3672_v6, %v3665_v2  ;;  %v4601_v56 = vand.u32 4294901760, %v4554_v52 }
 0x1cf   : > { %17294 = vmatprep.subr.bf16.mxu0 %v18466_v18  ;;  %17330 = vmatprep.subr.bf16.mxu1 %v18466_v18  ;;  %v4159_v26 = vand.u32 4294901760, %v4158_v8  ;;  %v17424_v51 = vpack.c.bf16 %v4157_v10, %v4150_v7  ;;  %v19334_v0 = vsub.f32 %v4553_v49, %v4598_v55  ;;  %v4607_v7 = vand.u32 4294901760, %v4556_v62 }
 0x1d0   : > { %16267 = vmatprep.mubr.msk.f32.mxu0 %vm18467_vm1, %v22004_v40  ;;  %16333 = vmatprep.mubr.msk.f32.mxu1 %vm18467_vm1, %v22004_v40  ;;  %v19336_v1 = vsub.f32 %v4554_v52, %v4601_v56  ;;  %v5089_v10 = vand.u32 4294901760, %v4559_v15  ;;  %v5092_v34 = vand.u32 4294901760, %v4560_v19 }
 0x1d1   : > { %v4679_v38 = vand.u32 4294901760, %v19334_v0  ;;  %v19354_v8 = vsub.f32 %v4556_v62, %v4607_v7 }
 0x1d2   : > { %17296 = vmatpush3.bf16.msra.mxu0 %v19038_v14  ;;  %17332 = vmatpush3.bf16.msra.mxu1 %v19040_v16 }
 0x1d3   : > { %17297 = vmatprep.subr.bf16.mxu0 %v18466_v18  ;;  %17333 = vmatprep.subr.bf16.mxu1 %v18466_v18 }
 0x1d5   : > { %16268 = vmatmul.mubr.f32.vlgmr.msra.gmra.mrb[4].mxu0 %v18734_v31  ;;  %16334 = vmatmul.mubr.f32.vlgmr.msra.gmra.mrb[4].mxu1 %v18734_v31 }
 0x1d6   : > { %17299 = vmatpush3.bf16.msra.mxu0 %v17298_v25  ;;  %17335 = vmatpush3.bf16.msra.mxu1 %v17334_v27  ;;  %v3680_v27 = vsub.f32 %v19171_v5, %v3679_v9 }
 0x1d7   : > { %17300 = vmatprep.subr.bf16.mxu0 %v18466_v18  ;;  %17336 = vmatprep.subr.bf16.mxu1 %v18466_v18 }
 0x1d8   : > { %16278 = vmatprep.mubr.msk.f32.mxu0 %vm18467_vm1, %v22004_v40  ;;  %16344 = vmatprep.mubr.msk.f32.mxu1 %vm18467_vm1, %v22004_v40 }
 0x1da   : > { %17302 = vmatpush3.bf16.msra.mxu0 %v17301_v35  ;;  %17338 = vmatpush3.bf16.msra.mxu1 %v17337_v36 }
 0x1db   : > { %17303 = vmatprep.subr.bf16.mxu0 %v18466_v18  ;;  %17339 = vmatprep.subr.bf16.mxu1 %v18466_v18 }
 0x1dd   : > { %16279 = vmatmul.mubr.f32.vlgmr.msra.gmra.mrb[4].mxu0 %v18724_v28  ;;  %16345 = vmatmul.mubr.f32.vlgmr.msra.gmra.mrb[4].mxu1 %v18724_v28 }
 0x1de   : > { %17305 = vmatpush3.bf16.msra.mxu0 %v17304_v37  ;;  %17341 = vmatpush3.bf16.msra.mxu1 %v17340_v39  ;;  %v3681_v37 = vand.u32 4294901760, %v3680_v27  ;;  %v3688_v39 = vand.u32 4294901760, %v3687_v4 }
 0x1df   : > { %17306 = vmatprep.subr.bf16.mxu0 %v18466_v18  ;;  %17342 = vmatprep.subr.bf16.mxu1 %v18466_v18 }
 0x1e0   : > { %16289 = vmatprep.mubr.msk.f32.mxu0 %vm18467_vm1, %v22004_v40  ;;  %16355 = vmatprep.mubr.msk.f32.mxu1 %vm18467_vm1, %v22004_v40  ;;  %v17373_v43 = vpack.c.bf16 %v3688_v39, %v3681_v37 }
 0x1e2   : > { %17308 = vmatpush3.bf16.msra.mxu0 %v17307_v41  ;;  %17344 = vmatpush3.bf16.msra.mxu1 %v17343_v42  ;;  %v4166_v41 = vand.u32 4294901760, %v4165_v32  ;;  %v4173_v42 = vand.u32 4294901760, %v4172_v33  ;;  %v19392_v33 = vpack.c.bf16 %v5092_v34, %v5089_v10 }
 0x1e3   : > { %17309 = vmatprep.subr.bf16.mxu0 %v18466_v18  ;;  %17345 = vmatprep.subr.bf16.mxu1 %v18466_v18 }
 0x1e5   : > { %16290 = vmatmul.mubr.f32.vlgmr.msra.gmra.mrb[4].mxu0 %v18727_v29  ;;  %16356 = vmatmul.mubr.f32.vlgmr.msra.gmra.mrb[4].mxu1 %v18727_v29 }
 0x1e6   : > { %17311 = vmatpush3.bf16.msra.mxu0 %v19014_v63  ;;  %17347 = vmatpush3.bf16.msra.mxu1 %v19016_v3 }
 0x1e7   : > { %17312 = vmatprep.subr.bf16.mxu0 %v18466_v18  ;;  %17348 = vmatprep.subr.bf16.mxu1 %v18466_v18 }
 0x1e8   : > { %16300 = vmatprep.mubr.msk.f32.mxu0 %vm18467_vm1, %v22004_v40  ;;  %16366 = vmatprep.mubr.msk.f32.mxu1 %vm18467_vm1, %v22004_v40 }
 0x1ea   : > { %17314 = vmatpush3.bf16.msra.mxu0 %v19038_v14  ;;  %17350 = vmatpush3.bf16.msra.mxu1 %v19040_v16 }
 0x1eb   : > { %17315 = vmatprep.subr.bf16.mxu0 %v18466_v18  ;;  %17351 = vmatprep.subr.bf16.mxu1 %v18466_v18 }
 0x1ed   : > { %16301 = vmatmul.mubr.f32.vlgmr.msra.gmra.mrb[4].mxu0 %v18730_v30  ;;  %16367 = vmatmul.mubr.f32.vlgmr.msra.gmra.mrb[4].mxu1 %v18730_v30 }
 0x1ee   : > { %17317 = vmatpush3.bf16.msra.mxu0 %v17316_v44  ;;  %17353 = vmatpush3.bf16.msra.mxu1 %v17352_v45  ;;  %v17409_v44 = vpack.c.bf16 %v4173_v42, %v4166_v41  ;;  %v17376_v45 = vpack.c.bf16 %v19160_v60, %v19158_v59 }
 0x1ef   : > { %17318 = vmatprep.subr.bf16.mxu0 %v18466_v18  ;;  %17354 = vmatprep.subr.bf16.mxu1 %v18466_v18 }
 0x1f0   : > { %16311 = vmatprep.mubr.msk.f32.mxu0 %vm18467_vm1, %v22004_v40  ;;  %16377 = vmatprep.mubr.msk.f32.mxu1 %vm18467_vm1, %v22004_v40 }
 0x1f2   : > { %17320 = vmatpush3.bf16.msra.mxu0 %v17319_v53  ;;  %17356 = vmatpush3.bf16.msra.mxu1 %v17355_v54  ;;  %v4557_v53 = vld [vmem:[%s21990_s7 + $0x20] sm:$0xff]  ;;  %v4558_v54 = vld [vmem:[%s21990_s7 + $0x28] sm:$0xff] }
 0x1f3   : > { %17321 = vmatprep.subr.bf16.mxu0 %v18466_v18  ;;  %17357 = vmatprep.subr.bf16.mxu1 %v18466_v18  ;;  %v5083_v57 = vand.u32 4294901760, %v4557_v53  ;;  %v5086_v58 = vand.u32 4294901760, %v4558_v54 }
 0x1f5   : > { %16312 = vmatmul.mubr.f32.vlgmr.msra.gmra.mrb[4].mxu0 %v18724_v28  ;;  %16378 = vmatmul.mubr.f32.vlgmr.msra.gmra.mrb[4].mxu1 %v18724_v28  ;;  %v19340_v5 = vsub.f32 %v4558_v54, %v5086_v58 }
 0x1f6   : > { %17323 = vmatpush3.bf16.msra.mxu0 %v19014_v63  ;;  %17359 = vmatpush3.bf16.msra.mxu1 %v19016_v3  ;;  %v3666_v63 = vsub.f32 %v19158_v59, %v3665_v2  ;;  %v3673_v3 = vsub.f32 %v19160_v60, %v3672_v6  ;;  %v17391_v59 = vpack.c.bf16 %v3686_v20, %v3679_v9  ;;  %v4604_v6 = vand.u32 4294901760, %v4555_v61 }
 0x1f7   : > { %17324 = vmatprep.subr.bf16.mxu0 %v18466_v18  ;;  %17360 = vmatprep.subr.bf16.mxu1 %v18466_v18  ;;  %v17427_v60 = vpack.c.bf16 %v4171_v22, %v4164_v21  ;;  %v19338_v2 = vsub.f32 %v4557_v53, %v5083_v57  ;;  %v19356_v9 = vsub.f32 %v4559_v15, %v5089_v10 }
 0x1f8   : > { %16322 = vmatprep.mubr.msk.f32.mxu0 %vm18467_vm1, %v22004_v40  ;;  %16388 = vmatprep.mubr.msk.f32.mxu1 %vm18467_vm1, %v22004_v40  ;;  %v3667_v25 = vand.u32 4294901760, %v3666_v63  ;;  %v19347_v11 = vsub.f32 %v4555_v61, %v4604_v6  ;;  %v4686_v63 = vand.u32 4294901760, %v19336_v1  ;;  %v19358_v20 = vsub.f32 %v4560_v19, %v5092_v34 }
 0x1f9   : > { %v19366_v21 = vpack.c.bf16 %v4601_v56, %v4598_v55  ;;  %v5178_v27 = vand.u32 4294901760, %v19356_v9  ;;  %v19390_v32 = vpack.c.bf16 %v4607_v7, %v4604_v6  ;;  %v17484_v52 = vpack.c.bf16 %v19340_v5, %v19338_v2  ;;  %v4561_v55 = vld [vmem:[%s21990_s7 + $0x40] sm:$0xff]  ;;  %v4567_v6 = vld [vmem:[%s21990_s7 + $0x70] sm:$0xff]  ;;  %v4568_v7 = vld [vmem:[%s21990_s7 + $0x78] sm:$0xff] }
 0x1fa   : > { %17326 = vmatpush3.bf16.msra.mxu0 %v19038_v14  ;;  %17362 = vmatpush3.bf16.msra.mxu1 %v19040_v16  ;;  %v3674_v14 = vand.u32 4294901760, %v3673_v3  ;;  %v4152_v16 = vand.u32 4294901760, %v4151_v13  ;;  %v5164_v3 = vand.u32 4294901760, %v19338_v2  ;;  %v5171_v13 = vand.u32 4294901760, %v19340_v5 }
 0x1fb   : > { %17363 = vmatprep.subr.bf16.mxu0 %v18466_v18  ;;  %17399 = vmatprep.subr.bf16.mxu1 %v18466_v18  ;;  %v5185_v4 = vand.u32 4294901760, %v19358_v20  ;;  %v5179_v41 = vsub.f32 %v19356_v9, %v5178_v27  ;;  %v17451_v53 = vpack.c.bf16 %v19354_v8, %v19347_v11  ;;  %v17487_v54 = vpack.c.bf16 %v19358_v20, %v19356_v9 }
 0x1fc   : > { %v17370_v35 = vpack.c.bf16 %v3674_v14, %v3667_v25  ;;  %v17406_v36 = vpack.c.bf16 %v4159_v26, %v4152_v16  ;;  %v5165_v22 = vsub.f32 %v19338_v2, %v5164_v3  ;;  %v5172_v25 = vsub.f32 %v19340_v5, %v5171_v13  ;;  %v4563_v2 = vld [vmem:[%s21990_s7 + $0x50] sm:$0xff]  ;;  %v4564_v5 = vld [vmem:[%s21990_s7 + $0x58] sm:$0xff] }
 0x1fd   : > { %16323 = vmatmul.mubr.f32.vlgmr.msra.gmra.mrb[4].mxu0 %v18724_v28  ;;  %16389 = vmatmul.mubr.f32.vlgmr.msra.gmra.mrb[4].mxu1 %v18724_v28  ;;  %v4693_v14 = vand.u32 4294901760, %v19347_v11  ;;  %v19383_v16 = vpack.c.bf16 %v5086_v58, %v5083_v57  ;;  %v4700_v26 = vand.u32 4294901760, %v19354_v8  ;;  %v5186_v42 = vsub.f32 %v19358_v20, %v5185_v4  ;;  %v4562_v58 = vld [vmem:[%s21990_s7 + $0x48] sm:$0xff] }
 0x1fe   : > { %17365 = vmatpush3.bf16.msra.mxu0 %v19190_v12  ;;  %17401 = vmatpush3.bf16.msra.mxu1 %v19207_v17  ;;  %v17460_v56 = vpack.c.bf16 %v4686_v63, %v4679_v38  ;;  %v17496_v57 = vpack.c.bf16 %v5171_v13, %v5164_v3  ;;  %v5568_v61 = vand.u32 4294901760, %v4561_v55  ;;  %v5571_v62 = vand.u32 4294901760, %v4562_v58 }
 0x1ff   : > { %17366 = vmatprep.subr.bf16.mxu0 %v18466_v18  ;;  %17402 = vmatprep.subr.bf16.mxu1 %v18466_v18  ;;  %v4694_v37 = vsub.f32 %v19347_v11, %v4693_v14  ;;  %v4701_v39 = vsub.f32 %v19354_v8, %v4700_v26  ;;  %v5577_v3 = vand.u32 4294901760, %v4564_v5  ;;  %v6059_v13 = vand.u32 4294901760, %v4567_v6 }
 0x200   : > { %16399 = vmatprep.mubr.msk.f32.mxu0 %vm18467_vm1, %v22004_v40  ;;  %16465 = vmatprep.mubr.msk.f32.mxu1 %vm18467_vm1, %v22004_v40  ;;  %v19510_v10 = vsub.f32 %v4561_v55, %v5568_v61  ;;  %v19512_v34 = vsub.f32 %v4562_v58, %v5571_v62  ;;  %v6062_v8 = vand.u32 4294901760, %v4568_v7 }
 0x202   : > { %17368 = vmatpush3.bf16.msra.mxu0 %v19214_v23  ;;  %17404 = vmatpush3.bf16.msra.mxu1 %v19216_v24  ;;  %v5649_v9 = vand.u32 4294901760, %v19510_v10 }
 0x203   : > { %17369 = vmatprep.subr.bf16.mxu0 %v18466_v18  ;;  %17405 = vmatprep.subr.bf16.mxu1 %v18466_v18 }
 0x205   : > { %16400 = vmatmul.mubr.f32.vlgmr.msra.gmra.mrb[6].mxu0 %v18734_v31  ;;  %16466 = vmatmul.mubr.f32.vlgmr.msra.gmra.mrb[6].mxu1 %v18734_v31 }
 0x206   : > { %17371 = vmatpush3.bf16.msra.mxu0 %v17370_v35  ;;  %17407 = vmatpush3.bf16.msra.mxu1 %v17406_v36  ;;  %v5173_v36 = vand.u32 4294901760, %v5172_v25  ;;  %v19530_v25 = vsub.f32 %v4564_v5, %v5577_v3 }
 0x207   : > { %17372 = vmatprep.subr.bf16.mxu0 %v18466_v18  ;;  %17408 = vmatprep.subr.bf16.mxu1 %v18466_v18 }
 0x208   : > { %16410 = vmatprep.mubr.msk.f32.mxu0 %vm18467_vm1, %v22004_v40  ;;  %16476 = vmatprep.mubr.msk.f32.mxu1 %vm18467_vm1, %v22004_v40 }
 0x20a   : > { %17374 = vmatpush3.bf16.msra.mxu0 %v17373_v43  ;;  %17410 = vmatpush3.bf16.msra.mxu1 %v17409_v44 }
 0x20b   : > { %17375 = vmatprep.subr.bf16.mxu0 %v18466_v18  ;;  %17411 = vmatprep.subr.bf16.mxu1 %v18466_v18 }
 0x20d   : > { %16411 = vmatmul.mubr.f32.vlgmr.msra.gmra.mrb[6].mxu0 %v18724_v28  ;;  %16477 = vmatmul.mubr.f32.vlgmr.msra.gmra.mrb[6].mxu1 %v18724_v28 }
 0x20e   : > { %17377 = vmatpush3.bf16.msra.mxu0 %v17376_v45  ;;  %17413 = vmatpush3.bf16.msra.mxu1 %v17412_v46  ;;  %v4695_v45 = vand.u32 4294901760, %v4694_v37  ;;  %v4702_v46 = vand.u32 4294901760, %v4701_v39 }
 0x20f   : > { %17378 = vmatprep.subr.bf16.mxu0 %v18466_v18  ;;  %17414 = vmatprep.subr.bf16.mxu1 %v18466_v18 }
 0x210   : > { %16421 = vmatprep.mubr.msk.f32.mxu0 %vm18467_vm1, %v22004_v40  ;;  %16487 = vmatprep.mubr.msk.f32.mxu1 %vm18467_vm1, %v22004_v40  ;;  %v17445_v49 = vpack.c.bf16 %v4702_v46, %v4695_v45 }
 0x212   : > { %17380 = vmatpush3.bf16.msra.mxu0 %v17379_v47  ;;  %17416 = vmatpush3.bf16.msra.mxu1 %v17415_v48  ;;  %v5180_v47 = vand.u32 4294901760, %v5179_v41  ;;  %v5187_v48 = vand.u32 4294901760, %v5186_v42  ;;  %v19568_v42 = vpack.c.bf16 %v6062_v8, %v6059_v13 }
 0x213   : > { %17381 = vmatprep.subr.bf16.mxu0 %v18466_v18  ;;  %17417 = vmatprep.subr.bf16.mxu1 %v18466_v18 }
 0x215   : > { %16422 = vmatmul.mubr.f32.vlgmr.msra.gmra.mrb[6].mxu0 %v18727_v29  ;;  %16488 = vmatmul.mubr.f32.vlgmr.msra.gmra.mrb[6].mxu1 %v18727_v29 }
 0x216   : > { %17383 = vmatpush3.bf16.msra.mxu0 %v19190_v12  ;;  %17419 = vmatpush3.bf16.msra.mxu1 %v19207_v17 }
 0x217   : > { %17384 = vmatprep.subr.bf16.mxu0 %v18466_v18  ;;  %17420 = vmatprep.subr.bf16.mxu1 %v18466_v18 }
 0x218   : > { %16432 = vmatprep.mubr.msk.f32.mxu0 %vm18467_vm1, %v22004_v40  ;;  %16498 = vmatprep.mubr.msk.f32.mxu1 %vm18467_vm1, %v22004_v40 }
 0x21a   : > { %17386 = vmatpush3.bf16.msra.mxu0 %v19214_v23  ;;  %17422 = vmatpush3.bf16.msra.mxu1 %v19216_v24 }
 0x21b   : > { %17387 = vmatprep.subr.bf16.mxu0 %v18466_v18  ;;  %17423 = vmatprep.subr.bf16.mxu1 %v18466_v18 }
 0x21d   : > { %16433 = vmatmul.mubr.f32.vlgmr.msra.gmra.mrb[6].mxu0 %v18730_v30  ;;  %16499 = vmatmul.mubr.f32.vlgmr.msra.gmra.mrb[6].mxu1 %v18730_v30 }
 0x21e   : > { %17389 = vmatpush3.bf16.msra.mxu0 %v17388_v50  ;;  %17425 = vmatpush3.bf16.msra.mxu1 %v17424_v51  ;;  %v17481_v50 = vpack.c.bf16 %v5187_v48, %v5180_v47  ;;  %v17448_v51 = vpack.c.bf16 %v19336_v1, %v19334_v0 }
 0x21f   : > { %17390 = vmatprep.subr.bf16.mxu0 %v18466_v18  ;;  %17426 = vmatprep.subr.bf16.mxu1 %v18466_v18 }
 0x220   : > { %16443 = vmatprep.mubr.msk.f32.mxu0 %vm18467_vm1, %v22004_v40  ;;  %16509 = vmatprep.mubr.msk.f32.mxu1 %vm18467_vm1, %v22004_v40 }
 0x222   : > { %17392 = vmatpush3.bf16.msra.mxu0 %v17391_v59  ;;  %17428 = vmatpush3.bf16.msra.mxu1 %v17427_v60  ;;  %v4565_v59 = vld [vmem:[%s21990_s7 + $0x60] sm:$0xff]  ;;  %v4566_v60 = vld [vmem:[%s21990_s7 + $0x68] sm:$0xff] }
 0x223   : > { %17393 = vmatprep.subr.bf16.mxu0 %v18466_v18  ;;  %17429 = vmatprep.subr.bf16.mxu1 %v18466_v18  ;;  %v6053_v15 = vand.u32 4294901760, %v4565_v59  ;;  %v6056_v19 = vand.u32 4294901760, %v4566_v60 }
 0x225   : > { %16444 = vmatmul.mubr.f32.vlgmr.msra.gmra.mrb[6].mxu0 %v18724_v28  ;;  %16510 = vmatmul.mubr.f32.vlgmr.msra.gmra.mrb[6].mxu1 %v18724_v28  ;;  %v19516_v11 = vsub.f32 %v4566_v60, %v6056_v19 }
 0x226   : > { %17395 = vmatpush3.bf16.msra.mxu0 %v19190_v12  ;;  %17431 = vmatpush3.bf16.msra.mxu1 %v19207_v17  ;;  %v4680_v12 = vsub.f32 %v19334_v0, %v4679_v38  ;;  %v4687_v17 = vsub.f32 %v19336_v1, %v4686_v63  ;;  %v17463_v0 = vpack.c.bf16 %v4700_v26, %v4693_v14  ;;  %v5574_v63 = vand.u32 4294901760, %v4563_v2 }
 0x227   : > { %17396 = vmatprep.subr.bf16.mxu0 %v18466_v18  ;;  %17432 = vmatprep.subr.bf16.mxu1 %v18466_v18  ;;  %v17499_v1 = vpack.c.bf16 %v5185_v4, %v5178_v27  ;;  %v19514_v38 = vsub.f32 %v4565_v59, %v6053_v15  ;;  %v19532_v14 = vsub.f32 %v4567_v6, %v6059_v13  ;;  %v15051_v6 = vld [vmem:[%s21987_s4] ss:$0 sm:$0xff] }
 0x228   : > { %16454 = vmatprep.mubr.msk.f32.mxu0 %vm18467_vm1, %v22004_v40  ;;  %16520 = vmatprep.mubr.msk.f32.mxu1 %vm18467_vm1, %v22004_v40  ;;  %v4681_v35 = vand.u32 4294901760, %v4680_v12  ;;  %v19523_v20 = vsub.f32 %v4563_v2, %v5574_v63  ;;  %v5656_v12 = vand.u32 4294901760, %v19512_v34  ;;  %v19534_v26 = vsub.f32 %v4568_v7, %v6062_v8  ;;  %v15055_v8 = vld [vmem:[%s21989_s6] ss:$0 sm:$0xff] }
 0x229   : > { %v19542_v27 = vpack.c.bf16 %v5571_v62, %v5568_v61  ;;  %v6148_v37 = vand.u32 4294901760, %v19532_v14  ;;  %v19566_v41 = vpack.c.bf16 %v5577_v3, %v5574_v63 }
 0x22a   : > { %17398 = vmatpush3.bf16.msra.mxu0 %v19214_v23  ;;  %17434 = vmatpush3.bf16.msra.mxu1 %v19216_v24  ;;  %v4688_v23 = vand.u32 4294901760, %v4687_v17  ;;  %v5166_v24 = vand.u32 4294901760, %v5165_v22  ;;  %v6134_v17 = vand.u32 4294901760, %v19514_v38  ;;  %v6141_v22 = vand.u32 4294901760, %v19516_v11 }
 0x22b   : > { %17435 = vmatprep.subr.bf16.mxu0 %v18466_v18  ;;  %17471 = vmatprep.subr.bf16.mxu1 %v18466_v18  ;;  %v6155_v39 = vand.u32 4294901760, %v19534_v26  ;;  %v6149_v47 = vsub.f32 %v19532_v14, %v6148_v37  ;;  %v17523_v58 = vpack.c.bf16 %v19530_v25, %v19523_v20  ;;  %v17559_v59 = vpack.c.bf16 %v19534_v26, %v19532_v14 }
 0x22c   : > { %v17442_v43 = vpack.c.bf16 %v4688_v23, %v4681_v35  ;;  %v17478_v44 = vpack.c.bf16 %v5173_v36, %v5166_v24  ;;  %v6135_v4 = vsub.f32 %v19514_v38, %v6134_v17  ;;  %v6142_v35 = vsub.f32 %v19516_v11, %v6141_v22 }
 0x22d   : > { %16455 = vmatmul.mubr.f32.vlgmr.msra.gmra.mrb[6].mxu0 %v18724_v28  ;;  %16521 = vmatmul.mubr.f32.vlgmr.msra.gmra.mrb[6].mxu1 %v18724_v28  ;;  %v5663_v23 = vand.u32 4294901760, %v19523_v20  ;;  %v19559_v24 = vpack.c.bf16 %v6056_v19, %v6053_v15  ;;  %v5670_v36 = vand.u32 4294901760, %v19530_v25  ;;  %v6156_v48 = vsub.f32 %v19534_v26, %v6155_v39 }
 0x22e   : > { %17437 = vmatpush3.bf16.msra.mxu0 %v19366_v21  ;;  %17473 = vmatpush3.bf16.msra.mxu1 %v19383_v16  ;;  %v17568_v19 = vpack.c.bf16 %v6141_v22, %v6134_v17 }
 0x22f   : > { %17438 = vmatprep.subr.bf16.mxu0 %v18466_v18  ;;  %17474 = vmatprep.subr.bf16.mxu1 %v18466_v18  ;;  %v5664_v45 = vsub.f32 %v19523_v20, %v5663_v23  ;;  %v5671_v46 = vsub.f32 %v19530_v25, %v5670_v36 }
 0x230   : > { %16531 = vmatprep.mubr.msk.f32.mxu0 %vm18467_vm1, %v22004_v40  ;;  %16597 = vmatprep.mubr.msk.f32.mxu1 %vm18467_vm1, %v22004_v40 }
 0x232   : > { %17440 = vmatpush3.bf16.msra.mxu0 %v19390_v32  ;;  %17476 = vmatpush3.bf16.msra.mxu1 %v19392_v33 }
 0x233   : > { %17441 = vmatprep.subr.bf16.mxu0 %v18466_v18  ;;  %17477 = vmatprep.subr.bf16.mxu1 %v18466_v18 }
 0x235   : > { %16532 = vmatmul.mubr.f32.vlgmr.msra.gmra.mrb[8].mxu0 %v18734_v31  ;;  %16598 = vmatmul.mubr.f32.vlgmr.msra.gmra.mrb[8].mxu1 %v18734_v31 }
 0x236   : > { %17443 = vmatpush3.bf16.msra.mxu0 %v17442_v43  ;;  %17479 = vmatpush3.bf16.msra.mxu1 %v17478_v44  ;;  %v6143_v44 = vand.u32 4294901760, %v6142_v35 }
 0x237   : > { %17444 = vmatprep.subr.bf16.mxu0 %v18466_v18  ;;  %17480 = vmatprep.subr.bf16.mxu1 %v18466_v18 }
 0x238   : > { %16542 = vmatprep.mubr.msk.f32.mxu0 %vm18467_vm1, %v22004_v40  ;;  %16608 = vmatprep.mubr.msk.f32.mxu1 %vm18467_vm1, %v22004_v40 }
 0x23a   : > { %17446 = vmatpush3.bf16.msra.mxu0 %v17445_v49  ;;  %17482 = vmatpush3.bf16.msra.mxu1 %v17481_v50 }
 0x23b   : > { %17447 = vmatprep.subr.bf16.mxu0 %v18466_v18  ;;  %17483 = vmatprep.subr.bf16.mxu1 %v18466_v18 }
 0x23d   : > { %16543 = vmatmul.mubr.f32.vlgmr.msra.gmra.mrb[8].mxu0 %v18724_v28  ;;  %16609 = vmatmul.mubr.f32.vlgmr.msra.gmra.mrb[8].mxu1 %v18724_v28 }
 0x23e   : > { %17449 = vmatpush3.bf16.msra.mxu0 %v17448_v51  ;;  %17485 = vmatpush3.bf16.msra.mxu1 %v17484_v52  ;;  %v5665_v51 = vand.u32 4294901760, %v5664_v45  ;;  %v5672_v52 = vand.u32 4294901760, %v5671_v46  ;;  %v15053_v46 = vld [vmem:[%s21987_s4 + $0x2] ss:$0 sm:$0xff] }
 0x23f   : > { %17450 = vmatprep.subr.bf16.mxu0 %v18466_v18  ;;  %17486 = vmatprep.subr.bf16.mxu1 %v18466_v18 }
 0x240   : > { %16553 = vmatprep.mubr.msk.f32.mxu0 %vm18467_vm1, %v22004_v40  ;;  %16619 = vmatprep.mubr.msk.f32.mxu1 %vm18467_vm1, %v22004_v40  ;;  %v17517_v55 = vpack.c.bf16 %v5672_v52, %v5665_v51 }
 0x242   : > { %17452 = vmatpush3.bf16.msra.mxu0 %v17451_v53  ;;  %17488 = vmatpush3.bf16.msra.mxu1 %v17487_v54  ;;  %v6150_v53 = vand.u32 4294901760, %v6149_v47  ;;  %v6157_v54 = vand.u32 4294901760, %v6156_v48  ;;  %v15054_v47 = vld [vmem:[%s21987_s4 + $0x3] ss:$0 sm:$0xff] }
 0x243   : > { %17453 = vmatprep.subr.bf16.mxu0 %v18466_v18  ;;  %17489 = vmatprep.subr.bf16.mxu1 %v18466_v18 }
 0x245   : > { %16554 = vmatmul.mubr.f32.vlgmr.msra.gmra.mrb[8].mxu0 %v18727_v29  ;;  %16620 = vmatmul.mubr.f32.vlgmr.msra.gmra.mrb[8].mxu1 %v18727_v29 }
 0x246   : > { %17455 = vmatpush3.bf16.msra.mxu0 %v19366_v21  ;;  %17491 = vmatpush3.bf16.msra.mxu1 %v19383_v16 }
 0x247   : > { %17456 = vmatprep.subr.bf16.mxu0 %v18466_v18  ;;  %17492 = vmatprep.subr.bf16.mxu1 %v18466_v18 }
 0x248   : > { %16564 = vmatprep.mubr.msk.f32.mxu0 %vm18467_vm1, %v22004_v40  ;;  %16630 = vmatprep.mubr.msk.f32.mxu1 %vm18467_vm1, %v22004_v40 }
 0x24a   : > { %17458 = vmatpush3.bf16.msra.mxu0 %v19390_v32  ;;  %17494 = vmatpush3.bf16.msra.mxu1 %v19392_v33 }
 0x24b   : > { %17459 = vmatprep.subr.bf16.mxu0 %v18466_v18  ;;  %17495 = vmatprep.subr.bf16.mxu1 %v18466_v18 }
 0x24d   : > { %16565 = vmatmul.mubr.f32.vlgmr.msra.gmra.mrb[8].mxu0 %v18730_v30  ;;  %16631 = vmatmul.mubr.f32.vlgmr.msra.gmra.mrb[8].mxu1 %v18730_v30 }
 0x24e   : > { %17461 = vmatpush3.bf16.msra.mxu0 %v17460_v56  ;;  %17497 = vmatpush3.bf16.msra.mxu1 %v17496_v57  ;;  %v17553_v56 = vpack.c.bf16 %v6157_v54, %v6150_v53  ;;  %v17520_v57 = vpack.c.bf16 %v19512_v34, %v19510_v10 }
 0x24f   : > { %17462 = vmatprep.subr.bf16.mxu0 %v18466_v18  ;;  %17498 = vmatprep.subr.bf16.mxu1 %v18466_v18 }
 0x250   : > { %16575 = vmatprep.mubr.msk.f32.mxu0 %vm18467_vm1, %v22004_v40  ;;  %16641 = vmatprep.mubr.msk.f32.mxu1 %vm18467_vm1, %v22004_v40 }
 0x252   : > { %17464 = vmatpush3.bf16.msra.mxu0 %v17463_v0  ;;  %17500 = vmatpush3.bf16.msra.mxu1 %v17499_v1  ;;  %v17535_v0 = vpack.c.bf16 %v5670_v36, %v5663_v23  ;;  %v17571_v1 = vpack.c.bf16 %v6155_v39, %v6148_v37 }
 0x253   : > { %17465 = vmatprep.subr.bf16.mxu0 %v18466_v18  ;;  %17501 = vmatprep.subr.bf16.mxu1 %v18466_v18 }
 0x255   : > { %16576 = vmatmul.mubr.f32.vlgmr.msra.gmra.mrb[8].mxu0 %v18724_v28  ;;  %16642 = vmatmul.mubr.f32.vlgmr.msra.gmra.mrb[8].mxu1 %v18724_v28 }
 0x256   : > { %17467 = vmatpush3.bf16.msra.mxu0 %v19366_v21  ;;  %17503 = vmatpush3.bf16.msra.mxu1 %v19383_v16  ;;  %v5650_v21 = vsub.f32 %v19510_v10, %v5649_v9  ;;  %v5657_v16 = vsub.f32 %v19512_v34, %v5656_v12 }
 0x257   : > { %17468 = vmatprep.subr.bf16.mxu0 %v18466_v18  ;;  %17504 = vmatprep.subr.bf16.mxu1 %v18466_v18 }
 0x258   : > { %16586 = vmatprep.mubr.msk.f32.mxu0 %vm18467_vm1, %v22004_v40  ;;  %16652 = vmatprep.mubr.msk.f32.mxu1 %vm18467_vm1, %v22004_v40  ;;  %v5651_v43 = vand.u32 4294901760, %v5650_v21 }
 0x25a   : > { %17470 = vmatpush3.bf16.msra.mxu0 %v19390_v32  ;;  %17506 = vmatpush3.bf16.msra.mxu1 %v19392_v33  ;;  %v5658_v32 = vand.u32 4294901760, %v5657_v16  ;;  %v6136_v33 = vand.u32 4294901760, %v6135_v4 }
 0x25b   : > { %17507 = vmatprep.subr.bf16.mxu0 %v18466_v18  ;;  %17543 = vmatprep.subr.bf16.mxu1 %v18466_v18 }
 0x25c   : > { %v17514_v49 = vpack.c.bf16 %v5658_v32, %v5651_v43  ;;  %v17550_v50 = vpack.c.bf16 %v6143_v44, %v6136_v33 }
 0x25d   : > { %16587 = vmatmul.mubr.f32.vlgmr.msra.gmra.mrb[8].mxu0 %v18724_v28  ;;  %16653 = vmatmul.mubr.f32.vlgmr.msra.gmra.mrb[8].mxu1 %v18724_v28 }
 0x25e   : > { %17509 = vmatpush3.bf16.msra.mxu0 %v19542_v27  ;;  %17545 = vmatpush3.bf16.msra.mxu1 %v19559_v24 }
 0x25f   : > { %17510 = vmatprep.subr.bf16.mxu0 %v18466_v18  ;;  %17546 = vmatprep.subr.bf16.mxu1 %v18466_v18 }
 0x260   : > { %16663 = vmatprep.mubr.msk.f32.mxu0 %vm18467_vm1, %v22004_v40  ;;  %16729 = vmatprep.mubr.msk.f32.mxu1 %vm18467_vm1, %v22004_v40 }
 0x262   : > { %17512 = vmatpush3.bf16.msra.mxu0 %v19566_v41  ;;  %17548 = vmatpush3.bf16.msra.mxu1 %v19568_v42 }
 0x263   : > { %17513 = vmatprep.subr.bf16.mxu0 %v18466_v18  ;;  %17549 = vmatprep.subr.bf16.mxu1 %v18466_v18 }
 0x265   : > { %16664 = vmatmul.mubr.f32.vlgmr.msra.gmra.mrb[10].mxu0 %v18734_v31  ;;  %16730 = vmatmul.mubr.f32.vlgmr.msra.gmra.mrb[10].mxu1 %v18734_v31  ;;  %v17556_v31 = vpack.c.bf16 %v19516_v11, %v19514_v38 }
 0x266   : > { %17515 = vmatpush3.bf16.msra.mxu0 %v17514_v49  ;;  %17551 = vmatpush3.bf16.msra.mxu1 %v17550_v50 }
 0x267   : > { %17516 = vmatprep.subr.bf16.mxu0 %v18466_v18  ;;  %17552 = vmatprep.subr.bf16.mxu1 %v18466_v18 }
 0x268   : > { %16674 = vmatprep.mubr.msk.f32.mxu0 %vm18467_vm1, %v22004_v40  ;;  %16740 = vmatprep.mubr.msk.f32.mxu1 %vm18467_vm1, %v22004_v40 }
 0x26a   : > { %17518 = vmatpush3.bf16.msra.mxu0 %v17517_v55  ;;  %17554 = vmatpush3.bf16.msra.mxu1 %v17553_v56  ;;  %v15057_v56 = vld [vmem:[%s21989_s6 + $0x2] ss:$0 sm:$0xff] }
 0x26b   : > { %17519 = vmatprep.subr.bf16.mxu0 %v18466_v18  ;;  %17555 = vmatprep.subr.bf16.mxu1 %v18466_v18 }
 0x26d   : > { %16675 = vmatmul.mubr.f32.vlgmr.msra.gmra.mrb[10].mxu0 %v18724_v28  ;;  %16741 = vmatmul.mubr.f32.vlgmr.msra.gmra.mrb[10].mxu1 %v18724_v28 }
 0x26e   : > { %17521 = vmatpush3.bf16.msra.mxu0 %v17520_v57  ;;  %17557 = vmatpush3.bf16.msra.mxu1 %v17556_v31  ;;  %v15058_v57 = vld [vmem:[%s21989_s6 + $0x3] ss:$0 sm:$0xff] }
 0x26f   : > { %17522 = vmatprep.subr.bf16.mxu0 %v18466_v18  ;;  %17558 = vmatprep.subr.bf16.mxu1 %v18466_v18 }
 0x270   : > { %v1110_v60 = vpop.f32.mrb[0].mxu0  ;;  %v1595_v61 = vpop.f32.mrb[0].mxu1  ;;  %16685 = vmatprep.mubr.msk.f32.mxu0 %vm18467_vm1, %v22004_v40  ;;  %16751 = vmatprep.mubr.msk.f32.mxu1 %vm18467_vm1, %v22004_v40 }
 0x271   : > { %v16060_v62 = vpop.f32.mrb[1].mxu0  ;;  %v16126_v15 = vpop.f32.mrb[1].mxu1  ;;  %v18059_v7 = vadd.f32 %v15051_v6, %v1110_v60 }
 0x272   : > { %17524 = vmatpush3.bf16.msra.mxu0 %v17523_v58  ;;  %17560 = vmatpush3.bf16.msra.mxu1 %v17559_v59 }
 0x273   : > { %17525 = vmatprep.subr.bf16.mxu0 %v18466_v18  ;;  %17561 = vmatprep.subr.bf16.mxu1 %v18466_v18  ;;  %v6539_v34 = vsel %vm6537_vm4, %v18059_v7, 0 }
 0x274   : > { %v19696_v11 = vand.u32 4294901760, %v6539_v34 }
 0x275   : > { %16686 = vmatmul.mubr.f32.vlgmr.msra.gmra.mrb[10].mxu0 %v18727_v29  ;;  %16752 = vmatmul.mubr.f32.vlgmr.msra.gmra.mrb[10].mxu1 %v18727_v29  ;;  %v17532_v29 = vpack.c.bf16 %v5656_v12, %v5649_v9  ;;  %v15056_v9 = vld [vmem:[%s21989_s6 + $0x1] ss:$0 sm:$0xff] }
 0x276   : > { %17527 = vmatpush3.bf16.msra.mxu0 %v19542_v27  ;;  %17563 = vmatpush3.bf16.msra.mxu1 %v19559_v24  ;;  %v6611_v3 = vsub.f32 %v6539_v34, %v19696_v11 }
 0x277   : > { %17528 = vmatprep.subr.bf16.mxu0 %v18466_v18  ;;  %17564 = vmatprep.subr.bf16.mxu1 %v18466_v18 }
 0x278   : > { %16696 = vmatprep.mubr.msk.f32.mxu0 %vm18467_vm1, %v22004_v40  ;;  %16762 = vmatprep.mubr.msk.f32.mxu1 %vm18467_vm1, %v22004_v40  ;;  %v6612_v20 = vand.u32 4294901760, %v6611_v3 }
 0x27a   : > { %17530 = vmatpush3.bf16.msra.mxu0 %v19566_v41  ;;  %17566 = vmatpush3.bf16.msra.mxu1 %v19568_v42  ;;  %v6613_v4 = vsub.f32 %v6611_v3, %v6612_v20 }
 0x27b   : > { %17531 = vmatprep.subr.bf16.mxu0 %v18466_v18  ;;  %17567 = vmatprep.subr.bf16.mxu1 %v18466_v18 }
 0x27c   : > { %v6614_v39 = vand.u32 4294901760, %v6613_v4 }
 0x27d   : > { %16697 = vmatmul.mubr.f32.vlgmr.msra.gmra.mrb[10].mxu0 %v18730_v30  ;;  %16763 = vmatmul.mubr.f32.vlgmr.msra.gmra.mrb[10].mxu1 %v18730_v30 }
 0x27e   : > { %17533 = vmatpush3.bf16.msra.mxu0 %v17532_v29  ;;  %17569 = vmatpush3.bf16.msra.mxu1 %v17568_v19 }
 0x27f   : > { %17534 = vmatprep.subr.bf16.mxu0 %v18466_v18  ;;  %17570 = vmatprep.subr.bf16.mxu1 %v18466_v18 }
 0x280   : > { %16707 = vmatprep.mubr.msk.f32.mxu0 %vm18467_vm1, %v22004_v40  ;;  %16773 = vmatprep.mubr.msk.f32.mxu1 %vm18467_vm1, %v22004_v40 }
 0x282   : > { %17536 = vmatpush3.bf16.msra.mxu0 %v17535_v0  ;;  %17572 = vmatpush3.bf16.msra.mxu1 %v17571_v1 }
 0x283   : > { %17537 = vmatprep.subr.bf16.mxu0 %v18466_v18  ;;  %17573 = vmatprep.subr.bf16.mxu1 %v18466_v18 }
 0x285   : > { %16708 = vmatmul.mubr.f32.vlgmr.msra.gmra.mrb[10].mxu0 %v18724_v28  ;;  %16774 = vmatmul.mubr.f32.vlgmr.msra.gmra.mrb[10].mxu1 %v18724_v28 }
 0x286   : > { %17539 = vmatpush3.bf16.msra.mxu0 %v19542_v27  ;;  %17575 = vmatpush3.bf16.msra.mxu1 %v19559_v24 }
 0x287   : > { %17540 = vmatprep.subr.bf16.mxu0 %v18466_v18  ;;  %17576 = vmatprep.subr.bf16.mxu1 %v18466_v18 }
 0x288   : > { %16718 = vmatprep.mubr.msk.f32.mxu0 %vm18467_vm1, %v22004_v40  ;;  %16784 = vmatprep.mubr.msk.f32.mxu1 %vm18467_vm1, %v22004_v40 }
 0x28a   : > { %17542 = vmatpush3.bf16.msra.mxu0 %v19566_v41  ;;  %17578 = vmatpush3.bf16.msra.mxu1 %v19568_v42 }
 0x28b   : > { %16787 = vmatprep.subr.mxu0 %v22004_v40  ;;  %16817 = vmatprep.subr.mxu1 %v22004_v40 }
 0x28d   : > { %16719 = vmatmul.mubr.f32.vlgmr.msra.gmra.mrb[10].mxu0 %v18724_v28  ;;  %16785 = vmatmul.mubr.f32.vlgmr.msra.gmra.mrb[10].mxu1 %v18724_v28  ;;  %v15052_v28 = vld [vmem:[%s21987_s4 + $0x1] ss:$0 sm:$0xff] }
 0x28e   : > { %16789 = vmatprep.mubr.msk.f32.mxu0 %vm18467_vm1, %v22004_v40  ;;  %16819 = vmatprep.mubr.msk.f32.mxu1 %vm18467_vm1, %v22004_v40  ;;  %v18060_v10 = vadd.f32 %v15052_v28, %v1595_v61 }
 0x290   : > { %v6991_v38 = vsel %vm6537_vm4, %v18060_v10, 0 }
 0x291   : > { %v19698_v63 = vand.u32 4294901760, %v6991_v38 }
 0x293   : > { %v7063_v13 = vsub.f32 %v6991_v38, %v19698_v63 }
 0x295   : > { %v7064_v12 = vand.u32 4294901760, %v7063_v13 }
 0x297   : > { %v7065_v35 = vsub.f32 %v7063_v13, %v7064_v12 }
 0x299   : > { %v7066_v41 = vand.u32 4294901760, %v7065_v35 }
 0x2a0   : > { %v19684_v18 = vpop.f32.mrb[2].mxu0  ;;  %v19686_v30 = vpop.f32.mrb[2].mxu1 }
 0x2a1   : > { %v16192_v2 = vpop.f32.mrb[3].mxu0  ;;  %v16258_v5 = vpop.f32.mrb[3].mxu1  ;;  %v18061_v48 = vadd.f32 %v15053_v46, %v19684_v18  ;;  %v18062_v49 = vadd.f32 %v15054_v47, %v19686_v30 }
 0x2a3   : > { %v7443_v50 = vsel %vm6537_vm4, %v18061_v48, 0  ;;  %v7895_v51 = vsel %vm6537_vm4, %v18062_v49, 0 }
 0x2a4   : > { %v19748_v52 = vand.u32 4294901760, %v7443_v50  ;;  %v19750_v53 = vand.u32 4294901760, %v7895_v51 }
 0x2a6   : > { %v19755_v54 = vsub.f32 %v7443_v50, %v19748_v52  ;;  %v19758_v55 = vsub.f32 %v7895_v51, %v19750_v53 }
 0x2a8   : > { %v7516_v31 = vand.u32 4294901760, %v19755_v54  ;;  %v7968_v58 = vand.u32 4294901760, %v19758_v55 }
 0x2aa   : > { %v7517_v1 = vsub.f32 %v19755_v54, %v7516_v31  ;;  %v7969_v18 = vsub.f32 %v19758_v55, %v7968_v58 }
 0x2ac   : > { %v7518_v28 = vand.u32 4294901760, %v7517_v1  ;;  %v7970_v7 = vand.u32 4294901760, %v7969_v18 }
 0x2d0   : > { %v3094_v17 = vpop.f32.mrb[4].mxu0  ;;  %v3579_v22 = vpop.f32.mrb[4].mxu1 }
 0x2d1   : > { %v18063_v25 = vadd.f32 %v15055_v8, %v3094_v17  ;;  %v18064_v14 = vadd.f32 %v15056_v9, %v3579_v22  ;;  %v16324_v26 = vpop.f32.mrb[5].mxu0  ;;  %v16390_v27 = vpop.f32.mrb[5].mxu1  ;;  %v15060_v8 = vld [vmem:[%s21991_s8 + $0x1] ss:$0 sm:$0xff] }
 0x2d3   : > { %v6542_v21 = vsel %vm6537_vm4, %v18063_v25, 0  ;;  %v6994_v16 = vsel %vm6537_vm4, %v18064_v14, 0 }
 0x2d4   : > { %v6545_v23 = vand.u32 4294901760, %v6542_v21  ;;  %v6997_v24 = vand.u32 4294901760, %v6994_v16 }
 0x2d6   : > { %v6622_v36 = vsub.f32 %v6542_v21, %v6545_v23  ;;  %v7074_v37 = vsub.f32 %v6994_v16, %v6997_v24  ;;  %16788 = vmatpush3.xpose.msra.mxu0 %v6545_v23  ;;  %16818 = vmatpush3.xpose.msra.mxu1 %v6997_v24 }
 0x2d7   : > { %16792 = vmatprep.subr.mxu0 %v22004_v40  ;;  %16822 = vmatprep.subr.mxu1 %v22004_v40 }
 0x2d8   : > { %v6623_v42 = vand.u32 4294901760, %v6622_v36  ;;  %v7075_v43 = vand.u32 4294901760, %v7074_v37 }
 0x2d9   : > { %16790 = vmatmul.mubr.f32.vlgmr.msra.gmra.mrb[12].mxu0 %v6614_v39  ;;  %16820 = vmatmul.mubr.f32.vlgmr.msra.gmra.mrb[12].mxu1 %v7066_v41 }
 0x2da   : > { %v6624_v32 = vsub.f32 %v6622_v36, %v6623_v42  ;;  %v7076_v33 = vsub.f32 %v7074_v37, %v7075_v43  ;;  %16794 = vmatprep.mubr.msk.f32.mxu0 %vm18467_vm1, %v22004_v40  ;;  %16824 = vmatprep.mubr.msk.f32.mxu1 %vm18467_vm1, %v22004_v40 }
 0x2dc   : > { %v6625_v44 = vand.u32 4294901760, %v6624_v32  ;;  %v7077_v45 = vand.u32 4294901760, %v7076_v33 }
 0x2de   : > { %16793 = vmatpush3.xpose.msra.mxu0 %v6625_v44  ;;  %16823 = vmatpush3.xpose.msra.mxu1 %v7077_v45 }
 0x2df   : > { %16797 = vmatprep.subr.mxu0 %v22004_v40  ;;  %16827 = vmatprep.subr.mxu1 %v22004_v40 }
 0x2e1   : > { %16795 = vmatmul.mubr.f32.vlgmr.msra.gmra.mrb[12].mxu0 %v19696_v11  ;;  %16825 = vmatmul.mubr.f32.vlgmr.msra.gmra.mrb[12].mxu1 %v19698_v63 }
 0x2e2   : > { %16798 = vmatpush3.xpose.msra.mxu0 %v6622_v36  ;;  %16828 = vmatpush3.xpose.msra.mxu1 %v7074_v37 }
 0x2e3   : > { %16799 = vmatprep.mubr.msk.f32.mxu0 %vm18467_vm1, %v22004_v40  ;;  %16802 = vmatprep.subr.mxu0 %v22004_v40 }
 0x2e4   : > { %16829 = vmatprep.mubr.msk.f32.mxu1 %vm18467_vm1, %v22004_v40  ;;  %16832 = vmatprep.subr.mxu1 %v22004_v40 }
 0x2e9   : > { %16800 = vmatmul.mubr.f32.vlgmr.msra.gmra.mrb[12].mxu0 %v6611_v3  ;;  %16830 = vmatmul.mubr.f32.vlgmr.msra.gmra.mrb[12].mxu1 %v7063_v13  ;;  %v15059_v13 = vld [vmem:[%s21991_s8] ss:$0 sm:$0xff] }
 0x2ea   : > { %16803 = vmatpush3.xpose.msra.mxu0 %v6545_v23  ;;  %16833 = vmatpush3.xpose.msra.mxu1 %v6997_v24 }
 0x2eb   : > { %16804 = vmatprep.mubr.msk.f32.mxu0 %vm18467_vm1, %v22004_v40  ;;  %16807 = vmatprep.subr.mxu0 %v22004_v40 }
 0x2ec   : > { %16834 = vmatprep.mubr.msk.f32.mxu1 %vm18467_vm1, %v22004_v40  ;;  %16837 = vmatprep.subr.mxu1 %v22004_v40 }
 0x2f1   : > { %16805 = vmatmul.mubr.f32.vlgmr.msra.gmra.mrb[12].mxu0 %v6612_v20  ;;  %16835 = vmatmul.mubr.f32.vlgmr.msra.gmra.mrb[12].mxu1 %v7064_v12 }
 0x2f2   : > { %16808 = vmatpush3.xpose.msra.mxu0 %v6623_v42  ;;  %16838 = vmatpush3.xpose.msra.mxu1 %v7075_v43 }
 0x2f3   : > { %16809 = vmatprep.mubr.msk.f32.mxu0 %vm18467_vm1, %v22004_v40  ;;  %16812 = vmatprep.subr.mxu0 %v22004_v40 }
 0x2f4   : > { %16839 = vmatprep.mubr.msk.f32.mxu1 %vm18467_vm1, %v22004_v40  ;;  %16842 = vmatprep.subr.mxu1 %v22004_v40 }
 0x2f9   : > { %16810 = vmatmul.mubr.f32.vlgmr.msra.gmra.mrb[12].mxu0 %v19696_v11  ;;  %16840 = vmatmul.mubr.f32.vlgmr.msra.gmra.mrb[12].mxu1 %v19698_v63 }
 0x2fa   : > { %16813 = vmatpush3.xpose.msra.mxu0 %v6545_v23  ;;  %16843 = vmatpush3.xpose.msra.mxu1 %v6997_v24 }
 0x2fb   : > { %16814 = vmatprep.mubr.msk.f32.mxu0 %vm18467_vm1, %v22004_v40  ;;  %16844 = vmatprep.mubr.msk.f32.mxu1 %vm18467_vm1, %v22004_v40 }
 0x2fc   : > { %16847 = vmatprep.subr.mxu0 %v22004_v40  ;;  %16877 = vmatprep.subr.mxu1 %v22004_v40 }
 0x300   : > { %v4064_v59 = vpop.f32.mrb[6].mxu0  ;;  %v4549_v60 = vpop.f32.mrb[6].mxu1 }
 0x301   : > { %v18065_v61 = vadd.f32 %v15057_v56, %v4064_v59  ;;  %v18066_v62 = vadd.f32 %v15058_v57, %v4549_v60  ;;  %v16456_v15 = vpop.f32.mrb[7].mxu0  ;;  %v16522_v29 = vpop.f32.mrb[7].mxu1  ;;  %16815 = vmatmul.mubr.f32.vlgmr.msra.gmra.mrb[12].mxu0 %v19696_v11  ;;  %16845 = vmatmul.mubr.f32.vlgmr.msra.gmra.mrb[12].mxu1 %v19698_v63 }
 0x302   : > { %16849 = vmatprep.mubr.msk.f32.mxu0 %vm18467_vm1, %v22004_v40  ;;  %16879 = vmatprep.mubr.msk.f32.mxu1 %vm18467_vm1, %v22004_v40 }
 0x303   : > { %v7446_v19 = vsel %vm6537_vm4, %v18065_v61, 0  ;;  %v7898_v0 = vsel %vm6537_vm4, %v18066_v62, 0 }
 0x304   : > { %v7449_v30 = vand.u32 4294901760, %v7446_v19  ;;  %v7901_v2 = vand.u32 4294901760, %v7898_v0 }
 0x306   : > { %v7526_v5 = vsub.f32 %v7446_v19, %v7449_v30  ;;  %v7978_v6 = vsub.f32 %v7898_v0, %v7901_v2  ;;  %16848 = vmatpush3.xpose.msra.mxu0 %v7449_v30  ;;  %16878 = vmatpush3.xpose.msra.mxu1 %v7901_v2 }
 0x307   : > { %16852 = vmatprep.subr.mxu0 %v22004_v40  ;;  %16882 = vmatprep.subr.mxu1 %v22004_v40 }
 0x308   : > { %v7527_v10 = vand.u32 4294901760, %v7526_v5  ;;  %v7979_v34 = vand.u32 4294901760, %v7978_v6 }
 0x309   : > { %16850 = vmatmul.mubr.f32.vlgmr.msra.gmra.mrb[14].mxu0 %v7518_v28  ;;  %16880 = vmatmul.mubr.f32.vlgmr.msra.gmra.mrb[14].mxu1 %v7970_v7 }
 0x30a   : > { %v7528_v38 = vsub.f32 %v7526_v5, %v7527_v10  ;;  %v7980_v11 = vsub.f32 %v7978_v6, %v7979_v34  ;;  %16854 = vmatprep.mubr.msk.f32.mxu0 %vm18467_vm1, %v22004_v40  ;;  %16884 = vmatprep.mubr.msk.f32.mxu1 %vm18467_vm1, %v22004_v40 }
 0x30c   : > { %v7529_v63 = vand.u32 4294901760, %v7528_v38  ;;  %v7981_v3 = vand.u32 4294901760, %v7980_v11 }
 0x30e   : > { %16853 = vmatpush3.xpose.msra.mxu0 %v7529_v63  ;;  %16883 = vmatpush3.xpose.msra.mxu1 %v7981_v3 }
 0x30f   : > { %16857 = vmatprep.subr.mxu0 %v22004_v40  ;;  %16887 = vmatprep.subr.mxu1 %v22004_v40 }
 0x311   : > { %16855 = vmatmul.mubr.f32.vlgmr.msra.gmra.mrb[14].mxu0 %v19748_v52  ;;  %16885 = vmatmul.mubr.f32.vlgmr.msra.gmra.mrb[14].mxu1 %v19750_v53 }
 0x312   : > { %16858 = vmatpush3.xpose.msra.mxu0 %v7526_v5  ;;  %16888 = vmatpush3.xpose.msra.mxu1 %v7978_v6 }
 0x313   : > { %16859 = vmatprep.mubr.msk.f32.mxu0 %vm18467_vm1, %v22004_v40  ;;  %16862 = vmatprep.subr.mxu0 %v22004_v40 }
 0x314   : > { %16889 = vmatprep.mubr.msk.f32.mxu1 %vm18467_vm1, %v22004_v40  ;;  %16892 = vmatprep.subr.mxu1 %v22004_v40 }
 0x319   : > { %16860 = vmatmul.mubr.f32.vlgmr.msra.gmra.mrb[14].mxu0 %v19755_v54  ;;  %16890 = vmatmul.mubr.f32.vlgmr.msra.gmra.mrb[14].mxu1 %v19758_v55 }
 0x31a   : > { %16863 = vmatpush3.xpose.msra.mxu0 %v7449_v30  ;;  %16893 = vmatpush3.xpose.msra.mxu1 %v7901_v2 }
 0x31b   : > { %16864 = vmatprep.mubr.msk.f32.mxu0 %vm18467_vm1, %v22004_v40  ;;  %16867 = vmatprep.subr.mxu0 %v22004_v40 }
 0x31c   : > { %16894 = vmatprep.mubr.msk.f32.mxu1 %vm18467_vm1, %v22004_v40  ;;  %16897 = vmatprep.subr.mxu1 %v22004_v40 }
 0x321   : > { %16865 = vmatmul.mubr.f32.vlgmr.msra.gmra.mrb[14].mxu0 %v7516_v31  ;;  %16895 = vmatmul.mubr.f32.vlgmr.msra.gmra.mrb[14].mxu1 %v7968_v58 }
 0x322   : > { %16868 = vmatpush3.xpose.msra.mxu0 %v7527_v10  ;;  %16898 = vmatpush3.xpose.msra.mxu1 %v7979_v34 }
 0x323   : > { %16869 = vmatprep.mubr.msk.f32.mxu0 %vm18467_vm1, %v22004_v40  ;;  %16872 = vmatprep.subr.mxu0 %v22004_v40 }
 0x324   : > { %16899 = vmatprep.mubr.msk.f32.mxu1 %vm18467_vm1, %v22004_v40  ;;  %16902 = vmatprep.subr.mxu1 %v22004_v40 }
 0x329   : > { %16870 = vmatmul.mubr.f32.vlgmr.msra.gmra.mrb[14].mxu0 %v19748_v52  ;;  %16900 = vmatmul.mubr.f32.vlgmr.msra.gmra.mrb[14].mxu1 %v19750_v53 }
 0x32a   : > { %16873 = vmatpush3.xpose.msra.mxu0 %v7449_v30  ;;  %16903 = vmatpush3.xpose.msra.mxu1 %v7901_v2 }
 0x32b   : > { %16874 = vmatprep.mubr.msk.f32.mxu0 %vm18467_vm1, %v22004_v40  ;;  %16904 = vmatprep.mubr.msk.f32.mxu1 %vm18467_vm1, %v22004_v40 }
 0x32c   : > { %16907 = vmatprep.subr.mxu0 %v22004_v40  ;;  %16937 = vmatprep.subr.mxu1 %v22004_v40 }
 0x330   : > { %v5078_v9 = vpop.f32.mrb[8].mxu0  ;;  %v5563_v20 = vpop.f32.mrb[8].mxu1 }
 0x331   : > { %v19828_v12 = vadd.f32 %v15059_v13, %v5078_v9  ;;  %v19830_v17 = vadd.f32 %v15060_v8, %v5563_v20  ;;  %v16588_v22 = vpop.f32.mrb[9].mxu0  ;;  %v16654_v25 = vpop.f32.mrb[9].mxu1  ;;  %16875 = vmatmul.mubr.f32.vlgmr.msra.gmra.mrb[14].mxu0 %v19748_v52  ;;  %16905 = vmatmul.mubr.f32.vlgmr.msra.gmra.mrb[14].mxu1 %v19750_v53 }
 0x332   : > { %16909 = vmatprep.mubr.msk.f32.mxu0 %vm18467_vm1, %v22004_v40  ;;  %16939 = vmatprep.mubr.msk.f32.mxu1 %vm18467_vm1, %v22004_v40 }
 0x333   : > { %v19839_v14 = vand.u32 4294901760, %v19828_v12  ;;  %v19842_v26 = vand.u32 4294901760, %v19830_v17 }
 0x335   : > { %16908 = vmatpush3.msra.mxu0 %v19839_v14  ;;  %16938 = vmatpush3.msra.mxu1 %v19842_v26  ;;  %v8475_v5 = vsub.f32 %v19828_v12, %v19839_v14  ;;  %v8924_v38 = vsub.f32 %v19830_v17, %v19842_v26 }
 0x336   : > { %16912 = vmatprep.subr.mxu0 %v22004_v40  ;;  %16942 = vmatprep.subr.mxu1 %v22004_v40 }
 0x337   : > { %v8476_v34 = vand.u32 4294901760, %v8475_v5  ;;  %v8925_v20 = vand.u32 4294901760, %v8924_v38 }
 0x339   : > { %v8477_v9 = vsub.f32 %v8475_v5, %v8476_v34 }
 0x360   : > { %v19848_v27 = vpop.f32.mrb[10].mxu0  ;;  %v19850_v21 = vpop.f32.mrb[10].mxu1 }
 0x361   : > { %v16720_v16 = vpop.f32.mrb[11].mxu0  ;;  %v16786_v4 = vpop.f32.mrb[11].mxu1 }
 0x362   : > { %v8926_v4 = vsub.f32 %v8924_v38, %v8925_v20 }
 0x3d4   : > { %v6986_v35 = vpop.f32.mrb[12].mxu0  ;;  %v7438_v23 = vpop.f32.mrb[12].mxu1 }
 0x3d5   : > { %v8346_v24 = vmul.f32 0.35355338, %v6986_v35  ;;  %v16816_v36 = vpop.f32.mrb[13].mxu0  ;;  %v16846_v37 = vpop.f32.mrb[13].mxu1  ;;  %v8347_v39 = vmul.f32 0.35355338, %v7438_v23 }
 0x3d6   : > { %v8478_v35 = vand.u32 4294901760, %v8477_v9  ;;  %v15062_v37 = vld [vmem:[%s21991_s8 + $0x3] ss:$0 sm:$0xff] }
 0x3d7   : > { %v8350_v41 = vsel %vm6537_vm4, %v8346_v24, -inf  ;;  %v8353_v42 = vsel %vm6537_vm4, %v8347_v39, -inf }
 0x3d8   : > { %8351 = vmax.xlane.f32.xlu1 %v8350_v41  ;;  %v15061_v41 = vld [vmem:[%s21991_s8 + $0x2] ss:$0 sm:$0xff] }
 0x3dc   : > { %8354 = vmax.xlane.f32.xlu1 %v8353_v42  ;;  %v18070_v42 = vadd.f32 %v15062_v37, %v19850_v21 }
 0x404   : > { %v7890_v43 = vpop.f32.mrb[14].mxu0  ;;  %v8342_v32 = vpop.f32.mrb[14].mxu1 }
 0x405   : > { %v8348_v33 = vmul.f32 0.35355338, %v7890_v43  ;;  %v8349_v44 = vmul.f32 0.35355338, %v8342_v32  ;;  %v16876_v45 = vpop.f32.mrb[15].mxu0  ;;  %v16906_v46 = vpop.f32.mrb[15].mxu1  ;;  %v18069_v43 = vadd.f32 %v15061_v41, %v19848_v27 }
 0x406   : > { %v19914_v32 = vand.u32 4294901760, %v18070_v42 }
 0x407   : > { %v8359_v47 = vsel %vm6537_vm4, %v8349_v44, -inf  ;;  %v8356_v48 = vsel %vm6537_vm4, %v8348_v33, -inf }
 0x408   : > { %8360 = vmax.xlane.f32.xlu1 %v8359_v47  ;;  %8357 = vmax.xlane.f32.xlu0 %v8356_v48 }
 0x465   : > { %v8352_v49 = vpop.xlane.xlu1 %8351 }
 0x466   : > { %v8362_v50 = vsub.f32 %v8346_v24, %v8352_v49  ;;  %v8927_v24 = vand.u32 4294901760, %v8926_v4 }
 0x468   : > { %v8366_v51 = vmul.f32 1.442695, %v8362_v50 }
 0x469   : > { %v8355_v52 = vpop.xlane.xlu1 %8354 }
 0x46a   : > { %18381 = vpow2.f32 %v8366_v51  ;;  %v8363_v53 = vsub.f32 %v8347_v39, %v8355_v52 }
 0x46c   : > { %v8368_v54 = vmul.f32 1.442695, %v8363_v53 }
 0x46e   : > { %18383 = vpow2.f32 %v8368_v54 }
 0x474   : > { %v18382_v55 = vpop.eup %18381 }
 0x475   : > { %v8374_v56 = vsel %vm6537_vm4, %v18382_v55, 0.0 }
 0x476   : > { %8375 = vadd.xlane.f32.xlu0 %v8374_v56 }
 0x478   : > { %v18384_v57 = vpop.eup %18383 }
 0x479   : > { %v8377_v31 = vsel %vm6537_vm4, %v18384_v57, 0.0 }
 0x47a   : > { %8378 = vadd.xlane.f32.xlu1 %v8377_v31 }
 0x495   : > { %v8361_v58 = vpop.xlane.xlu1 %8360  ;;  %v8358_v59 = vpop.xlane.xlu0 %8357 }
 0x496   : > { %v8365_v60 = vsub.f32 %v8349_v44, %v8361_v58  ;;  %v8364_v61 = vsub.f32 %v8348_v33, %v8358_v59  ;;  %v19916_v33 = vand.u32 4294901760, %v18069_v43  ;;  %v9822_v44 = vsub.f32 %v18070_v42, %v19914_v32 }
 0x498   : > { %v8372_v62 = vmul.f32 1.442695, %v8365_v60  ;;  %v8370_v15 = vmul.f32 1.442695, %v8364_v61  ;;  %v9373_v46 = vsub.f32 %v18069_v43, %v19916_v33  ;;  %v9823_v50 = vand.u32 4294901760, %v9822_v44 }
 0x49a   : > { %18385 = vpow2.f32 %v8372_v62  ;;  %v9374_v52 = vand.u32 4294901760, %v9373_v46 }
 0x49b   : > { %18387 = vpow2.f32 %v8370_v15  ;;  %v10190_v15 = vld [vmem:[%s21992_s9] sm:$0xff] }
 0x4a4   : > { %v19858_v29 = vpop.eup %18385 }
 0x4a5   : > { %v19860_v19 = vpop.eup %18387  ;;  %v8383_v0 = vsel %vm6537_vm4, %v19858_v29, 0.0 }
 0x4a6   : > { %8384 = vadd.xlane.f32.xlu1 %v8383_v0  ;;  %v8380_v1 = vsel %vm6537_vm4, %v19860_v19, 0.0 }
 0x4a7   : > { %8381 = vadd.xlane.f32.xlu0 %v8380_v1 }
 0x503   : > { %v8376_v18 = vpop.xlane.xlu0 %8375 }
 0x504   : > { %18389 = vrcp.f32 %v8376_v18 }
 0x507   : > { %v8379_v30 = vpop.xlane.xlu1 %8378 }
 0x508   : > { %18391 = vrcp.f32 %v8379_v30 }
 0x50e   : > { %v18390_v2 = vpop.eup %18389 }
 0x50f   : > { %v8390_v6 = vmul.f32 %v18390_v2, %v18382_v55  ;;  %v9824_v55 = vsub.f32 %v9822_v44, %v9823_v50 }
 0x511   : > { %v8395_v28 = vsel %vm6537_vm4, %v8390_v6, 0  ;;  %v9825_v61 = vand.u32 4294901760, %v9824_v55 }
 0x512   : > { %v18392_v7 = vpop.eup %18391  ;;  %v19869_v10 = vand.u32 4294901760, %v8395_v28 }
 0x513   : > { %v8391_v11 = vmul.f32 %v18392_v7, %v18384_v57  ;;  %v9375_v57 = vsub.f32 %v9373_v46, %v9374_v52 }
 0x514   : > { %v8464_v63 = vsub.f32 %v8395_v28, %v19869_v10 }
 0x515   : > { %v8844_v3 = vsel %vm6537_vm4, %v8391_v11, 0  ;;  %v9376_v62 = vand.u32 4294901760, %v9375_v57 }
 0x516   : > { %v8465_v13 = vand.u32 4294901760, %v8464_v63  ;;  %v19875_v8 = vand.u32 4294901760, %v8844_v3 }
 0x518   : > { %v8466_v12 = vsub.f32 %v8464_v63, %v8465_v13  ;;  %v8913_v22 = vsub.f32 %v8844_v3, %v19875_v8 }
 0x51a   : > { %v8467_v25 = vand.u32 4294901760, %v8466_v12  ;;  %v8914_v16 = vand.u32 4294901760, %v8913_v22 }
 0x51c   : > { %16910 = vmatmul.mubr.f32.vlgmr.msra.gmra.mrb[16].mxu0 %v8467_v25  ;;  %v8915_v23 = vsub.f32 %v8913_v22, %v8914_v16 }
 0x51d   : > { %16913 = vmatpush3.msra.mxu0 %v8478_v35  ;;  %16914 = vmatprep.mubr.msk.f32.mxu0 %vm18467_vm1, %v22004_v40 }
 0x51e   : > { %v8916_v17 = vand.u32 4294901760, %v8915_v23  ;;  %16917 = vmatprep.subr.mxu0 %v22004_v40  ;;  %v10193_v23 = vld [vmem:[%s21992_s9 + $0x18] sm:$0xff] }
 0x520   : > { %16940 = vmatmul.mubr.f32.vlgmr.msra.gmra.mrb[16].mxu1 %v8916_v17  ;;  %v10192_v17 = vld [vmem:[%s21992_s9 + $0x10] sm:$0xff] }
 0x521   : > { %16943 = vmatpush3.msra.mxu1 %v8927_v24  ;;  %16944 = vmatprep.mubr.msk.f32.mxu1 %vm18467_vm1, %v22004_v40  ;;  %v20045_v24 = vand.u32 4294901760, %v10193_v23 }
 0x522   : > { %16947 = vmatprep.subr.mxu1 %v22004_v40 }
 0x523   : > { %v20055_v37 = vsub.f32 %v10193_v23, %v20045_v24 }
 0x524   : > { %16915 = vmatmul.mubr.f32.vlgmr.msra.gmra.mrb[16].mxu0 %v19869_v10 }
 0x525   : > { %16918 = vmatpush3.msra.mxu0 %v8475_v5  ;;  %16919 = vmatprep.mubr.msk.f32.mxu0 %vm18467_vm1, %v22004_v40 }
 0x526   : > { %16922 = vmatprep.subr.mxu0 %v22004_v40 }
 0x528   : > { %16945 = vmatmul.mubr.f32.vlgmr.msra.gmra.mrb[16].mxu1 %v19875_v8 }
 0x529   : > { %16948 = vmatpush3.msra.mxu1 %v8924_v38  ;;  %16949 = vmatprep.mubr.msk.f32.mxu1 %vm18467_vm1, %v22004_v40 }
 0x52a   : > { %16952 = vmatprep.subr.mxu1 %v22004_v40 }
 0x52c   : > { %16920 = vmatmul.mubr.f32.vlgmr.msra.gmra.mrb[16].mxu0 %v8464_v63 }
 0x52d   : > { %16923 = vmatpush3.msra.mxu0 %v19839_v14  ;;  %16924 = vmatprep.mubr.msk.f32.mxu0 %vm18467_vm1, %v22004_v40 }
 0x52e   : > { %16927 = vmatprep.subr.mxu0 %v22004_v40 }
 0x530   : > { %16950 = vmatmul.mubr.f32.vlgmr.msra.gmra.mrb[16].mxu1 %v8913_v22 }
 0x531   : > { %16953 = vmatpush3.msra.mxu1 %v19842_v26  ;;  %16954 = vmatprep.mubr.msk.f32.mxu1 %vm18467_vm1, %v22004_v40 }
 0x532   : > { %16957 = vmatprep.subr.mxu1 %v22004_v40 }
 0x533   : > { %v8385_v36 = vpop.xlane.xlu1 %8384 }
 0x534   : > { %18393 = vrcp.f32 %v8385_v36  ;;  %v8382_v39 = vpop.xlane.xlu0 %8381  ;;  %16925 = vmatmul.mubr.f32.vlgmr.msra.gmra.mrb[16].mxu0 %v8465_v13  ;;  %v20048_v36 = vand.u32 4294901760, %v10192_v17 }
 0x535   : > { %18395 = vrcp.f32 %v8382_v39  ;;  %16928 = vmatpush3.msra.mxu0 %v8476_v34  ;;  %16929 = vmatprep.mubr.msk.f32.mxu0 %vm18467_vm1, %v22004_v40 }
 0x536   : > { %16932 = vmatprep.subr.mxu0 %v22004_v40  ;;  %v11173_v39 = vsub.f32 %v10192_v17, %v20048_v36 }
 0x538   : > { %16955 = vmatmul.mubr.f32.vlgmr.msra.gmra.mrb[16].mxu1 %v8914_v16 }
 0x539   : > { %16958 = vmatpush3.msra.mxu1 %v8925_v20  ;;  %16959 = vmatprep.mubr.msk.f32.mxu1 %vm18467_vm1, %v22004_v40 }
 0x53a   : > { %16962 = vmatprep.subr.mxu1 %v22004_v40 }
 0x53c   : > { %16930 = vmatmul.mubr.f32.vlgmr.msra.gmra.mrb[16].mxu0 %v19869_v10 }
 0x53d   : > { %16933 = vmatpush3.msra.mxu0 %v19839_v14  ;;  %16934 = vmatprep.mubr.msk.f32.mxu0 %vm18467_vm1, %v22004_v40 }
 0x53e   : > { %v18394_v21 = vpop.eup %18393  ;;  %16967 = vmatprep.subr.mxu0 %v22004_v40 }
 0x53f   : > { %v18396_v27 = vpop.eup %18395  ;;  %v8393_v45 = vmul.f32 %v18394_v21, %v19858_v29  ;;  %v19991_v29 = vand.u32 4294901760, %v10190_v15 }
 0x540   : > { %v8392_v47 = vmul.f32 %v18396_v27, %v19860_v19  ;;  %16960 = vmatmul.mubr.f32.vlgmr.msra.gmra.mrb[16].mxu1 %v19875_v8  ;;  %v10191_v19 = vld [vmem:[%s21992_s9 + $0x8] sm:$0xff] }
 0x541   : > { %16963 = vmatpush3.msra.mxu1 %v19842_v26  ;;  %16964 = vmatprep.mubr.msk.f32.mxu1 %vm18467_vm1, %v22004_v40  ;;  %v9742_v14 = vsel %vm6537_vm4, %v8393_v45, 0  ;;  %v19998_v0 = vand.u32 4294901760, %v10191_v19  ;;  %v10275_v1 = vsub.f32 %v10190_v15, %v19991_v29  ;;  %v11174_v45 = vand.u32 4294901760, %v11173_v39 }
 0x542   : > { %16997 = vmatprep.subr.mxu1 %v22004_v40  ;;  %v9293_v48 = vsel %vm6537_vm4, %v8392_v47, 0  ;;  %v19934_v49 = vand.u32 4294901760, %v9742_v14 }
 0x543   : > { %v9361_v51 = vand.u32 4294901760, %v9293_v48  ;;  %v10724_v5 = vsub.f32 %v10191_v19, %v19998_v0  ;;  %v10276_v6 = vand.u32 4294901760, %v10275_v1 }
 0x544   : > { %16935 = vmatmul.mubr.f32.vlgmr.msra.gmra.mrb[16].mxu0 %v19869_v10  ;;  %v9811_v53 = vsub.f32 %v9742_v14, %v19934_v49 }
 0x545   : > { %16968 = vmatpush3.msra.mxu0 %v19916_v33  ;;  %16969 = vmatprep.mubr.msk.f32.mxu0 %vm18467_vm1, %v22004_v40  ;;  %v9362_v26 = vsub.f32 %v9293_v48, %v9361_v51  ;;  %v10277_v11 = vsub.f32 %v10275_v1, %v10276_v6  ;;  %v10725_v63 = vand.u32 4294901760, %v10724_v5 }
 0x546   : > { %16972 = vmatprep.subr.mxu0 %v22004_v40  ;;  %v9812_v54 = vand.u32 4294901760, %v9811_v53 }
 0x547   : > { %v9363_v56 = vand.u32 4294901760, %v9362_v26  ;;  %v10278_v20 = vand.u32 4294901760, %v10277_v11  ;;  %v10726_v12 = vsub.f32 %v10724_v5, %v10725_v63 }
 0x548   : > { %16965 = vmatmul.mubr.f32.vlgmr.msra.gmra.mrb[16].mxu1 %v19875_v8  ;;  %v9813_v31 = vsub.f32 %v9811_v53, %v9812_v54 }
 0x549   : > { %16998 = vmatpush3.msra.mxu1 %v19914_v32  ;;  %16999 = vmatprep.mubr.msk.f32.mxu1 %vm18467_vm1, %v22004_v40  ;;  %v9364_v58 = vsub.f32 %v9362_v26, %v9363_v56  ;;  %v10727_v4 = vand.u32 4294901760, %v10726_v12 }
 0x54a   : > { %17002 = vmatprep.subr.mxu1 %v22004_v40  ;;  %v9814_v59 = vand.u32 4294901760, %v9813_v31 }
 0x54b   : > { %v9365_v60 = vand.u32 4294901760, %v9364_v58 }
 0x54c   : > { %17000 = vmatmul.mubr.f32.vlgmr.msra.gmra.mrb[18].mxu1 %v9814_v59 }
 0x54d   : > { %16970 = vmatmul.mubr.f32.vlgmr.msra.gmra.mrb[18].mxu0 %v9365_v60  ;;  %17003 = vmatpush3.msra.mxu1 %v9825_v61 }
 0x54e   : > { %16973 = vmatpush3.msra.mxu0 %v9376_v62  ;;  %16974 = vmatprep.mubr.msk.f32.mxu0 %vm18467_vm1, %v22004_v40 }
 0x54f   : > { %16977 = vmatprep.subr.mxu0 %v22004_v40  ;;  %17004 = vmatprep.mubr.msk.f32.mxu1 %vm18467_vm1, %v22004_v40 }
 0x550   : > { %17007 = vmatprep.subr.mxu1 %v22004_v40 }
 0x554   : > { %17005 = vmatmul.mubr.f32.vlgmr.msra.gmra.mrb[18].mxu1 %v19934_v49 }
 0x555   : > { %16975 = vmatmul.mubr.f32.vlgmr.msra.gmra.mrb[18].mxu0 %v9361_v51  ;;  %17008 = vmatpush3.msra.mxu1 %v9822_v44 }
 0x556   : > { %16978 = vmatpush3.msra.mxu0 %v9373_v46  ;;  %16979 = vmatprep.mubr.msk.f32.mxu0 %vm18467_vm1, %v22004_v40 }
 0x557   : > { %16982 = vmatprep.subr.mxu0 %v22004_v40  ;;  %17009 = vmatprep.mubr.msk.f32.mxu1 %vm18467_vm1, %v22004_v40 }
 0x558   : > { %17012 = vmatprep.subr.mxu1 %v22004_v40 }
 0x55c   : > { %17010 = vmatmul.mubr.f32.vlgmr.msra.gmra.mrb[18].mxu1 %v9811_v53 }
 0x55d   : > { %16980 = vmatmul.mubr.f32.vlgmr.msra.gmra.mrb[18].mxu0 %v9362_v26  ;;  %17013 = vmatpush3.msra.mxu1 %v19914_v32 }
 0x55e   : > { %16983 = vmatpush3.msra.mxu0 %v19916_v33  ;;  %16984 = vmatprep.mubr.msk.f32.mxu0 %vm18467_vm1, %v22004_v40 }
 0x55f   : > { %16987 = vmatprep.subr.mxu0 %v22004_v40  ;;  %17014 = vmatprep.mubr.msk.f32.mxu1 %vm18467_vm1, %v22004_v40 }
 0x560   : > { %17017 = vmatprep.subr.mxu1 %v22004_v40 }
 0x564   : > { %17015 = vmatmul.mubr.f32.vlgmr.msra.gmra.mrb[18].mxu1 %v9812_v54 }
 0x565   : > { %16985 = vmatmul.mubr.f32.vlgmr.msra.gmra.mrb[18].mxu0 %v9363_v56  ;;  %17018 = vmatpush3.msra.mxu1 %v9823_v50  ;;  %v11175_v50 = vsub.f32 %v11173_v39, %v11174_v45 }
 0x566   : > { %16988 = vmatpush3.msra.mxu0 %v9374_v52  ;;  %16989 = vmatprep.mubr.msk.f32.mxu0 %vm18467_vm1, %v22004_v40 }
 0x567   : > { %16992 = vmatprep.subr.mxu0 %v22004_v40  ;;  %17019 = vmatprep.mubr.msk.f32.mxu1 %vm18467_vm1, %v22004_v40  ;;  %v11176_v55 = vand.u32 4294901760, %v11175_v50  ;;  %v12054_v50 = vld [vmem:[%s21996_s13 + $0x60] sm:$0xff] }
 0x568   : > { %17022 = vmatprep.subr.mxu1 %v22004_v40 }
 0x56c   : > { %17020 = vmatmul.mubr.f32.vlgmr.msra.gmra.mrb[18].mxu1 %v19934_v49 }
 0x56d   : > { %16990 = vmatmul.mubr.f32.vlgmr.msra.gmra.mrb[18].mxu0 %v9361_v51  ;;  %17023 = vmatpush3.msra.mxu1 %v19914_v32 }
 0x56e   : > { %16993 = vmatpush3.msra.mxu0 %v19916_v33  ;;  %16994 = vmatprep.mubr.msk.f32.mxu0 %vm18467_vm1, %v22004_v40  ;;  %v11623_v33 = vand.u32 4294901760, %v20055_v37 }
 0x56f   : > { %17024 = vmatprep.mubr.msk.f32.mxu1 %vm18467_vm1, %v22004_v40  ;;  %17027 = vmatprep.subr.mxu0 %v22004_v40 }
 0x570   : > { %17057 = vmatprep.subr.mxu1 %v22004_v40  ;;  %v11624_v48 = vsub.f32 %v20055_v37, %v11623_v33 }
 0x572   : > { %v11625_v26 = vand.u32 4294901760, %v11624_v48 }
 0x574   : > { %17025 = vmatmul.mubr.f32.vlgmr.msra.gmra.mrb[18].mxu1 %v19934_v49 }
 0x575   : > { %16995 = vmatmul.mubr.f32.vlgmr.msra.gmra.mrb[18].mxu0 %v9361_v51  ;;  %17059 = vmatprep.mubr.msk.f32.mxu1 %vm18467_vm1, %v22004_v40 }
 0x576   : > { %17029 = vmatprep.mubr.msk.f32.mxu0 %vm18467_vm1, %v22004_v40  ;;  %17028 = vmatpush3.msra.mxu0 %v19991_v29 }
 0x577   : > { %17032 = vmatprep.subr.mxu0 %v22004_v40  ;;  %17058 = vmatpush3.msra.mxu1 %v19998_v0 }
 0x578   : > { %17062 = vmatprep.subr.mxu1 %v22004_v40 }
 0x617   : > { %v8839_v18 = vpop.f32.mrb[16].mxu0 }
 0x618   : > { %v10195_v30 = vsel %vm6537_vm4, %v8839_v18, 0  ;;  %v16936_v2 = vpop.f32.mrb[17].mxu0 }
 0x619   : > { %v20005_v28 = vand.u32 4294901760, %v10195_v30  ;;  %v15063_v2 = vld [vmem:[%s21993_s10] ss:$0 sm:$0xff] }
 0x61b   : > { %v10264_v7 = vsub.f32 %v10195_v30, %v20005_v28  ;;  %v9288_v10 = vpop.f32.mrb[16].mxu1 }
 0x61c   : > { %v10644_v34 = vsel %vm6537_vm4, %v9288_v10, 0  ;;  %v16966_v38 = vpop.f32.mrb[17].mxu1 }
 0x61d   : > { %v10265_v3 = vand.u32 4294901760, %v10264_v7  ;;  %v20009_v13 = vand.u32 4294901760, %v10644_v34 }
 0x61f   : > { %v10266_v8 = vsub.f32 %v10264_v7, %v10265_v3  ;;  %v10713_v9 = vsub.f32 %v10644_v34, %v20009_v13 }
 0x621   : > { %v10267_v22 = vand.u32 4294901760, %v10266_v8  ;;  %v10714_v25 = vand.u32 4294901760, %v10713_v9  ;;  %v12047_v8 = vld [vmem:[%s21996_s13 + $0x28] sm:$0xff] }
 0x622   : > { %v12087_v12 = vand.u32 4294901760, %v12047_v8 }
 0x623   : > { %v10715_v16 = vsub.f32 %v10713_v9, %v10714_v25  ;;  %17030 = vmatmul.mubr.f32.vlgmr.msra.gmra.mrb[20].mxu0 %v10267_v22  ;;  %v12049_v22 = vld [vmem:[%s21996_s13 + $0x38] sm:$0xff] }
 0x624   : > { %17033 = vmatpush3.msra.mxu0 %v10278_v20  ;;  %17034 = vmatprep.mubr.msk.f32.mxu0 %vm18467_vm1, %v22004_v40 }
 0x625   : > { %v10716_v35 = vand.u32 4294901760, %v10715_v16  ;;  %17037 = vmatprep.subr.mxu0 %v22004_v40  ;;  %v12042_v16 = vld [vmem:[%s21996_s13] sm:$0xff] }
 0x626   : > { %v12085_v23 = vand.u32 4294901760, %v12042_v16 }
 0x627   : > { %17060 = vmatmul.mubr.f32.vlgmr.msra.gmra.mrb[20].mxu1 %v10716_v35  ;;  %v12630_v35 = vand.u32 4294901760, %v12049_v22 }
 0x628   : > { %17063 = vmatpush3.msra.mxu1 %v10727_v4  ;;  %17064 = vmatprep.mubr.msk.f32.mxu1 %vm18467_vm1, %v22004_v40  ;;  %v12046_v4 = vld [vmem:[%s21996_s13 + $0x20] sm:$0xff] }
 0x629   : > { %17067 = vmatprep.subr.mxu1 %v22004_v40  ;;  %v12089_v17 = vand.u32 4294901760, %v12046_v4 }
 0x62b   : > { %17035 = vmatmul.mubr.f32.vlgmr.msra.gmra.mrb[20].mxu0 %v20005_v28 }
 0x62c   : > { %17038 = vmatpush3.msra.mxu0 %v10275_v1  ;;  %17039 = vmatprep.mubr.msk.f32.mxu0 %vm18467_vm1, %v22004_v40 }
 0x62d   : > { %17042 = vmatprep.subr.mxu0 %v22004_v40 }
 0x62f   : > { %17065 = vmatmul.mubr.f32.vlgmr.msra.gmra.mrb[20].mxu1 %v20009_v13 }
 0x630   : > { %17068 = vmatpush3.msra.mxu1 %v10724_v5  ;;  %17069 = vmatprep.mubr.msk.f32.mxu1 %vm18467_vm1, %v22004_v40 }
 0x631   : > { %17072 = vmatprep.subr.mxu1 %v22004_v40 }
 0x633   : > { %17040 = vmatmul.mubr.f32.vlgmr.msra.gmra.mrb[20].mxu0 %v10264_v7 }
 0x634   : > { %17043 = vmatpush3.msra.mxu0 %v19991_v29  ;;  %17044 = vmatprep.mubr.msk.f32.mxu0 %vm18467_vm1, %v22004_v40 }
 0x635   : > { %17047 = vmatprep.subr.mxu0 %v22004_v40 }
 0x637   : > { %17070 = vmatmul.mubr.f32.vlgmr.msra.gmra.mrb[20].mxu1 %v10713_v9  ;;  %v12045_v9 = vld [vmem:[%s21996_s13 + $0x18] sm:$0xff] }
 0x638   : > { %17073 = vmatpush3.msra.mxu1 %v19998_v0  ;;  %17074 = vmatprep.mubr.msk.f32.mxu1 %vm18467_vm1, %v22004_v40 }
 0x639   : > { %17077 = vmatprep.subr.mxu1 %v22004_v40 }
 0x63b   : > { %17045 = vmatmul.mubr.f32.vlgmr.msra.gmra.mrb[20].mxu0 %v10265_v3 }
 0x63c   : > { %17048 = vmatpush3.msra.mxu0 %v10276_v6  ;;  %17049 = vmatprep.mubr.msk.f32.mxu0 %vm18467_vm1, %v22004_v40 }
 0x63d   : > { %17052 = vmatprep.subr.mxu0 %v22004_v40 }
 0x63f   : > { %17075 = vmatmul.mubr.f32.vlgmr.msra.gmra.mrb[20].mxu1 %v10714_v25  ;;  %v12626_v25 = vand.u32 4294901760, %v12045_v9 }
 0x640   : > { %17078 = vmatpush3.msra.mxu1 %v10725_v63  ;;  %17079 = vmatprep.mubr.msk.f32.mxu1 %vm18467_vm1, %v22004_v40 }
 0x641   : > { %17082 = vmatprep.subr.mxu1 %v22004_v40 }
 0x643   : > { %17050 = vmatmul.mubr.f32.vlgmr.msra.gmra.mrb[20].mxu0 %v20005_v28 }
 0x644   : > { %17053 = vmatpush3.msra.mxu0 %v19991_v29  ;;  %17054 = vmatprep.mubr.msk.f32.mxu0 %vm18467_vm1, %v22004_v40 }
 0x645   : > { %17087 = vmatprep.subr.mxu0 %v22004_v40 }
 0x647   : > { %v10186_v41 = vpop.f32.mrb[18].mxu1  ;;  %17080 = vmatmul.mubr.f32.vlgmr.msra.gmra.mrb[20].mxu1 %v20009_v13 }
 0x648   : > { %v9737_v42 = vpop.f32.mrb[18].mxu0  ;;  %v11542_v43 = vsel %vm6537_vm4, %v10186_v41, 0  ;;  %v17026_v32 = vpop.f32.mrb[19].mxu1  ;;  %17083 = vmatpush3.msra.mxu1 %v19998_v0  ;;  %17084 = vmatprep.mubr.msk.f32.mxu1 %vm18467_vm1, %v22004_v40  ;;  %v12055_v41 = vld [vmem:[%s21996_s13 + $0x68] sm:$0xff] }
 0x649   : > { %v11093_v21 = vsel %vm6537_vm4, %v9737_v42, 0  ;;  %v20066_v27 = vand.u32 4294901760, %v11542_v43  ;;  %v16996_v44 = vpop.f32.mrb[19].mxu0  ;;  %17117 = vmatprep.subr.mxu1 %v22004_v40  ;;  %v12053_v42 = vld [vmem:[%s21996_s13 + $0x58] sm:$0xff]  ;;  %v20175_v32 = vpack.c.bf16 %v12630_v35, %v12626_v25 }
 0x64a   : > { %v11161_v46 = vand.u32 4294901760, %v11093_v21  ;;  %v20185_v44 = vsub.f32 %v12046_v4, %v12089_v17  ;;  %v12634_v48 = vand.u32 4294901760, %v12053_v42 }
 0x64b   : > { %v11611_v47 = vsub.f32 %v11542_v43, %v20066_v27  ;;  %17055 = vmatmul.mubr.f32.vlgmr.msra.gmra.mrb[20].mxu0 %v20005_v28  ;;  %v18401_v28 = vld [vmem:[%s18613_s18] sm:$0xff]  ;;  %v12057_v43 = vld [vmem:[%s21996_s13 + $0x78] sm:$0xff]  ;;  %s14984_s18 = sshll.u32 %s539_s26, 4  ;;  %s21942_s18 = int_to_ptr.vmem [resolvable:$true] %s14984_s18 }
 0x64c   : > { %v11162_v14 = vsub.f32 %v11093_v21, %v11161_v46  ;;  %17088 = vmatpush3.msra.mxu0 %v20048_v36  ;;  %17089 = vmatprep.mubr.msk.f32.mxu0 %vm18467_vm1, %v22004_v40  ;;  %v20179_v21 = vsub.f32 %v12042_v16, %v12085_v23  ;;  %v12187_v16 = vand.u32 4294901760, %v20185_v44  ;;  %s18402_s23 = scalar_lea.vmem %s21942_s18, 128  ;;  %p18409_p0 = scmp.lt.s32.totalorder %s21942_s18, %s18407_s29 }
 0x64d   : > { %v11612_v49 = vand.u32 4294901760, %v11611_v47  ;;  %17092 = vmatprep.subr.mxu0 %v22004_v40  ;;  %p18403_p11 = scmp.ne.s32.totalorder %s21942_s18, %s18402_s23  ;;  %p18410_p1 = scmp.lt.s32.totalorder %s18408_s3, %s18402_s23 }
 0x64e   : > { %v11163_v51 = vand.u32 4294901760, %v11162_v14  ;;  %v12188_v4 = vsub.f32 %v20185_v44, %v12187_v16 }
 0x64f   : > { %v11613_v52 = vsub.f32 %v11611_v47, %v11612_v49  ;;  %17085 = vmatmul.mubr.f32.vlgmr.msra.gmra.mrb[20].mxu1 %v20009_v13  ;;  %v12043_v13 = vld [vmem:[%s21996_s13 + $0x8] sm:$0xff]  ;;  %p18404_p12 = pnand %p18403_p11, %p18598_p5  ;;  %p18411_p2 = por %p18410_p1, %p18409_p0 }
 0x650   : > { %v11164_v53 = vsub.f32 %v11162_v14, %v11163_v51  ;;  %17118 = vmatpush3.msra.mxu1 %v20045_v24  ;;  %17119 = vmatprep.mubr.msk.f32.mxu1 %vm18467_vm1, %v22004_v40  ;;  %v12083_v20 = vand.u32 4294901760, %v12043_v13 }
 0x651   : > { %v11614_v54 = vand.u32 4294901760, %v11613_v52  ;;  %17122 = vmatprep.subr.mxu1 %v22004_v40  ;;  %v12052_v52 = vld [vmem:[%s21996_s13 + $0x50] sm:$0xff]  ;;  %p18405_p13 = pneg %p18404_p12 }
 0x652   : > { %v11165_v56 = vand.u32 4294901760, %v11164_v53 }
 0x653   : > { %17120 = vmatmul.mubr.f32.vlgmr.msra.gmra.mrb[22].mxu1 %v11614_v54  ;;  %p18412_p3 = pnand %p18411_p2, %p18405_p13 }
 0x654   : > { %17090 = vmatmul.mubr.f32.vlgmr.msra.gmra.mrb[22].mxu0 %v11165_v56  ;;  %17123 = vmatpush3.msra.mxu1 %v11625_v26  ;;  %v12056_v56 = vld [vmem:[%s21996_s13 + $0x70] sm:$0xff] }
 0x655   : > { %17093 = vmatpush3.msra.mxu0 %v11176_v55  ;;  %17094 = vmatprep.mubr.msk.f32.mxu0 %vm18467_vm1, %v22004_v40 }
 0x656   : > { %17124 = vmatprep.mubr.msk.f32.mxu1 %vm18467_vm1, %v22004_v40  ;;  %17097 = vmatprep.subr.mxu0 %v22004_v40 }
 0x657   : > { %17127 = vmatprep.subr.mxu1 %v22004_v40 }
 0x65b   : > { %17125 = vmatmul.mubr.f32.vlgmr.msra.gmra.mrb[22].mxu1 %v20066_v27 }
 0x65c   : > { %17095 = vmatmul.mubr.f32.vlgmr.msra.gmra.mrb[22].mxu0 %v11161_v46  ;;  %17128 = vmatpush3.msra.mxu1 %v20055_v37  ;;  %v12051_v37 = vld [vmem:[%s21996_s13 + $0x48] sm:$0xff] }
 0x65d   : > { %17098 = vmatpush3.msra.mxu0 %v11173_v39  ;;  %17099 = vmatprep.mubr.msk.f32.mxu0 %vm18467_vm1, %v22004_v40  ;;  %v20164_v39 = vpack.c.bf16 %v12087_v12, %v12083_v20 }
 0x65e   : > { %17129 = vmatprep.mubr.msk.f32.mxu1 %vm18467_vm1, %v22004_v40  ;;  %17102 = vmatprep.subr.mxu0 %v22004_v40 }
 0x65f   : > { %17132 = vmatprep.subr.mxu1 %v22004_v40 }
 0x663   : > { %17130 = vmatmul.mubr.f32.vlgmr.msra.gmra.mrb[22].mxu1 %v11611_v47  ;;  %v12091_v47 = vand.u32 4294901760, %v12051_v37 }
 0x664   : > { %17100 = vmatmul.mubr.f32.vlgmr.msra.gmra.mrb[22].mxu0 %v11162_v14  ;;  %17133 = vmatpush3.msra.mxu1 %v20045_v24  ;;  %v12095_v14 = vand.u32 4294901760, %v12055_v41 }
 0x665   : > { %17103 = vmatpush3.msra.mxu0 %v20048_v36  ;;  %17104 = vmatprep.mubr.msk.f32.mxu0 %vm18467_vm1, %v22004_v40  ;;  %v20201_v55 = vsub.f32 %v12051_v37, %v12091_v47 }
 0x666   : > { %17134 = vmatprep.mubr.msk.f32.mxu1 %vm18467_vm1, %v22004_v40  ;;  %17107 = vmatprep.subr.mxu0 %v22004_v40 }
 0x667   : > { %17137 = vmatprep.subr.mxu1 %v22004_v40 }
 0x66b   : > { %17135 = vmatmul.mubr.f32.vlgmr.msra.gmra.mrb[22].mxu1 %v11612_v49  ;;  %v12638_v49 = vand.u32 4294901760, %v12057_v43 }
 0x66c   : > { %17105 = vmatmul.mubr.f32.vlgmr.msra.gmra.mrb[22].mxu0 %v11163_v51  ;;  %17138 = vmatpush3.msra.mxu1 %v11623_v33  ;;  %v20177_v33 = vpack.c.bf16 %v12089_v17, %v12085_v23 }
 0x66d   : > { %17108 = vmatpush3.msra.mxu0 %v11174_v45  ;;  %17109 = vmatprep.mubr.msk.f32.mxu0 %vm18467_vm1, %v22004_v40 }
 0x66e   : > { %17139 = vmatprep.mubr.msk.f32.mxu1 %vm18467_vm1, %v22004_v40  ;;  %17112 = vmatprep.subr.mxu0 %v22004_v40 }
 0x66f   : > { %17142 = vmatprep.subr.mxu1 %v22004_v40 }
 0x673   : > { %17140 = vmatmul.mubr.f32.vlgmr.msra.gmra.mrb[22].mxu1 %v20066_v27 }
 0x674   : > { %17110 = vmatmul.mubr.f32.vlgmr.msra.gmra.mrb[22].mxu0 %v11161_v46  ;;  %17143 = vmatpush3.msra.mxu1 %v20045_v24  ;;  %v12044_v24 = vld [vmem:[%s21996_s13 + $0x10] sm:$0xff] }
 0x675   : > { %17113 = vmatpush3.msra.mxu0 %v20048_v36  ;;  %17114 = vmatprep.mubr.msk.f32.mxu0 %vm18467_vm1, %v22004_v40  ;;  %v12048_v36 = vld [vmem:[%s21996_s13 + $0x30] sm:$0xff]  ;;  %v12628_v45 = vand.u32 4294901760, %v12044_v24 }
 0x676   : > { %17144 = vmatprep.mubr.msk.f32.mxu1 %vm18467_vm1, %v22004_v40  ;;  %17580 = vmatprep.subr.bf16.mxu0 %v20164_v39 }
 0x677   : > { %17628 = vmatprep.subr.bf16.mxu1 %v20175_v32  ;;  %v20197_v26 = vsub.f32 %v12044_v24, %v12628_v45 }
 0x67b   : > { %17145 = vmatmul.mubr.f32.vlgmr.msra.gmra.mrb[22].mxu1 %v20066_v27  ;;  %v12050_v27 = vld [vmem:[%s21996_s13 + $0x40] sm:$0xff] }
 0x67c   : > { %17115 = vmatmul.mubr.f32.vlgmr.msra.gmra.mrb[22].mxu0 %v11161_v46  ;;  %12698 = vmatprep.mubr.f32.mxu1 %v22004_v40  ;;  %v12632_v46 = vand.u32 4294901760, %v12048_v36  ;;  %v12093_v51 = vand.u32 4294901760, %v12050_v27 }
 0x67d   : > { %12155 = vmatprep.mubr.f32.mxu0 %v22004_v40  ;;  %17582 = vmatpush1.bf16.msra.mxu0 %v20177_v33 }
 0x67e   : > { %v20195_v53 = vpack.c.bf16 %v12632_v46, %v12628_v45  ;;  %v20199_v54 = vsub.f32 %v12048_v36, %v12632_v46 }
 0x680   : > { %17630 = vmatpush1.bf16.msra.mxu1 %v20195_v53 }
 0x71e   : > { %v10639_v57 = vpop.f32.mrb[20].mxu0 }
 0x71f   : > { %v17056_v31 = vpop.f32.mrb[21].mxu0  ;;  %v11990_v59 = vsel %vm547_vm0, %v10639_v57, 0.0  ;;  %v20206_v57 = vpack.c.bf16 %v12095_v14, %v12091_v47  ;;  %v12193_v47 = vand.u32 4294901760, %v20201_v55 }
 0x720   : > { %v20208_v31 = vsub.f32 %v12055_v41, %v12095_v14 }
 0x721   : > { %17584 = vmatprep.subr.bf16.mxu0 %v20206_v57 }
 0x722   : > { %v11088_v58 = vpop.f32.mrb[20].mxu1  ;;  %v12205_v14 = vand.u32 4294901760, %v20208_v31 }
 0x723   : > { %v11991_v60 = vsel %vm547_vm0, %v11088_v58, 0.0  ;;  %v17086_v61 = vpop.f32.mrb[21].mxu1  ;;  %v20210_v58 = vpack.c.bf16 %v12638_v49, %v12634_v48 }
 0x724   : > { %v11992_v62 = vadd.f32 %v11991_v60, %v11990_v59  ;;  %v20212_v59 = vsub.f32 %v12053_v42, %v12634_v48  ;;  %v20215_v60 = vsub.f32 %v12057_v43, %v12638_v49  ;;  %v12097_v61 = vand.u32 4294901760, %v12054_v50 }
 0x725   : > { %17632 = vmatprep.subr.bf16.mxu1 %v20210_v58  ;;  %v12189_v42 = vand.u32 4294901760, %v12188_v4 }
 0x74e   : > { %v11986_v15 = vpop.f32.mrb[22].mxu1 }
 0x74f   : > { %v11537_v29 = vpop.f32.mrb[22].mxu0  ;;  %v17146_v19 = vpop.f32.mrb[23].mxu1  ;;  %v11995_v30 = vsel %vm547_vm0, %v11986_v15, 0.0  ;;  %v12636_v15 = vand.u32 4294901760, %v12052_v52 }
 0x750   : > { %v11993_v0 = vsel %vm547_vm0, %v11537_v29, 0.0  ;;  %v17116_v1 = vpop.f32.mrb[23].mxu0  ;;  %v12640_v29 = vand.u32 4294901760, %v12056_v56  ;;  %v20221_v19 = vpack.c.bf16 %v12097_v61, %v12093_v51 }
 0x751   : > { %v11994_v18 = vadd.f32 %v11993_v0, %v11992_v62  ;;  %v20217_v62 = vsub.f32 %v12050_v27, %v12093_v51  ;;  %v20223_v0 = vsub.f32 %v12054_v50, %v12097_v61  ;;  %v20225_v1 = vsub.f32 %v12052_v52, %v12636_v15 }
 0x752   : > { %17586 = vmatpush1.bf16.msra.mxu0 %v20221_v19  ;;  %v12736_v50 = vand.u32 4294901760, %v20212_v59  ;;  %v12748_v51 = vand.u32 4294901760, %v20215_v60  ;;  %v12194_v52 = vsub.f32 %v20201_v55, %v12193_v47 }
 0x753   : > { %v11996_v5 = vadd.f32 %v11995_v30, %v11994_v18  ;;  %v20227_v18 = vpack.c.bf16 %v12640_v29, %v12636_v15  ;;  %v20229_v30 = vsub.f32 %v12056_v56, %v12640_v29  ;;  %v12206_v56 = vsub.f32 %v20208_v31, %v12205_v14 }
 0x754   : > { %v12199_v61 = vand.u32 4294901760, %v20217_v62  ;;  %v12211_v15 = vand.u32 4294901760, %v20223_v0  ;;  %v12737_v29 = vsub.f32 %v20212_v59, %v12736_v50 }
 0x755   : > { %v12004_v6 = vadd.f32 %v15063_v2, %v11996_v5  ;;  %17634 = vmatpush1.bf16.msra.mxu1 %v20227_v18  ;;  %v20233_v2 = vsub.f32 %v12043_v13, %v12083_v20  ;;  %v20235_v5 = vsub.f32 %v12047_v8, %v12087_v12  ;;  %v12718_v13 = vand.u32 4294901760, %v20197_v26 }
 0x756   : > { %v12730_v8 = vand.u32 4294901760, %v20199_v54  ;;  %v12200_v4 = vsub.f32 %v20217_v62, %v12199_v61 }
 0x757   : > { %v20127_v7 = vadd.f32 %v18401_v28, %v12004_v6  ;;  %v20237_v6 = vsub.f32 %v12045_v9, %v12626_v25  ;;  %v20239_v28 = vsub.f32 %v12049_v22, %v12630_v35  ;;  %v12719_v35 = vsub.f32 %v20197_v26, %v12718_v13 }
 0x758   : > { %v12731_v23 = vsub.f32 %v20199_v54, %v12730_v8 }
 0x759   : > { %22152 = vst [vmem:[#allocation8_spill] sm:$0xff] %v20127_v7  ;;  %v12008_v10 = vsel %vm547_vm0, %v20127_v7, 0.0  ;;  %v12720_v43 = vand.u32 4294901760, %v12719_v35  ;;  %v12212_v35 = vsub.f32 %v20223_v0, %v12211_v15 }
 0x75a   : > { %12009 = vadd.xlane.f32.xlu0 %v12008_v10  ;;  %v12169_v10 = vand.u32 4294901760, %v20233_v2  ;;  %v12732_v27 = vand.u32 4294901760, %v12731_v23  ;;  %v12738_v23 = vand.u32 4294901760, %v12737_v29  ;;  %v17597_v29 = vpack.c.bf16 %v20185_v44, %v20179_v21 }
 0x75c   : > { %v12170_v9 = vsub.f32 %v20233_v2, %v12169_v10  ;;  %v20275_v49 = vpack.c.bf16 %v12732_v27, %v12720_v43 }
 0x75e   : > { %v12171_v17 = vand.u32 4294901760, %v12170_v9  ;;  %v12749_v9 = vsub.f32 %v20215_v60, %v12748_v51 }
 0x7e7   : > { %v12010_v34 = vpop.xlane.xlu0 %12009 }
 0x7e8   : > { %v12011_v38 = vmul.f32 0.03125, %v12010_v34  ;;  %v12181_v34 = vand.u32 4294901760, %v20235_v5 }
 0x7ea   : > { %v20132_v11 = vsub.f32 %v20127_v7, %v12011_v38  ;;  %v12712_v38 = vand.u32 4294901760, %v20237_v6  ;;  %v12182_v20 = vsub.f32 %v20235_v5, %v12181_v34 }
 0x7ec   : > { %v12013_v63 = vmul.f32 %v20132_v11, %v20132_v11  ;;  %v12713_v12 = vsub.f32 %v20237_v6, %v12712_v38  ;;  %v12183_v24 = vand.u32 4294901760, %v12182_v20  ;;  %v12742_v20 = vand.u32 4294901760, %v20225_v1 }
 0x7ee   : > { %v12014_v3 = vsel %vm547_vm0, %v12013_v63, 0.0  ;;  %v12724_v63 = vand.u32 4294901760, %v20239_v28  ;;  %v12714_v36 = vand.u32 4294901760, %v12713_v12  ;;  %v17587_v45 = vpack.c.bf16 %v12183_v24, %v12171_v17 }
 0x7ef   : > { %12015 = vadd.xlane.f32.xlu1 %v12014_v3  ;;  %v12175_v3 = vand.u32 4294901760, %v20179_v21  ;;  %v12754_v12 = vand.u32 4294901760, %v20229_v30  ;;  %v12750_v17 = vand.u32 4294901760, %v12749_v9  ;;  %v12743_v24 = vsub.f32 %v20225_v1, %v12742_v20 }
 0x7f0   : > { %v12725_v22 = vsub.f32 %v20239_v28, %v12724_v63  ;;  %17588 = vmatprep.subr.bf16.mxu0 %v17587_v45  ;;  %v17645_v9 = vpack.c.bf16 %v20199_v54, %v20197_v26  ;;  %v20317_v54 = vpack.c.bf16 %v12724_v63, %v12712_v38 }
 0x7f1   : > { %v12176_v25 = vsub.f32 %v20179_v21, %v12175_v3  ;;  %v17639_v43 = vpack.c.bf16 %v12750_v17, %v12738_v23  ;;  %v12744_v27 = vand.u32 4294901760, %v12743_v24  ;;  %v20311_v23 = vpack.c.bf16 %v12181_v34, %v12169_v10 }
 0x7f2   : > { %v12726_v37 = vand.u32 4294901760, %v12725_v22  ;;  %v12195_v22 = vand.u32 4294901760, %v12194_v52  ;;  %v17595_v52 = vpack.c.bf16 %v20235_v5, %v20233_v2  ;;  %v20323_v17 = vpack.c.bf16 %v12187_v16, %v12175_v3  ;;  %v15064_v16 = vld [vmem:[%s21994_s11] ss:$0 sm:$0xff] }
 0x7f3   : > { %v12177_v41 = vand.u32 4294901760, %v12176_v25  ;;  %v12207_v25 = vand.u32 4294901760, %v12206_v56  ;;  %v17643_v56 = vpack.c.bf16 %v20239_v28, %v20237_v6  ;;  %v20327_v24 = vpack.c.bf16 %v12730_v8, %v12718_v13 }
 0x7f4   : > { %v17635_v46 = vpack.c.bf16 %v12726_v37, %v12714_v36  ;;  %v12755_v36 = vsub.f32 %v20229_v30, %v12754_v12  ;;  %v20329_v2 = vpack.c.bf16 %v12205_v14, %v12193_v47  ;;  %v20331_v5 = vpack.c.bf16 %v12748_v51, %v12736_v50  ;;  %v15065_v47 = vld [vmem:[%s21995_s12] ss:$0 sm:$0xff] }
 0x7f5   : > { %v20273_v48 = vpack.c.bf16 %v12189_v42, %v12177_v41  ;;  %v17591_v37 = vpack.c.bf16 %v12207_v25, %v12195_v22  ;;  %v12201_v41 = vand.u32 4294901760, %v12200_v4  ;;  %v12213_v42 = vand.u32 4294901760, %v12212_v35 }
 0x7f6   : > { %17636 = vmatprep.subr.bf16.mxu1 %v17635_v46  ;;  %v12756_v45 = vand.u32 4294901760, %v12755_v36  ;;  %v17599_v22 = vpack.c.bf16 %v20208_v31, %v20201_v55  ;;  %v17647_v25 = vpack.c.bf16 %v20215_v60, %v20212_v59  ;;  %v17601_v4 = vpack.c.bf16 %v20223_v0, %v20217_v62 }
 0x7f7   : > { %v17593_v46 = vpack.c.bf16 %v12213_v42, %v12201_v41  ;;  %v17649_v35 = vpack.c.bf16 %v20229_v30, %v20225_v1  ;;  %v20333_v10 = vpack.c.bf16 %v12211_v15, %v12199_v61  ;;  %v20335_v6 = vpack.c.bf16 %v12754_v12, %v12742_v20  ;;  %v20358_v41 = vld [vmem:[%s21998_s15 + $0x80] sm:$0xff]  ;;  %v20363_v42 = vld [vmem:[%s21998_s15 + $0x88] sm:$0xff] }
 0x7f8   : > { %v17641_v40 = vpack.c.bf16 %v12756_v45, %v12744_v27  ;;  %v12033_v13 = vmul.f32 %v15064_v16, %v20132_v11  ;;  %v22153_v11 = vmov 0.0   ;;  %v20385_v27 = vld [vmem:[%s21998_s15 + $0x98] sm:$0xff]  ;;  %v20390_v45 = vld [vmem:[%s21998_s15 + $0x10] sm:$0xff] }
 0x87c   : > { %v12016_v28 = vpop.xlane.xlu1 %12015 }
 0x87d   : > { %v12017_v34 = vmul.f32 0.032258064, %v12016_v28 }
 0x87f   : > { %18397 = vrsqrt.f32 %v12017_v34  ;;  %vm12020_vm5 = vcmp.eq.f32.partialorder %v12017_v34, inf  ;;  %v12023_v44 = vand.u32 2147483648, %v12017_v34  ;;  %vm12022_vm6 = vcmp.eq.f32.partialorder %v12017_v34, 0.0 }
 0x889   : > { %v18398_v21 = vpop.eup %18397 }
 0x88a   : > { %v12019_v38 = vmul.f32 %v18398_v21, %v12017_v34 }
 0x88c   : > { %v12021_v63 = vsel %vm12020_vm5, %v12017_v34, %v12019_v38  ;;  %v22017_v34 = vand.u32 4294901760, %v20385_v27 }
 0x88d   : > { %v12024_v26 = vsel %vm12022_vm6, %v12023_v44, %v12021_v63  ;;  %v20477_v63 = vld [vmem:[%s21998_s15 + $0xa8] sm:$0xff] }
 0x88e   : > { %v12025_v3 = vadd.f32 1e-06, %v12024_v26  ;;  %v20447_v60 = vsub.f32 %v20385_v27, %v22017_v34 }
 0x890   : > { %18399 = vrcp.f32 %v12025_v3  ;;  %v22010_v44 = vand.u32 4294901760, %v20447_v60 }
 0x89a   : > { %v18400_v8 = vpop.eup %18399 }
 0x89b   : > { %v12034_v14 = vmul.f32 %v18400_v8, %v12033_v13 }
 0x89d   : > { %v12041_v50 = vadd.f32 %v15065_v47, %v12034_v14  ;;  %v22018_v14 = vand.u32 4294901760, %v20477_v63 }
 0x89f   : > { %v12081_v51 = vsel %vm547_vm0, %v12041_v50, 0  ;;  %v20499_v50 = vld [vmem:[%s21998_s15 + $0x20] sm:$0xff] }
 0x8a0   : > { %v20345_v61 = vand.u32 4294901760, %v12081_v51 }
 0x8a2   : > { %v12157_v15 = vsub.f32 %v12081_v51, %v20345_v61  ;;  %v20504_v51 = vld [vmem:[%s21998_s15 + $0x28] sm:$0xff] }
 0x8a4   : > { %v20348_v20 = vand.u32 4294901760, %v12157_v15 }
 0x8a6   : > { %v12159_v12 = vsub.f32 %v12157_v15, %v20348_v20 }
 0x8a8   : > { %v12160_v36 = vand.u32 4294901760, %v12159_v12 }
 0x8aa   : > { %12161 = vmatmul.mubr.f32.vlgmr.msra.gmra.mrb[24].mxu0 %v12160_v36  ;;  %12704 = vmatmul.mubr.f32.vlgmr.msra.gmra.mrb[24].mxu1 %v12160_v36  ;;  %v13493_v36 = vsub.f32 %v20447_v60, %v22010_v44 }
 0x8ab   : > { %17590 = vmatpush1.bf16.msra.mxu0 %v20273_v48  ;;  %17638 = vmatpush1.bf16.msra.mxu1 %v20275_v49  ;;  %v20368_v48 = vld [vmem:[%s21998_s15] sm:$0xff]  ;;  %v13293_v49 = vand.u32 4294901760, %v20358_v41 }
 0x8ac   : > { %17592 = vmatprep.subr.bf16.mxu0 %v17591_v37  ;;  %17640 = vmatprep.subr.bf16.mxu1 %v17639_v43  ;;  %v13296_v37 = vand.u32 4294901760, %v20363_v42  ;;  %v20375_v43 = vld [vmem:[%s21998_s15 + $0x8] sm:$0xff]  ;;  %v13494_v34 = vand.u32 4294901760, %v13493_v36 }
 0x8ad   : > { %12271 = vmatprep.mubr.f32.mxu0 %v22153_v11  ;;  %12814 = vmatprep.mubr.f32.mxu1 %v22153_v11  ;;  %v20412_v21 = vsub.f32 %v20358_v41, %v13293_v49 }
 0x8af   : > { %17594 = vmatpush1.bf16.msra.mxu0 %v17593_v46  ;;  %17642 = vmatpush1.bf16.msra.mxu1 %v17641_v40  ;;  %v20380_v40 = vld [vmem:[%s21998_s15 + $0x90] sm:$0xff]  ;;  %v20395_v46 = vld [vmem:[%s21998_s15 + $0x18] sm:$0xff]  ;;  %v22011_v62 = vand.u32 4294901760, %v20412_v21 }
 0x8b0   : > { %17596 = vmatprep.subr.bf16.mxu0 %v17595_v52  ;;  %17644 = vmatprep.subr.bf16.mxu1 %v17643_v56  ;;  %v22021_v52 = vand.u32 4294901760, %v20368_v48  ;;  %v22020_v56 = vand.u32 4294901760, %v20375_v43  ;;  %v22019_v28 = vand.u32 4294901760, %v20380_v40  ;;  %v22012_v38 = vand.u32 4294901760, %v20395_v46 }
 0x8b1   : > { %v13472_v26 = vsub.f32 %v20412_v21, %v22011_v62 }
 0x8b2   : > { %12273 = vmatmul.mubr.f32.vlgmr.msra.gmra.mrb[24].mxu0 %v20345_v61  ;;  %12816 = vmatmul.mubr.f32.vlgmr.msra.gmra.mrb[24].mxu1 %v20345_v61  ;;  %v20426_v55 = vsub.f32 %v20368_v48, %v22021_v52  ;;  %v20437_v31 = vsub.f32 %v20375_v43, %v22020_v56  ;;  %v20442_v59 = vsub.f32 %v20380_v40, %v22019_v28 }
 0x8b3   : > { %17598 = vmatpush1.bf16.msra.mxu0 %v17597_v29  ;;  %17646 = vmatpush1.bf16.msra.mxu1 %v17645_v9  ;;  %v20417_v29 = vsub.f32 %v20363_v42, %v13296_v37  ;;  %v22013_v9 = vand.u32 4294901760, %v20390_v45  ;;  %v20461_v30 = vsub.f32 %v20395_v46, %v22012_v38  ;;  %v20630_v42 = vld [vmem:[%s21998_s15 + $0x40] sm:$0xff] }
 0x8b4   : > { %17600 = vmatprep.subr.bf16.mxu0 %v17599_v22  ;;  %17648 = vmatprep.subr.bf16.mxu1 %v17647_v25  ;;  %v22006_v22 = vand.u32 4294901760, %v20426_v55  ;;  %v20467_v25 = vld [vmem:[%s21998_s15 + $0xa0] sm:$0xff] }
 0x8b5   : > { %12359 = vmatprep.mubr.f32.mxu0 %v22153_v11  ;;  %12902 = vmatprep.mubr.f32.mxu1 %v22153_v11  ;;  %v22007_v0 = vand.u32 4294901760, %v20417_v29  ;;  %v20456_v1 = vsub.f32 %v20390_v45, %v22013_v9  ;;  %v22014_v13 = vand.u32 4294901760, %v20461_v30  ;;  %v22016_v8 = vand.u32 4294901760, %v20467_v25 }
 0x8b6   : > { %v13360_v47 = vsub.f32 %v20426_v55, %v22006_v22  ;;  %v20520_v22 = vld [vmem:[%s21998_s15 + $0xb0] sm:$0xff]  ;;  %v22028_v9 = vand.u32 4294901760, %v20499_v50 }
 0x8b7   : > { %17602 = vmatpush1.bf16.msra.mxu0 %v17601_v4  ;;  %17650 = vmatpush1.bf16.msra.mxu1 %v17649_v35  ;;  %v22008_v4 = vand.u32 4294901760, %v20437_v31  ;;  %v22009_v35 = vand.u32 4294901760, %v20442_v59  ;;  %v13479_v3 = vsub.f32 %v20417_v29, %v22007_v0  ;;  %v22015_v16 = vand.u32 4294901760, %v20456_v1  ;;  %v20525_v0 = vld [vmem:[%s21998_s15 + $0xb8] sm:$0xff] }
 0x8b8   : > { %17604 = vmatprep.subr.bf16.mxu0 %v20164_v39  ;;  %17652 = vmatprep.subr.bf16.mxu1 %v20175_v32  ;;  %v13381_v62 = vsub.f32 %v20461_v30, %v22014_v13  ;;  %v20538_v38 = vsub.f32 %v20467_v25, %v22016_v8  ;;  %v20554_v13 = vld [vmem:[%s21998_s15 + $0x30] sm:$0xff] }
 0x8b9   : > { %v13486_v12 = vsub.f32 %v20442_v59, %v22009_v35  ;;  %v13480_v35 = vand.u32 4294901760, %v13479_v3  ;;  %v13374_v44 = vsub.f32 %v20456_v1, %v22015_v16  ;;  %v22023_v3 = vand.u32 4294901760, %v20525_v0 }
 0x8ba   : > { %12362 = vmatmul.mubr.f32.vlgmr.msra.gmra.mrb[24].mxu0 %v12157_v15  ;;  %12905 = vmatmul.mubr.f32.vlgmr.msra.gmra.mrb[24].mxu1 %v12157_v15  ;;  %v13367_v15 = vsub.f32 %v20437_v31, %v22008_v4  ;;  %v13473_v4 = vand.u32 4294901760, %v13472_v26  ;;  %v22022_v26 = vand.u32 4294901760, %v20520_v22  ;;  %v13361_v16 = vand.u32 4294901760, %v13360_v47 }
 0x8bb   : > { %17606 = vmatpush1.bf16.msra.mxu0 %v20177_v33  ;;  %17654 = vmatpush1.bf16.msra.mxu1 %v20195_v53  ;;  %v13487_v8 = vand.u32 4294901760, %v13486_v12  ;;  %v13375_v56 = vand.u32 4294901760, %v13374_v44  ;;  %v13382_v52 = vand.u32 4294901760, %v13381_v62  ;;  %v20584_v62 = vld [vmem:[%s21998_s15 + $0xc0] sm:$0xff]  ;;  %v20600_v47 = vsub.f32 %v20525_v0, %v22023_v3 }
 0x8bc   : > { %17608 = vmatprep.subr.bf16.mxu0 %v20206_v57  ;;  %17656 = vmatprep.subr.bf16.mxu1 %v20210_v58  ;;  %v20565_v28 = vpack.c.bf16 %v13480_v35, %v13473_v4  ;;  %v20589_v4 = vld [vmem:[%s21998_s15 + $0xc8] sm:$0xff]  ;;  %v20595_v44 = vsub.f32 %v20520_v22, %v22022_v26  ;;  %v20613_v26 = vpack.c.bf16 %v13296_v37, %v13293_v49 }
 0x8bd   : > { %12440 = vmatprep.mubr.f32.mxu0 %v22153_v11  ;;  %12983 = vmatprep.mubr.f32.mxu1 %v22153_v11  ;;  %v20607_v36 = vpack.c.bf16 %v13494_v34, %v13487_v8  ;;  %v20617_v3 = vpack.c.bf16 %v13382_v52, %v13375_v56  ;;  %v22036_v34 = vand.u32 4294901760, %v20584_v62  ;;  %v22030_v41 = vand.u32 4294901760, %v20589_v4  ;;  %v20655_v52 = vld [vmem:[%s21998_s15 + $0xd8] sm:$0xff] }
 0x8be   : > { %v22032_v8 = vand.u32 4294901760, %v20595_v44 }
 0x8bf   : > { %17610 = vmatpush1.bf16.msra.mxu0 %v20221_v19  ;;  %17658 = vmatpush1.bf16.msra.mxu1 %v20227_v18 }
 0x8c0   : > { %17612 = vmatprep.subr.bf16.mxu0 %v20311_v23  ;;  %17660 = vmatprep.subr.bf16.mxu1 %v20317_v54  ;;  %v22027_v23 = vand.u32 4294901760, %v20504_v51  ;;  %v20547_v54 = vsub.f32 %v20477_v63, %v22018_v14  ;;  %v20561_v14 = vld [vmem:[%s21998_s15 + $0x38] sm:$0xff] }
 0x8c2   : > { %12444 = vmatmul.mubr.f32.vlgmr.msra.gmra.mrb[24].mxu0 %v20348_v20  ;;  %12987 = vmatmul.mubr.f32.vlgmr.msra.gmra.mrb[24].mxu1 %v20348_v20  ;;  %v13368_v20 = vand.u32 4294901760, %v13367_v15  ;;  %v22026_v35 = vand.u32 4294901760, %v20547_v54  ;;  %v22029_v15 = vand.u32 4294901760, %v20561_v14 }
 0x8c3   : > { %17614 = vmatpush1.bf16.msra.mxu0 %v20323_v17  ;;  %17662 = vmatpush1.bf16.msra.mxu1 %v20327_v24  ;;  %v22024_v17 = vand.u32 4294901760, %v20538_v38  ;;  %v20573_v24 = vsub.f32 %v20499_v50, %v22028_v9 }
 0x8c4   : > { %17616 = vmatprep.subr.bf16.mxu0 %v20329_v2  ;;  %17664 = vmatprep.subr.bf16.mxu1 %v20331_v5  ;;  %v20578_v2 = vsub.f32 %v20504_v51, %v22027_v23  ;;  %v22025_v5 = vand.u32 4294901760, %v20554_v13  ;;  %v20605_v12 = vpack.c.bf16 %v13368_v20, %v13361_v16  ;;  %v13507_v56 = vsub.f32 %v20547_v54, %v22026_v35 }
 0x8c5   : > { %12538 = vmatprep.mubr.f32.mxu0 %v22153_v11  ;;  %13081 = vmatprep.mubr.f32.mxu1 %v22153_v11  ;;  %v22159_v35 = vand.u32 4294901760, %v20390_v45  ;;  %v22160_v23 = vand.u32 4294901760, %v20395_v46  ;;  %v22035_v20 = vand.u32 4294901760, %v20630_v42 }
 0x8c6   : > { %v22031_v49 = vand.u32 4294901760, %v20578_v2  ;;  %v20645_v37 = vsub.f32 %v20554_v13, %v22025_v5 }
 0x8c7   : > { %17618 = vmatpush1.bf16.msra.mxu0 %v20333_v10  ;;  %17666 = vmatpush1.bf16.msra.mxu1 %v20335_v6  ;;  %v22154_v10 = vand.u32 4294901760, %v20368_v48  ;;  %v22155_v6 = vand.u32 4294901760, %v20375_v43  ;;  %v22033_v48 = vand.u32 4294901760, %v20573_v24  ;;  %v20650_v43 = vld [vmem:[%s21998_s15 + $0xd0] sm:$0xff]  ;;  %v20681_v9 = vpack.c.bf16 %v22160_v23, %v22159_v35 }
 0x8c8   : > { %17620 = vmatprep.subr.bf16.mxu0 %v20164_v39  ;;  %17668 = vmatprep.subr.bf16.mxu1 %v20175_v32  ;;  %v20635_v39 = vld [vmem:[%s21998_s15 + $0x48] sm:$0xff]  ;;  %v13500_v32 = vsub.f32 %v20538_v38, %v22024_v17  ;;  %v22158_v17 = vand.u32 4294901760, %v20385_v27  ;;  %v22038_v27 = vand.u32 4294901760, %v20655_v52  ;;  %v13395_v23 = vsub.f32 %v20578_v2, %v22031_v49 }
 0x8c9   : > { %v20623_v16 = vpack.c.bf16 %v22155_v6, %v22154_v10  ;;  %v20667_v10 = vsub.f32 %v20561_v14, %v22029_v15  ;;  %v22157_v6 = vand.u32 4294901760, %v20380_v40  ;;  %v22034_v15 = vand.u32 4294901760, %v20635_v39 }
 0x8ca   : > { %12540 = vmatmul.mubr.f32.vlgmr.msra.gmra.mrb[24].mxu0 %v20345_v61  ;;  %13083 = vmatmul.mubr.f32.vlgmr.msra.gmra.mrb[24].mxu1 %v20345_v61  ;;  %v22037_v40 = vand.u32 4294901760, %v20650_v43  ;;  %v13501_v45 = vand.u32 4294901760, %v13500_v32  ;;  %v13388_v46 = vsub.f32 %v20573_v24, %v22033_v48  ;;  %v13508_v35 = vand.u32 4294901760, %v13507_v56 }
 0x8cb   : > { %22156 = vst [vmem:[#allocation9_spill] sm:$0xff] %v20667_v10  ;;  %17622 = vmatpush1.bf16.msra.mxu0 %v20177_v33  ;;  %17670 = vmatpush1.bf16.msra.mxu1 %v20195_v53  ;;  %v20675_v5 = vpack.c.bf16 %v22158_v17, %v22157_v6  ;;  %v20690_v33 = vsub.f32 %v20584_v62, %v22036_v34  ;;  %v22040_v17 = vand.u32 4294901760, %v20645_v37  ;;  %v22039_v32 = vand.u32 4294901760, %v20667_v10 }
 0x8cc   : > { %17624 = vmatprep.subr.bf16.mxu0 %v20206_v57  ;;  %17672 = vmatprep.subr.bf16.mxu1 %v20210_v58  ;;  %v20695_v53 = vsub.f32 %v20589_v4, %v22030_v41  ;;  %v20702_v57 = vld [vmem:[%s21998_s15 + $0x50] sm:$0xff]  ;;  %v20707_v58 = vld [vmem:[%s21998_s15 + $0x58] sm:$0xff]  ;;  %v13514_v6 = vsub.f32 %v20595_v44, %v22032_v8  ;;  %v22163_v41 = vand.u32 4294901760, %v20600_v47  ;;  %v20730_v49 = vsub.f32 %v20630_v42, %v22035_v20 }
 0x8cd   : > { %22161 = vst [vmem:[#allocation10_spill] sm:$0xff] %v20690_v33  ;;  %12618 = vmatprep.mubr.f32.mxu0 %v22153_v11  ;;  %13161 = vmatprep.mubr.f32.mxu1 %v22153_v11  ;;  %v20735_v56 = vsub.f32 %v20635_v39, %v22034_v15  ;;  %v20746_v48 = vsub.f32 %v20650_v43, %v22037_v40  ;;  %v13389_v20 = vand.u32 4294901760, %v13388_v46  ;;  %v13396_v34 = vand.u32 4294901760, %v13395_v23 }
 0x8ce   : > { %22162 = vst [vmem:[#allocation11_spill] sm:$0xff] %v20695_v53  ;;  %v13521_v11 = vsub.f32 %v20600_v47, %v22163_v41  ;;  %22164 = vst [vmem:[#allocation12_spill] sm:$0xff] %v20730_v49  ;;  %v20751_v15 = vsub.f32 %v20655_v52, %v22038_v27  ;;  %v17715_v40 = vpack.c.bf16 %v13508_v35, %v13501_v45  ;;  %v13515_v8 = vand.u32 4294901760, %v13514_v6 }
 0x8cf   : > { %17626 = vmatpush1.bf16.msra.mxu0 %v20221_v19  ;;  %17674 = vmatpush1.bf16.msra.mxu1 %v20227_v18  ;;  %22165 = vst [vmem:[#allocation13_spill] sm:$0xff] %v20735_v56  ;;  %22166 = vst [vmem:[#allocation14_spill] sm:$0xff] %v20746_v48  ;;  %v22168_v19 = vand.u32 4294901760, %v20467_v25  ;;  %v22169_v18 = vand.u32 4294901760, %v20477_v63  ;;  %v13409_v46 = vsub.f32 %v20667_v10, %v22039_v32  ;;  %v22170_v23 = vand.u32 4294901760, %v20702_v57 }
 0x8d0   : > { %17708 = vmatprep.subr.bf16.mxu1 %v20565_v28  ;;  %17676 = vmatprep.subr.bf16.mxu0 %v20613_v26  ;;  %22167 = vst [vmem:[#allocation15_spill] sm:$0xff] %v20751_v15  ;;  %v13402_v28 = vsub.f32 %v20645_v37, %v22040_v17  ;;  %v13522_v27 = vand.u32 4294901760, %v13521_v11  ;;  %v22175_v6 = vand.u32 4294901760, %v20695_v53  ;;  %v17717_v32 = vpack.c.bf16 %v13396_v34, %v13389_v20 }
 0x8d1   : > { %v20760_v41 = vpack.c.bf16 %v22169_v18, %v22168_v19  ;;  %v20774_v19 = vsub.f32 %v20702_v57, %v22170_v23  ;;  %v22049_v18 = vand.u32 4294901760, %v20746_v48  ;;  %v22048_v23 = vand.u32 4294901760, %v20751_v15 }
 0x8d2   : > { %12620 = vmatmul.mubr.f32.vlgmr.msra.gmra.mrb[24].mxu0 %v20345_v61  ;;  %13163 = vmatmul.mubr.f32.vlgmr.msra.gmra.mrb[24].mxu1 %v20345_v61  ;;  %v22172_v61 = vand.u32 4294901760, %v20707_v58  ;;  %v13535_v11 = vsub.f32 %v20695_v53, %v22175_v6  ;;  %v13403_v17 = vand.u32 4294901760, %v13402_v28  ;;  %v13410_v63 = vand.u32 4294901760, %v13409_v46 }
 0x8d3   : > { %17710 = vmatpush3.bf16.msra.mxu1 %v20605_v12  ;;  %17678 = vmatpush3.bf16.msra.mxu0 %v20623_v16  ;;  %22171 = vst [vmem:[#allocation16_spill] sm:$0xff] %v20774_v19  ;;  %v22174_v12 = vand.u32 4294901760, %v20690_v33  ;;  %v22177_v25 = vand.u32 4294901760, %v20504_v51  ;;  %v22180_v34 = vand.u32 4294901760, %v20730_v49  ;;  %v22047_v20 = vand.u32 4294901760, %v20774_v19 }
 0x8d4   : > { %v20779_v45 = vsub.f32 %v20707_v58, %v22172_v61  ;;  %17712 = vmatprep.subr.bf16.mxu1 %v20607_v36  ;;  %17680 = vmatprep.subr.bf16.mxu0 %v20675_v5  ;;  %v17719_v61 = vpack.c.bf16 %v13522_v27, %v13515_v8  ;;  %v22176_v36 = vand.u32 4294901760, %v20499_v50  ;;  %v22181_v50 = vand.u32 4294901760, %v20735_v56 }
 0x8d5   : > { %v13528_v35 = vsub.f32 %v20690_v33, %v22174_v12  ;;  %v22178_v12 = vand.u32 4294901760, %v20520_v22  ;;  %v22179_v33 = vand.u32 4294901760, %v20525_v0  ;;  %v13416_v8 = vsub.f32 %v20730_v49, %v22180_v34 }
 0x8d6   : > { %22173 = vst [vmem:[#allocation17_spill] sm:$0xff] %v20779_v45  ;;  %v20795_v7 = vpack.c.bf16 %v22177_v25, %v22176_v36  ;;  %v13423_v51 = vsub.f32 %v20735_v56, %v22181_v50  ;;  %v22046_v22 = vand.u32 4294901760, %v20779_v45  ;;  %v13549_v27 = vsub.f32 %v20751_v15, %v22048_v23  ;;  %v20843_v50 = vld [vmem:[%s21998_s15 + $0xe8] sm:$0xff] }
 0x8d7   : > { %v20801_v10 = vpack.c.bf16 %v22179_v33, %v22178_v12  ;;  %17714 = vmatpush3.bf16.msra.mxu1 %v20617_v3  ;;  %17682 = vmatpush3.bf16.msra.mxu0 %v20681_v9  ;;  %v13529_v0 = vand.u32 4294901760, %v13528_v35  ;;  %v13536_v33 = vand.u32 4294901760, %v13535_v11  ;;  %v13542_v3 = vsub.f32 %v20746_v48, %v22049_v18 }
 0x8d8   : > { %17716 = vmatprep.subr.bf16.mxu1 %v17715_v40  ;;  %17684 = vmatprep.subr.bf16.mxu0 %v20760_v41  ;;  %v17721_v28 = vpack.c.bf16 %v13410_v63, %v13403_v17  ;;  %v22182_v46 = vand.u32 4294901760, %v20554_v13  ;;  %v22183_v25 = vand.u32 4294901760, %v20561_v14  ;;  %v13417_v40 = vand.u32 4294901760, %v13416_v8 }
 0x8d9   : > { %v13424_v35 = vand.u32 4294901760, %v13423_v51  ;;  %v13430_v11 = vsub.f32 %v20774_v19, %v22047_v20  ;;  %v13437_v36 = vsub.f32 %v20779_v45, %v22046_v22  ;;  %v17723_v17 = vpack.c.bf16 %v13536_v33, %v13529_v0  ;;  %v13185_v33 = vld [vmem:[%s21998_s15 + $0x60] sm:$0xff] }
 0x8da   : > { %v20824_v6 = vpack.c.bf16 %v22183_v25, %v22182_v46  ;;  %v13543_v13 = vand.u32 4294901760, %v13542_v3  ;;  %v13550_v14 = vand.u32 4294901760, %v13549_v27  ;;  %v13332_v0 = vand.u32 4294901760, %v20843_v50  ;;  %v13186_v3 = vld [vmem:[%s21998_s15 + $0x68] sm:$0xff] }
 0x8db   : > { %17718 = vmatpush3.bf16.msra.mxu1 %v17717_v32  ;;  %17686 = vmatpush3.bf16.msra.mxu0 %v20795_v7  ;;  %v17725_v32 = vpack.c.bf16 %v13424_v35, %v13417_v40  ;;  %v13431_v63 = vand.u32 4294901760, %v13430_v11  ;;  %v13438_v12 = vand.u32 4294901760, %v13437_v36  ;;  %v13281_v27 = vand.u32 4294901760, %v13185_v33  ;;  %v13203_v11 = vld [vmem:[%s21998_s15 + $0xf0] sm:$0xff]  ;;  %v13204_v36 = vld [vmem:[%s21998_s15 + $0xf8] sm:$0xff] }
 0x8dc   : > { %22184 = vst [vmem:[#allocation18_spill] sm:$0xff] %v20824_v6  ;;  %17720 = vmatprep.subr.bf16.mxu1 %v17719_v61  ;;  %17688 = vmatprep.subr.bf16.mxu0 %v20801_v10  ;;  %v17727_v34 = vpack.c.bf16 %v13550_v14, %v13543_v13  ;;  %v20838_v61 = vld [vmem:[%s21998_s15 + $0xe0] sm:$0xff]  ;;  %v20857_v25 = vsub.f32 %v20843_v50, %v13332_v0  ;;  %v13335_v14 = vand.u32 4294901760, %v13203_v11  ;;  %v22186_v49 = vand.u32 4294901760, %v20589_v4 }
 0x8dd   : > { %v17729_v8 = vpack.c.bf16 %v13438_v12, %v13431_v63  ;;  %v13329_v51 = vand.u32 4294901760, %v20838_v61  ;;  %v20859_v40 = vsub.f32 %v13185_v33, %v13281_v27  ;;  %v13187_v63 = vld [vmem:[%s21998_s15 + $0x70] sm:$0xff]  ;;  %v13188_v12 = vld [vmem:[%s21998_s15 + $0x78] sm:$0xff] }
 0x8de   : > { %v22057_v13 = vand.u32 4294901760, %v20857_v25  ;;  %v13290_v50 = vand.u32 4294901760, %v13188_v12  ;;  %v20885_v22 = vsub.f32 %v13203_v11, %v13335_v14 }
 0x8df   : > { %17722 = vmatpush3.bf16.msra.mxu1 %v17721_v28  ;;  %17690 = vmatpush3.bf16.msra.mxu0 %v20824_v6  ;;  %v13284_v28 = vand.u32 4294901760, %v13186_v3  ;;  %v20854_v46 = vsub.f32 %v20838_v61, %v13329_v51  ;;  %v13287_v61 = vand.u32 4294901760, %v13187_v63 }
 0x8e0   : > { %17724 = vmatprep.subr.bf16.mxu1 %v17723_v17  ;;  %v20897_v19 = vsub.f32 %v13188_v12, %v13290_v50  ;;  %v22188_v12 = vand.u32 4294901760, %v20630_v42 }
 0x8e1   : > { %v20861_v35 = vsub.f32 %v13186_v3, %v13284_v28  ;;  %v22054_v17 = vand.u32 4294901760, %v20854_v46  ;;  %v13563_v3 = vsub.f32 %v20857_v25, %v22057_v13  ;;  %v20895_v45 = vsub.f32 %v13187_v63, %v13287_v61 }
 0x8e2   : > { %v22071_v13 = vand.u32 4294901760, %v20885_v22  ;;  %v22068_v4 = vand.u32 4294901760, %v20897_v19 }
 0x8e3   : > { %17726 = vmatpush3.bf16.msra.mxu1 %v17725_v32  ;;  %v13338_v32 = vand.u32 4294901760, %v13204_v36  ;;  %v13556_v33 = vsub.f32 %v20854_v46, %v22054_v17  ;;  %v13564_v15 = vand.u32 4294901760, %v13563_v3  ;;  %v22069_v56 = vand.u32 4294901760, %v20895_v45 }
 0x8e4   : > { %17728 = vmatprep.subr.bf16.mxu1 %v17727_v34  ;;  %v22062_v34 = vand.u32 4294901760, %v20859_v40 }
 0x8e5   : > { %v20887_v20 = vsub.f32 %v13204_v36, %v13338_v32  ;;  %v13557_v17 = vand.u32 4294901760, %v13556_v33  ;;  %v22189_v33 = vand.u32 4294901760, %v20635_v39  ;;  %v13458_v42 = vsub.f32 %v20895_v45, %v22069_v56  ;;  %v22208_v56 = vld [vmem:[#allocation11_spill] sm:$0xff] }
 0x8e6   : > { %v13444_v23 = vsub.f32 %v20859_v40, %v22062_v34  ;;  %v22185_v34 = vand.u32 4294901760, %v20584_v62  ;;  %v22191_v39 = vand.u32 4294901760, %v20650_v43 }
 0x8e7   : > { %17730 = vmatpush3.bf16.msra.mxu1 %v17729_v8  ;;  %v22067_v8 = vand.u32 4294901760, %v20861_v35  ;;  %v22070_v11 = vand.u32 4294901760, %v20887_v20  ;;  %v17731_v63 = vpack.c.bf16 %v13564_v15, %v13557_v17  ;;  %v20912_v3 = vpack.c.bf16 %v22189_v33, %v22188_v12 }
 0x8e8   : > { %v13445_v36 = vand.u32 4294901760, %v13444_v23  ;;  %v20906_v53 = vpack.c.bf16 %v22186_v49, %v22185_v34  ;;  %v13465_v17 = vsub.f32 %v20897_v19, %v22068_v4  ;;  %v22194_v34 = vand.u32 4294901760, %v20702_v57  ;;  %v21038_v4 = vld [vmem:[%s21998_s15 + $0x1e8] sm:$0xff] }
 0x8e9   : > { %v13451_v18 = vsub.f32 %v20861_v35, %v22067_v8  ;;  %22190 = vst [vmem:[#allocation20_spill] sm:$0xff] %v20912_v3  ;;  %17732 = vmatprep.subr.bf16.mxu1 %v17731_v63  ;;  %v13577_v62 = vsub.f32 %v20887_v20, %v22070_v11  ;;  %v13459_v63 = vand.u32 4294901760, %v13458_v42  ;;  %v20943_v33 = vpack.c.bf16 %v13332_v0, %v13329_v51  ;;  %v22213_v0 = vld [vmem:[#allocation12_spill] sm:$0xff] }
 0x8ea   : > { %22187 = vst [vmem:[#allocation19_spill] sm:$0xff] %v20906_v53  ;;  %17692 = vmatprep.subr.bf16.mxu0 %v20906_v53  ;;  %v13466_v43 = vand.u32 4294901760, %v13465_v17  ;;  %v20950_v57 = vpack.c.bf16 %v13338_v32, %v13335_v14  ;;  %v17739_v51 = vpack.c.bf16 %v20417_v29, %v20412_v21  ;;  %v12060_v32 = vlaneseq  ;;  %22206 = vst [vmem:[#allocation30_spill] sm:$0xff] %v21038_v4  ;;  %v21051_v14 = vld [vmem:[%s21998_s15 + $0x168] sm:$0xff] }
 0x8eb   : > { %v13452_v48 = vand.u32 4294901760, %v13451_v18  ;;  %v13570_v18 = vsub.f32 %v20885_v22, %v22071_v13  ;;  %17694 = vmatpush3.bf16.msra.mxu0 %v20912_v3  ;;  %v13578_v23 = vand.u32 4294901760, %v13577_v62  ;;  %22197 = vst [vmem:[#allocation23_spill] sm:$0xff] %v20943_v33  ;;  %v20972_v62 = vld [vmem:[%s21997_s14] sm:$0xf]  ;;  %22210 = vst [vmem:[#allocation11_spill] sm:$0xff] %v21051_v14 }
 0x8ec   : > { %22198 = vst [vmem:[#allocation24_spill] sm:$0xff] %v20950_v57  ;;  %v21046_v13 = vld [vmem:[%s21998_s15 + $0x160] sm:$0xff] }
 0x8ed   : > { %v17733_v8 = vpack.c.bf16 %v13452_v48, %v13445_v36  ;;  %v13571_v15 = vand.u32 4294901760, %v13570_v18  ;;  %v22192_v48 = vand.u32 4294901760, %v20655_v52  ;;  %v17737_v52 = vpack.c.bf16 %v13466_v43, %v13459_v63 }
 0x8ee   : > { %v20945_v18 = vpack.c.bf16 %v13284_v28, %v13281_v27 }
 0x8ef   : > { %17734 = vmatpush3.bf16.msra.mxu1 %v17733_v8  ;;  %v20930_v49 = vpack.c.bf16 %v22192_v48, %v22191_v39  ;;  %v22195_v8 = vand.u32 4294901760, %v20707_v58  ;;  %v17735_v12 = vpack.c.bf16 %v13578_v23, %v13571_v15  ;;  %v20952_v58 = vpack.c.bf16 %v13290_v50, %v13287_v61 }
 0x8f0   : > { %v20966_v61 = vshrl.u32 %v12060_v32, 7 }
 0x8f1   : > { %22193 = vst [vmem:[#allocation21_spill] sm:$0xff] %v20930_v49  ;;  %v20939_v36 = vpack.c.bf16 %v22195_v8, %v22194_v34  ;;  %17696 = vmatprep.subr.bf16.mxu0 %v20930_v49  ;;  %17736 = vmatprep.subr.bf16.mxu1 %v17735_v12 }
 0x8f2   : > { %v12062_v50 = vsub.s32 0, %v20966_v61  ;;  %v12066_v15 = vsub.s32 1, %v20966_v61 }
 0x8f3   : > { %22196 = vst [vmem:[#allocation22_spill] sm:$0xff] %v20939_v36  ;;  %17698 = vmatpush3.bf16.msra.mxu0 %v20939_v36  ;;  %17738 = vmatpush3.bf16.msra.mxu1 %v17737_v52 }
 0x8f4   : > { %17700 = vmatprep.subr.bf16.mxu0 %v20943_v33  ;;  %17772 = vmatprep.subr.bf16.mxu1 %v20613_v26  ;;  %v12063_v42 = vrot.slane %v20972_v62, %v12062_v50  ;;  %v12067_v39 = vrot.slane %v20972_v62, %v12066_v15 }
 0x8f7   : > { %17702 = vmatpush3.bf16.msra.mxu0 %v20945_v18 }
 0x8f8   : > { %17704 = vmatprep.subr.bf16.mxu0 %v20950_v57 }
 0x8fb   : > { %17706 = vmatpush3.bf16.msra.mxu0 %v20952_v58 }
 0x8fc   : > { %17740 = vmatprep.subr.bf16.mxu0 %v17739_v51 }
 0x9a5   : > { %v12621_v48 = vpop.f32.mrb[24].mxu0  ;;  %v20977_v23 = vpop.f32.mrb[24].mxu1 }
 0x9a6   : > { %22199 = vst [vmem:[#allocation25_spill] sm:$0xff] %v20977_v23  ;;  %v18071_v17 = vadd.f32 %v12621_v48, %v12063_v42  ;;  %v12623_v34 = vpop.f32.mrb[25].mxu0  ;;  %v20979_v8 = vpop.f32.mrb[25].mxu1 }
 0x9a7   : > { %22200 = vst [vmem:[#allocation26_spill] sm:$0xff] %v20979_v8  ;;  %v18072_v63 = vadd.f32 %v12623_v34, %v12067_v39  ;;  %v17741_v34 = vpack.c.bf16 %v20437_v31, %v20426_v55 }
 0x9a8   : > { %v13169_v12 = vmax.f32 %v18071_v17, 0.0 }
 0x9a9   : > { %v13170_v43 = vmax.f32 %v18072_v63, 0.0 }
 0x9aa   : > { %v20981_v52 = vand.u32 4294901760, %v13169_v12 }
 0x9ab   : > { %v20983_v51 = vand.u32 4294901760, %v13170_v43 }
 0x9ac   : > { %22201 = vst [vmem:[#allocation27_spill] sm:$0xff] %v20981_v52  ;;  %v20986_v32 = vsub.f32 %v13169_v12, %v20981_v52  ;;  %v17743_v12 = vpack.c.bf16 %v20447_v60, %v20442_v59 }
 0x9ad   : > { %v13341_v50 = vsub.f32 %v13170_v43, %v20983_v51  ;;  %13581 = vmatprep.mubr.f32.mxu1 %v20983_v51  ;;  %v17745_v43 = vpack.c.bf16 %v20461_v30, %v20456_v1 }
 0x9ae   : > { %v22072_v15 = vand.u32 4294901760, %v20986_v32  ;;  %13583 = vmatmul.mubr.f32.vlgmr.msra.gmra.mrb[26].mxu1 %v20981_v52 }
 0x9af   : > { %17774 = vmatpush3.bf16.msra.mxu1 %v20623_v16  ;;  %v13342_v42 = vand.u32 4294901760, %v13341_v50 }
 0x9b0   : > { %v13349_v39 = vsub.f32 %v20986_v32, %v22072_v15  ;;  %17776 = vmatprep.subr.bf16.mxu1 %v20675_v5  ;;  %v21063_v15 = vld [vmem:[%s21998_s15 + $0x1f8] sm:$0xff] }
 0x9b1   : > { %13825 = vmatprep.mubr.f32.mxu1 %v13342_v42  ;;  %v13343_v48 = vsub.f32 %v13341_v50, %v13342_v42  ;;  %v17747_v42 = vpack.c.bf16 %v20547_v54, %v20538_v38  ;;  %22212 = vst [vmem:[#allocation32_spill] sm:$0xff] %v21063_v15 }
 0x9b2   : > { %v13350_v63 = vand.u32 4294901760, %v13349_v39  ;;  %v17749_v39 = vpack.c.bf16 %v20578_v2, %v20573_v24 }
 0x9b3   : > { %17778 = vmatpush3.bf16.msra.mxu1 %v20681_v9  ;;  %v13344_v17 = vand.u32 4294901760, %v13343_v48  ;;  %v17751_v48 = vpack.c.bf16 %v20600_v47, %v20595_v44 }
 0x9b4   : > { %17780 = vmatprep.subr.bf16.mxu1 %v20760_v41 }
 0x9b5   : > { %13345 = vmatprep.mubr.f32.mxu0 %v13344_v17  ;;  %v21023_v17 = vld [vmem:[%s21998_s15 + $0x158] sm:$0xff] }
 0x9b6   : > { %13351 = vmatmul.mubr.f32.vlgmr.msra.gmra.mrb[26].mxu0 %v13350_v63  ;;  %22203 = vst [vmem:[#allocation29_spill] sm:$0xff] %v21023_v17  ;;  %v22217_v23 = vand.u32 4294901760, %v21023_v17 }
 0x9b7   : > { %17742 = vmatpush3.bf16.msra.mxu0 %v17741_v34  ;;  %17782 = vmatpush3.bf16.msra.mxu1 %v20795_v7  ;;  %v22204_v34 = vld [vmem:[#allocation9_spill] sm:$0xff] }
 0x9b8   : > { %13718 = vmatprep.mubr.f32.mxu0 %v13341_v50  ;;  %17744 = vmatprep.subr.bf16.mxu0 %v17743_v12  ;;  %v21018_v50 = vld [vmem:[%s21998_s15 + $0x150] sm:$0xff]  ;;  %v17753_v63 = vpack.c.bf16 %v22204_v34, %v20645_v37  ;;  %v21076_v52 = vsub.f32 %v21023_v17, %v22217_v23  ;;  %v22226_v23 = vld [vmem:[#allocation17_spill] sm:$0xff] }
 0x9b9   : > { %17784 = vmatprep.subr.bf16.mxu1 %v20801_v10  ;;  %22202 = vst [vmem:[#allocation28_spill] sm:$0xff] %v21018_v50  ;;  %v22215_v28 = vand.u32 4294901760, %v21018_v50  ;;  %v22225_v17 = vld [vmem:[#allocation16_spill] sm:$0xff] }
 0x9bb   : > { %17746 = vmatpush3.bf16.msra.mxu0 %v17745_v43  ;;  %17786 = vmatpush3.bf16.msra.mxu1 %v20824_v6  ;;  %v22214_v43 = vld [vmem:[#allocation13_spill] sm:$0xff]  ;;  %v21071_v27 = vsub.f32 %v21018_v50, %v22215_v28  ;;  %v22221_v28 = vld [vmem:[#allocation14_spill] sm:$0xff]  ;;  %v22222_v50 = vld [vmem:[#allocation15_spill] sm:$0xff] }
 0x9bc   : > { %17748 = vmatprep.subr.bf16.mxu0 %v17747_v42  ;;  %17788 = vmatprep.subr.bf16.mxu1 %v20906_v53  ;;  %v21033_v42 = vld [vmem:[%s21998_s15 + $0x1e0] sm:$0xff]  ;;  %v17757_v12 = vpack.c.bf16 %v22214_v43, %v22213_v0  ;;  %22218 = vst [vmem:[#allocation13_spill] sm:$0xff] %v21076_v52  ;;  %v17761_v53 = vpack.c.bf16 %v22226_v23, %v22225_v17 }
 0x9bd   : > { %22205 = vst [vmem:[#allocation9_spill] sm:$0xff] %v21033_v42  ;;  %22216 = vst [vmem:[#allocation12_spill] sm:$0xff] %v21071_v27  ;;  %v22223_v8 = vand.u32 4294901760, %v21033_v42 }
 0x9bf   : > { %17750 = vmatpush3.bf16.msra.mxu0 %v17749_v39  ;;  %17790 = vmatpush3.bf16.msra.mxu1 %v20912_v3  ;;  %v22207_v39 = vld [vmem:[#allocation10_spill] sm:$0xff]  ;;  %v21098_v6 = vsub.f32 %v21033_v42, %v22223_v8  ;;  %v22227_v3 = vand.u32 4294901760, %v21046_v13  ;;  %v22231_v42 = vand.u32 4294901760, %v21063_v15 }
 0x9c0   : > { %17752 = vmatprep.subr.bf16.mxu0 %v17751_v48  ;;  %17792 = vmatprep.subr.bf16.mxu1 %v20930_v49  ;;  %v17755_v11 = vpack.c.bf16 %v22208_v56, %v22207_v39  ;;  %22209 = vst [vmem:[#allocation10_spill] sm:$0xff] %v21046_v13  ;;  %v21058_v48 = vld [vmem:[%s21998_s15 + $0x1f0] sm:$0xff] }
 0x9c1   : > { %22211 = vst [vmem:[#allocation31_spill] sm:$0xff] %v21058_v48  ;;  %v21081_v49 = vld [vmem:[%s21998_s15 + $0x170] sm:$0xff]  ;;  %v22229_v8 = vand.u32 4294901760, %v21058_v48 }
 0x9c2   : > { %22219 = vst [vmem:[#allocation33_spill] sm:$0xff] %v21081_v49 }
 0x9c3   : > { %17754 = vmatpush3.bf16.msra.mxu0 %v17753_v63  ;;  %17794 = vmatpush3.bf16.msra.mxu1 %v20939_v36  ;;  %v21086_v63 = vld [vmem:[%s21998_s15 + $0x178] sm:$0xff]  ;;  %v17759_v36 = vpack.c.bf16 %v22222_v50, %v22221_v28  ;;  %v22228_v50 = vand.u32 4294901760, %v21051_v14  ;;  %v21136_v28 = vsub.f32 %v21058_v48, %v22229_v8  ;;  %v21157_v8 = vld [vmem:[%s21998_s15 + $0x108] sm:$0xff]  ;;  %v22240_v48 = vpack.c.bf16 %v20857_v25, %v20854_v46 }
 0x9c4   : > { %22220 = vst [vmem:[#allocation34_spill] sm:$0xff] %v21086_v63  ;;  %17756 = vmatprep.subr.bf16.mxu0 %v17755_v11  ;;  %17796 = vmatprep.subr.bf16.mxu1 %v20943_v33  ;;  %v22224_v11 = vand.u32 4294901760, %v21038_v4 }
 0x9c5   : > { %22230 = vst [vmem:[#allocation16_spill] sm:$0xff] %v21136_v28 }
 0x9c6   : > { %v21103_v33 = vsub.f32 %v21038_v4, %v22224_v11  ;;  %v21116_v11 = vld [vmem:[%s21998_s15 + $0x180] sm:$0xff]  ;;  %v21126_v4 = vsub.f32 %v21051_v14, %v22228_v50  ;;  %v22234_v50 = vand.u32 4294901760, %v21076_v52 }
 0x9c7   : > { %17758 = vmatpush3.bf16.msra.mxu0 %v17757_v12  ;;  %17798 = vmatpush3.bf16.msra.mxu1 %v20945_v18  ;;  %v21121_v12 = vsub.f32 %v21046_v13, %v22227_v3  ;;  %v21141_v3 = vsub.f32 %v21063_v15, %v22231_v42  ;;  %v22233_v13 = vand.u32 4294901760, %v21071_v27  ;;  %v22236_v15 = vand.u32 4294901760, %v21081_v49 }
 0x9c8   : > { %17760 = vmatprep.subr.bf16.mxu0 %v17759_v36  ;;  %17800 = vmatprep.subr.bf16.mxu1 %v20950_v57  ;;  %v21131_v36 = vld [vmem:[%s21998_s15 + $0x188] sm:$0xff]  ;;  %v21152_v57 = vld [vmem:[%s21998_s15 + $0x100] sm:$0xff]  ;;  %v22244_v42 = vand.u32 4294901760, %v20986_v32  ;;  %v22246_v27 = vand.u32 4294901760, %v21126_v4 }
 0x9c9   : > { %22232 = vst [vmem:[#allocation17_spill] sm:$0xff] %v21141_v3  ;;  %v21147_v14 = vpack.c.bf16 %v22234_v50, %v22233_v13  ;;  %v21164_v52 = vsub.f32 %v21081_v49, %v22236_v15  ;;  %v22238_v13 = vand.u32 4294901760, %v21086_v63  ;;  %v21195_v49 = vld [vmem:[%s21998_s15 + $0x190] sm:$0xff]  ;;  %v22251_v15 = vand.u32 4294901760, %v21136_v28 }
 0x9cb   : > { %22235 = vst [vmem:[#allocation35_spill] sm:$0xff] %v21147_v14  ;;  %22237 = vst [vmem:[#allocation36_spill] sm:$0xff] %v21164_v52  ;;  %v21169_v50 = vsub.f32 %v21086_v63, %v22238_v13  ;;  %17762 = vmatpush3.bf16.msra.mxu0 %v17761_v53  ;;  %17802 = vmatpush3.bf16.msra.mxu1 %v20952_v58  ;;  %v22241_v13 = vand.u32 4294901760, %v21098_v6  ;;  %v22242_v53 = vand.u32 4294901760, %v21103_v33 }
 0x9cc   : > { %17764 = vmatprep.subr.bf16.mxu0 %v22240_v48  ;;  %17836 = vmatprep.subr.bf16.mxu1 %v20613_v26  ;;  %v22248_v26 = vpack.c.bf16 %v20861_v35, %v20859_v40  ;;  %v22250_v48 = vand.u32 4294901760, %v20417_v29 }
 0x9cd   : > { %22239 = vst [vmem:[#allocation37_spill] sm:$0xff] %v21169_v50  ;;  %v21184_v63 = vpack.c.bf16 %v22242_v53, %v22241_v13  ;;  %v22245_v53 = vand.u32 4294901760, %v21121_v12  ;;  %v21216_v13 = vld [vmem:[%s21998_s15 + $0x198] sm:$0xff] }
 0x9ce   : > { %13829 = vmatmul.mubr.f32.vlgmr.msra.gmra.mrb[28].mxu1 %v22244_v42  ;;  %v22249_v42 = vand.u32 4294901760, %v20412_v21  ;;  %v22255_v21 = vand.u32 4294901760, %v21116_v11 }
 0x9cf   : > { %22243 = vst [vmem:[#allocation38_spill] sm:$0xff] %v21184_v63  ;;  %v21203_v14 = vpack.c.bf16 %v22246_v27, %v22245_v53  ;;  %17766 = vmatpush3.bf16.msra.mxu0 %v22248_v26  ;;  %17838 = vmatpush3.bf16.msra.mxu1 %v20623_v16  ;;  %v22252_v27 = vand.u32 4294901760, %v21141_v3  ;;  %v22254_v16 = vpack.c.bf16 %v20887_v20, %v20885_v22 }
 0x9d0   : > { %v17803_v63 = vpack.c.bf16 %v22250_v48, %v22249_v42  ;;  %14099 = vmatprep.mubr.f32.mxu1 %v20983_v51  ;;  %v21231_v29 = vsub.f32 %v21116_v11, %v22255_v21  ;;  %v22257_v48 = vand.u32 4294901760, %v21131_v36  ;;  %v22259_v42 = vand.u32 4294901760, %v21164_v52  ;;  %17840 = vmatprep.subr.bf16.mxu1 %v20675_v5 }
 0x9d1   : > { %22247 = vst [vmem:[#allocation39_spill] sm:$0xff] %v21203_v14  ;;  %v21222_v53 = vpack.c.bf16 %v22252_v27, %v22251_v15  ;;  %17768 = vmatprep.subr.bf16.mxu0 %v22254_v16  ;;  %v22260_v15 = vand.u32 4294901760, %v21169_v50  ;;  %v22262_v16 = vand.u32 4294901760, %v21152_v57  ;;  %v22264_v21 = vand.u32 4294901760, %v21157_v8  ;;  %v21259_v50 = vld [vmem:[%s21998_s15 + $0x110] sm:$0xff] }
 0x9d2   : > { %22256 = vst [vmem:[#allocation41_spill] sm:$0xff] %v21231_v29  ;;  %v21236_v26 = vsub.f32 %v21131_v36, %v22257_v48  ;;  %v12074_v5 = vsub.s32 3, %v20966_v61  ;;  %v22106_v3 = vand.u32 4294901760, %v21231_v29 }
 0x9d3   : > { %22253 = vst [vmem:[#allocation40_spill] sm:$0xff] %v21222_v53  ;;  %v21242_v27 = vpack.c.bf16 %v22260_v15, %v22259_v42  ;;  %v21248_v53 = vsub.f32 %v21152_v57, %v22262_v16  ;;  %v21253_v14 = vsub.f32 %v21157_v8, %v22264_v21  ;;  %v22266_v15 = vpack.c.bf16 %v20897_v19, %v20895_v45 }
 0x9d4   : > { %22258 = vst [vmem:[#allocation42_spill] sm:$0xff] %v21236_v26  ;;  %17842 = vmatpush3.bf16.msra.mxu1 %v20681_v9  ;;  %v22267_v16 = vand.u32 4294901760, %v20426_v55  ;;  %v22268_v21 = vand.u32 4294901760, %v20437_v31  ;;  %v22270_v42 = vand.u32 4294901760, %v20447_v60  ;;  %v22104_v28 = vand.u32 4294901760, %v21236_v26 }
 0x9d5   : > { %22261 = vst [vmem:[#allocation43_spill] sm:$0xff] %v21242_v27  ;;  %22263 = vst [vmem:[#allocation44_spill] sm:$0xff] %v21248_v53  ;;  %17770 = vmatpush3.bf16.msra.mxu0 %v22266_v15  ;;  %17844 = vmatprep.subr.bf16.mxu1 %v20760_v41  ;;  %v22269_v27 = vand.u32 4294901760, %v20442_v59  ;;  %v22107_v15 = vand.u32 4294901760, %v21259_v50  ;;  %v22105_v9 = vand.u32 4294901760, %v21248_v53  ;;  %v22271_v31 = vand.u32 4294901760, %v21195_v49 }
 0x9d6   : > { %22265 = vst [vmem:[#allocation45_spill] sm:$0xff] %v21253_v14  ;;  %v17805_v48 = vpack.c.bf16 %v22268_v21, %v22267_v16  ;;  %17804 = vmatprep.subr.bf16.mxu0 %v17803_v63  ;;  %v21289_v59 = vld [vmem:[%s21998_s15 + $0x118] sm:$0xff]  ;;  %v22273_v60 = vand.u32 4294901760, %v21216_v13  ;;  %v22276_v16 = vand.u32 4294901760, %v20461_v30  ;;  %v22278_v55 = vand.u32 4294901760, %v20547_v54 }
 0x9d7   : > { %v17807_v52 = vpack.c.bf16 %v22270_v42, %v22269_v27  ;;  %v21284_v63 = vsub.f32 %v21195_v49, %v22271_v31  ;;  %v12075_v27 = vrot.slane %v20972_v62, %v12074_v5  ;;  %v22275_v42 = vand.u32 4294901760, %v20456_v1 }
 0x9d8   : > { %13721 = vmatmul.mubr.f32.vlgmr.msra.gmra.mrb[28].mxu0 %v20986_v32  ;;  %v21295_v41 = vsub.f32 %v21216_v13, %v22273_v60  ;;  %v22277_v31 = vand.u32 4294901760, %v20538_v38  ;;  %v21310_v60 = vld [vmem:[%s21998_s15 + $0x1a0] sm:$0xff]  ;;  %17846 = vmatpush3.bf16.msra.mxu1 %v20795_v7  ;;  %v14334_v38 = vsub.f32 %v21231_v29, %v22106_v3  ;;  %v14341_v1 = vsub.f32 %v21236_v26, %v22104_v28 }
 0x9d9   : > { %22272 = vst [vmem:[#allocation46_spill] sm:$0xff] %v21284_v63  ;;  %17806 = vmatpush3.bf16.msra.mxu0 %v17805_v48  ;;  %13995 = vmatprep.mubr.f32.mxu0 %v20983_v51  ;;  %v17809_v21 = vpack.c.bf16 %v22276_v16, %v22275_v42  ;;  %v21315_v48 = vld [vmem:[%s21998_s15 + $0x1a8] sm:$0xff]  ;;  %v22108_v30 = vand.u32 4294901760, %v21289_v59  ;;  %v21328_v54 = vsub.f32 %v21259_v50, %v22107_v15  ;;  %v22280_v7 = vand.u32 4294901760, %v20573_v24 }
 0x9da   : > { %22274 = vst [vmem:[#allocation47_spill] sm:$0xff] %v21295_v41  ;;  %v17811_v32 = vpack.c.bf16 %v22278_v55, %v22277_v31  ;;  %17808 = vmatprep.subr.bf16.mxu0 %v17807_v52  ;;  %17848 = vmatprep.subr.bf16.mxu1 %v20801_v10  ;;  %v22281_v52 = vand.u32 4294901760, %v20578_v2  ;;  %v14222_v5 = vsub.f32 %v21248_v53, %v22105_v9  ;;  %v22282_v55 = vand.u32 4294901760, %v21253_v14  ;;  %v22291_v2 = vld [vmem:[#allocation14_spill] sm:$0xff] }
 0x9db   : > { %22279 = vst [vmem:[#allocation48_spill] sm:$0xff] %v21328_v54  ;;  %v22283_v31 = vand.u32 4294901760, %v20595_v44  ;;  %v22284_v28 = vand.u32 4294901760, %v20600_v47  ;;  %v22286_v9 = vand.u32 4294901760, %v22204_v34  ;;  %v22288_v15 = vand.u32 4294901760, %v22208_v56  ;;  %v22295_v34 = vld [vmem:[#allocation18_spill] sm:$0xff] }
 0x9dc   : > { %v17813_v51 = vpack.c.bf16 %v22281_v52, %v22280_v7  ;;  %v14229_v42 = vsub.f32 %v21253_v14, %v22282_v55  ;;  %v22285_v52 = vand.u32 4294901760, %v20645_v37  ;;  %v22287_v55 = vand.u32 4294901760, %v22207_v39  ;;  %v22293_v7 = vld [vmem:[#allocation15_spill] sm:$0xff]  ;;  %v21372_v37 = vld [vmem:[%s21998_s15 + $0x120] sm:$0xff]  ;;  %17850 = vmatpush3.bf16.msra.mxu1 %v22295_v34 }
 0x9dd   : > { %v17815_v10 = vpack.c.bf16 %v22284_v28, %v22283_v31  ;;  %17810 = vmatpush3.bf16.msra.mxu0 %v17809_v21  ;;  %v22289_v47 = vand.u32 4294901760, %v22213_v0  ;;  %v22290_v28 = vand.u32 4294901760, %v22214_v43  ;;  %v22292_v24 = vand.u32 4294901760, %v22291_v2  ;;  %v22309_v43 = vld [vmem:[#allocation20_spill] sm:$0xff] }
 0x9de   : > { %v17817_v3 = vpack.c.bf16 %v22286_v9, %v22285_v52  ;;  %v17819_v44 = vpack.c.bf16 %v22288_v15, %v22287_v55  ;;  %v22294_v21 = vand.u32 4294901760, %v22293_v7  ;;  %17812 = vmatprep.subr.bf16.mxu0 %v17811_v32  ;;  %v14335_v56 = vand.u32 4294901760, %v14334_v38  ;;  %v21384_v15 = vld [vmem:[%s21998_s15 + $0x128] sm:$0xff]  ;;  %v21389_v9 = vld [vmem:[%s21998_s15 + $0x1b0] sm:$0xff]  ;;  %v22297_v32 = vld [vmem:[#allocation26_spill] sm:$0xff] }
 0x9df   : > { %v21361_v31 = vpack.c.bf16 %v22290_v28, %v22289_v47  ;;  %v14342_v0 = vand.u32 4294901760, %v14341_v1  ;;  %v21379_v39 = vsub.f32 %v21289_v59, %v22108_v30  ;;  %v21392_v38 = vadd.f32 %v22297_v32, %v12075_v27  ;;  %v22298_v1 = vld [vmem:[#allocation19_spill] sm:$0xff] }
 0x9e0   : > { %v21367_v16 = vpack.c.bf16 %v22294_v21, %v22292_v24  ;;  %17852 = vmatprep.subr.bf16.mxu1 %v22298_v1  ;;  %v14223_v24 = vand.u32 4294901760, %v14222_v5  ;;  %v14230_v2 = vand.u32 4294901760, %v14229_v42  ;;  %v22299_v7 = vand.u32 4294901760, %v21284_v63  ;;  %v21415_v42 = vld [vmem:[%s21998_s15 + $0x1b8] sm:$0xff] }
 0x9e1   : > { %22296 = vst [vmem:[#allocation14_spill] sm:$0xff] %v21379_v39  ;;  %v22300_v55 = vand.u32 4294901760, %v21295_v41  ;;  %v22301_v28 = vand.u32 4294901760, %v21310_v60  ;;  %v22303_v27 = vand.u32 4294901760, %v21315_v48  ;;  %17814 = vmatpush3.bf16.msra.mxu0 %v17813_v51  ;;  %v22305_v32 = vand.u32 4294901760, %v22225_v17  ;;  %17854 = vmatpush3.bf16.msra.mxu1 %v22309_v43 }
 0x9e2   : > { %v14348_v52 = vsub.f32 %v21284_v63, %v22299_v7  ;;  %v22306_v1 = vand.u32 4294901760, %v22226_v23  ;;  %v22111_v30 = vand.u32 4294901760, %v21384_v15  ;;  %v22110_v5 = vand.u32 4294901760, %v21389_v9  ;;  %17816 = vmatprep.subr.bf16.mxu0 %v17815_v10 }
 0x9e3   : > { %v14355_v47 = vsub.f32 %v21295_v41, %v22300_v55  ;;  %v21404_v21 = vsub.f32 %v21310_v60, %v22301_v28  ;;  %v21409_v34 = vsub.f32 %v21315_v48, %v22303_v27  ;;  %v22307_v55 = vand.u32 4294901760, %v20854_v46 }
 0x9e4   : > { %v21421_v7 = vpack.c.bf16 %v22306_v1, %v22305_v32  ;;  %v22308_v28 = vand.u32 4294901760, %v20857_v25  ;;  %v21432_v51 = vpack.c.bf16 %v14342_v0, %v14335_v56  ;;  %v22310_v17 = vand.u32 4294901760, %v20859_v40  ;;  %v21459_v0 = vld [vmem:[%s21998_s15 + $0x138] sm:$0xff] }
 0x9e5   : > { %22302 = vst [vmem:[#allocation15_spill] sm:$0xff] %v21404_v21  ;;  %22304 = vst [vmem:[#allocation18_spill] sm:$0xff] %v21409_v34  ;;  %v22311_v23 = vand.u32 4294901760, %v20861_v35  ;;  %v22312_v46 = vand.u32 4294901760, %v21328_v54  ;;  %v22109_v1 = vand.u32 4294901760, %v21379_v39  ;;  %v21448_v10 = vpack.c.bf16 %v14230_v2, %v14223_v24  ;;  %v21454_v35 = vld [vmem:[%s21998_s15 + $0x130] sm:$0xff]  ;;  %17818 = vmatpush3.bf16.msra.mxu0 %v17817_v3 }
 0x9e6   : > { %v21427_v27 = vpack.c.bf16 %v22308_v28, %v22307_v55  ;;  %v13172_v55 = vmax.f32 %v21392_v38, 0.0  ;;  %v22313_v28 = vld [vmem:[#allocation21_spill] sm:$0xff]  ;;  %v14349_v56 = vand.u32 4294901760, %v14348_v52  ;;  %v14356_v43 = vand.u32 4294901760, %v14355_v47  ;;  %v21471_v52 = vld [vmem:[%s21998_s15 + $0x1c0] sm:$0xff]  ;;  %17820 = vmatprep.subr.bf16.mxu0 %v17819_v44 }
 0x9e7   : > { %v21438_v32 = vpack.c.bf16 %v22311_v23, %v22310_v17  ;;  %v21443_v25 = vsub.f32 %v21328_v54, %v22312_v46  ;;  %17856 = vmatprep.subr.bf16.mxu1 %v22313_v28  ;;  %v22314_v24 = vand.u32 4294901760, %v21372_v37  ;;  %v21476_v23 = vld [vmem:[%s21998_s15 + $0x1c8] sm:$0xff]  ;;  %v22316_v47 = vand.u32 4294901760, %v20885_v22  ;;  %v22322_v22 = vld [vmem:[#allocation22_spill] sm:$0xff] }
 0x9e8   : > { %v22317_v46 = vand.u32 4294901760, %v20887_v20  ;;  %v22319_v17 = vand.u32 4294901760, %v20897_v19  ;;  %v21493_v40 = vsub.f32 %v21384_v15, %v22111_v30  ;;  %v21498_v3 = vsub.f32 %v21389_v9, %v22110_v5  ;;  %17858 = vmatpush3.bf16.msra.mxu1 %v22322_v22  ;;  %v21530_v30 = vld [vmem:[%s21998_s15 + $0x1d0] sm:$0xff] }
 0x9e9   : > { %v21466_v2 = vsub.f32 %v21372_v37, %v22314_v24  ;;  %v22318_v24 = vand.u32 4294901760, %v20895_v45  ;;  %v14237_v20 = vand.u32 4294901760, %v21443_v25  ;;  %v14243_v19 = vsub.f32 %v21379_v39, %v22109_v1  ;;  %v22323_v25 = vld [vmem:[#allocation23_spill] sm:$0xff]  ;;  %17822 = vmatpush3.bf16.msra.mxu0 %v21361_v31 }
 0x9ea   : > { %v21482_v28 = vpack.c.bf16 %v22317_v46, %v22316_v47  ;;  %22320 = vst [vmem:[#allocation19_spill] sm:$0xff] %v21493_v40  ;;  %22321 = vst [vmem:[#allocation20_spill] sm:$0xff] %v21498_v3  ;;  %v21510_v47 = vld [vmem:[%s21998_s15 + $0x140] sm:$0xff]  ;;  %v21515_v46 = vld [vmem:[%s21998_s15 + $0x148] sm:$0xff]  ;;  %v21517_v44 = vand.u32 4294901760, %v13172_v55  ;;  %17860 = vmatprep.subr.bf16.mxu1 %v22323_v25  ;;  %v17903_v25 = vpack.c.bf16 %v14356_v43, %v14349_v56  ;;  %v22325_v45 = vand.u32 4294901760, %v21404_v21 }
 0x9eb   : > { %22315 = vst [vmem:[#allocation26_spill] sm:$0xff] %v21466_v2  ;;  %v21488_v38 = vpack.c.bf16 %v22319_v17, %v22318_v24  ;;  %v22324_v24 = vand.u32 4294901760, %v21415_v42  ;;  %v21535_v17 = vld [vmem:[%s21998_s15 + $0x1d8] sm:$0xff]  ;;  %v22326_v39 = vand.u32 4294901760, %v21409_v34  ;;  %17824 = vmatprep.subr.bf16.mxu0 %v21367_v16  ;;  %v22327_v43 = vand.u32 4294901760, %v21454_v35 }
 0x9ec   : > { %17862 = vmatpush3.bf16.msra.mxu1 %v20945_v18  ;;  %v21564_v56 = vsub.f32 %v13172_v55, %v21517_v44  ;;  %v22329_v18 = vld [vmem:[#allocation24_spill] sm:$0xff]  ;;  %v22330_v54 = vand.u32 4294901760, %v21471_v52  ;;  %v22331_v5 = vand.u32 4294901760, %v21476_v23  ;;  %v14244_v41 = vand.u32 4294901760, %v14243_v19 }
 0x9ed   : > { %v21523_v22 = vsub.f32 %v21415_v42, %v22324_v24  ;;  %v14362_v24 = vsub.f32 %v21404_v21, %v22325_v45  ;;  %v14369_v1 = vsub.f32 %v21409_v34, %v22326_v39  ;;  %v21554_v39 = vsub.f32 %v21454_v35, %v22327_v43  ;;  %17864 = vmatprep.subr.bf16.mxu1 %v22329_v18 }
 0x9ee   : > { %v22328_v45 = vand.u32 4294901760, %v21459_v0  ;;  %v21571_v43 = vsub.f32 %v21471_v52, %v22330_v54  ;;  %v22332_v55 = vand.u32 4294901760, %v21466_v2  ;;  %17826 = vmatpush3.bf16.msra.mxu0 %v21421_v7  ;;  %v22333_v18 = vand.u32 4294901760, %v21493_v40 }
 0x9ef   : > { %v14363_v34 = vand.u32 4294901760, %v14362_v24  ;;  %v14370_v63 = vand.u32 4294901760, %v14369_v1  ;;  %v22334_v54 = vand.u32 4294901760, %v21498_v3  ;;  %v22336_v1 = vand.u32 4294901760, %v21515_v46  ;;  %17828 = vmatprep.subr.bf16.mxu0 %v21427_v27 }
 0x9f0   : > { %v21559_v31 = vsub.f32 %v21459_v0, %v22328_v45  ;;  %v21576_v45 = vsub.f32 %v21476_v23, %v22331_v5  ;;  %v14250_v21 = vsub.f32 %v21466_v2, %v22332_v55  ;;  %v14257_v16 = vsub.f32 %v21493_v40, %v22333_v18  ;;  %17866 = vmatpush3.bf16.msra.mxu1 %v20952_v58 }
 0x9f1   : > { %v14376_v14 = vsub.f32 %v21498_v3, %v22334_v54  ;;  %v22335_v5 = vand.u32 4294901760, %v21510_v47  ;;  %v21596_v24 = vsub.f32 %v21515_v46, %v22336_v1  ;;  %v22337_v18 = vand.u32 4294901760, %v21530_v30  ;;  %17900 = vmatprep.subr.bf16.mxu1 %v21432_v51  ;;  %v22342_v51 = vld [vmem:[#allocation27_spill] sm:$0xff] }
 0x9f2   : > { %v22339_v27 = vand.u32 4294901760, %v21523_v22  ;;  %v22138_v7 = vand.u32 4294901760, %v21576_v45  ;;  %v17905_v40 = vpack.c.bf16 %v14244_v41, %v14237_v20  ;;  %v22341_v2 = vand.u32 4294901760, %v21131_v36  ;;  %17830 = vmatpush3.bf16.msra.mxu0 %v21438_v32 }
 0x9f3   : > { %v21591_v19 = vsub.f32 %v21510_v47, %v22335_v5  ;;  %v21605_v54 = vsub.f32 %v21530_v30, %v22337_v18  ;;  %v22338_v5 = vand.u32 4294901760, %v21535_v17  ;;  %v22340_v18 = vand.u32 4294901760, %v21116_v11  ;;  %14101 = vmatmul.mubr.f32.vlgmr.msra.gmra.mrb[30].mxu1 %v22342_v51  ;;  %17832 = vmatprep.subr.bf16.mxu0 %v21482_v28 }
 0x9f4   : > { %v14383_v1 = vsub.f32 %v21523_v22, %v22339_v27  ;;  %v14251_v26 = vand.u32 4294901760, %v14250_v21  ;;  %v14258_v58 = vand.u32 4294901760, %v14257_v16  ;;  %v14377_v29 = vand.u32 4294901760, %v14376_v14  ;;  %17902 = vmatpush3.bf16.msra.mxu1 %v21448_v10  ;;  %14443 = vmatprep.mubr.f32.mxu1 %v21517_v44 }
 0x9f5   : > { %v21610_v3 = vsub.f32 %v21535_v17, %v22338_v5  ;;  %v21623_v53 = vpack.c.bf16 %v22341_v2, %v22340_v18  ;;  %v17907_v5 = vpack.c.bf16 %v14370_v63, %v14363_v34  ;;  %v14277_v27 = vand.u32 4294901760, %v21591_v19  ;;  %17904 = vmatprep.subr.bf16.mxu1 %v17903_v25 }
 0x9f6   : > { %v14284_v55 = vand.u32 4294901760, %v21596_v24  ;;  %v22343_v11 = vand.u32 4294901760, %v21554_v39  ;;  %v22344_v63 = vand.u32 4294901760, %v21559_v31  ;;  %v14403_v21 = vand.u32 4294901760, %v21605_v54  ;;  %17834 = vmatpush3.bf16.msra.mxu0 %v21488_v38 }
 0x9f7   : > { %v14410_v14 = vand.u32 4294901760, %v21610_v3  ;;  %v22345_v34 = vand.u32 4294901760, %v21564_v56  ;;  %v14384_v10 = vand.u32 4294901760, %v14383_v1  ;;  %v22346_v2 = vand.u32 4294901760, %v21571_v43  ;;  %17868 = vmatprep.subr.bf16.mxu0 %v21623_v53 }
 0x9f8   : > { %v14264_v36 = vsub.f32 %v21554_v39, %v22343_v11  ;;  %v14271_v41 = vsub.f32 %v21559_v31, %v22344_v63  ;;  %v14397_v16 = vsub.f32 %v21576_v45, %v22138_v7  ;;  %v12070_v18 = vsub.s32 2, %v20966_v61  ;;  %17906 = vmatpush3.bf16.msra.mxu1 %v17905_v40 }
 0x9f9   : > { %v14205_v32 = vsub.f32 %v21564_v56, %v22345_v34  ;;  %v14390_v20 = vsub.f32 %v21571_v43, %v22346_v2  ;;  %v22347_v11 = vand.u32 4294901760, %v21152_v57  ;;  %v22348_v28 = vand.u32 4294901760, %v21157_v8  ;;  %17908 = vmatprep.subr.bf16.mxu1 %v17907_v5  ;;  %13997 = vmatmul.mubr.f32.vlgmr.msra.gmra.mrb[30].mxu0 %v22342_v51  ;;  %v22353_v5 = vld [vmem:[#allocation12_spill] sm:$0xff] }
 0x9fa   : > { %v17909_v63 = vpack.c.bf16 %v14258_v58, %v14251_v26  ;;  %v22349_v1 = vand.u32 4294901760, %v21195_v49  ;;  %v22350_v34 = vand.u32 4294901760, %v21216_v13  ;;  %v14278_v7 = vsub.f32 %v21591_v19, %v14277_v27 }
 0x9fb   : > { %v21654_v25 = vpack.c.bf16 %v22348_v28, %v22347_v11  ;;  %v14285_v57 = vsub.f32 %v21596_v24, %v14284_v55  ;;  %v14265_v61 = vand.u32 4294901760, %v14264_v36  ;;  %v14272_v8 = vand.u32 4294901760, %v14271_v41 }
 0x9fc   : > { %v21661_v2 = vpack.c.bf16 %v22350_v34, %v22349_v1  ;;  %v14404_v49 = vsub.f32 %v21605_v54, %v14403_v21  ;;  %v14411_v13 = vsub.f32 %v21610_v3, %v14410_v14  ;;  %v14206_v26 = vand.u32 4294901760, %v14205_v32  ;;  %17910 = vmatpush3.bf16.msra.mxu1 %v17909_v63 }
 0x9fd   : > { %v17911_v38 = vpack.c.bf16 %v14384_v10, %v14377_v29  ;;  %v14391_v58 = vand.u32 4294901760, %v14390_v20  ;;  %v14398_v11 = vand.u32 4294901760, %v14397_v16  ;;  %v12071_v28 = vrot.slane %v20972_v62, %v12070_v18  ;;  %17870 = vmatpush3.bf16.msra.mxu0 %v21654_v25  ;;  %v22355_v10 = vld [vmem:[#allocation13_spill] sm:$0xff] }
 0x9fe   : > { %v22351_v40 = vand.u32 4294901760, %v21259_v50  ;;  %v22352_v36 = vand.u32 4294901760, %v21289_v59  ;;  %14207 = vmatprep.mubr.f32.mxu0 %v14206_v26  ;;  %v14279_v1 = vand.u32 4294901760, %v14278_v7  ;;  %v14286_v34 = vand.u32 4294901760, %v14285_v57  ;;  %17872 = vmatprep.subr.bf16.mxu0 %v21661_v2 }
 0x9ff   : > { %v22354_v32 = vand.u32 4294901760, %v22353_v5  ;;  %v22356_v20 = vand.u32 4294901760, %v22355_v10  ;;  %v17913_v50 = vpack.c.bf16 %v14272_v8, %v14265_v61  ;;  %v22357_v59 = vand.u32 4294901760, %v21310_v60  ;;  %17912 = vmatprep.subr.bf16.mxu1 %v17911_v38 }
 0xa00   : > { %v21682_v41 = vpack.c.bf16 %v22352_v36, %v22351_v40  ;;  %v22358_v51 = vand.u32 4294901760, %v21315_v48  ;;  %v14405_v7 = vand.u32 4294901760, %v14404_v49  ;;  %v14412_v18 = vand.u32 4294901760, %v14411_v13 }
 0xa01   : > { %v14292_v29 = vsub.f32 %v22353_v5, %v22354_v32  ;;  %v14299_v62 = vsub.f32 %v22355_v10, %v22356_v20  ;;  %v17915_v57 = vpack.c.bf16 %v14398_v11, %v14391_v58  ;;  %v22359_v26 = vand.u32 4294901760, %v21098_v6  ;;  %17914 = vmatpush3.bf16.msra.mxu1 %v17913_v50 }
 0xa02   : > { %v21696_v16 = vpack.c.bf16 %v22358_v51, %v22357_v59  ;;  %v22360_v36 = vand.u32 4294901760, %v21103_v33  ;;  %v22361_v61 = vand.u32 4294901760, %v21372_v37  ;;  %v22362_v60 = vand.u32 4294901760, %v21384_v15  ;;  %17874 = vmatpush3.bf16.msra.mxu0 %v21682_v41  ;;  %v22366_v37 = vld [vmem:[#allocation25_spill] sm:$0xff] }
 0xa03   : > { %v14418_v40 = vsub.f32 %v21098_v6, %v22359_v26  ;;  %v22363_v48 = vand.u32 4294901760, %v21389_v9  ;;  %v22364_v49 = vand.u32 4294901760, %v21415_v42  ;;  %v17917_v38 = vpack.c.bf16 %v14286_v34, %v14279_v1  ;;  %17916 = vmatprep.subr.bf16.mxu1 %v17915_v57  ;;  %v22368_v1 = vld [vmem:[#allocation16_spill] sm:$0xff] }
 0xa04   : > { %v14425_v63 = vsub.f32 %v21103_v33, %v22360_v36  ;;  %v21708_v8 = vpack.c.bf16 %v22362_v60, %v22361_v61  ;;  %v14293_v58 = vand.u32 4294901760, %v14292_v29  ;;  %v14300_v11 = vand.u32 4294901760, %v14299_v62  ;;  %17876 = vmatprep.subr.bf16.mxu0 %v21696_v16  ;;  %v22370_v62 = vld [vmem:[#allocation17_spill] sm:$0xff] }
 0xa05   : > { %v21714_v13 = vpack.c.bf16 %v22364_v49, %v22363_v48  ;;  %v22365_v32 = vand.u32 4294901760, %v21121_v12  ;;  %v18073_v59 = vadd.f32 %v22366_v37, %v12071_v28  ;;  %v17919_v15 = vpack.c.bf16 %v14412_v18, %v14405_v7  ;;  %17918 = vmatpush3.bf16.msra.mxu1 %v17917_v38 }
 0xa06   : > { %v22367_v9 = vand.u32 4294901760, %v21126_v4  ;;  %v14419_v51 = vand.u32 4294901760, %v14418_v40  ;;  %v14426_v26 = vand.u32 4294901760, %v14425_v63  ;;  %v22369_v34 = vand.u32 4294901760, %v22368_v1  ;;  %17878 = vmatpush3.bf16.msra.mxu0 %v21708_v8 }
 0xa07   : > { %v14306_v20 = vsub.f32 %v21121_v12, %v22365_v32  ;;  %v22371_v36 = vand.u32 4294901760, %v22370_v62  ;;  %v22372_v28 = vand.u32 4294901760, %v21454_v35  ;;  %v22373_v50 = vand.u32 4294901760, %v21459_v0  ;;  %17880 = vmatprep.subr.bf16.mxu0 %v21714_v13  ;;  %v22376_v32 = vld [vmem:[#allocation36_spill] sm:$0xff]  ;;  %v22378_v0 = vld [vmem:[#allocation37_spill] sm:$0xff]  ;;  %17920 = vmatprep.subr.bf16.mxu1 %v17919_v15 }
 0xa08   : > { %v14313_v42 = vsub.f32 %v21126_v4, %v22367_v9  ;;  %v14432_v29 = vsub.f32 %v22368_v1, %v22369_v34  ;;  %v17921_v18 = vpack.c.bf16 %v14300_v11, %v14293_v58  ;;  %v22374_v57 = vand.u32 4294901760, %v21471_v52 }
 0xa09   : > { %v14439_v61 = vsub.f32 %v22370_v62, %v22371_v36  ;;  %v21736_v7 = vpack.c.bf16 %v22373_v50, %v22372_v28  ;;  %v22375_v40 = vand.u32 4294901760, %v21476_v23  ;;  %v14307_v60 = vand.u32 4294901760, %v14306_v20 }
 0xa0a   : > { %v13171_v48 = vmax.f32 %v18073_v59, 0.0  ;;  %v14314_v49 = vand.u32 4294901760, %v14313_v42  ;;  %v22377_v37 = vand.u32 4294901760, %v22376_v32  ;;  %v22379_v9 = vand.u32 4294901760, %v22378_v0  ;;  %17922 = vmatpush3.bf16.msra.mxu1 %v17921_v18 }
 0xa0b   : > { %v21742_v63 = vpack.c.bf16 %v22375_v40, %v22374_v57  ;;  %v17923_v52 = vpack.c.bf16 %v14426_v26, %v14419_v51  ;;  %v14433_v11 = vand.u32 4294901760, %v14432_v29  ;;  %v14440_v23 = vand.u32 4294901760, %v14439_v61  ;;  %17882 = vmatpush3.bf16.msra.mxu0 %v21736_v7  ;;  %v22386_v61 = vld [vmem:[#allocation29_spill] sm:$0xff] }
 0xa0c   : > { %v14320_v35 = vsub.f32 %v22376_v32, %v22377_v37  ;;  %v14327_v58 = vsub.f32 %v22378_v0, %v22379_v9  ;;  %v22380_v20 = vand.u32 4294901760, %v21510_v47  ;;  %v22381_v38 = vand.u32 4294901760, %v21515_v46  ;;  %v22384_v46 = vld [vmem:[#allocation28_spill] sm:$0xff]  ;;  %v22388_v57 = vld [vmem:[#allocation9_spill] sm:$0xff] }
 0xa0d   : > { %v22382_v42 = vand.u32 4294901760, %v21530_v30  ;;  %v22383_v34 = vand.u32 4294901760, %v21535_v17  ;;  %v21764_v28 = vand.u32 4294901760, %v13171_v48  ;;  %17884 = vmatprep.subr.bf16.mxu0 %v21742_v63  ;;  %v17925_v15 = vpack.c.bf16 %v14314_v49, %v14307_v60  ;;  %17924 = vmatprep.subr.bf16.mxu1 %v17923_v52  ;;  %v22390_v60 = vld [vmem:[#allocation30_spill] sm:$0xff] }
 0xa0e   : > { %v21756_v59 = vpack.c.bf16 %v22381_v38, %v22380_v20  ;;  %v14321_v51 = vand.u32 4294901760, %v14320_v35  ;;  %v14328_v26 = vand.u32 4294901760, %v14327_v58  ;;  %v17927_v47 = vpack.c.bf16 %v14440_v23, %v14433_v11  ;;  %v22392_v35 = vld [vmem:[#allocation10_spill] sm:$0xff]  ;;  %v22394_v58 = vld [vmem:[#allocation11_spill] sm:$0xff]  ;;  %v22398_v38 = vld [vmem:[#allocation32_spill] sm:$0xff] }
 0xa0f   : > { %v21762_v36 = vpack.c.bf16 %v22383_v34, %v22382_v42  ;;  %v22385_v29 = vand.u32 4294901760, %v22384_v46  ;;  %v22387_v30 = vand.u32 4294901760, %v22386_v61  ;;  %v21775_v17 = vsub.f32 %v13171_v48, %v21764_v28  ;;  %17926 = vmatpush3.bf16.msra.mxu1 %v17925_v15  ;;  %v22396_v23 = vld [vmem:[#allocation31_spill] sm:$0xff]  ;;  %v22400_v15 = vld [vmem:[#allocation33_spill] sm:$0xff] }
 0xa10   : > { %17886 = vmatpush3.bf16.msra.mxu0 %v21756_v59  ;;  %v17929_v18 = vpack.c.bf16 %v14328_v26, %v14321_v51  ;;  %v22389_v40 = vand.u32 4294901760, %v22388_v57  ;;  %v22391_v49 = vand.u32 4294901760, %v22390_v60  ;;  %17928 = vmatprep.subr.bf16.mxu1 %v17927_v47  ;;  %v22393_v9 = vand.u32 4294901760, %v22392_v35  ;;  %v22402_v26 = vld [vmem:[#allocation34_spill] sm:$0xff]  ;;  %v22408_v60 = vld [vmem:[#allocation45_spill] sm:$0xff] }
 0xa11   : > { %v21772_v50 = vpack.c.bf16 %v22387_v30, %v22385_v29  ;;  %17888 = vmatprep.subr.bf16.mxu0 %v21762_v36  ;;  %v22395_v52 = vand.u32 4294901760, %v22394_v58  ;;  %v14210_v48 = vand.u32 4294901760, %v21775_v17  ;;  %v22397_v20 = vand.u32 4294901760, %v22396_v23  ;;  %v22405_v30 = vld [vmem:[#allocation41_spill] sm:$0xff]  ;;  %v22410_v58 = vld [vmem:[#allocation47_spill] sm:$0xff]  ;;  %v22411_v23 = vld [vmem:[#allocation48_spill] sm:$0xff] }
 0xa12   : > { %v21782_v37 = vpack.c.bf16 %v22391_v49, %v22389_v40  ;;  %v22399_v42 = vand.u32 4294901760, %v22398_v38  ;;  %v22401_v51 = vand.u32 4294901760, %v22400_v15  ;;  %v22403_v47 = vand.u32 4294901760, %v22402_v26  ;;  %v22407_v40 = vld [vmem:[#allocation44_spill] sm:$0xff]  ;;  %v22414_v15 = vld [vmem:[#allocation18_spill] sm:$0xff] }
 0xa13   : > { %v21789_v11 = vpack.c.bf16 %v22395_v52, %v22393_v9  ;;  %17930 = vmatpush3.bf16.msra.mxu1 %v17929_v18  ;;  %v14211_v29 = vsub.f32 %v21775_v17, %v14210_v48  ;;  %v22404_v61 = vand.u32 4294901760, %v21564_v56  ;;  %v22406_v18 = vld [vmem:[#allocation42_spill] sm:$0xff]  ;;  %v17933_v49 = vpack.c.bf16 %v22408_v60, %v22407_v40 }
 0xa14   : > { %17890 = vmatpush3.bf16.msra.mxu0 %v21772_v50  ;;  %17964 = vmatprep.subr.bf16.mxu1 %v21623_v53  ;;  %v21798_v34 = vpack.c.bf16 %v22399_v42, %v22397_v20  ;;  %v21806_v46 = vpack.c.bf16 %v22403_v47, %v22401_v51  ;;  %v17931_v57 = vpack.c.bf16 %v22406_v18, %v22405_v30  ;;  %v22409_v9 = vld [vmem:[#allocation46_spill] sm:$0xff]  ;;  %v22413_v42 = vld [vmem:[#allocation15_spill] sm:$0xff] }
 0xa15   : > { %17892 = vmatprep.subr.bf16.mxu0 %v21782_v37  ;;  %v14212_v35 = vand.u32 4294901760, %v14211_v29  ;;  %v17935_v52 = vpack.c.bf16 %v22410_v58, %v22409_v9  ;;  %v22412_v20 = vld [vmem:[#allocation14_spill] sm:$0xff]  ;;  %v17939_v51 = vpack.c.bf16 %v22414_v15, %v22413_v42  ;;  %v22416_v47 = vld [vmem:[#allocation19_spill] sm:$0xff] }
 0xa16   : > { %14445 = vmatmul.mubr.f32.vlgmr.msra.gmra.mrb[32].mxu1 %v21764_v28  ;;  %v17937_v38 = vpack.c.bf16 %v22412_v20, %v22411_v23  ;;  %v22415_v26 = vld [vmem:[#allocation26_spill] sm:$0xff] }
 0xa17   : > { %17966 = vmatpush3.bf16.msra.mxu1 %v21654_v25  ;;  %14687 = vmatprep.mubr.f32.mxu1 %v22404_v61  ;;  %v17941_v29 = vpack.c.bf16 %v22416_v47, %v22415_v26  ;;  %v22417_v61 = vld [vmem:[#allocation20_spill] sm:$0xff] }
 0xa18   : > { %17894 = vmatpush3.bf16.msra.mxu0 %v21789_v11  ;;  %17968 = vmatprep.subr.bf16.mxu1 %v21661_v2 }
 0xa19   : > { %17896 = vmatprep.subr.bf16.mxu0 %v21798_v34 }
 0xa1b   : > { %17970 = vmatpush3.bf16.msra.mxu1 %v21682_v41 }
 0xa1c   : > { %17898 = vmatpush3.bf16.msra.mxu0 %v21806_v46  ;;  %17972 = vmatprep.subr.bf16.mxu1 %v21696_v16 }
 0xa1d   : > { %17932 = vmatprep.subr.bf16.mxu0 %v17931_v57  ;;  %v17945_v57 = vpack.c.bf16 %v21559_v31, %v21554_v39 }
 0xa1f   : > { %14213 = vmatmul.mubr.f32.vlgmr.msra.gmra.mrb[32].mxu0 %v14212_v35  ;;  %17974 = vmatpush3.bf16.msra.mxu1 %v21708_v8  ;;  %v17949_v35 = vpack.c.bf16 %v21596_v24, %v21591_v19  ;;  %v22440_v19 = vld [vmem:[#allocation43_spill] sm:$0xff] }
 0xa20   : > { %17934 = vmatpush3.bf16.msra.mxu0 %v17933_v49  ;;  %14580 = vmatprep.mubr.f32.mxu0 %v21564_v56  ;;  %v17943_v56 = vpack.c.bf16 %v21523_v22, %v22417_v61  ;;  %v17947_v49 = vpack.c.bf16 %v21576_v45, %v21571_v43 }
 0xa21   : > { %17936 = vmatprep.subr.bf16.mxu0 %v17935_v52  ;;  %17976 = vmatprep.subr.bf16.mxu1 %v21714_v13  ;;  %v17951_v52 = vpack.c.bf16 %v21610_v3, %v21605_v54  ;;  %v22439_v3 = vld [vmem:[#allocation40_spill] sm:$0xff] }
 0xa23   : > { %17978 = vmatpush3.bf16.msra.mxu1 %v21736_v7 }
 0xa24   : > { %17938 = vmatpush3.bf16.msra.mxu0 %v17937_v38  ;;  %17980 = vmatprep.subr.bf16.mxu1 %v21742_v63  ;;  %v17953_v38 = vpack.c.bf16 %v22355_v10, %v22353_v5  ;;  %v17959_v5 = vpack.c.bf16 %v22370_v62, %v22368_v1  ;;  %v17961_v10 = vpack.c.bf16 %v22378_v0, %v22376_v32  ;;  %v22423_v62 = vand.u32 4294901760, %v22410_v58 }
 0xa25   : > { %17940 = vmatprep.subr.bf16.mxu0 %v17939_v51  ;;  %v17955_v51 = vpack.c.bf16 %v21103_v33, %v21098_v6  ;;  %v22418_v6 = vand.u32 4294901760, %v22405_v30  ;;  %v22425_v0 = vand.u32 4294901760, %v22412_v20  ;;  %v22427_v30 = vand.u32 4294901760, %v22414_v15 }
 0xa27   : > { %17982 = vmatpush3.bf16.msra.mxu1 %v21756_v59 }
 0xa28   : > { %17942 = vmatpush3.bf16.msra.mxu0 %v17941_v29  ;;  %17984 = vmatprep.subr.bf16.mxu1 %v21762_v36  ;;  %v17957_v29 = vpack.c.bf16 %v21126_v4, %v21121_v12  ;;  %v22419_v4 = vand.u32 4294901760, %v22406_v18  ;;  %v22420_v12 = vand.u32 4294901760, %v22407_v40  ;;  %v22430_v40 = vand.u32 4294901760, %v22417_v61 }
 0xa29   : > { %17944 = vmatprep.subr.bf16.mxu0 %v17943_v56 }
 0xa2a   : > { %v17995_v33 = vpack.c.bf16 %v22419_v4, %v22418_v6 }
 0xa2b   : > { %17986 = vmatpush3.bf16.msra.mxu1 %v21772_v50 }
 0xa2c   : > { %17946 = vmatpush3.bf16.msra.mxu0 %v17945_v57  ;;  %17988 = vmatprep.subr.bf16.mxu1 %v21782_v37 }
 0xa2d   : > { %17948 = vmatprep.subr.bf16.mxu0 %v17947_v49 }
 0xa2f   : > { %17990 = vmatpush3.bf16.msra.mxu1 %v21789_v11 }
 0xa30   : > { %17950 = vmatpush3.bf16.msra.mxu0 %v17949_v35  ;;  %17992 = vmatprep.subr.bf16.mxu1 %v21798_v34 }
 0xa31   : > { %17952 = vmatprep.subr.bf16.mxu0 %v17951_v52 }
 0xa33   : > { %17994 = vmatpush3.bf16.msra.mxu1 %v21806_v46 }
 0xa34   : > { %17954 = vmatpush3.bf16.msra.mxu0 %v17953_v38  ;;  %18028 = vmatprep.subr.bf16.mxu1 %v21623_v53  ;;  %v22421_v53 = vand.u32 4294901760, %v22408_v60 }
 0xa35   : > { %17956 = vmatprep.subr.bf16.mxu0 %v17955_v51 }
 0xa36   : > { %14691 = vmatmul.mubr.f32.vlgmr.msra.gmra.mrb[34].mxu1 %v14210_v48  ;;  %v17997_v1 = vpack.c.bf16 %v22421_v53, %v22420_v12 }
 0xa37   : > { %18030 = vmatpush3.bf16.msra.mxu1 %v21654_v25  ;;  %14961 = vmatprep.mubr.f32.mxu1 %v21517_v44  ;;  %v22422_v25 = vand.u32 4294901760, %v22409_v9  ;;  %v22432_v9 = vand.u32 4294901760, %v21554_v39  ;;  %v18015_v39 = vpack.c.bf16 %v14410_v14, %v14403_v21  ;;  %v15066_v21 = vld [vmem:[%s21999_s16] ss:$0 sm:$0xff] }
 0xa38   : > { %17958 = vmatpush3.bf16.msra.mxu0 %v17957_v29  ;;  %18032 = vmatprep.subr.bf16.mxu1 %v21661_v2  ;;  %v22424_v2 = vand.u32 4294901760, %v22411_v23  ;;  %v22434_v23 = vand.u32 4294901760, %v21571_v43  ;;  %v22437_v43 = vld [vmem:[#allocation38_spill] sm:$0xff] }
 0xa39   : > { %17960 = vmatprep.subr.bf16.mxu0 %v17959_v5  ;;  %v17999_v32 = vpack.c.bf16 %v22423_v62, %v22422_v25 }
 0xa3a   : > { %v18001_v48 = vpack.c.bf16 %v22425_v0, %v22424_v2 }
 0xa3b   : > { %18034 = vmatpush3.bf16.msra.mxu1 %v21682_v41  ;;  %v22426_v41 = vand.u32 4294901760, %v22413_v42 }
 0xa3c   : > { %17962 = vmatpush3.bf16.msra.mxu0 %v17961_v10  ;;  %18036 = vmatprep.subr.bf16.mxu1 %v21696_v16  ;;  %v22428_v16 = vand.u32 4294901760, %v22415_v26 }
 0xa3d   : > { %17996 = vmatprep.subr.bf16.mxu0 %v17995_v33  ;;  %v18003_v18 = vpack.c.bf16 %v22427_v30, %v22426_v41 }
 0xa3f   : > { %14583 = vmatmul.mubr.f32.vlgmr.msra.gmra.mrb[34].mxu0 %v21775_v17  ;;  %18038 = vmatpush3.bf16.msra.mxu1 %v21708_v8  ;;  %v22431_v8 = vand.u32 4294901760, %v21523_v22  ;;  %v18013_v22 = vpack.c.bf16 %v14284_v55, %v14277_v27 }
 0xa40   : > { %17998 = vmatpush3.bf16.msra.mxu0 %v17997_v1  ;;  %14857 = vmatprep.mubr.f32.mxu0 %v21517_v44  ;;  %v22429_v44 = vand.u32 4294901760, %v22416_v47 }
 0xa41   : > { %18000 = vmatprep.subr.bf16.mxu0 %v17999_v32  ;;  %18040 = vmatprep.subr.bf16.mxu1 %v21714_v13  ;;  %v18007_v60 = vpack.c.bf16 %v22431_v8, %v22430_v40  ;;  %v22433_v13 = vand.u32 4294901760, %v21559_v31  ;;  %v22436_v31 = vld [vmem:[#allocation35_spill] sm:$0xff]  ;;  %v22441_v8 = vld [vmem:[#allocation8_spill] sm:$0xff] }
 0xa42   : > { %v18005_v17 = vpack.c.bf16 %v22429_v44, %v22428_v16 }
 0xa43   : > { %18042 = vmatpush3.bf16.msra.mxu1 %v21736_v7  ;;  %v18009_v58 = vpack.c.bf16 %v22433_v13, %v22432_v9  ;;  %v22435_v7 = vand.u32 4294901760, %v21576_v45  ;;  %v22438_v45 = vld [vmem:[#allocation39_spill] sm:$0xff] }
 0xa44   : > { %18002 = vmatpush3.bf16.msra.mxu0 %v18001_v48  ;;  %18044 = vmatprep.subr.bf16.mxu1 %v21742_v63 }
 0xa45   : > { %18004 = vmatprep.subr.bf16.mxu0 %v18003_v18  ;;  %v18011_v20 = vpack.c.bf16 %v22435_v7, %v22434_v23 }
 0xa47   : > { %18046 = vmatpush3.bf16.msra.mxu1 %v21756_v59 }
 0xa48   : > { %18006 = vmatpush3.bf16.msra.mxu0 %v18005_v17  ;;  %18048 = vmatprep.subr.bf16.mxu1 %v21762_v36 }
 0xa49   : > { %18008 = vmatprep.subr.bf16.mxu0 %v18007_v60 }
 0xa4b   : > { %18050 = vmatpush3.bf16.msra.mxu1 %v21772_v50 }
 0xa4c   : > { %18010 = vmatpush3.bf16.msra.mxu0 %v18009_v58  ;;  %18052 = vmatprep.subr.bf16.mxu1 %v21782_v37 }
 0xa4d   : > { %18012 = vmatprep.subr.bf16.mxu0 %v18011_v20 }
 0xa4f   : > { %18054 = vmatpush3.bf16.msra.mxu1 %v21789_v11 }
 0xa50   : > { %18014 = vmatpush3.bf16.msra.mxu0 %v18013_v22  ;;  %18056 = vmatprep.subr.bf16.mxu1 %v21798_v34 }
 0xa51   : > { %18016 = vmatprep.subr.bf16.mxu0 %v18015_v39 }
 0xa53   : > { %18058 = vmatpush3.bf16.msra.mxu1 %v21806_v46 }
 0xa54   : > { %18018 = vmatpush3.bf16.msra.mxu0 %v22436_v31 }
 0xa55   : > { %18020 = vmatprep.subr.bf16.mxu0 %v22437_v43 }
 0xa56   : > { %14963 = vmatmul.mubr.f32.vlgmr.msra.gmra.mrb[36].mxu1 %v21764_v28 }
 0xa58   : > { %18022 = vmatpush3.bf16.msra.mxu0 %v22438_v45 }
 0xa59   : > { %18024 = vmatprep.subr.bf16.mxu0 %v22439_v3 }
 0xa5c   : > { %18026 = vmatpush3.bf16.msra.mxu0 %v22440_v19 }
 0xa5f   : > { %14859 = vmatmul.mubr.f32.vlgmr.msra.gmra.mrb[36].mxu0 %v21764_v28 }
 0xa81   : > { %v15642_v24 = vpop.f32.mrb[26].mxu1 }
 0xa82   : > { %v15643_v55 = vpop.f32.mrb[27].mxu1 }
 0xa83   : > { %v15644_v54 = vadd.f32 %v15643_v55, %v15642_v24 }
 0xa89   : > { %v15607_v27 = vpop.f32.mrb[26].mxu0 }
 0xa8a   : > { %v15608_v14 = vpop.f32.mrb[27].mxu0 }
 0xa8b   : > { %v15609_v63 = vadd.f32 %v15608_v14, %v15607_v27 }
 0xa8d   : > { %v13353_v59 = vadd.f32 %v15609_v63, %v15066_v21 }
 0xa8f   : > { %v13585_v36 = vadd.f32 %v15644_v54, %v13353_v59 }
 0xaa1   : > { %v15712_v50 = vpop.f32.mrb[28].mxu1 }
 0xaa2   : > { %v15713_v37 = vpop.f32.mrb[29].mxu1 }
 0xaa3   : > { %v15714_v11 = vadd.f32 %v15713_v37, %v15712_v50 }
 0xaab   : > { %v15677_v34 = vpop.f32.mrb[28].mxu0 }
 0xaac   : > { %v15678_v46 = vpop.f32.mrb[29].mxu0 }
 0xaad   : > { %v15679_v42 = vadd.f32 %v15678_v46, %v15677_v34 }
 0xaaf   : > { %v13723_v15 = vadd.f32 %v15679_v42, %v13585_v36 }
 0xab1   : > { %v13831_v28 = vadd.f32 %v15714_v11, %v13723_v15 }
 0xac6   : > { %v15782_v26 = vpop.f32.mrb[30].mxu1 }
 0xac7   : > { %v15783_v47 = vpop.f32.mrb[31].mxu1 }
 0xac8   : > { %v15784_v61 = vadd.f32 %v15783_v47, %v15782_v26 }
 0xacc   : > { %v15747_v56 = vpop.f32.mrb[30].mxu0 }
 0xacd   : > { %v15748_v57 = vpop.f32.mrb[31].mxu0 }
 0xace   : > { %v15749_v49 = vadd.f32 %v15748_v57, %v15747_v56 }
 0xad0   : > { %v13999_v35 = vadd.f32 %v15749_v49, %v13831_v28 }
 0xad2   : > { %v14103_v52 = vadd.f32 %v15784_v61, %v13999_v35 }
 0xae9   : > { %v15852_v38 = vpop.f32.mrb[32].mxu1 }
 0xaea   : > { %v15853_v51 = vpop.f32.mrb[33].mxu1 }
 0xaeb   : > { %v15854_v29 = vadd.f32 %v15853_v51, %v15852_v38 }
 0xaf2   : > { %v15817_v5 = vpop.f32.mrb[32].mxu0 }
 0xaf3   : > { %v15818_v10 = vpop.f32.mrb[33].mxu0 }
 0xaf4   : > { %v15819_v6 = vadd.f32 %v15818_v10, %v15817_v5 }
 0xaf6   : > { %v14215_v4 = vadd.f32 %v15819_v6, %v14103_v52 }
 0xaf8   : > { %v14447_v33 = vadd.f32 %v15854_v29, %v14215_v4 }
 0xb09   : > { %v15922_v12 = vpop.f32.mrb[34].mxu1 }
 0xb0a   : > { %v15923_v53 = vpop.f32.mrb[35].mxu1 }
 0xb0b   : > { %v15924_v1 = vadd.f32 %v15923_v53, %v15922_v12 }
 0xb12   : > { %v15887_v25 = vpop.f32.mrb[34].mxu0 }
 0xb13   : > { %v15888_v62 = vpop.f32.mrb[35].mxu0 }
 0xb14   : > { %v15889_v32 = vadd.f32 %v15888_v62, %v15887_v25 }
 0xb16   : > { %v14585_v2 = vadd.f32 %v15889_v32, %v14447_v33 }
 0xb18   : > { %v14693_v0 = vadd.f32 %v15924_v1, %v14585_v2 }
 0xb29   : > { %v15992_v48 = vpop.f32.mrb[36].mxu1 }
 0xb2a   : > { %v15993_v41 = vpop.f32.mrb[37].mxu1 }
 0xb2b   : > { %v15994_v30 = vadd.f32 %v15993_v41, %v15992_v48 }
 0xb32   : > { %v15957_v18 = vpop.f32.mrb[36].mxu0 }
 0xb33   : > { %v15958_v16 = vpop.f32.mrb[37].mxu0 }
 0xb34   : > { %v15959_v44 = vadd.f32 %v15958_v16, %v15957_v18 }
 0xb36   : > { %v14861_v17 = vadd.f32 %v15959_v44, %v14693_v0 }
 0xb38   : > { %v14965_v40 = vadd.f32 %v15994_v30, %v14861_v17 }
 0xb3a   : > { %v14968_v60 = vadd.f32 %v14965_v40, %v22441_v8 }
 0xb3c   : > { %14969 = vst.msk [vmem:[%s539_s26] sm:$0xff] %vm547_vm0, %v14968_v60 }
 0xb3d   : > { %18415 = shalt.err (!%p18412_p3)
}
 0xb3e   : > { %s18416_s2 = scalar_lea.hbm %s21940_s21, 128  ;;  %s18420_s0 = scalar_lea.hbm %s22000_s17, 256 }
 0xb3f   : > { %p18417_p4 = scmp.ne.s32.totalorder %s21940_s21, %s18416_s2  ;;  %p18421_p9 = scmp.lt.u32.totalorder %s21940_s21, %s22000_s17 }
 0xb40   : > { %p18422_p10 = scmp.lt.u32.totalorder %s18420_s0, %s18416_s2  ;;  %p18424_p12 = scmp.lt.u32.totalorder %s18416_s2, %s21940_s21 }
 0xb41   : > { %p18418_p7 = pnand %p18417_p4, %p18598_p5 }
 0xb42   : > { %p18423_p11 = por %p18422_p10, %p18421_p9 }
 0xb43   : > { %p18419_p8 = pneg %p18418_p7 }
 0xb44   : > { %p18425_p13 = por %p18424_p12, %p18423_p11 }
 0xb46   : > { %p18426_p0 = pnand %p18425_p13, %p18419_p8 }
 0xb48   : > { %18429 = shalt.err (!%p18426_p0)
}
 0xb49   : > { %18335 = dma.vmem_to_hbm [thread:$0]  (%p18598_p5), %s21942_s18, 128, %s21940_s21, %s14971_s22  }
 0xb4a PF: > { %p18341_p1 = scmp.ge.s32.totalorder %s18464_s27, 2  ;;  %s14996_s3 = sand.u32 1, %s18452_s24  }
 0xb4b   : > { %s14997_s23 = scalar_lea.sflag [#allocation3], %s14996_s3 }
 0xb4c   : > { %p18338_p2 = pnand %p18341_p1, %p18602_p6 }
 0xb4e   : > { %18447 = dma.done.wait (!%p18338_p2), %s14997_s23, 128  }
 0xb4f   : > { %18449 = vsyncadd (!%p18338_p2), %s14997_s23, 4294967168  ;;  %s22442_s27 = sld [smem:[#allocation6_spill]]  ;;  %s22443_s29 = sld [smem:[#allocation5_spill]] }
 0xb50   : > { %s22444_s26 = sld [smem:[#allocation7_spill]]  ;;  %s22445_s24 = smov %s18456_s25 }
 0xb55   : > { %p27_p3 = scmp.ge.s32.totalorder %s22442_s27, 4   ;;  %s22446_s25 = smov %s22443_s29 }
 0xb57   :  { %29 = sbr.rel (!%p27_p3) target bundleno = 8 (0x8), region = 123 }
 0xb5e   :  { %15002 = vsyncpa [#allocation3], 1 }
 0xb5f   :  { %15004 = vsyncpa [#allocation3 + $0x1], 1 }

</bundles_post_ra>
